<compile_context>
chip_gen: v7x
topology: tpu7x:2x2x1
jax: 0.10.0
libtpu: 0.0.40
codegen_flags: <defaults>
</compile_context>

<pallas_src>
import functools
import math

import jax
import jax.numpy as jnp
from jax.experimental import pallas as pl
from jax.experimental.pallas import tpu as pltpu

_BN_EPS = 1e-5
_VMEM_LIMIT = 32 * 1024 * 1024      # explicit VMEM budget (safe on v5e/v6e/v7x)
_NEG = -1e30                        # -inf stand-in, bf16 representable


def _rup(x, m):
    return (x + m - 1) // m * m


def _cpad(c):
    return max(128, _rup(c, 128))


# ----------------------------------------------------------------------------
# Tiled GEMM kernel (1x1x1 convs + fc):  out = act(x @ w + bias [+ residual])
# ----------------------------------------------------------------------------
def _make_gemm_kernel(relu, has_res):
    def kernel(*refs):
        if has_res:
            x_ref, w_ref, b_ref, r_ref, o_ref, acc_ref = refs
        else:
            x_ref, w_ref, b_ref, o_ref, acc_ref = refs
            r_ref = None
        k = pl.program_id(2)

        @pl.when(k == 0)
        def _():
            acc_ref[...] = jnp.zeros_like(acc_ref)

        acc_ref[...] += jnp.dot(x_ref[...], w_ref[...],
                                preferred_element_type=jnp.float32)

        @pl.when(k == pl.num_programs(2) - 1)
        def _():
            out = acc_ref[...] + b_ref[...]
            if r_ref is not None:
                out = out + r_ref[...].astype(jnp.float32)
            if relu:
                out = jnp.maximum(out, 0.0)
            o_ref[...] = out.astype(o_ref.dtype)

    return kernel


def gemm_bias_act(x, w, bias, residual=None, relu=True,
                  out_dtype=jnp.bfloat16):
    """x: [M, K] bf16; w: [K, N] bf16 (BN scale pre-folded); bias: [N] f32."""
    M, K = x.shape
    Kw, Nout = w.shape
    assert K == Kw and K % 128 == 0 and Nout % 128 == 0
    Mp = _rup(M, 8)
    if Mp != M:
        x = jnp.pad(x, ((0, Mp - M), (0, 0)))
        if residual is not None:
            residual = jnp.pad(residual, ((0, Mp - M), (0, 0)))
    if Mp % 256 == 0:
        TM = 256
    elif Mp % 128 == 0:
        TM = 128
    else:
        TM = Mp
    TN = 256 if Nout % 256 == 0 else 128
    if K % 512 == 0:
        TK = 512
    elif K % 256 == 0:
        TK = 256
    else:
        TK = 128
    bias2 = bias.reshape(1, Nout).astype(jnp.float32)

    in_specs = [
        pl.BlockSpec((TM, TK), lambda i, j, k: (i, k)),
        pl.BlockSpec((TK, TN), lambda i, j, k: (k, j)),
        pl.BlockSpec((1, TN), lambda i, j, k: (0, j)),
    ]
    args = [x, w, bias2]
    if residual is not None:
        in_specs.append(pl.BlockSpec((TM, TN), lambda i, j, k: (i, j)))
        args.append(residual)

    out = pl.pallas_call(
        _make_gemm_kernel(relu, residual is not None),
        out_shape=jax.ShapeDtypeStruct((Mp, Nout), out_dtype),
        grid=(Mp // TM, Nout // TN, K // TK),
        in_specs=in_specs,
        out_specs=pl.BlockSpec((TM, TN), lambda i, j, k: (i, j)),
        scratch_shapes=[pltpu.VMEM((TM, TN), jnp.float32)],
        compiler_params=pltpu.CompilerParams(
            dimension_semantics=("parallel", "parallel", "arbitrary"),
            vmem_limit_bytes=_VMEM_LIMIT),
    )(*args)
    return out if Mp == M else out[:M]


# ----------------------------------------------------------------------------
# Implicit-GEMM "band" machinery for kxkxk convs and maxpool
# ----------------------------------------------------------------------------
def _band_prep(x, kshape, stride, padding, pad_value):
    """Pad + phase-rearrange x [N,D,H,W,C] -> [N, Dp, P*Lpad, C].

    For output (do, ho, wo) and tap (id, ih, iw), the needed input element
    lives at D-plane (do*sd + id), phase (ih%sh, iw%sw), flat offset
    base(ih,iw) + (ho*Wq + wo).  So each (n, d-plane) block lets the kernel
    grab the whole H/W window of a tap with a single static contiguous slice.
    """
    N, D, H, W, C = x.shape
    kd, kh, kw = kshape
    sd, sh, sw = stride
    pd, ph, pw = padding
    Do = (D + 2 * pd - kd) // sd + 1
    Ho = (H + 2 * ph - kh) // sh + 1
    Wo = (W + 2 * pw - kw) // sw + 1
    Dp = D + 2 * pd
    Hp = _rup(H + 2 * ph, sh)
    Wp = _rup(W + 2 * pw, sw)
    Hq, Wq, P = Hp // sh, Wp // sw, sh * sw
    LB = _rup(Ho * Wq, 8)
    base_max = ((kh - 1) // sh) * Wq + (kw - 1) // sw
    Lpad = _rup(max(Hq * Wq, base_max + LB), 8)

    xp = jnp.pad(x, ((0, 0), (pd, pd), (ph, Hp - H - ph), (pw, Wp - W - pw),
                     (0, 0)), constant_values=pad_value)
    xp = xp.reshape(N, Dp, Hq, sh, Wq, sw, C)
    xp = jnp.transpose(xp, (0, 1, 3, 5, 2, 4, 6)).reshape(N, Dp, P, Hq * Wq, C)
    if Lpad > Hq * Wq:
        xp = jnp.pad(xp, ((0, 0), (0, 0), (0, 0), (0, Lpad - Hq * Wq), (0, 0)),
                     constant_values=pad_value)
    elif Lpad < Hq * Wq:
        xp = xp[:, :, :, :Lpad, :]
    xp = xp.reshape(N, Dp, P * Lpad, C)
    meta = dict(Do=Do, Ho=Ho, Wo=Wo, Dp=Dp, Wq=Wq, P=P, LB=LB, Lpad=Lpad)
    return xp, meta


def _band_to_spatial(band, meta):
    """band [N, Do, LB, C] -> [N, Do, Ho, Wo, C] (drop junk band columns)."""
    N, Do = band.shape[0], band.shape[1]
    Ho, Wo, Wq = meta["Ho"], meta["Wo"], meta["Wq"]
    out = band[:, :, :Ho * Wq, :].reshape(N, Do, Ho, Wq, band.shape[-1])
    return out[:, :, :, :Wo, :]


def _convk_kernel(x_ref, w_ref, b_ref, o_ref, acc_ref, *,
                  kh, kw, sh, sw, Wq, LB, Lpad, relu):
    t = pl.program_id(3)          # D-tap (reduction) axis

    @pl.when(t == 0)
    def _():
        acc_ref[...] = jnp.zeros_like(acc_ref)

    acc = acc_ref[...]
    for ih in range(kh):          # static unroll of H/W taps, all in VMEM
        for iw in range(kw):
            phase = (ih % sh) * sw + (iw % sw)
            base = phase * Lpad + (ih // sh) * Wq + (iw // sw)
            lhs = x_ref[pl.ds(base, LB), :]
            acc = acc + jnp.dot(lhs, w_ref[ih * kw + iw],
                                preferred_element_type=jnp.float32)
    acc_ref[...] = acc

    @pl.when(t == pl.num_programs(3) - 1)
    def _():
        out = acc_ref[...] + b_ref[...]
        if relu:
            out = jnp.maximum(out, 0.0)
        o_ref[...] = out.astype(o_ref.dtype)


def conv_knn_bias_act(x, wmat, bias, kshape, stride, padding, relu=True):
    """x: [N,D,H,W,Ci] bf16; wmat: [kd, kh*kw, Ci, Co] bf16 (scale folded)."""
    N, Ci = x.shape[0], x.shape[-1]
    kd, kh, kw = kshape
    sd, sh, sw = stride
    Co = wmat.shape[-1]
    xp, m = _band_prep(x, kshape, stride, padding, 0.0)
    Do, LB, Lpad, P, Wq = m["Do"], m["LB"], m["Lpad"], m["P"], m["Wq"]
    TN = 256 if Co % 256 == 0 else 128
    bias2 = bias.reshape(1, Co).astype(jnp.float32)

    kernel = functools.partial(_convk_kernel, kh=kh, kw=kw, sh=sh, sw=sw,
                               Wq=Wq, LB=LB, Lpad=Lpad, relu=relu)
    band = pl.pallas_call(
        kernel,
        out_shape=jax.ShapeDtypeStruct((N, Do, LB, Co), jnp.bfloat16),
        grid=(N, Do, Co // TN, kd),
        in_specs=[
            pl.BlockSpec((None, None, P * Lpad, Ci),
                         lambda n, do, oc, t: (n, do * sd + t, 0, 0)),
            pl.BlockSpec((None, kh * kw, Ci, TN),
                         lambda n, do, oc, t: (t, 0, 0, oc)),
            pl.BlockSpec((1, TN), lambda n, do, oc, t: (0, oc)),
        ],
        out_specs=pl.BlockSpec((None, None, LB, TN),
                               lambda n, do, oc, t: (n, do, 0, oc)),
        scratch_shapes=[pltpu.VMEM((LB, TN), jnp.float32)],
        compiler_params=pltpu.CompilerParams(
            dimension_semantics=("parallel", "parallel", "parallel",
                                 "arbitrary"),
            vmem_limit_bytes=_VMEM_LIMIT),
    )(xp, wmat, bias2)
    return _band_to_spatial(band, m)


def _maxpool_kernel(x_ref, o_ref, acc_ref, *, kh, kw, sh, sw, Wq, LB, Lpad):
    t = pl.program_id(2)

    @pl.when(t == 0)
    def _():
        acc_ref[...] = jnp.full(acc_ref.shape, _NEG, jnp.float32)

    acc = acc_ref[...]
    for ih in range(kh):
        for iw in range(kw):
            phase = (ih % sh) * sw + (iw % sw)
            base = phase * Lpad + (ih // sh) * Wq + (iw // sw)
            acc = jnp.maximum(acc,
                              x_ref[pl.ds(base, LB), :].astype(jnp.float32))
    acc_ref[...] = acc

    @pl.when(t == pl.num_programs(2) - 1)
    def _():
        o_ref[...] = acc_ref[...].astype(o_ref.dtype)


def maxpool3d(x, stride=(1, 2, 2)):
    """nn.MaxPool3d(kernel_size=3, stride=stride, padding=1)."""
    N, C = x.shape[0], x.shape[-1]
    kd, kh, kw = 3, 3, 3
    sd, sh, sw = stride
    xp, m = _band_prep(x, (kd, kh, kw), stride, (1, 1, 1), _NEG)
    Do, LB, Lpad, P, Wq = m["Do"], m["LB"], m["Lpad"], m["P"], m["Wq"]
    kernel = functools.partial(_maxpool_kernel, kh=kh, kw=kw, sh=sh, sw=sw,
                               Wq=Wq, LB=LB, Lpad=Lpad)
    band = pl.pallas_call(
        kernel,
        out_shape=jax.ShapeDtypeStruct((N, Do, LB, C), x.dtype),
        grid=(N, Do, kd),
        in_specs=[pl.BlockSpec((None, None, P * Lpad, C),
                               lambda n, do, t: (n, do * sd + t, 0, 0))],
        out_specs=pl.BlockSpec((None, None, LB, C),
                               lambda n, do, t: (n, do, 0, 0)),
        scratch_shapes=[pltpu.VMEM((LB, C), jnp.float32)],
        compiler_params=pltpu.CompilerParams(
            dimension_semantics=("parallel", "parallel", "arbitrary"),
            vmem_limit_bytes=_VMEM_LIMIT),
    )(xp)
    return _band_to_spatial(band, m)


# ----------------------------------------------------------------------------
# Global average pool (AdaptiveAvgPool3d((1,1,1))), tiled over spatial axis
# ----------------------------------------------------------------------------
def _avgpool_kernel(x_ref, o_ref, acc_ref, *, inv_s):
    s = pl.program_id(1)

    @pl.when(s == 0)
    def _():
        acc_ref[...] = jnp.zeros_like(acc_ref)

    acc_ref[...] += jnp.sum(x_ref[...].astype(jnp.float32), axis=1)

    @pl.when(s == pl.num_programs(1) - 1)
    def _():
        o_ref[...] = (acc_ref[...] * inv_s).astype(o_ref.dtype)


def global_avgpool(x):
    N, D, H, W, C = x.shape
    S = D * H * W
    xr = x.reshape(N, S, C)
    Sp = _rup(S, 8)
    if Sp != S:
        xr = jnp.pad(xr, ((0, 0), (0, Sp - S), (0, 0)))
    if Sp <= 512:
        TS = Sp
    elif Sp % 512 == 0:
        TS = 512
    elif Sp % 256 == 0:
        TS = 256
    elif Sp % 128 == 0:
        TS = 128
    else:
        TS = 8
    out = pl.pallas_call(
        functools.partial(_avgpool_kernel, inv_s=1.0 / float(S)),
        out_shape=jax.ShapeDtypeStruct((N, C), jnp.bfloat16),
        grid=(N, Sp // TS),
        in_specs=[pl.BlockSpec((1, TS, C), lambda n, s: (n, s, 0))],
        out_specs=pl.BlockSpec((1, C), lambda n, s: (n, 0)),
        scratch_shapes=[pltpu.VMEM((1, C), jnp.float32)],
        compiler_params=pltpu.CompilerParams(
            dimension_semantics=("parallel", "arbitrary"),
            vmem_limit_bytes=_VMEM_LIMIT),
    )(xr)
    return out


# ----------------------------------------------------------------------------
# parameter construction (deterministic, mirrors nn.Module __init__)
# BN is folded (gamma=1, beta=0, mean=0, var=1, eps=1e-5) into the weights.
# Weights are pre-transposed / padded to kernel GEMM layout once, in bf16.
# ----------------------------------------------------------------------------
def _bn_fold(c):
    scale = jnp.full((c,), 1.0 / math.sqrt(1.0 + _BN_EPS), jnp.float32)
    bias = jnp.zeros((_cpad(c),), jnp.float32)
    return scale, bias


def _kaiming_conv(key, out_c, in_c, kd, kh, kw):
    fan_out = out_c * kd * kh * kw
    std = math.sqrt(2.0 / fan_out)
    return jax.random.normal(key, (out_c, in_c, kd, kh, kw), jnp.float32) * std


def _fold_conv1x1(w, scale):
    O, I = w.shape[0], w.shape[1]
    wg = (w.reshape(O, I) * scale[:, None]).T                     # [I, O]
    wg = jnp.pad(wg, ((0, _cpad(I) - I), (0, _cpad(O) - O)))
    return wg.astype(jnp.bfloat16)


def _fold_convk(w, scale):
    O, I, kd, kh, kw = w.shape
    wt = jnp.transpose(w, (2, 3, 4, 1, 0)) * scale                # [kd,kh,kw,I,O]
    wt = wt.reshape(kd, kh * kw, I, O)
    wt = jnp.pad(wt, ((0, 0), (0, 0), (0, _cpad(I) - I), (0, _cpad(O) - O)))
    return wt.astype(jnp.bfloat16)


def init_resnet_params(key, in_channels, num_classes, layers, features, k):
    keys = jax.random.split(key, 256)
    ki = iter(range(256))
    params = {}

    sc, bb = _bn_fold(64)
    params["stem_w"] = _fold_convk(
        _kaiming_conv(keys[next(ki)], 64, in_channels, 7, 7, 7), sc)
    params["stem_b"] = bb

    inplanes = 64
    strides = (1, 2, 2, 2)
    layer_params = []
    for li, (nblk, stride) in enumerate(zip(layers, strides)):
        planes = features * (2 ** li)
        blocks = []
        for bi in range(nblk * k):
            s = stride if bi == 0 else 1
            width = planes  # base_width=64, groups=1
            blk = {"stride": s}
            sc1, bb1 = _bn_fold(width)
            blk["conv1_w"] = _fold_conv1x1(
                _kaiming_conv(keys[next(ki)], width, inplanes, 1, 1, 1), sc1)
            blk["conv1_b"] = bb1
            sc2, bb2 = _bn_fold(width)
            # TODO(synk): conv2 stands in for the external TSSTA `module`.
            blk["conv2_w"] = _fold_convk(
                _kaiming_conv(keys[next(ki)], width, width, 3, 3, 3), sc2)
            blk["conv2_b"] = bb2
            sc3, bb3 = _bn_fold(planes * 4)
            blk["conv3_w"] = _fold_conv1x1(
                _kaiming_conv(keys[next(ki)], planes * 4, width, 1, 1, 1), sc3)
            blk["conv3_b"] = bb3
            if s != 1 or inplanes != planes * 4:
                scd, bbd = _bn_fold(planes * 4)
                blk["down_w"] = _fold_convk(
                    _kaiming_conv(keys[next(ki)], planes * 4, inplanes,
                                  3, 3, 3), scd)
                blk["down_b"] = bbd
            inplanes = planes * 4
            blocks.append(blk)
        layer_params.append(blocks)
    params["layers"] = layer_params

    fan_in = features * 8 * 4
    bound = 1.0 / math.sqrt(fan_in)
    fc_w = jax.random.uniform(keys[next(ki)], (num_classes, fan_in),
                              jnp.float32, -bound, bound)
    fc_b = jax.random.uniform(keys[next(ki)], (num_classes,),
                              jnp.float32, -bound, bound)
    params["fc_w"] = jnp.pad(
        fc_w.T, ((0, _cpad(fan_in) - fan_in),
                 (0, _cpad(num_classes) - num_classes))).astype(jnp.bfloat16)
    params["fc_b"] = jnp.pad(fc_b, (0, _cpad(num_classes) - num_classes))
    return params


# ----------------------------------------------------------------------------
# forward pass
# ----------------------------------------------------------------------------
def bottleneck_forward(x, blk):
    s = blk["stride"]
    N, D, H, W, C = x.shape
    identity = x
    # conv1 (1x1x1) + bn + relu : pure GEMM, no im2col
    out = gemm_bias_act(x.reshape(N * D * H * W, C),
                        blk["conv1_w"], blk["conv1_b"], relu=True)
    out = out.reshape(N, D, H, W, -1)
    # conv2 (3x3x3 TSSTA stand-in) + bn + relu : implicit-GEMM band conv
    out = conv_knn_bias_act(out, blk["conv2_w"], blk["conv2_b"],
                            kshape=(3, 3, 3), stride=(s, s, s),
                            padding=(1, 1, 1), relu=True)
    if "down_w" in blk:  # downsample = conv3x3(stride s) + bn  (per spec)
        identity = conv_knn_bias_act(x, blk["down_w"], blk["down_b"],
                                     kshape=(3, 3, 3), stride=(s, s, s),
                                     padding=(1, 1, 1), relu=False)
    No, Do, Ho, Wo, Cw = out.shape
    Co = blk["conv3_w"].shape[-1]
    # conv3 (1x1x1) + bn + residual add + relu fused in one GEMM kernel
    out = gemm_bias_act(out.reshape(No * Do * Ho * Wo, Cw),
                        blk["conv3_w"], blk["conv3_b"],
                        residual=identity.reshape(No * Do * Ho * Wo, Co),
                        relu=True)
    return out.reshape(No, Do, Ho, Wo, Co)


def resnet_forward(x_ncdhw, params, num_classes):
    # NCDHW (PyTorch) -> NDHWC, pad channels to 128 once, cast to bf16 once.
    x = jnp.transpose(x_ncdhw, (0, 2, 3, 4, 1)).astype(jnp.float32)
    cin = x.shape[-1]
    x = jnp.pad(x, ((0, 0),) * 4 + ((0, _cpad(cin) - cin),)).astype(jnp.bfloat16)
    # stem: Conv3d(k=7, stride=(1,2,2), pad=3) + BN + ReLU
    x = conv_knn_bias_act(x, params["stem_w"], params["stem_b"],
                          kshape=(7, 7, 7), stride=(1, 2, 2),
                          padding=(3, 3, 3), relu=True)
    # MaxPool3d(k=3, stride=(1,2,2), pad=1)
    x = maxpool3d(x, stride=(1, 2, 2))
    for layer in params["layers"]:
        for blk in layer:
            x = bottleneck_forward(x, blk)
    pooled = global_avgpool(x)                 # [N, Cp]
    # Dropout(p=0.0) is the identity.
    logits = gemm_bias_act(pooled, params["fc_w"], params["fc_b"],
                           relu=False, out_dtype=jnp.float32)
    return logits[:, :num_classes]


# ----------------------------------------------------------------------------
# main
# ----------------------------------------------------------------------------
if __name__ == "__main__":
    key = jax.random.PRNGKey(0)
    k_x, k_p = jax.random.split(key)

    # small config: layers=[1,1,1,1], k=1, features=8, 5 classes
    IN_CHANNELS, NUM_CLASSES, FEATURES, K = 3, 5, 8, 1
    LAYERS = (1, 1, 1, 1)

    x = jax.random.normal(k_x, (2, IN_CHANNELS, 4, 16, 16), jnp.float32)  # NCDHW
    params = init_resnet_params(k_p, IN_CHANNELS, NUM_CLASSES, LAYERS,
                                FEATURES, K)

    logits = resnet_forward(x, params, NUM_CLASSES)
    logits = jax.block_until_ready(logits)
    assert logits.shape == (2, NUM_CLASSES), logits.shape
    assert bool(jnp.all(jnp.isfinite(logits)))
    print("KERNEL_OK")
</pallas_src>

<mosaic_0001>
module attributes {stable_mosaic.version = 11 : i64} {
  func.func @_convk_kernel(%arg0: i32, %arg1: i32, %arg2: i32, %arg3: i32, %arg4: memref<1x1x512x128xbf16, #tpu.memory_space<vmem>>, %arg5: memref<1x49x128x128xbf16, #tpu.memory_space<vmem>>, %arg6: memref<1x128xf32, #tpu.memory_space<vmem>>, %arg7: memref<1x1x88x128xbf16, #tpu.memory_space<vmem>>, %arg8: memref<88x128xf32, #tpu.memory_space<vmem>>) attributes {dimension_semantics = [#tpu.dimension_semantics<parallel>, #tpu.dimension_semantics<parallel>, #tpu.dimension_semantics<parallel>, #tpu.dimension_semantics<arbitrary>], iteration_bounds = array<i64: 2, 4, 1, 7>, scalar_prefetch = 0 : i64, scratch_operands = 1 : i64, tpu.core_type = #tpu.core_type<tc>, window_params = [{transform_indices = @transform_0, window_bounds = array<i64: 1, 1, 512, 128>}, {transform_indices = @transform_1, window_bounds = array<i64: 1, 49, 128, 128>}, {transform_indices = @transform_2, window_bounds = array<i64: 1, 128>}, {transform_indices = @transform_3, window_bounds = array<i64: 1, 1, 88, 128>}]} {
    %c0_i32 = arith.constant 0 : i32
    %0 = arith.cmpi eq, %arg3, %c0_i32 : i32
    %1 = arith.extui %0 : i1 to i32
    %c0_i32_0 = arith.constant 0 : i32
    %2 = arith.cmpi ne, %1, %c0_i32_0 : i32
    scf.if %2 {
      %cst_364 = arith.constant 0.000000e+00 : f32
      %302 = vector.broadcast %cst_364 : f32 to vector<88x128xf32>
      %c0_365 = arith.constant 0 : index
      %c0_366 = arith.constant 0 : index
      %303 = vector.load %arg8[%c0_365, %c0_366] : memref<88x128xf32, #tpu.memory_space<vmem>>, vector<88x128xf32>
      tpu.vector_store %arg8[%c0_365, %c0_366], %302 {strides = array<i32>} : memref<88x128xf32, #tpu.memory_space<vmem>>, vector<88x128xf32>,
    } else {
    }
    %c0 = arith.constant 0 : index
    %c0_1 = arith.constant 0 : index
    %3 = vector.load %arg8[%c0, %c0_1] : memref<88x128xf32, #tpu.memory_space<vmem>>, vector<88x128xf32>
    %c0_2 = arith.constant 0 : index
    %c0_3 = arith.constant 0 : index
    %c0_4 = arith.constant 0 : index
    %c0_5 = arith.constant 0 : index
    %4 = vector.load %arg4[%c0_2, %c0_3, %c0_4, %c0_5] : memref<1x1x512x128xbf16, #tpu.memory_space<vmem>>, vector<1x1x88x128xbf16>
    %5 = vector.shape_cast %4 : vector<1x1x88x128xbf16> to vector<88x128xbf16>
    %c0_6 = arith.constant 0 : index
    %c0_7 = arith.constant 0 : index
    %c0_8 = arith.constant 0 : index
    %c0_9 = arith.constant 0 : index
    %6 = vector.load %arg5[%c0_6, %c0_7, %c0_8, %c0_9] : memref<1x49x128x128xbf16, #tpu.memory_space<vmem>>, vector<1x1x128x128xbf16>
    %7 = vector.shape_cast %6 : vector<1x1x128x128xbf16> to vector<128x128xbf16>
    %cst = arith.constant dense<0.000000e+00> : vector<88x128xf32>
    %8 = tpu.matmul %5, %7, %cst {dimension_numbers = #tpu.dot_dimension_numbers<[1], [0], [0], [1], [0, 0, 1, 1], [], []>} : vector<88x128xbf16>, vector<128x128xbf16>, vector<88x128xf32> -> vector<88x128xf32>
    %9 = arith.addf %3, %8 : vector<88x128xf32>
    %c0_10 = arith.constant 0 : index
    %c0_11 = arith.constant 0 : index
    %c128 = arith.constant 128 : index
    %c0_12 = arith.constant 0 : index
    %10 = vector.load %arg4[%c0_10, %c0_11, %c128, %c0_12] : memref<1x1x512x128xbf16, #tpu.memory_space<vmem>>, vector<1x1x88x128xbf16>
    %11 = vector.shape_cast %10 : vector<1x1x88x128xbf16> to vector<88x128xbf16>
    %c0_13 = arith.constant 0 : index
    %c1 = arith.constant 1 : index
    %c0_14 = arith.constant 0 : index
    %c0_15 = arith.constant 0 : index
    %12 = vector.load %arg5[%c0_13, %c1, %c0_14, %c0_15] : memref<1x49x128x128xbf16, #tpu.memory_space<vmem>>, vector<1x1x128x128xbf16>
    %13 = vector.shape_cast %12 : vector<1x1x128x128xbf16> to vector<128x128xbf16>
    %cst_16 = arith.constant dense<0.000000e+00> : vector<88x128xf32>
    %14 = tpu.matmul %11, %13, %cst_16 {dimension_numbers = #tpu.dot_dimension_numbers<[1], [0], [0], [1], [0, 0, 1, 1], [], []>} : vector<88x128xbf16>, vector<128x128xbf16>, vector<88x128xf32> -> vector<88x128xf32>
    %15 = arith.addf %9, %14 : vector<88x128xf32>
    %c0_17 = arith.constant 0 : index
    %c0_18 = arith.constant 0 : index
    %c1_19 = arith.constant 1 : index
    %c0_20 = arith.constant 0 : index
    %16 = vector.load %arg4[%c0_17, %c0_18, %c1_19, %c0_20] : memref<1x1x512x128xbf16, #tpu.memory_space<vmem>>, vector<1x1x88x128xbf16>
    %17 = vector.shape_cast %16 : vector<1x1x88x128xbf16> to vector<88x128xbf16>
    %c0_21 = arith.constant 0 : index
    %c2 = arith.constant 2 : index
    %c0_22 = arith.constant 0 : index
    %c0_23 = arith.constant 0 : index
    %18 = vector.load %arg5[%c0_21, %c2, %c0_22, %c0_23] : memref<1x49x128x128xbf16, #tpu.memory_space<vmem>>, vector<1x1x128x128xbf16>
    %19 = vector.shape_cast %18 : vector<1x1x128x128xbf16> to vector<128x128xbf16>
    %cst_24 = arith.constant dense<0.000000e+00> : vector<88x128xf32>
    %20 = tpu.matmul %17, %19, %cst_24 {dimension_numbers = #tpu.dot_dimension_numbers<[1], [0], [0], [1], [0, 0, 1, 1], [], []>} : vector<88x128xbf16>, vector<128x128xbf16>, vector<88x128xf32> -> vector<88x128xf32>
    %21 = arith.addf %15, %20 : vector<88x128xf32>
    %c0_25 = arith.constant 0 : index
    %c0_26 = arith.constant 0 : index
    %c129 = arith.constant 129 : index
    %c0_27 = arith.constant 0 : index
    %22 = vector.load %arg4[%c0_25, %c0_26, %c129, %c0_27] : memref<1x1x512x128xbf16, #tpu.memory_space<vmem>>, vector<1x1x88x128xbf16>
    %23 = vector.shape_cast %22 : vector<1x1x88x128xbf16> to vector<88x128xbf16>
    %c0_28 = arith.constant 0 : index
    %c3 = arith.constant 3 : index
    %c0_29 = arith.constant 0 : index
    %c0_30 = arith.constant 0 : index
    %24 = vector.load %arg5[%c0_28, %c3, %c0_29, %c0_30] : memref<1x49x128x128xbf16, #tpu.memory_space<vmem>>, vector<1x1x128x128xbf16>
    %25 = vector.shape_cast %24 : vector<1x1x128x128xbf16> to vector<128x128xbf16>
    %cst_31 = arith.constant dense<0.000000e+00> : vector<88x128xf32>
    %26 = tpu.matmul %23, %25, %cst_31 {dimension_numbers = #tpu.dot_dimension_numbers<[1], [0], [0], [1], [0, 0, 1, 1], [], []>} : vector<88x128xbf16>, vector<128x128xbf16>, vector<88x128xf32> -> vector<88x128xf32>
    %27 = arith.addf %21, %26 : vector<88x128xf32>
    %c0_32 = arith.constant 0 : index
    %c0_33 = arith.constant 0 : index
    %c2_34 = arith.constant 2 : index
    %c0_35 = arith.constant 0 : index
    %28 = vector.load %arg4[%c0_32, %c0_33, %c2_34, %c0_35] : memref<1x1x512x128xbf16, #tpu.memory_space<vmem>>, vector<1x1x88x128xbf16>
    %29 = vector.shape_cast %28 : vector<1x1x88x128xbf16> to vector<88x128xbf16>
    %c0_36 = arith.constant 0 : index
    %c4 = arith.constant 4 : index
    %c0_37 = arith.constant 0 : index
    %c0_38 = arith.constant 0 : index
    %30 = vector.load %arg5[%c0_36, %c4, %c0_37, %c0_38] : memref<1x49x128x128xbf16, #tpu.memory_space<vmem>>, vector<1x1x128x128xbf16>
    %31 = vector.shape_cast %30 : vector<1x1x128x128xbf16> to vector<128x128xbf16>
    %cst_39 = arith.constant dense<0.000000e+00> : vector<88x128xf32>
    %32 = tpu.matmul %29, %31, %cst_39 {dimension_numbers = #tpu.dot_dimension_numbers<[1], [0], [0], [1], [0, 0, 1, 1], [], []>} : vector<88x128xbf16>, vector<128x128xbf16>, vector<88x128xf32> -> vector<88x128xf32>
    %33 = arith.addf %27, %32 : vector<88x128xf32>
    %c0_40 = arith.constant 0 : index
    %c0_41 = arith.constant 0 : index
    %c130 = arith.constant 130 : index
    %c0_42 = arith.constant 0 : index
    %34 = vector.load %arg4[%c0_40, %c0_41, %c130, %c0_42] : memref<1x1x512x128xbf16, #tpu.memory_space<vmem>>, vector<1x1x88x128xbf16>
    %35 = vector.shape_cast %34 : vector<1x1x88x128xbf16> to vector<88x128xbf16>
    %c0_43 = arith.constant 0 : index
    %c5 = arith.constant 5 : index
    %c0_44 = arith.constant 0 : index
    %c0_45 = arith.constant 0 : index
    %36 = vector.load %arg5[%c0_43, %c5, %c0_44, %c0_45] : memref<1x49x128x128xbf16, #tpu.memory_space<vmem>>, vector<1x1x128x128xbf16>
    %37 = vector.shape_cast %36 : vector<1x1x128x128xbf16> to vector<128x128xbf16>
    %cst_46 = arith.constant dense<0.000000e+00> : vector<88x128xf32>
    %38 = tpu.matmul %35, %37, %cst_46 {dimension_numbers = #tpu.dot_dimension_numbers<[1], [0], [0], [1], [0, 0, 1, 1], [], []>} : vector<88x128xbf16>, vector<128x128xbf16>, vector<88x128xf32> -> vector<88x128xf32>
    %39 = arith.addf %33, %38 : vector<88x128xf32>
    %c0_47 = arith.constant 0 : index
    %c0_48 = arith.constant 0 : index
    %c3_49 = arith.constant 3 : index
    %c0_50 = arith.constant 0 : index
    %40 = vector.load %arg4[%c0_47, %c0_48, %c3_49, %c0_50] : memref<1x1x512x128xbf16, #tpu.memory_space<vmem>>, vector<1x1x88x128xbf16>
    %41 = vector.shape_cast %40 : vector<1x1x88x128xbf16> to vector<88x128xbf16>
    %c0_51 = arith.constant 0 : index
    %c6 = arith.constant 6 : index
    %c0_52 = arith.constant 0 : index
    %c0_53 = arith.constant 0 : index
    %42 = vector.load %arg5[%c0_51, %c6, %c0_52, %c0_53] : memref<1x49x128x128xbf16, #tpu.memory_space<vmem>>, vector<1x1x128x128xbf16>
    %43 = vector.shape_cast %42 : vector<1x1x128x128xbf16> to vector<128x128xbf16>
    %cst_54 = arith.constant dense<0.000000e+00> : vector<88x128xf32>
    %44 = tpu.matmul %41, %43, %cst_54 {dimension_numbers = #tpu.dot_dimension_numbers<[1], [0], [0], [1], [0, 0, 1, 1], [], []>} : vector<88x128xbf16>, vector<128x128xbf16>, vector<88x128xf32> -> vector<88x128xf32>
    %45 = arith.addf %39, %44 : vector<88x128xf32>
    %c0_55 = arith.constant 0 : index
    %c0_56 = arith.constant 0 : index
    %c256 = arith.constant 256 : index
    %c0_57 = arith.constant 0 : index
    %46 = vector.load %arg4[%c0_55, %c0_56, %c256, %c0_57] : memref<1x1x512x128xbf16, #tpu.memory_space<vmem>>, vector<1x1x88x128xbf16>
    %47 = vector.shape_cast %46 : vector<1x1x88x128xbf16> to vector<88x128xbf16>
    %c0_58 = arith.constant 0 : index
    %c7 = arith.constant 7 : index
    %c0_59 = arith.constant 0 : index
    %c0_60 = arith.constant 0 : index
    %48 = vector.load %arg5[%c0_58, %c7, %c0_59, %c0_60] : memref<1x49x128x128xbf16, #tpu.memory_space<vmem>>, vector<1x1x128x128xbf16>
    %49 = vector.shape_cast %48 : vector<1x1x128x128xbf16> to vector<128x128xbf16>
    %cst_61 = arith.constant dense<0.000000e+00> : vector<88x128xf32>
    %50 = tpu.matmul %47, %49, %cst_61 {dimension_numbers = #tpu.dot_dimension_numbers<[1], [0], [0], [1], [0, 0, 1, 1], [], []>} : vector<88x128xbf16>, vector<128x128xbf16>, vector<88x128xf32> -> vector<88x128xf32>
    %51 = arith.addf %45, %50 : vector<88x128xf32>
    %c0_62 = arith.constant 0 : index
    %c0_63 = arith.constant 0 : index
    %c384 = arith.constant 384 : index
    %c0_64 = arith.constant 0 : index
    %52 = vector.load %arg4[%c0_62, %c0_63, %c384, %c0_64] : memref<1x1x512x128xbf16, #tpu.memory_space<vmem>>, vector<1x1x88x128xbf16>
    %53 = vector.shape_cast %52 : vector<1x1x88x128xbf16> to vector<88x128xbf16>
    %c0_65 = arith.constant 0 : index
    %c8 = arith.constant 8 : index
    %c0_66 = arith.constant 0 : index
    %c0_67 = arith.constant 0 : index
    %54 = vector.load %arg5[%c0_65, %c8, %c0_66, %c0_67] : memref<1x49x128x128xbf16, #tpu.memory_space<vmem>>, vector<1x1x128x128xbf16>
    %55 = vector.shape_cast %54 : vector<1x1x128x128xbf16> to vector<128x128xbf16>
    %cst_68 = arith.constant dense<0.000000e+00> : vector<88x128xf32>
    %56 = tpu.matmul %53, %55, %cst_68 {dimension_numbers = #tpu.dot_dimension_numbers<[1], [0], [0], [1], [0, 0, 1, 1], [], []>} : vector<88x128xbf16>, vector<128x128xbf16>, vector<88x128xf32> -> vector<88x128xf32>
    %57 = arith.addf %51, %56 : vector<88x128xf32>
    %c0_69 = arith.constant 0 : index
    %c0_70 = arith.constant 0 : index
    %c257 = arith.constant 257 : index
    %c0_71 = arith.constant 0 : index
    %58 = vector.load %arg4[%c0_69, %c0_70, %c257, %c0_71] : memref<1x1x512x128xbf16, #tpu.memory_space<vmem>>, vector<1x1x88x128xbf16>
    %59 = vector.shape_cast %58 : vector<1x1x88x128xbf16> to vector<88x128xbf16>
    %c0_72 = arith.constant 0 : index
    %c9 = arith.constant 9 : index
    %c0_73 = arith.constant 0 : index
    %c0_74 = arith.constant 0 : index
    %60 = vector.load %arg5[%c0_72, %c9, %c0_73, %c0_74] : memref<1x49x128x128xbf16, #tpu.memory_space<vmem>>, vector<1x1x128x128xbf16>
    %61 = vector.shape_cast %60 : vector<1x1x128x128xbf16> to vector<128x128xbf16>
    %cst_75 = arith.constant dense<0.000000e+00> : vector<88x128xf32>
    %62 = tpu.matmul %59, %61, %cst_75 {dimension_numbers = #tpu.dot_dimension_numbers<[1], [0], [0], [1], [0, 0, 1, 1], [], []>} : vector<88x128xbf16>, vector<128x128xbf16>, vector<88x128xf32> -> vector<88x128xf32>
    %63 = arith.addf %57, %62 : vector<88x128xf32>
    %c0_76 = arith.constant 0 : index
    %c0_77 = arith.constant 0 : index
    %c385 = arith.constant 385 : index
    %c0_78 = arith.constant 0 : index
    %64 = vector.load %arg4[%c0_76, %c0_77, %c385, %c0_78] : memref<1x1x512x128xbf16, #tpu.memory_space<vmem>>, vector<1x1x88x128xbf16>
    %65 = vector.shape_cast %64 : vector<1x1x88x128xbf16> to vector<88x128xbf16>
    %c0_79 = arith.constant 0 : index
    %c10 = arith.constant 10 : index
    %c0_80 = arith.constant 0 : index
    %c0_81 = arith.constant 0 : index
    %66 = vector.load %arg5[%c0_79, %c10, %c0_80, %c0_81] : memref<1x49x128x128xbf16, #tpu.memory_space<vmem>>, vector<1x1x128x128xbf16>
    %67 = vector.shape_cast %66 : vector<1x1x128x128xbf16> to vector<128x128xbf16>
    %cst_82 = arith.constant dense<0.000000e+00> : vector<88x128xf32>
    %68 = tpu.matmul %65, %67, %cst_82 {dimension_numbers = #tpu.dot_dimension_numbers<[1], [0], [0], [1], [0, 0, 1, 1], [], []>} : vector<88x128xbf16>, vector<128x128xbf16>, vector<88x128xf32> -> vector<88x128xf32>
    %69 = arith.addf %63, %68 : vector<88x128xf32>
    %c0_83 = arith.constant 0 : index
    %c0_84 = arith.constant 0 : index
    %c258 = arith.constant 258 : index
    %c0_85 = arith.constant 0 : index
    %70 = vector.load %arg4[%c0_83, %c0_84, %c258, %c0_85] : memref<1x1x512x128xbf16, #tpu.memory_space<vmem>>, vector<1x1x88x128xbf16>
    %71 = vector.shape_cast %70 : vector<1x1x88x128xbf16> to vector<88x128xbf16>
    %c0_86 = arith.constant 0 : index
    %c11 = arith.constant 11 : index
    %c0_87 = arith.constant 0 : index
    %c0_88 = arith.constant 0 : index
    %72 = vector.load %arg5[%c0_86, %c11, %c0_87, %c0_88] : memref<1x49x128x128xbf16, #tpu.memory_space<vmem>>, vector<1x1x128x128xbf16>
    %73 = vector.shape_cast %72 : vector<1x1x128x128xbf16> to vector<128x128xbf16>
    %cst_89 = arith.constant dense<0.000000e+00> : vector<88x128xf32>
    %74 = tpu.matmul %71, %73, %cst_89 {dimension_numbers = #tpu.dot_dimension_numbers<[1], [0], [0], [1], [0, 0, 1, 1], [], []>} : vector<88x128xbf16>, vector<128x128xbf16>, vector<88x128xf32> -> vector<88x128xf32>
    %75 = arith.addf %69, %74 : vector<88x128xf32>
    %c0_90 = arith.constant 0 : index
    %c0_91 = arith.constant 0 : index
    %c386 = arith.constant 386 : index
    %c0_92 = arith.constant 0 : index
    %76 = vector.load %arg4[%c0_90, %c0_91, %c386, %c0_92] : memref<1x1x512x128xbf16, #tpu.memory_space<vmem>>, vector<1x1x88x128xbf16>
    %77 = vector.shape_cast %76 : vector<1x1x88x128xbf16> to vector<88x128xbf16>
    %c0_93 = arith.constant 0 : index
    %c12 = arith.constant 12 : index
    %c0_94 = arith.constant 0 : index
    %c0_95 = arith.constant 0 : index
    %78 = vector.load %arg5[%c0_93, %c12, %c0_94, %c0_95] : memref<1x49x128x128xbf16, #tpu.memory_space<vmem>>, vector<1x1x128x128xbf16>
    %79 = vector.shape_cast %78 : vector<1x1x128x128xbf16> to vector<128x128xbf16>
    %cst_96 = arith.constant dense<0.000000e+00> : vector<88x128xf32>
    %80 = tpu.matmul %77, %79, %cst_96 {dimension_numbers = #tpu.dot_dimension_numbers<[1], [0], [0], [1], [0, 0, 1, 1], [], []>} : vector<88x128xbf16>, vector<128x128xbf16>, vector<88x128xf32> -> vector<88x128xf32>
    %81 = arith.addf %75, %80 : vector<88x128xf32>
    %c0_97 = arith.constant 0 : index
    %c0_98 = arith.constant 0 : index
    %c259 = arith.constant 259 : index
    %c0_99 = arith.constant 0 : index
    %82 = vector.load %arg4[%c0_97, %c0_98, %c259, %c0_99] : memref<1x1x512x128xbf16, #tpu.memory_space<vmem>>, vector<1x1x88x128xbf16>
    %83 = vector.shape_cast %82 : vector<1x1x88x128xbf16> to vector<88x128xbf16>
    %c0_100 = arith.constant 0 : index
    %c13 = arith.constant 13 : index
    %c0_101 = arith.constant 0 : index
    %c0_102 = arith.constant 0 : index
    %84 = vector.load %arg5[%c0_100, %c13, %c0_101, %c0_102] : memref<1x49x128x128xbf16, #tpu.memory_space<vmem>>, vector<1x1x128x128xbf16>
    %85 = vector.shape_cast %84 : vector<1x1x128x128xbf16> to vector<128x128xbf16>
    %cst_103 = arith.constant dense<0.000000e+00> : vector<88x128xf32>
    %86 = tpu.matmul %83, %85, %cst_103 {dimension_numbers = #tpu.dot_dimension_numbers<[1], [0], [0], [1], [0, 0, 1, 1], [], []>} : vector<88x128xbf16>, vector<128x128xbf16>, vector<88x128xf32> -> vector<88x128xf32>
    %87 = arith.addf %81, %86 : vector<88x128xf32>
    %c0_104 = arith.constant 0 : index
    %c0_105 = arith.constant 0 : index
    %c11_106 = arith.constant 11 : index
    %c0_107 = arith.constant 0 : index
    %88 = vector.load %arg4[%c0_104, %c0_105, %c11_106, %c0_107] : memref<1x1x512x128xbf16, #tpu.memory_space<vmem>>, vector<1x1x88x128xbf16>
    %89 = vector.shape_cast %88 : vector<1x1x88x128xbf16> to vector<88x128xbf16>
    %c0_108 = arith.constant 0 : index
    %c14 = arith.constant 14 : index
    %c0_109 = arith.constant 0 : index
    %c0_110 = arith.constant 0 : index
    %90 = vector.load %arg5[%c0_108, %c14, %c0_109, %c0_110] : memref<1x49x128x128xbf16, #tpu.memory_space<vmem>>, vector<1x1x128x128xbf16>
    %91 = vector.shape_cast %90 : vector<1x1x128x128xbf16> to vector<128x128xbf16>
    %cst_111 = arith.constant dense<0.000000e+00> : vector<88x128xf32>
    %92 = tpu.matmul %89, %91, %cst_111 {dimension_numbers = #tpu.dot_dimension_numbers<[1], [0], [0], [1], [0, 0, 1, 1], [], []>} : vector<88x128xbf16>, vector<128x128xbf16>, vector<88x128xf32> -> vector<88x128xf32>
    %93 = arith.addf %87, %92 : vector<88x128xf32>
    %c0_112 = arith.constant 0 : index
    %c0_113 = arith.constant 0 : index
    %c139 = arith.constant 139 : index
    %c0_114 = arith.constant 0 : index
    %94 = vector.load %arg4[%c0_112, %c0_113, %c139, %c0_114] : memref<1x1x512x128xbf16, #tpu.memory_space<vmem>>, vector<1x1x88x128xbf16>
    %95 = vector.shape_cast %94 : vector<1x1x88x128xbf16> to vector<88x128xbf16>
    %c0_115 = arith.constant 0 : index
    %c15 = arith.constant 15 : index
    %c0_116 = arith.constant 0 : index
    %c0_117 = arith.constant 0 : index
    %96 = vector.load %arg5[%c0_115, %c15, %c0_116, %c0_117] : memref<1x49x128x128xbf16, #tpu.memory_space<vmem>>, vector<1x1x128x128xbf16>
    %97 = vector.shape_cast %96 : vector<1x1x128x128xbf16> to vector<128x128xbf16>
    %cst_118 = arith.constant dense<0.000000e+00> : vector<88x128xf32>
    %98 = tpu.matmul %95, %97, %cst_118 {dimension_numbers = #tpu.dot_dimension_numbers<[1], [0], [0], [1], [0, 0, 1, 1], [], []>} : vector<88x128xbf16>, vector<128x128xbf16>, vector<88x128xf32> -> vector<88x128xf32>
    %99 = arith.addf %93, %98 : vector<88x128xf32>
    %c0_119 = arith.constant 0 : index
    %c0_120 = arith.constant 0 : index
    %c12_121 = arith.constant 12 : index
    %c0_122 = arith.constant 0 : index
    %100 = vector.load %arg4[%c0_119, %c0_120, %c12_121, %c0_122] : memref<1x1x512x128xbf16, #tpu.memory_space<vmem>>, vector<1x1x88x128xbf16>
    %101 = vector.shape_cast %100 : vector<1x1x88x128xbf16> to vector<88x128xbf16>
    %c0_123 = arith.constant 0 : index
    %c16 = arith.constant 16 : index
    %c0_124 = arith.constant 0 : index
    %c0_125 = arith.constant 0 : index
    %102 = vector.load %arg5[%c0_123, %c16, %c0_124, %c0_125] : memref<1x49x128x128xbf16, #tpu.memory_space<vmem>>, vector<1x1x128x128xbf16>
    %103 = vector.shape_cast %102 : vector<1x1x128x128xbf16> to vector<128x128xbf16>
    %cst_126 = arith.constant dense<0.000000e+00> : vector<88x128xf32>
    %104 = tpu.matmul %101, %103, %cst_126 {dimension_numbers = #tpu.dot_dimension_numbers<[1], [0], [0], [1], [0, 0, 1, 1], [], []>} : vector<88x128xbf16>, vector<128x128xbf16>, vector<88x128xf32> -> vector<88x128xf32>
    %105 = arith.addf %99, %104 : vector<88x128xf32>
    %c0_127 = arith.constant 0 : index
    %c0_128 = arith.constant 0 : index
    %c140 = arith.constant 140 : index
    %c0_129 = arith.constant 0 : index
    %106 = vector.load %arg4[%c0_127, %c0_128, %c140, %c0_129] : memref<1x1x512x128xbf16, #tpu.memory_space<vmem>>, vector<1x1x88x128xbf16>
    %107 = vector.shape_cast %106 : vector<1x1x88x128xbf16> to vector<88x128xbf16>
    %c0_130 = arith.constant 0 : index
    %c17 = arith.constant 17 : index
    %c0_131 = arith.constant 0 : index
    %c0_132 = arith.constant 0 : index
    %108 = vector.load %arg5[%c0_130, %c17, %c0_131, %c0_132] : memref<1x49x128x128xbf16, #tpu.memory_space<vmem>>, vector<1x1x128x128xbf16>
    %109 = vector.shape_cast %108 : vector<1x1x128x128xbf16> to vector<128x128xbf16>
    %cst_133 = arith.constant dense<0.000000e+00> : vector<88x128xf32>
    %110 = tpu.matmul %107, %109, %cst_133 {dimension_numbers = #tpu.dot_dimension_numbers<[1], [0], [0], [1], [0, 0, 1, 1], [], []>} : vector<88x128xbf16>, vector<128x128xbf16>, vector<88x128xf32> -> vector<88x128xf32>
    %111 = arith.addf %105, %110 : vector<88x128xf32>
    %c0_134 = arith.constant 0 : index
    %c0_135 = arith.constant 0 : index
    %c13_136 = arith.constant 13 : index
    %c0_137 = arith.constant 0 : index
    %112 = vector.load %arg4[%c0_134, %c0_135, %c13_136, %c0_137] : memref<1x1x512x128xbf16, #tpu.memory_space<vmem>>, vector<1x1x88x128xbf16>
    %113 = vector.shape_cast %112 : vector<1x1x88x128xbf16> to vector<88x128xbf16>
    %c0_138 = arith.constant 0 : index
    %c18 = arith.constant 18 : index
    %c0_139 = arith.constant 0 : index
    %c0_140 = arith.constant 0 : index
    %114 = vector.load %arg5[%c0_138, %c18, %c0_139, %c0_140] : memref<1x49x128x128xbf16, #tpu.memory_space<vmem>>, vector<1x1x128x128xbf16>
    %115 = vector.shape_cast %114 : vector<1x1x128x128xbf16> to vector<128x128xbf16>
    %cst_141 = arith.constant dense<0.000000e+00> : vector<88x128xf32>
    %116 = tpu.matmul %113, %115, %cst_141 {dimension_numbers = #tpu.dot_dimension_numbers<[1], [0], [0], [1], [0, 0, 1, 1], [], []>} : vector<88x128xbf16>, vector<128x128xbf16>, vector<88x128xf32> -> vector<88x128xf32>
    %117 = arith.addf %111, %116 : vector<88x128xf32>
    %c0_142 = arith.constant 0 : index
    %c0_143 = arith.constant 0 : index
    %c141 = arith.constant 141 : index
    %c0_144 = arith.constant 0 : index
    %118 = vector.load %arg4[%c0_142, %c0_143, %c141, %c0_144] : memref<1x1x512x128xbf16, #tpu.memory_space<vmem>>, vector<1x1x88x128xbf16>
    %119 = vector.shape_cast %118 : vector<1x1x88x128xbf16> to vector<88x128xbf16>
    %c0_145 = arith.constant 0 : index
    %c19 = arith.constant 19 : index
    %c0_146 = arith.constant 0 : index
    %c0_147 = arith.constant 0 : index
    %120 = vector.load %arg5[%c0_145, %c19, %c0_146, %c0_147] : memref<1x49x128x128xbf16, #tpu.memory_space<vmem>>, vector<1x1x128x128xbf16>
    %121 = vector.shape_cast %120 : vector<1x1x128x128xbf16> to vector<128x128xbf16>
    %cst_148 = arith.constant dense<0.000000e+00> : vector<88x128xf32>
    %122 = tpu.matmul %119, %121, %cst_148 {dimension_numbers = #tpu.dot_dimension_numbers<[1], [0], [0], [1], [0, 0, 1, 1], [], []>} : vector<88x128xbf16>, vector<128x128xbf16>, vector<88x128xf32> -> vector<88x128xf32>
    %123 = arith.addf %117, %122 : vector<88x128xf32>
    %c0_149 = arith.constant 0 : index
    %c0_150 = arith.constant 0 : index
    %c14_151 = arith.constant 14 : index
    %c0_152 = arith.constant 0 : index
    %124 = vector.load %arg4[%c0_149, %c0_150, %c14_151, %c0_152] : memref<1x1x512x128xbf16, #tpu.memory_space<vmem>>, vector<1x1x88x128xbf16>
    %125 = vector.shape_cast %124 : vector<1x1x88x128xbf16> to vector<88x128xbf16>
    %c0_153 = arith.constant 0 : index
    %c20 = arith.constant 20 : index
    %c0_154 = arith.constant 0 : index
    %c0_155 = arith.constant 0 : index
    %126 = vector.load %arg5[%c0_153, %c20, %c0_154, %c0_155] : memref<1x49x128x128xbf16, #tpu.memory_space<vmem>>, vector<1x1x128x128xbf16>
    %127 = vector.shape_cast %126 : vector<1x1x128x128xbf16> to vector<128x128xbf16>
    %cst_156 = arith.constant dense<0.000000e+00> : vector<88x128xf32>
    %128 = tpu.matmul %125, %127, %cst_156 {dimension_numbers = #tpu.dot_dimension_numbers<[1], [0], [0], [1], [0, 0, 1, 1], [], []>} : vector<88x128xbf16>, vector<128x128xbf16>, vector<88x128xf32> -> vector<88x128xf32>
    %129 = arith.addf %123, %128 : vector<88x128xf32>
    %c0_157 = arith.constant 0 : index
    %c0_158 = arith.constant 0 : index
    %c267 = arith.constant 267 : index
    %c0_159 = arith.constant 0 : index
    %130 = vector.load %arg4[%c0_157, %c0_158, %c267, %c0_159] : memref<1x1x512x128xbf16, #tpu.memory_space<vmem>>, vector<1x1x88x128xbf16>
    %131 = vector.shape_cast %130 : vector<1x1x88x128xbf16> to vector<88x128xbf16>
    %c0_160 = arith.constant 0 : index
    %c21 = arith.constant 21 : index
    %c0_161 = arith.constant 0 : index
    %c0_162 = arith.constant 0 : index
    %132 = vector.load %arg5[%c0_160, %c21, %c0_161, %c0_162] : memref<1x49x128x128xbf16, #tpu.memory_space<vmem>>, vector<1x1x128x128xbf16>
    %133 = vector.shape_cast %132 : vector<1x1x128x128xbf16> to vector<128x128xbf16>
    %cst_163 = arith.constant dense<0.000000e+00> : vector<88x128xf32>
    %134 = tpu.matmul %131, %133, %cst_163 {dimension_numbers = #tpu.dot_dimension_numbers<[1], [0], [0], [1], [0, 0, 1, 1], [], []>} : vector<88x128xbf16>, vector<128x128xbf16>, vector<88x128xf32> -> vector<88x128xf32>
    %135 = arith.addf %129, %134 : vector<88x128xf32>
    %c0_164 = arith.constant 0 : index
    %c0_165 = arith.constant 0 : index
    %c395 = arith.constant 395 : index
    %c0_166 = arith.constant 0 : index
    %136 = vector.load %arg4[%c0_164, %c0_165, %c395, %c0_166] : memref<1x1x512x128xbf16, #tpu.memory_space<vmem>>, vector<1x1x88x128xbf16>
    %137 = vector.shape_cast %136 : vector<1x1x88x128xbf16> to vector<88x128xbf16>
    %c0_167 = arith.constant 0 : index
    %c22 = arith.constant 22 : index
    %c0_168 = arith.constant 0 : index
    %c0_169 = arith.constant 0 : index
    %138 = vector.load %arg5[%c0_167, %c22, %c0_168, %c0_169] : memref<1x49x128x128xbf16, #tpu.memory_space<vmem>>, vector<1x1x128x128xbf16>
    %139 = vector.shape_cast %138 : vector<1x1x128x128xbf16> to vector<128x128xbf16>
    %cst_170 = arith.constant dense<0.000000e+00> : vector<88x128xf32>
    %140 = tpu.matmul %137, %139, %cst_170 {dimension_numbers = #tpu.dot_dimension_numbers<[1], [0], [0], [1], [0, 0, 1, 1], [], []>} : vector<88x128xbf16>, vector<128x128xbf16>, vector<88x128xf32> -> vector<88x128xf32>
    %141 = arith.addf %135, %140 : vector<88x128xf32>
    %c0_171 = arith.constant 0 : index
    %c0_172 = arith.constant 0 : index
    %c268 = arith.constant 268 : index
    %c0_173 = arith.constant 0 : index
    %142 = vector.load %arg4[%c0_171, %c0_172, %c268, %c0_173] : memref<1x1x512x128xbf16, #tpu.memory_space<vmem>>, vector<1x1x88x128xbf16>
    %143 = vector.shape_cast %142 : vector<1x1x88x128xbf16> to vector<88x128xbf16>
    %c0_174 = arith.constant 0 : index
    %c23 = arith.constant 23 : index
    %c0_175 = arith.constant 0 : index
    %c0_176 = arith.constant 0 : index
    %144 = vector.load %arg5[%c0_174, %c23, %c0_175, %c0_176] : memref<1x49x128x128xbf16, #tpu.memory_space<vmem>>, vector<1x1x128x128xbf16>
    %145 = vector.shape_cast %144 : vector<1x1x128x128xbf16> to vector<128x128xbf16>
    %cst_177 = arith.constant dense<0.000000e+00> : vector<88x128xf32>
    %146 = tpu.matmul %143, %145, %cst_177 {dimension_numbers = #tpu.dot_dimension_numbers<[1], [0], [0], [1], [0, 0, 1, 1], [], []>} : vector<88x128xbf16>, vector<128x128xbf16>, vector<88x128xf32> -> vector<88x128xf32>
    %147 = arith.addf %141, %146 : vector<88x128xf32>
    %c0_178 = arith.constant 0 : index
    %c0_179 = arith.constant 0 : index
    %c396 = arith.constant 396 : index
    %c0_180 = arith.constant 0 : index
    %148 = vector.load %arg4[%c0_178, %c0_179, %c396, %c0_180] : memref<1x1x512x128xbf16, #tpu.memory_space<vmem>>, vector<1x1x88x128xbf16>
    %149 = vector.shape_cast %148 : vector<1x1x88x128xbf16> to vector<88x128xbf16>
    %c0_181 = arith.constant 0 : index
    %c24 = arith.constant 24 : index
    %c0_182 = arith.constant 0 : index
    %c0_183 = arith.constant 0 : index
    %150 = vector.load %arg5[%c0_181, %c24, %c0_182, %c0_183] : memref<1x49x128x128xbf16, #tpu.memory_space<vmem>>, vector<1x1x128x128xbf16>
    %151 = vector.shape_cast %150 : vector<1x1x128x128xbf16> to vector<128x128xbf16>
    %cst_184 = arith.constant dense<0.000000e+00> : vector<88x128xf32>
    %152 = tpu.matmul %149, %151, %cst_184 {dimension_numbers = #tpu.dot_dimension_numbers<[1], [0], [0], [1], [0, 0, 1, 1], [], []>} : vector<88x128xbf16>, vector<128x128xbf16>, vector<88x128xf32> -> vector<88x128xf32>
    %153 = arith.addf %147, %152 : vector<88x128xf32>
    %c0_185 = arith.constant 0 : index
    %c0_186 = arith.constant 0 : index
    %c269 = arith.constant 269 : index
    %c0_187 = arith.constant 0 : index
    %154 = vector.load %arg4[%c0_185, %c0_186, %c269, %c0_187] : memref<1x1x512x128xbf16, #tpu.memory_space<vmem>>, vector<1x1x88x128xbf16>
    %155 = vector.shape_cast %154 : vector<1x1x88x128xbf16> to vector<88x128xbf16>
    %c0_188 = arith.constant 0 : index
    %c25 = arith.constant 25 : index
    %c0_189 = arith.constant 0 : index
    %c0_190 = arith.constant 0 : index
    %156 = vector.load %arg5[%c0_188, %c25, %c0_189, %c0_190] : memref<1x49x128x128xbf16, #tpu.memory_space<vmem>>, vector<1x1x128x128xbf16>
    %157 = vector.shape_cast %156 : vector<1x1x128x128xbf16> to vector<128x128xbf16>
    %cst_191 = arith.constant dense<0.000000e+00> : vector<88x128xf32>
    %158 = tpu.matmul %155, %157, %cst_191 {dimension_numbers = #tpu.dot_dimension_numbers<[1], [0], [0], [1], [0, 0, 1, 1], [], []>} : vector<88x128xbf16>, vector<128x128xbf16>, vector<88x128xf32> -> vector<88x128xf32>
    %159 = arith.addf %153, %158 : vector<88x128xf32>
    %c0_192 = arith.constant 0 : index
    %c0_193 = arith.constant 0 : index
    %c397 = arith.constant 397 : index
    %c0_194 = arith.constant 0 : index
    %160 = vector.load %arg4[%c0_192, %c0_193, %c397, %c0_194] : memref<1x1x512x128xbf16, #tpu.memory_space<vmem>>, vector<1x1x88x128xbf16>
    %161 = vector.shape_cast %160 : vector<1x1x88x128xbf16> to vector<88x128xbf16>
    %c0_195 = arith.constant 0 : index
    %c26 = arith.constant 26 : index
    %c0_196 = arith.constant 0 : index
    %c0_197 = arith.constant 0 : index
    %162 = vector.load %arg5[%c0_195, %c26, %c0_196, %c0_197] : memref<1x49x128x128xbf16, #tpu.memory_space<vmem>>, vector<1x1x128x128xbf16>
    %163 = vector.shape_cast %162 : vector<1x1x128x128xbf16> to vector<128x128xbf16>
    %cst_198 = arith.constant dense<0.000000e+00> : vector<88x128xf32>
    %164 = tpu.matmul %161, %163, %cst_198 {dimension_numbers = #tpu.dot_dimension_numbers<[1], [0], [0], [1], [0, 0, 1, 1], [], []>} : vector<88x128xbf16>, vector<128x128xbf16>, vector<88x128xf32> -> vector<88x128xf32>
    %165 = arith.addf %159, %164 : vector<88x128xf32>
    %c0_199 = arith.constant 0 : index
    %c0_200 = arith.constant 0 : index
    %c270 = arith.constant 270 : index
    %c0_201 = arith.constant 0 : index
    %166 = vector.load %arg4[%c0_199, %c0_200, %c270, %c0_201] : memref<1x1x512x128xbf16, #tpu.memory_space<vmem>>, vector<1x1x88x128xbf16>
    %167 = vector.shape_cast %166 : vector<1x1x88x128xbf16> to vector<88x128xbf16>
    %c0_202 = arith.constant 0 : index
    %c27 = arith.constant 27 : index
    %c0_203 = arith.constant 0 : index
    %c0_204 = arith.constant 0 : index
    %168 = vector.load %arg5[%c0_202, %c27, %c0_203, %c0_204] : memref<1x49x128x128xbf16, #tpu.memory_space<vmem>>, vector<1x1x128x128xbf16>
    %169 = vector.shape_cast %168 : vector<1x1x128x128xbf16> to vector<128x128xbf16>
    %cst_205 = arith.constant dense<0.000000e+00> : vector<88x128xf32>
    %170 = tpu.matmul %167, %169, %cst_205 {dimension_numbers = #tpu.dot_dimension_numbers<[1], [0], [0], [1], [0, 0, 1, 1], [], []>} : vector<88x128xbf16>, vector<128x128xbf16>, vector<88x128xf32> -> vector<88x128xf32>
    %171 = arith.addf %165, %170 : vector<88x128xf32>
    %c0_206 = arith.constant 0 : index
    %c0_207 = arith.constant 0 : index
    %c22_208 = arith.constant 22 : index
    %c0_209 = arith.constant 0 : index
    %172 = vector.load %arg4[%c0_206, %c0_207, %c22_208, %c0_209] : memref<1x1x512x128xbf16, #tpu.memory_space<vmem>>, vector<1x1x88x128xbf16>
    %173 = vector.shape_cast %172 : vector<1x1x88x128xbf16> to vector<88x128xbf16>
    %c0_210 = arith.constant 0 : index
    %c28 = arith.constant 28 : index
    %c0_211 = arith.constant 0 : index
    %c0_212 = arith.constant 0 : index
    %174 = vector.load %arg5[%c0_210, %c28, %c0_211, %c0_212] : memref<1x49x128x128xbf16, #tpu.memory_space<vmem>>, vector<1x1x128x128xbf16>
    %175 = vector.shape_cast %174 : vector<1x1x128x128xbf16> to vector<128x128xbf16>
    %cst_213 = arith.constant dense<0.000000e+00> : vector<88x128xf32>
    %176 = tpu.matmul %173, %175, %cst_213 {dimension_numbers = #tpu.dot_dimension_numbers<[1], [0], [0], [1], [0, 0, 1, 1], [], []>} : vector<88x128xbf16>, vector<128x128xbf16>, vector<88x128xf32> -> vector<88x128xf32>
    %177 = arith.addf %171, %176 : vector<88x128xf32>
    %c0_214 = arith.constant 0 : index
    %c0_215 = arith.constant 0 : index
    %c150 = arith.constant 150 : index
    %c0_216 = arith.constant 0 : index
    %178 = vector.load %arg4[%c0_214, %c0_215, %c150, %c0_216] : memref<1x1x512x128xbf16, #tpu.memory_space<vmem>>, vector<1x1x88x128xbf16>
    %179 = vector.shape_cast %178 : vector<1x1x88x128xbf16> to vector<88x128xbf16>
    %c0_217 = arith.constant 0 : index
    %c29 = arith.constant 29 : index
    %c0_218 = arith.constant 0 : index
    %c0_219 = arith.constant 0 : index
    %180 = vector.load %arg5[%c0_217, %c29, %c0_218, %c0_219] : memref<1x49x128x128xbf16, #tpu.memory_space<vmem>>, vector<1x1x128x128xbf16>
    %181 = vector.shape_cast %180 : vector<1x1x128x128xbf16> to vector<128x128xbf16>
    %cst_220 = arith.constant dense<0.000000e+00> : vector<88x128xf32>
    %182 = tpu.matmul %179, %181, %cst_220 {dimension_numbers = #tpu.dot_dimension_numbers<[1], [0], [0], [1], [0, 0, 1, 1], [], []>} : vector<88x128xbf16>, vector<128x128xbf16>, vector<88x128xf32> -> vector<88x128xf32>
    %183 = arith.addf %177, %182 : vector<88x128xf32>
    %c0_221 = arith.constant 0 : index
    %c0_222 = arith.constant 0 : index
    %c23_223 = arith.constant 23 : index
    %c0_224 = arith.constant 0 : index
    %184 = vector.load %arg4[%c0_221, %c0_222, %c23_223, %c0_224] : memref<1x1x512x128xbf16, #tpu.memory_space<vmem>>, vector<1x1x88x128xbf16>
    %185 = vector.shape_cast %184 : vector<1x1x88x128xbf16> to vector<88x128xbf16>
    %c0_225 = arith.constant 0 : index
    %c30 = arith.constant 30 : index
    %c0_226 = arith.constant 0 : index
    %c0_227 = arith.constant 0 : index
    %186 = vector.load %arg5[%c0_225, %c30, %c0_226, %c0_227] : memref<1x49x128x128xbf16, #tpu.memory_space<vmem>>, vector<1x1x128x128xbf16>
    %187 = vector.shape_cast %186 : vector<1x1x128x128xbf16> to vector<128x128xbf16>
    %cst_228 = arith.constant dense<0.000000e+00> : vector<88x128xf32>
    %188 = tpu.matmul %185, %187, %cst_228 {dimension_numbers = #tpu.dot_dimension_numbers<[1], [0], [0], [1], [0, 0, 1, 1], [], []>} : vector<88x128xbf16>, vector<128x128xbf16>, vector<88x128xf32> -> vector<88x128xf32>
    %189 = arith.addf %183, %188 : vector<88x128xf32>
    %c0_229 = arith.constant 0 : index
    %c0_230 = arith.constant 0 : index
    %c151 = arith.constant 151 : index
    %c0_231 = arith.constant 0 : index
    %190 = vector.load %arg4[%c0_229, %c0_230, %c151, %c0_231] : memref<1x1x512x128xbf16, #tpu.memory_space<vmem>>, vector<1x1x88x128xbf16>
    %191 = vector.shape_cast %190 : vector<1x1x88x128xbf16> to vector<88x128xbf16>
    %c0_232 = arith.constant 0 : index
    %c31 = arith.constant 31 : index
    %c0_233 = arith.constant 0 : index
    %c0_234 = arith.constant 0 : index
    %192 = vector.load %arg5[%c0_232, %c31, %c0_233, %c0_234] : memref<1x49x128x128xbf16, #tpu.memory_space<vmem>>, vector<1x1x128x128xbf16>
    %193 = vector.shape_cast %192 : vector<1x1x128x128xbf16> to vector<128x128xbf16>
    %cst_235 = arith.constant dense<0.000000e+00> : vector<88x128xf32>
    %194 = tpu.matmul %191, %193, %cst_235 {dimension_numbers = #tpu.dot_dimension_numbers<[1], [0], [0], [1], [0, 0, 1, 1], [], []>} : vector<88x128xbf16>, vector<128x128xbf16>, vector<88x128xf32> -> vector<88x128xf32>
    %195 = arith.addf %189, %194 : vector<88x128xf32>
    %c0_236 = arith.constant 0 : index
    %c0_237 = arith.constant 0 : index
    %c24_238 = arith.constant 24 : index
    %c0_239 = arith.constant 0 : index
    %196 = vector.load %arg4[%c0_236, %c0_237, %c24_238, %c0_239] : memref<1x1x512x128xbf16, #tpu.memory_space<vmem>>, vector<1x1x88x128xbf16>
    %197 = vector.shape_cast %196 : vector<1x1x88x128xbf16> to vector<88x128xbf16>
    %c0_240 = arith.constant 0 : index
    %c32 = arith.constant 32 : index
    %c0_241 = arith.constant 0 : index
    %c0_242 = arith.constant 0 : index
    %198 = vector.load %arg5[%c0_240, %c32, %c0_241, %c0_242] : memref<1x49x128x128xbf16, #tpu.memory_space<vmem>>, vector<1x1x128x128xbf16>
    %199 = vector.shape_cast %198 : vector<1x1x128x128xbf16> to vector<128x128xbf16>
    %cst_243 = arith.constant dense<0.000000e+00> : vector<88x128xf32>
    %200 = tpu.matmul %197, %199, %cst_243 {dimension_numbers = #tpu.dot_dimension_numbers<[1], [0], [0], [1], [0, 0, 1, 1], [], []>} : vector<88x128xbf16>, vector<128x128xbf16>, vector<88x128xf32> -> vector<88x128xf32>
    %201 = arith.addf %195, %200 : vector<88x128xf32>
    %c0_244 = arith.constant 0 : index
    %c0_245 = arith.constant 0 : index
    %c152 = arith.constant 152 : index
    %c0_246 = arith.constant 0 : index
    %202 = vector.load %arg4[%c0_244, %c0_245, %c152, %c0_246] : memref<1x1x512x128xbf16, #tpu.memory_space<vmem>>, vector<1x1x88x128xbf16>
    %203 = vector.shape_cast %202 : vector<1x1x88x128xbf16> to vector<88x128xbf16>
    %c0_247 = arith.constant 0 : index
    %c33 = arith.constant 33 : index
    %c0_248 = arith.constant 0 : index
    %c0_249 = arith.constant 0 : index
    %204 = vector.load %arg5[%c0_247, %c33, %c0_248, %c0_249] : memref<1x49x128x128xbf16, #tpu.memory_space<vmem>>, vector<1x1x128x128xbf16>
    %205 = vector.shape_cast %204 : vector<1x1x128x128xbf16> to vector<128x128xbf16>
    %cst_250 = arith.constant dense<0.000000e+00> : vector<88x128xf32>
    %206 = tpu.matmul %203, %205, %cst_250 {dimension_numbers = #tpu.dot_dimension_numbers<[1], [0], [0], [1], [0, 0, 1, 1], [], []>} : vector<88x128xbf16>, vector<128x128xbf16>, vector<88x128xf32> -> vector<88x128xf32>
    %207 = arith.addf %201, %206 : vector<88x128xf32>
    %c0_251 = arith.constant 0 : index
    %c0_252 = arith.constant 0 : index
    %c25_253 = arith.constant 25 : index
    %c0_254 = arith.constant 0 : index
    %208 = vector.load %arg4[%c0_251, %c0_252, %c25_253, %c0_254] : memref<1x1x512x128xbf16, #tpu.memory_space<vmem>>, vector<1x1x88x128xbf16>
    %209 = vector.shape_cast %208 : vector<1x1x88x128xbf16> to vector<88x128xbf16>
    %c0_255 = arith.constant 0 : index
    %c34 = arith.constant 34 : index
    %c0_256 = arith.constant 0 : index
    %c0_257 = arith.constant 0 : index
    %210 = vector.load %arg5[%c0_255, %c34, %c0_256, %c0_257] : memref<1x49x128x128xbf16, #tpu.memory_space<vmem>>, vector<1x1x128x128xbf16>
    %211 = vector.shape_cast %210 : vector<1x1x128x128xbf16> to vector<128x128xbf16>
    %cst_258 = arith.constant dense<0.000000e+00> : vector<88x128xf32>
    %212 = tpu.matmul %209, %211, %cst_258 {dimension_numbers = #tpu.dot_dimension_numbers<[1], [0], [0], [1], [0, 0, 1, 1], [], []>} : vector<88x128xbf16>, vector<128x128xbf16>, vector<88x128xf32> -> vector<88x128xf32>
    %213 = arith.addf %207, %212 : vector<88x128xf32>
    %c0_259 = arith.constant 0 : index
    %c0_260 = arith.constant 0 : index
    %c278 = arith.constant 278 : index
    %c0_261 = arith.constant 0 : index
    %214 = vector.load %arg4[%c0_259, %c0_260, %c278, %c0_261] : memref<1x1x512x128xbf16, #tpu.memory_space<vmem>>, vector<1x1x88x128xbf16>
    %215 = vector.shape_cast %214 : vector<1x1x88x128xbf16> to vector<88x128xbf16>
    %c0_262 = arith.constant 0 : index
    %c35 = arith.constant 35 : index
    %c0_263 = arith.constant 0 : index
    %c0_264 = arith.constant 0 : index
    %216 = vector.load %arg5[%c0_262, %c35, %c0_263, %c0_264] : memref<1x49x128x128xbf16, #tpu.memory_space<vmem>>, vector<1x1x128x128xbf16>
    %217 = vector.shape_cast %216 : vector<1x1x128x128xbf16> to vector<128x128xbf16>
    %cst_265 = arith.constant dense<0.000000e+00> : vector<88x128xf32>
    %218 = tpu.matmul %215, %217, %cst_265 {dimension_numbers = #tpu.dot_dimension_numbers<[1], [0], [0], [1], [0, 0, 1, 1], [], []>} : vector<88x128xbf16>, vector<128x128xbf16>, vector<88x128xf32> -> vector<88x128xf32>
    %219 = arith.addf %213, %218 : vector<88x128xf32>
    %c0_266 = arith.constant 0 : index
    %c0_267 = arith.constant 0 : index
    %c406 = arith.constant 406 : index
    %c0_268 = arith.constant 0 : index
    %220 = vector.load %arg4[%c0_266, %c0_267, %c406, %c0_268] : memref<1x1x512x128xbf16, #tpu.memory_space<vmem>>, vector<1x1x88x128xbf16>
    %221 = vector.shape_cast %220 : vector<1x1x88x128xbf16> to vector<88x128xbf16>
    %c0_269 = arith.constant 0 : index
    %c36 = arith.constant 36 : index
    %c0_270 = arith.constant 0 : index
    %c0_271 = arith.constant 0 : index
    %222 = vector.load %arg5[%c0_269, %c36, %c0_270, %c0_271] : memref<1x49x128x128xbf16, #tpu.memory_space<vmem>>, vector<1x1x128x128xbf16>
    %223 = vector.shape_cast %222 : vector<1x1x128x128xbf16> to vector<128x128xbf16>
    %cst_272 = arith.constant dense<0.000000e+00> : vector<88x128xf32>
    %224 = tpu.matmul %221, %223, %cst_272 {dimension_numbers = #tpu.dot_dimension_numbers<[1], [0], [0], [1], [0, 0, 1, 1], [], []>} : vector<88x128xbf16>, vector<128x128xbf16>, vector<88x128xf32> -> vector<88x128xf32>
    %225 = arith.addf %219, %224 : vector<88x128xf32>
    %c0_273 = arith.constant 0 : index
    %c0_274 = arith.constant 0 : index
    %c279 = arith.constant 279 : index
    %c0_275 = arith.constant 0 : index
    %226 = vector.load %arg4[%c0_273, %c0_274, %c279, %c0_275] : memref<1x1x512x128xbf16, #tpu.memory_space<vmem>>, vector<1x1x88x128xbf16>
    %227 = vector.shape_cast %226 : vector<1x1x88x128xbf16> to vector<88x128xbf16>
    %c0_276 = arith.constant 0 : index
    %c37 = arith.constant 37 : index
    %c0_277 = arith.constant 0 : index
    %c0_278 = arith.constant 0 : index
    %228 = vector.load %arg5[%c0_276, %c37, %c0_277, %c0_278] : memref<1x49x128x128xbf16, #tpu.memory_space<vmem>>, vector<1x1x128x128xbf16>
    %229 = vector.shape_cast %228 : vector<1x1x128x128xbf16> to vector<128x128xbf16>
    %cst_279 = arith.constant dense<0.000000e+00> : vector<88x128xf32>
    %230 = tpu.matmul %227, %229, %cst_279 {dimension_numbers = #tpu.dot_dimension_numbers<[1], [0], [0], [1], [0, 0, 1, 1], [], []>} : vector<88x128xbf16>, vector<128x128xbf16>, vector<88x128xf32> -> vector<88x128xf32>
    %231 = arith.addf %225, %230 : vector<88x128xf32>
    %c0_280 = arith.constant 0 : index
    %c0_281 = arith.constant 0 : index
    %c407 = arith.constant 407 : index
    %c0_282 = arith.constant 0 : index
    %232 = vector.load %arg4[%c0_280, %c0_281, %c407, %c0_282] : memref<1x1x512x128xbf16, #tpu.memory_space<vmem>>, vector<1x1x88x128xbf16>
    %233 = vector.shape_cast %232 : vector<1x1x88x128xbf16> to vector<88x128xbf16>
    %c0_283 = arith.constant 0 : index
    %c38 = arith.constant 38 : index
    %c0_284 = arith.constant 0 : index
    %c0_285 = arith.constant 0 : index
    %234 = vector.load %arg5[%c0_283, %c38, %c0_284, %c0_285] : memref<1x49x128x128xbf16, #tpu.memory_space<vmem>>, vector<1x1x128x128xbf16>
    %235 = vector.shape_cast %234 : vector<1x1x128x128xbf16> to vector<128x128xbf16>
    %cst_286 = arith.constant dense<0.000000e+00> : vector<88x128xf32>
    %236 = tpu.matmul %233, %235, %cst_286 {dimension_numbers = #tpu.dot_dimension_numbers<[1], [0], [0], [1], [0, 0, 1, 1], [], []>} : vector<88x128xbf16>, vector<128x128xbf16>, vector<88x128xf32> -> vector<88x128xf32>
    %237 = arith.addf %231, %236 : vector<88x128xf32>
    %c0_287 = arith.constant 0 : index
    %c0_288 = arith.constant 0 : index
    %c280 = arith.constant 280 : index
    %c0_289 = arith.constant 0 : index
    %238 = vector.load %arg4[%c0_287, %c0_288, %c280, %c0_289] : memref<1x1x512x128xbf16, #tpu.memory_space<vmem>>, vector<1x1x88x128xbf16>
    %239 = vector.shape_cast %238 : vector<1x1x88x128xbf16> to vector<88x128xbf16>
    %c0_290 = arith.constant 0 : index
    %c39 = arith.constant 39 : index
    %c0_291 = arith.constant 0 : index
    %c0_292 = arith.constant 0 : index
    %240 = vector.load %arg5[%c0_290, %c39, %c0_291, %c0_292] : memref<1x49x128x128xbf16, #tpu.memory_space<vmem>>, vector<1x1x128x128xbf16>
    %241 = vector.shape_cast %240 : vector<1x1x128x128xbf16> to vector<128x128xbf16>
    %cst_293 = arith.constant dense<0.000000e+00> : vector<88x128xf32>
    %242 = tpu.matmul %239, %241, %cst_293 {dimension_numbers = #tpu.dot_dimension_numbers<[1], [0], [0], [1], [0, 0, 1, 1], [], []>} : vector<88x128xbf16>, vector<128x128xbf16>, vector<88x128xf32> -> vector<88x128xf32>
    %243 = arith.addf %237, %242 : vector<88x128xf32>
    %c0_294 = arith.constant 0 : index
    %c0_295 = arith.constant 0 : index
    %c408 = arith.constant 408 : index
    %c0_296 = arith.constant 0 : index
    %244 = vector.load %arg4[%c0_294, %c0_295, %c408, %c0_296] : memref<1x1x512x128xbf16, #tpu.memory_space<vmem>>, vector<1x1x88x128xbf16>
    %245 = vector.shape_cast %244 : vector<1x1x88x128xbf16> to vector<88x128xbf16>
    %c0_297 = arith.constant 0 : index
    %c40 = arith.constant 40 : index
    %c0_298 = arith.constant 0 : index
    %c0_299 = arith.constant 0 : index
    %246 = vector.load %arg5[%c0_297, %c40, %c0_298, %c0_299] : memref<1x49x128x128xbf16, #tpu.memory_space<vmem>>, vector<1x1x128x128xbf16>
    %247 = vector.shape_cast %246 : vector<1x1x128x128xbf16> to vector<128x128xbf16>
    %cst_300 = arith.constant dense<0.000000e+00> : vector<88x128xf32>
    %248 = tpu.matmul %245, %247, %cst_300 {dimension_numbers = #tpu.dot_dimension_numbers<[1], [0], [0], [1], [0, 0, 1, 1], [], []>} : vector<88x128xbf16>, vector<128x128xbf16>, vector<88x128xf32> -> vector<88x128xf32>
    %249 = arith.addf %243, %248 : vector<88x128xf32>
    %c0_301 = arith.constant 0 : index
    %c0_302 = arith.constant 0 : index
    %c281 = arith.constant 281 : index
    %c0_303 = arith.constant 0 : index
    %250 = vector.load %arg4[%c0_301, %c0_302, %c281, %c0_303] : memref<1x1x512x128xbf16, #tpu.memory_space<vmem>>, vector<1x1x88x128xbf16>
    %251 = vector.shape_cast %250 : vector<1x1x88x128xbf16> to vector<88x128xbf16>
    %c0_304 = arith.constant 0 : index
    %c41 = arith.constant 41 : index
    %c0_305 = arith.constant 0 : index
    %c0_306 = arith.constant 0 : index
    %252 = vector.load %arg5[%c0_304, %c41, %c0_305, %c0_306] : memref<1x49x128x128xbf16, #tpu.memory_space<vmem>>, vector<1x1x128x128xbf16>
    %253 = vector.shape_cast %252 : vector<1x1x128x128xbf16> to vector<128x128xbf16>
    %cst_307 = arith.constant dense<0.000000e+00> : vector<88x128xf32>
    %254 = tpu.matmul %251, %253, %cst_307 {dimension_numbers = #tpu.dot_dimension_numbers<[1], [0], [0], [1], [0, 0, 1, 1], [], []>} : vector<88x128xbf16>, vector<128x128xbf16>, vector<88x128xf32> -> vector<88x128xf32>
    %255 = arith.addf %249, %254 : vector<88x128xf32>
    %c0_308 = arith.constant 0 : index
    %c0_309 = arith.constant 0 : index
    %c33_310 = arith.constant 33 : index
    %c0_311 = arith.constant 0 : index
    %256 = vector.load %arg4[%c0_308, %c0_309, %c33_310, %c0_311] : memref<1x1x512x128xbf16, #tpu.memory_space<vmem>>, vector<1x1x88x128xbf16>
    %257 = vector.shape_cast %256 : vector<1x1x88x128xbf16> to vector<88x128xbf16>
    %c0_312 = arith.constant 0 : index
    %c42 = arith.constant 42 : index
    %c0_313 = arith.constant 0 : index
    %c0_314 = arith.constant 0 : index
    %258 = vector.load %arg5[%c0_312, %c42, %c0_313, %c0_314] : memref<1x49x128x128xbf16, #tpu.memory_space<vmem>>, vector<1x1x128x128xbf16>
    %259 = vector.shape_cast %258 : vector<1x1x128x128xbf16> to vector<128x128xbf16>
    %cst_315 = arith.constant dense<0.000000e+00> : vector<88x128xf32>
    %260 = tpu.matmul %257, %259, %cst_315 {dimension_numbers = #tpu.dot_dimension_numbers<[1], [0], [0], [1], [0, 0, 1, 1], [], []>} : vector<88x128xbf16>, vector<128x128xbf16>, vector<88x128xf32> -> vector<88x128xf32>
    %261 = arith.addf %255, %260 : vector<88x128xf32>
    %c0_316 = arith.constant 0 : index
    %c0_317 = arith.constant 0 : index
    %c161 = arith.constant 161 : index
    %c0_318 = arith.constant 0 : index
    %262 = vector.load %arg4[%c0_316, %c0_317, %c161, %c0_318] : memref<1x1x512x128xbf16, #tpu.memory_space<vmem>>, vector<1x1x88x128xbf16>
    %263 = vector.shape_cast %262 : vector<1x1x88x128xbf16> to vector<88x128xbf16>
    %c0_319 = arith.constant 0 : index
    %c43 = arith.constant 43 : index
    %c0_320 = arith.constant 0 : index
    %c0_321 = arith.constant 0 : index
    %264 = vector.load %arg5[%c0_319, %c43, %c0_320, %c0_321] : memref<1x49x128x128xbf16, #tpu.memory_space<vmem>>, vector<1x1x128x128xbf16>
    %265 = vector.shape_cast %264 : vector<1x1x128x128xbf16> to vector<128x128xbf16>
    %cst_322 = arith.constant dense<0.000000e+00> : vector<88x128xf32>
    %266 = tpu.matmul %263, %265, %cst_322 {dimension_numbers = #tpu.dot_dimension_numbers<[1], [0], [0], [1], [0, 0, 1, 1], [], []>} : vector<88x128xbf16>, vector<128x128xbf16>, vector<88x128xf32> -> vector<88x128xf32>
    %267 = arith.addf %261, %266 : vector<88x128xf32>
    %c0_323 = arith.constant 0 : index
    %c0_324 = arith.constant 0 : index
    %c34_325 = arith.constant 34 : index
    %c0_326 = arith.constant 0 : index
    %268 = vector.load %arg4[%c0_323, %c0_324, %c34_325, %c0_326] : memref<1x1x512x128xbf16, #tpu.memory_space<vmem>>, vector<1x1x88x128xbf16>
    %269 = vector.shape_cast %268 : vector<1x1x88x128xbf16> to vector<88x128xbf16>
    %c0_327 = arith.constant 0 : index
    %c44 = arith.constant 44 : index
    %c0_328 = arith.constant 0 : index
    %c0_329 = arith.constant 0 : index
    %270 = vector.load %arg5[%c0_327, %c44, %c0_328, %c0_329] : memref<1x49x128x128xbf16, #tpu.memory_space<vmem>>, vector<1x1x128x128xbf16>
    %271 = vector.shape_cast %270 : vector<1x1x128x128xbf16> to vector<128x128xbf16>
    %cst_330 = arith.constant dense<0.000000e+00> : vector<88x128xf32>
    %272 = tpu.matmul %269, %271, %cst_330 {dimension_numbers = #tpu.dot_dimension_numbers<[1], [0], [0], [1], [0, 0, 1, 1], [], []>} : vector<88x128xbf16>, vector<128x128xbf16>, vector<88x128xf32> -> vector<88x128xf32>
    %273 = arith.addf %267, %272 : vector<88x128xf32>
    %c0_331 = arith.constant 0 : index
    %c0_332 = arith.constant 0 : index
    %c162 = arith.constant 162 : index
    %c0_333 = arith.constant 0 : index
    %274 = vector.load %arg4[%c0_331, %c0_332, %c162, %c0_333] : memref<1x1x512x128xbf16, #tpu.memory_space<vmem>>, vector<1x1x88x128xbf16>
    %275 = vector.shape_cast %274 : vector<1x1x88x128xbf16> to vector<88x128xbf16>
    %c0_334 = arith.constant 0 : index
    %c45 = arith.constant 45 : index
    %c0_335 = arith.constant 0 : index
    %c0_336 = arith.constant 0 : index
    %276 = vector.load %arg5[%c0_334, %c45, %c0_335, %c0_336] : memref<1x49x128x128xbf16, #tpu.memory_space<vmem>>, vector<1x1x128x128xbf16>
    %277 = vector.shape_cast %276 : vector<1x1x128x128xbf16> to vector<128x128xbf16>
    %cst_337 = arith.constant dense<0.000000e+00> : vector<88x128xf32>
    %278 = tpu.matmul %275, %277, %cst_337 {dimension_numbers = #tpu.dot_dimension_numbers<[1], [0], [0], [1], [0, 0, 1, 1], [], []>} : vector<88x128xbf16>, vector<128x128xbf16>, vector<88x128xf32> -> vector<88x128xf32>
    %279 = arith.addf %273, %278 : vector<88x128xf32>
    %c0_338 = arith.constant 0 : index
    %c0_339 = arith.constant 0 : index
    %c35_340 = arith.constant 35 : index
    %c0_341 = arith.constant 0 : index
    %280 = vector.load %arg4[%c0_338, %c0_339, %c35_340, %c0_341] : memref<1x1x512x128xbf16, #tpu.memory_space<vmem>>, vector<1x1x88x128xbf16>
    %281 = vector.shape_cast %280 : vector<1x1x88x128xbf16> to vector<88x128xbf16>
    %c0_342 = arith.constant 0 : index
    %c46 = arith.constant 46 : index
    %c0_343 = arith.constant 0 : index
    %c0_344 = arith.constant 0 : index
    %282 = vector.load %arg5[%c0_342, %c46, %c0_343, %c0_344] : memref<1x49x128x128xbf16, #tpu.memory_space<vmem>>, vector<1x1x128x128xbf16>
    %283 = vector.shape_cast %282 : vector<1x1x128x128xbf16> to vector<128x128xbf16>
    %cst_345 = arith.constant dense<0.000000e+00> : vector<88x128xf32>
    %284 = tpu.matmul %281, %283, %cst_345 {dimension_numbers = #tpu.dot_dimension_numbers<[1], [0], [0], [1], [0, 0, 1, 1], [], []>} : vector<88x128xbf16>, vector<128x128xbf16>, vector<88x128xf32> -> vector<88x128xf32>
    %285 = arith.addf %279, %284 : vector<88x128xf32>
    %c0_346 = arith.constant 0 : index
    %c0_347 = arith.constant 0 : index
    %c163 = arith.constant 163 : index
    %c0_348 = arith.constant 0 : index
    %286 = vector.load %arg4[%c0_346, %c0_347, %c163, %c0_348] : memref<1x1x512x128xbf16, #tpu.memory_space<vmem>>, vector<1x1x88x128xbf16>
    %287 = vector.shape_cast %286 : vector<1x1x88x128xbf16> to vector<88x128xbf16>
    %c0_349 = arith.constant 0 : index
    %c47 = arith.constant 47 : index
    %c0_350 = arith.constant 0 : index
    %c0_351 = arith.constant 0 : index
    %288 = vector.load %arg5[%c0_349, %c47, %c0_350, %c0_351] : memref<1x49x128x128xbf16, #tpu.memory_space<vmem>>, vector<1x1x128x128xbf16>
    %289 = vector.shape_cast %288 : vector<1x1x128x128xbf16> to vector<128x128xbf16>
    %cst_352 = arith.constant dense<0.000000e+00> : vector<88x128xf32>
    %290 = tpu.matmul %287, %289, %cst_352 {dimension_numbers = #tpu.dot_dimension_numbers<[1], [0], [0], [1], [0, 0, 1, 1], [], []>} : vector<88x128xbf16>, vector<128x128xbf16>, vector<88x128xf32> -> vector<88x128xf32>
    %291 = arith.addf %285, %290 : vector<88x128xf32>
    %c0_353 = arith.constant 0 : index
    %c0_354 = arith.constant 0 : index
    %c36_355 = arith.constant 36 : index
    %c0_356 = arith.constant 0 : index
    %292 = vector.load %arg4[%c0_353, %c0_354, %c36_355, %c0_356] : memref<1x1x512x128xbf16, #tpu.memory_space<vmem>>, vector<1x1x88x128xbf16>
    %293 = vector.shape_cast %292 : vector<1x1x88x128xbf16> to vector<88x128xbf16>
    %c0_357 = arith.constant 0 : index
    %c48 = arith.constant 48 : index
    %c0_358 = arith.constant 0 : index
    %c0_359 = arith.constant 0 : index
    %294 = vector.load %arg5[%c0_357, %c48, %c0_358, %c0_359] : memref<1x49x128x128xbf16, #tpu.memory_space<vmem>>, vector<1x1x128x128xbf16>
    %295 = vector.shape_cast %294 : vector<1x1x128x128xbf16> to vector<128x128xbf16>
    %cst_360 = arith.constant dense<0.000000e+00> : vector<88x128xf32>
    %296 = tpu.matmul %293, %295, %cst_360 {dimension_numbers = #tpu.dot_dimension_numbers<[1], [0], [0], [1], [0, 0, 1, 1], [], []>} : vector<88x128xbf16>, vector<128x128xbf16>, vector<88x128xf32> -> vector<88x128xf32>
    %297 = arith.addf %291, %296 : vector<88x128xf32>
    %c0_361 = arith.constant 0 : index
    %c0_362 = arith.constant 0 : index
    %298 = vector.load %arg8[%c0_361, %c0_362] : memref<88x128xf32, #tpu.memory_space<vmem>>, vector<88x128xf32>
    tpu.vector_store %arg8[%c0_361, %c0_362], %297 {strides = array<i32>} : memref<88x128xf32, #tpu.memory_space<vmem>>, vector<88x128xf32>,
    %c6_i32 = arith.constant 6 : i32
    %299 = arith.cmpi eq, %arg3, %c6_i32 : i32
    %300 = arith.extui %299 : i1 to i32
    %c0_i32_363 = arith.constant 0 : i32
    %301 = arith.cmpi ne, %300, %c0_i32_363 : i32
    scf.if %301 {
      %c0_364 = arith.constant 0 : index
      %c0_365 = arith.constant 0 : index
      %302 = vector.load %arg8[%c0_364, %c0_365] : memref<88x128xf32, #tpu.memory_space<vmem>>, vector<88x128xf32>
      %c0_366 = arith.constant 0 : index
      %c0_367 = arith.constant 0 : index
      %303 = vector.load %arg6[%c0_366, %c0_367] : memref<1x128xf32, #tpu.memory_space<vmem>>, vector<1x128xf32>
      %304 = vector.broadcast %303 : vector<1x128xf32> to vector<88x128xf32>
      %305 = arith.addf %302, %304 : vector<88x128xf32>
      %cst_368 = arith.constant 0.000000e+00 : f32
      %306 = vector.broadcast %cst_368 : f32 to vector<88x128xf32>
      %307 = arith.maximumf %305, %306 : vector<88x128xf32>
      %308 = arith.truncf %307 : vector<88x128xf32> to vector<88x128xbf16>
      %c0_369 = arith.constant 0 : index
      %c0_370 = arith.constant 0 : index
      %c0_371 = arith.constant 0 : index
      %c0_372 = arith.constant 0 : index
      %309 = vector.load %arg7[%c0_369, %c0_370, %c0_371, %c0_372] : memref<1x1x88x128xbf16, #tpu.memory_space<vmem>>, vector<1x1x88x128xbf16>
      %310 = vector.shape_cast %309 : vector<1x1x88x128xbf16> to vector<88x128xbf16>
      %311 = vector.shape_cast %308 : vector<88x128xbf16> to vector<1x1x88x128xbf16>
      tpu.vector_store %arg7[%c0_369, %c0_370, %c0_371, %c0_372], %311 {strides = array<i32>} : memref<1x1x88x128xbf16, #tpu.memory_space<vmem>>, vector<1x1x88x128xbf16>,
    } else {
    }
    return
  }
  func.func @transform_0(%arg0: i32, %arg1: i32, %arg2: i32, %arg3: i32) -> (i32, i32, i32, i32) {
    %c1_i32 = arith.constant 1 : i32
    %0 = arith.muli %arg1, %c1_i32 : i32
    %1 = arith.addi %0, %arg3 : i32
    %c0_i32 = arith.constant 0 : i32
    %c0_i32_0 = arith.constant 0 : i32
    %c0_i32_1 = arith.constant 0 : i32
    return %arg0, %1, %c0_i32, %c0_i32_0 : i32, i32, i32, i32
  }
  func.func @transform_1(%arg0: i32, %arg1: i32, %arg2: i32, %arg3: i32) -> (i32, i32, i32, i32) {
    %c0_i32 = arith.constant 0 : i32
    %c0_i32_0 = arith.constant 0 : i32
    %c0_i32_1 = arith.constant 0 : i32
    return %arg3, %c0_i32, %c0_i32_0, %arg2 : i32, i32, i32, i32
  }
  func.func @transform_2(%arg0: i32, %arg1: i32, %arg2: i32, %arg3: i32) -> (i32, i32) {
    %c0_i32 = arith.constant 0 : i32
    %c0_i32_0 = arith.constant 0 : i32
    return %c0_i32, %arg2 : i32, i32
  }
  func.func @transform_3(%arg0: i32, %arg1: i32, %arg2: i32, %arg3: i32) -> (i32, i32, i32, i32) {
    %c0_i32 = arith.constant 0 : i32
    %c0_i32_0 = arith.constant 0 : i32
    return %arg0, %arg1, %c0_i32, %arg2 : i32, i32, i32, i32
  }
}

</mosaic_0001>

<bundles_post_ra>
// kernel: tpu_custom_call.1
= control target key start
LH: loop header
LB: loop body
LE: loop exit
PB: predicated region body
PF: predicated region fallthrough
CT: control target
= control target key end

     0   :  { %s18321_s0 = inlined_call_operand.hbm [shape: bf16[2,10,512,128], index: 0, kind: input, shape index: {}]   ;;  %s18322_s1 = inlined_call_operand.hbm [shape: bf16[7,49,128,128], index: 1, kind: input, shape index: {}]   ;;  %s18323_s2 = inlined_call_operand.hbm [shape: f32[1,128], index: 2, kind: input, shape index: {}]   ;;  %s18324_s3 = inlined_call_operand.hbm [shape: bf16[2,4,88,128], index: 3, kind: output, shape index: {}]  }
   0x1   :  { %18419 = sst [smem:[#allocation67_spill]] %s18323_s2 }
   0x2   :  { %18420 = sst [smem:[#allocation68_spill]] %s18324_s3 }
   0x3   :  { %8 = vsyncpa [#allocation4], 0 }
   0x4   :  { %10 = vsyncpa [#allocation4 + $0x1], 0 }
   0x5   :  { %11 = vsyncpa [#allocation7], 0 }
   0x6   :  { %13 = vsyncpa [#allocation7 + $0x1], 0 }
   0x7   :  { %14 = vsyncpa [#allocation5], 0 }
   0x8   :  { %16 = vsyncpa [#allocation5 + $0x1], 0  ;;  %s15654_s12 = smov 0   ;;  %s15656_s13 = smov 0  }
   0x9   :  { %s15658_s14 = smov 0   ;;  %s15660_s15 = smov 0  }
   0xa   :  { %s15662_s16 = smov 0   ;;  %s15664_s17 = smov 0  }
   0xb   :  { %s15666_s18 = smov 0   ;;  %s15668_s19 = smov 0  }
   0xc   :  { %s15670_s20 = smov 0   ;;  %s15672_s21 = smov 0  }
   0xd   :  { %s15674_s22 = smov 0   ;;  %s15676_s23 = smov 0  }
   0xe   :  { %s15678_s24 = smov 0   ;;  %s15680_s25 = smov 0  }
   0xf   :  { %s15682_s26 = smov 0   ;;  %s15684_s27 = smov 0  }
  0x10 LB: > { %18421 = sst [smem:[#allocation14_spill]] %s15563_s12  ;;  %s15731_s28 = sadd.s32 4294967295, %s15623_s27   ;;  %s15623_s27 = sphi %s15684_s27, %s22_s27   ;;  %s15619_s26 = sphi %s15682_s26, %s18651_s26   ;;  %s15615_s25 = sphi %s15680_s25, %s18650_s25   ;;  %s15611_s24 = sphi %s15678_s24, %s18649_s24   ;;  %s15607_s23 = sphi %s15676_s23, %s18648_s23   ;;  %s15603_s22 = sphi %s15674_s22, %s18637_s22   ;;  %s15599_s21 = sphi %s15672_s21, %s18647_s21   ;;  %s15595_s20 = sphi %s15670_s20, %s18646_s20   ;;  %s15591_s19 = sphi %s15668_s19, %s18645_s19   ;;  %s15587_s18 = sphi %s15666_s18, %s18636_s18   ;;  %s15583_s17 = sphi %s15664_s17, %s18644_s17   ;;  %s15579_s16 = sphi %s15662_s16, %s18643_s16   ;;  %s15575_s15 = sphi %s15660_s15, %s18634_s15   ;;  %s15571_s14 = sphi %s15658_s14, %s18642_s14   ;;  %s15567_s13 = sphi %s15656_s13, %s18641_s13   ;;  %s15563_s12 = sphi %s15654_s12, %s18640_s12  }
  0x11   : > { %18422 = sst [smem:[#allocation15_spill]] %s15567_s13  ;;  %s10729_s29 = sadd.s32 4294967294, %s15623_s27  }
  0x12   : > { %18423 = sst [smem:[#allocation16_spill]] %s15579_s16  ;;  %p18325_p0 = scmp.eq.s32.totalorder %s15623_s27, 0 }
  0x13   : > { %18424 = sst [smem:[#allocation17_spill]] %s15591_s19  ;;  %p72_p1 = scmp.ne.s32.totalorder %s15591_s19, %s15587_s18 }
  0x14   : > { %18425 = sst [smem:[#allocation18_spill]] %s15599_s21  ;;  %p18329_p2 = scmp.eq.s32.totalorder %s15731_s28, 0 }
  0x15   : > { %18426 = sst [smem:[#allocation19_spill]] %s15603_s22  ;;  %p94_p3 = scmp.ne.s32.totalorder %s15583_s17, %s15579_s16 }
  0x16   : > { %18427 = sst [smem:[#allocation20_spill]] %s15607_s23  ;;  %p100_p4 = scmp.ne.s32.totalorder %s15579_s16, %s15575_s15 }
  0x17   : > { %18428 = sst [smem:[#allocation21_spill]] %s15615_s25  ;;  %p15743_p5 = por %p18329_p2, %p72_p1 }
  0x18   : > { %18429 = sst [smem:[#allocation22_spill]] %s15731_s28  ;;  %p15750_p6 = por %p94_p3, %p18325_p0 }
  0x19   : > { %s18430_s4 = scalar_select %p15743_p5, 1, 0 }
  0x1a   : > { %p15756_p7 = por %p100_p4, %p18329_p2  ;;  %p153_p8 = scmp.ne.s32.totalorder %s15571_s14, %s15567_s13 }
  0x1b   : > { %18431 = sst [smem:[#allocation23_spill]] %s18430_s4  ;;  %p154_p9 = scmp.eq.s32.totalorder %s15731_s28, 55 }
  0x1c   : > { %s18433_s7 = scalar_select %p15756_p7, 1, 0 }
  0x1d   : > { %p159_p10 = scmp.ne.s32.totalorder %s15567_s13, %s15563_s12  ;;  %p160_p11 = scmp.eq.s32.totalorder %s10729_s29, 55 }
  0x1e   : > { %18434 = sst [smem:[#allocation24_spill]] %s18433_s7  ;;  %p15765_p12 = por %p154_p9, %p153_p8 }
  0x1f   : > { %p10730_p13 = scmp.ge.s32.totalorder %s15623_s27, 1  ;;  %p15770_p1 = por %p160_p11, %p159_p10 }
  0x20   : > { %s18435_s8 = scalar_select %p15765_p12, 1, 0 }
  0x21   : > { %s18437_s9 = scalar_select %p15770_p1, 1, 0 }
  0x22   : > { %18436 = sst [smem:[#allocation25_spill]] %s18435_s8  ;;  %p167_p3 = scmp.lt.s32.totalorder %s15623_s27, 57 }
  0x23   : > { %18438 = sst [smem:[#allocation26_spill]] %s18437_s9  ;;  %s15625_s11 = smov [#allocation8]  }
  0x24   : > { %p15775_p4 = pnand %p10730_p13, %p167_p3  ;;  %s182_s15 = sshll.u32 %s15625_s11, 4  ;;  %s183_s15 = int_to_ptr.vmem [resolvable:$true] %s182_s15 }
  0x25   : > { %p18332_p8 = scmp.lt.s32.totalorder %s15623_s27, 56  ;;  %s18443_s2 = sld [smem:[#allocation67_spill]] }
  0x26   : > { %s18439_s10 = scalar_select %p15775_p4, 1, 0 }
  0x27   : > { %p14609_p0 = pneg %p15775_p4  ;;  %p15792_p10 = pnand %p18332_p8, %p15750_p6 }
  0x28   : > { %18440 = sst [smem:[#allocation27_spill]] %s18439_s10 }
  0x29   : > { %p15784_p9 = pnand %p14609_p0, %p18329_p2 }
  0x2a   : > { %s18442_s29 = scalar_select %p15792_p10, 1, 0 }
  0x2b   : > { %s15365_s11 = scalar_lea.hbm %s18443_s2, 16  ;;  %p15367_p0 = pneg %p15784_p9 }
  0x2c   : > { %p15366_p11 = scmp.ne.s32.totalorder %s18443_s2, %s15365_s11  ;;  %p15372_p2 = scmp.lt.u32.totalorder %s15365_s11, %s18443_s2 }
  0x2e   : > { %p15368_p13 = pnand %p15367_p0, %p15366_p11 }
  0x30   : > { %p15369_p3 = pneg %p15368_p13 }
  0x32   : > { %p15374_p6 = pnand %p15372_p2, %p15369_p3 }
  0x34   : > { %15377 = shalt.err (!%p15374_p6)
}
  0x35   : > { %s15378_s8 = scalar_lea.vmem %s183_s15, 16  ;;  %s15385_s30 = scalar_lea.vmem %s183_s15, 32 }
  0x36   : > { %p15379_p8 = scmp.ne.s32.totalorder %s183_s15, %s15378_s8  ;;  %p15386_p7 = scmp.lt.s32.totalorder %s183_s15, %s183_s15 }
  0x37   : > { %p15387_p5 = scmp.lt.s32.totalorder %s15385_s30, %s15378_s8 }
  0x38   : > { %p15381_p1 = pnand %p15379_p8, %p15367_p0 }
  0x39   : > { %p15388_p4 = por %p15387_p5, %p15386_p7 }
  0x3a   : > { %p15382_p12 = pneg %p15381_p1 }
  0x3c   : > { %p15389_p10 = pnand %p15388_p4, %p15382_p12 }
  0x3e   : > { %15392 = shalt.err (!%p15389_p10)
}
  0x3f   : > { %14612 = dma.hbm_to_vmem [thread:$0]  (!%p15784_p9), %s18443_s2, 16, %s183_s15, [#allocation7]  }
  0x40   : > { %s37_s3 = sadd.s32 1, %s15611_s24  ;;  %s44_s8 = sadd.s32 1, %s15615_s25 }
  0x41   : > { %p38_p2 = scmp.ge.s32.totalorder %s37_s3, 7  ;;  %s48_s9 = sadd.s32 1, %s15619_s26 }
  0x42   : > { %s15817_s18 = sadd.s32 %s15611_s24, %s15615_s25  ;;  %s59_s11 = sadd.s32 1, %s15595_s20 }
  0x43   : > { %s18653_s3 = smov (%p38_p2, %s37_s3), 0  ;;  %s18655_s8 = smov (!%p38_p2, %s44_s8), %s15615_s25 }
  0x44   : > { %18444 = sst [smem:[#allocation28_spill]] %s18653_s3  ;;  %p66_p5 = scmp.ne.s32.totalorder %s15595_s20, %s15591_s19 }
  0x45   : > { %s82_s15 = ssub.s32 %s15611_s24, %s18653_s3  ;;  %p46_p7 = scmp.ge.s32.totalorder %s18655_s8, 4 }
  0x46   : > { %p85_p12 = scmp.eq.s32.totalorder %s82_s15, 0  ;;  %p18445_p1 = scmp.eq.s32.totalorder %s15623_s27, 0 }
  0x47   : > { %s193_s30 = sand.u32 1, %s15595_s20   ;;  %s18657_s8 = smov (%p46_p7, %s18655_s8), 0 }
  0x48   : > { %p15829_p4 = por %p18445_p1, %p66_p5  ;;  %18447 = sst [smem:[#allocation29_spill]] %s18657_s8 }
  0x49   : > { %s18659_s9 = smov (!%p46_p7, %s48_s9), %s15619_s26  ;;  %s53_s12 = sadd.s32 %s18657_s8, %s18653_s3 }
  0x4a   : > { %s137_s5 = ssub.s32 %s15615_s25, %s18657_s8  ;;  %p50_p8 = scmp.ge.s32.totalorder %s18659_s9, 2 }
  0x4b   : > { %s55_s15 = ssub.s32 %s15817_s18, %s53_s12  ;;  %s18448_s2 = sadd.s32 1, %s15583_s17 }
  0x4c   : > { %s15845_s23 = scalar_select %p85_p12, %s15583_s17, %s18448_s2  }
  0x4d   : > { %s18661_s9 = smov (%p50_p8, %s18659_s9), 0  ;;  %s10733_s22 = sshll.u32 %s193_s30, 8 }
  0x4e   : > { %18449 = sst [smem:[#allocation30_spill]] %s15845_s23  ;;  %s54_s21 = ssub.s32 %s15619_s26, %s18661_s9 }
  0x4f   : > { %s56_s13 = sor.u32 %s55_s15, %s54_s21  ;;  %s138_s7 = sor.u32 %s137_s5, %s54_s21 }
  0x50   : > { %p57_p9 = scmp.eq.s32.totalorder %s56_s13, 0  ;;  %p141_p10 = scmp.eq.s32.totalorder %s138_s7, 0 }
  0x51   : > { %s10734_s16 = sshll.u32 %s15817_s18, 6  ;;  %s14592_s28 = smul.u32 640, %s15619_s26 }
  0x52   : > { %s15854_s3 = scalar_select %p57_p9, %s15595_s20, %s59_s11  }
  0x53   : > { %s18450_s8 = sadd.s32 1, %s15571_s14  ;;  %s204_s2 = sadd.s32 %s14592_s28, %s10734_s16 }
  0x54   : > { %s15859_s12 = scalar_select %p141_p10, %s15571_s14, %s18450_s8  }
  0x55   : > { %s197_s25 = scalar_lea.vmem [#allocation3], %s10733_s22  ;;  %s10735_s4 = sshll.u32 %s204_s2, 6 }
  0x56   : > { %s207_s23 = sshll.u32 %s197_s25, 4  ;;  %s15866_s15 = scalar_lea.hbm %s18321_s0, %s10735_s4  ;;  %s15861_s23 = int_to_ptr.vmem [resolvable:$true] %s207_s23 }
  0x57   : > { %p18451_p11 = scmp.lt.s32.totalorder %s15623_s27, 56  ;;  %s15876_s16 = scalar_lea.sflag [#allocation4], %s193_s30 }
  0x58   : > { %s15393_s21 = scalar_lea.hbm %s15866_s15, 4096  ;;  %s15398_s25 = scalar_lea.hbm %s18321_s0, 81920 }
  0x59   : > { %p15872_p0 = pnand %p18451_p11, %p15829_p4  ;;  %p15394_p13 = scmp.ne.s32.totalorder %s15866_s15, %s15393_s21 }
  0x5a   : > { %p15399_p5 = scmp.lt.u32.totalorder %s15866_s15, %s18321_s0  ;;  %p15400_p7 = scmp.lt.u32.totalorder %s15398_s25, %s15393_s21 }
  0x5b   : > { %p15395_p3 = pneg %p15872_p0  ;;  %p15402_p1 = scmp.lt.u32.totalorder %s15393_s21, %s15866_s15 }
  0x5c   : > { %p15401_p12 = por %p15400_p7, %p15399_p5 }
  0x5d   : > { %p15396_p6 = pnand %p15395_p3, %p15394_p13 }
  0x5e   : > { %p15403_p4 = por %p15402_p1, %p15401_p12 }
  0x5f   : > { %p15397_p2 = pneg %p15396_p6 }
  0x61   : > { %p15404_p8 = pnand %p15403_p4, %p15397_p2 }
  0x63   : > { %15407 = shalt.err (!%p15404_p8)
}
  0x64   : > { %s15408_s7 = scalar_lea.vmem %s15861_s23, 4096  ;;  %s15626_s10 = smov [#allocation3]  }
  0x65   : > { %p15409_p9 = scmp.ne.s32.totalorder %s15861_s23, %s15408_s7  ;;  %s15413_s8 = sshll.u32 %s15626_s10, 4  ;;  %s15414_s8 = int_to_ptr.vmem [resolvable:$false] %s15413_s8 }
  0x66   : > { %s15415_s18 = scalar_lea.vmem %s15414_s8, 8192  ;;  %p15416_p13 = scmp.lt.s32.totalorder %s15861_s23, %s15414_s8 }
  0x67   : > { %p15411_p10 = pnand %p15409_p9, %p15395_p3  ;;  %p15417_p6 = scmp.lt.s32.totalorder %s15415_s18, %s15408_s7 }
  0x69   : > { %p15412_p11 = pneg %p15411_p10  ;;  %p15418_p5 = por %p15417_p6, %p15416_p13 }
  0x6b   : > { %p15419_p7 = pnand %p15418_p5, %p15412_p11 }
  0x6d   : > { %15422 = shalt.err (!%p15419_p7)
}
  0x6e   : > { %s15627_s11 = smov 64   ;;  %s15628_s6 = smov 4  }
  0x6f   : > { %14616 = dma.hbm_to_vmem [thread:$0]  (!%p15872_p0), %s15866_s15, 4096, %s15861_s23, %s15876_s16, %s15627_s11, %s15627_s11, %s15628_s6  }
  0x70   : > { %s217_s30 = sand.u32 1, %s15623_s27   ;;  %s219_s5 = sand.u32 1, %s15583_s17  }
  0x71   : > { %s14593_s2 = smul.u32 3136, %s219_s5  ;;  %s15917_s13 = scalar_lea.sflag [#allocation7], %s217_s30 }
  0x72   : > { %s14594_s21 = smul.u32 50176, %s15611_s24  ;;  %p18453_p3 = scmp.ne.s32.totalorder %s18442_s29, 0 }
  0x73   : > { %s221_s28 = scalar_lea.vmem [#allocation6], %s14593_s2  ;;  %s15428_s7 = scalar_lea.hbm %s18322_s1, 351232 }
  0x74   : > { %s15913_s25 = scalar_lea.hbm %s18322_s1, %s14594_s21  ;;  %s229_s4 = sshll.u32 %s221_s28, 4  ;;  %s15915_s4 = int_to_ptr.vmem [resolvable:$true] %s229_s4 }
  0x75   : > { %s15423_s23 = scalar_lea.hbm %s15913_s25, 50176  ;;  %p15425_p2 = pneg %p18453_p3 }
  0x76   : > { %p15424_p0 = scmp.ne.s32.totalorder %s15913_s25, %s15423_s23  ;;  %p15429_p4 = scmp.lt.u32.totalorder %s15913_s25, %s18322_s1 }
  0x77   : > { %p15430_p8 = scmp.lt.u32.totalorder %s15428_s7, %s15423_s23  ;;  %p15432_p10 = scmp.lt.u32.totalorder %s15423_s23, %s15913_s25 }
  0x78   : > { %p15426_p12 = pnand %p15425_p2, %p15424_p0 }
  0x79   : > { %p15431_p9 = por %p15430_p8, %p15429_p4 }
  0x7a   : > { %p15427_p1 = pneg %p15426_p12 }
  0x7b   : > { %p15433_p11 = por %p15432_p10, %p15431_p9 }
  0x7d   : > { %p15434_p13 = pnand %p15433_p11, %p15427_p1 }
  0x7f   : > { %15437 = shalt.err (!%p15434_p13)
}
  0x80   : > { %s15438_s18 = scalar_lea.vmem %s15915_s4, 50176  ;;  %s15629_s30 = smov [#allocation6]  }
  0x81   : > { %p15439_p6 = scmp.ne.s32.totalorder %s15915_s4, %s15438_s18  ;;  %s15443_s5 = sshll.u32 %s15629_s30, 4  ;;  %s15444_s5 = int_to_ptr.vmem [resolvable:$false] %s15443_s5 }
  0x82   : > { %s15445_s2 = scalar_lea.vmem %s15444_s5, 100352  ;;  %p15446_p0 = scmp.lt.s32.totalorder %s15915_s4, %s15444_s5 }
  0x83   : > { %p15441_p5 = pnand %p15439_p6, %p15425_p2  ;;  %p15447_p12 = scmp.lt.s32.totalorder %s15445_s2, %s15438_s18 }
  0x85   : > { %p15442_p7 = pneg %p15441_p5  ;;  %p15448_p4 = por %p15447_p12, %p15446_p0 }
  0x87   : > { %p15449_p8 = pnand %p15448_p4, %p15442_p7 }
  0x89   : > { %15452 = shalt.err (!%p15449_p8)
}
  0x8a   : > { %14619 = dma.hbm_to_vmem [thread:$0]  (!%p18453_p3), %s15913_s25, 50176, %s15915_s4, %s15917_s13, %s15627_s11, %s15627_s11, %s15628_s6  }
  0x8b   : > { %s18454_s21 = sld [smem:[#allocation27_spill]] }
  0x91   : > { %p18455_p2 = scmp.ne.s32.totalorder %s18454_s21, 0 }
  0x93   : > { %241 = sbr.rel (%p18455_p2) target bundleno = 1290 (0x50a), region = 32 }
  0x9a   : > { %s18456_s19 = sld [smem:[#allocation17_spill]]  ;;  %s18457_s22 = sld [smem:[#allocation23_spill]] }
  0xa0   : > { %s243_s28 = sand.u32 1, %s18456_s19   ;;  %p18458_p1 = scmp.ne.s32.totalorder %s18457_s22, 0 }
  0xa1   : > { %s10738_s23 = sshll.u32 %s243_s28, 8  ;;  %s244_s15 = scalar_lea.sflag [#allocation4], %s243_s28 }
  0xa2   : > { %s15951_s16 = scalar_lea.vmem [#allocation3], %s10738_s23 }
  0xa3   : > { %15546 = dma.done.wait (%p18458_p1), %s244_s15, 4096  }
  0xa4   : > { %15548 = vsyncadd (%p18458_p1), %s244_s15, 4294963200  ;;  %s18459_s29 = sld [smem:[#allocation22_spill]]  ;;  %s18460_s7 = sld [smem:[#allocation16_spill]] }
  0xa5   : > { %s18461_s10 = sld [smem:[#allocation24_spill]] }
  0xaa   : > { %s252_s8 = sand.u32 1, %s18459_s29   ;;  %s254_s11 = sand.u32 1, %s18460_s7  }
  0xab   : > { %s14595_s6 = smul.u32 3136, %s254_s11  ;;  %s253_s25 = scalar_lea.sflag [#allocation7], %s252_s8 }
  0xac   : > { %p18462_p3 = scmp.ne.s32.totalorder %s18461_s10, 0 }
  0xad   : > { %s15959_s4 = scalar_lea.vmem [#allocation6], %s14595_s6 }
  0xae   : > { %15550 = dma.done.wait (%p18462_p3), %s253_s25, 50176  }
  0xaf   : > { %15552 = vsyncadd (%p18462_p3), %s253_s25, 4294917120  ;;  %p18463_p9 = scmp.eq.s32.totalorder %s18459_s29, 0 }
  0xb1   : > { %15554 = dma.done.wait (%p18463_p9), [#allocation7], 16   ;;  %p18464_p10 = pmov %p18463_p9 }
  0xb2   : > { %s18465_s13 = sld [smem:[#allocation15_spill]] }
  0xb3   : > { %15556 = vsyncadd (%p18464_p10), [#allocation7], 4294967280  ;;  %s18466_s2 = sld [smem:[#allocation18_spill]] }
  0xb8   : > { %s285_s18 = sand.u32 1, %s18465_s13  }
  0xb9   : > { %s14596_s30 = smul.u32 44, %s285_s18  ;;  %p10740_p11 = scmp.ne.s32.totalorder %s18466_s2, 0 }
  0xba   : > { %v15630_v0 = vmov (!%p10740_p11), 0.0  }
  0xbb   : > { %s15972_s5 = scalar_lea.vmem [#allocation9], %s14596_s30  ;;  %293 = sbr.rel (%p10740_p11) target bundleno = 194 (0xc2), region = 48  ;;  %294 = vst [vmem:[#allocation2] sm:$0xff] (!%p10740_p11), %v15630_v0  ;;  %295 = vst [vmem:[#allocation2 + $0x8] sm:$0xff] (!%p10740_p11), %v15630_v0 }
  0xbc   : > { %296 = vst [vmem:[#allocation2 + $0x10] sm:$0xff] (!%p10740_p11), %v15630_v0  ;;  %297 = vst [vmem:[#allocation2 + $0x18] sm:$0xff] (!%p10740_p11), %v15630_v0 }
  0xbd   : > { %298 = vst [vmem:[#allocation2 + $0x20] sm:$0xff] (!%p10740_p11), %v15630_v0  ;;  %299 = vst [vmem:[#allocation2 + $0x28] sm:$0xff] (!%p10740_p11), %v15630_v0 }
  0xbe   : > { %300 = vst [vmem:[#allocation2 + $0x30] sm:$0xff] (!%p10740_p11), %v15630_v0  ;;  %301 = vst [vmem:[#allocation2 + $0x38] sm:$0xff] (!%p10740_p11), %v15630_v0 }
  0xbf   : > { %302 = vst [vmem:[#allocation2 + $0x40] sm:$0xff] (!%p10740_p11), %v15630_v0  ;;  %303 = vst [vmem:[#allocation2 + $0x48] sm:$0xff] (!%p10740_p11), %v15630_v0 }
  0xc0   : > { %304 = vst [vmem:[#allocation2 + $0x50] sm:$0xff] (!%p10740_p11), %v15630_v0 }
  0xc2 PF: > { %v14762_v1 = vld [vmem:[%s15959_s4] sm:$0xff]   ;;  %v14764_v3 = vld [vmem:[%s15959_s4 + $0x8] sm:$0xff]   ;;  %v14766_v5 = vld [vmem:[%s15959_s4 + $0x10] sm:$0xff]   ;;  %vm3767_vm0 = vcmask 1045504   ;;  %vm4122_vm1 = vsmask.f32 5376 }
  0xc3   : > { %v14763_v2 = vld [vmem:[%s15959_s4 + $0x600] sm:$0xff]   ;;  %12812 = vmatprep.subr.bf16.mxu1 %v14762_v1  ;;  %v14765_v4 = vld [vmem:[%s15959_s4 + $0x608] sm:$0xff]   ;;  %v14767_v6 = vld [vmem:[%s15959_s4 + $0x610] sm:$0xff]   ;;  %vm776_vm2 = vsmask.f32 7424  ;;  %vm1241_vm3 = vcmask 1046528  }
  0xc4   : > { %13484 = vmatprep.subr.bf16.mxu0 %v14763_v2  ;;  %12813 = vmatpush3.bf16.msra.mxu1 %v14762_v1  ;;  %v14768_v7 = vld [vmem:[%s15959_s4 + $0x18] sm:$0xff]   ;;  %v14770_v9 = vld [vmem:[%s15959_s4 + $0x20] sm:$0xff]   ;;  %v14772_v11 = vld [vmem:[%s15959_s4 + $0x28] sm:$0xff]   ;;  %vm4521_vm4 = vcmask 1044480   ;;  %vm1596_vm5 = vsmask.f32 6400 }
  0xc5   : > { %13485 = vmatpush3.bf16.msra.mxu0 %v14763_v2  ;;  %12814 = vmatprep.subr.bf16.mxu1 %v14764_v3  ;;  %v14769_v8 = vld [vmem:[%s15959_s4 + $0x618] sm:$0xff]   ;;  %v14771_v10 = vld [vmem:[%s15959_s4 + $0x620] sm:$0xff]   ;;  %v14773_v13 = vld [vmem:[%s15959_s4 + $0x628] sm:$0xff]   ;;  %vm6572_vm6 = vsmask.f32 4352  ;;  %s18621_s21 = sld [smem:[#allocation18_spill]] }
  0xc6   : > { %13486 = vmatprep.subr.bf16.mxu0 %v14765_v4  ;;  %v14778_v12 = vld [vmem:[%s15951_s16] sm:$0xff]   ;;  %v4936_v14 = vld [vmem:[%s15951_s16 + $0xc8] sm:$0xf]  ;;  %v15990_v15 = vld [vmem:[%s15951_s16 + $0xcc] sm:$0xff]  }
  0xc7   : > { %12828 = vmatprep.mubr.bf16.mxu1 %v14778_v12  ;;  %v5369_v16 = vld [vmem:[%s15951_s16 + $0xc4] sm:$0xc]  ;;  %v14774_v17 = vld [vmem:[%s15959_s4 + $0x30] sm:$0xff]   ;;  %v5391_v20 = vrot.slane %v15990_v15, 2  ;;  %v14776_v22 = vld [vmem:[%s15959_s4 + $0x38] sm:$0xff]  }
  0xc8   : > { %12815 = vmatpush3.bf16.msra.mxu1 %v14764_v3  ;;  %v15994_v18 = vcombine.low %v5369_v16, %v4936_v14  ;;  %v14775_v19 = vld [vmem:[%s15959_s4 + $0x630] sm:$0xff]   ;;  %v14777_v25 = vld [vmem:[%s15959_s4 + $0x638] sm:$0xff]   ;;  %v14779_v26 = vld [vmem:[%s15959_s4 + $0x40] sm:$0xff]  }
  0xc9   : > { %13487 = vmatpush3.bf16.msra.mxu0 %v14765_v4  ;;  %12816 = vmatprep.subr.bf16.mxu1 %v14766_v5  ;;  %v16002_v24 = vld [vmem:[%s15951_s16 + $0xd4] sm:$0xff]   ;;  %v14782_v27 = vld [vmem:[%s15959_s4 + $0x640] sm:$0xff]   ;;  %v14783_v29 = vld [vmem:[%s15951_s16 + $0x8] sm:$0xff]  }
  0xca   : > { %13488 = vmatprep.subr.bf16.mxu0 %v14767_v6  ;;  %v5390_v21 = vrot.slane %v15994_v18, 2  ;;  %v5393_v28 = vrot.slane %v16002_v24, 2  ;;  %v14785_v30 = vld [vmem:[%s15959_s4 + $0x48] sm:$0xff]   ;;  %v16013_v33 = vld [vmem:[%s15951_s16 + $0xdc] sm:$0xff]   ;;  %v14791_v34 = vld [vmem:[%s15951_s16 + $0x10] sm:$0xff]  }
  0xcb   : > { %v14786_v31 = vld [vmem:[%s15959_s4 + $0x648] sm:$0xff]   ;;  %v5395_v35 = vrot.slane %v16013_v33, 2  ;;  %v14787_v37 = vld [vmem:[%s15959_s4 + $0x50] sm:$0xff]   ;;  %v14792_v41 = vld [vmem:[%s15951_s16 + $0x18] sm:$0xff]   ;;  %p12070_p13 = scmp.ne.s32.totalorder %s18621_s21, 6 }
  0xcc   : > { %12817 = vmatpush3.bf16.msra.mxu1 %v14766_v5  ;;  %v5392_v23 = vsel %vm3767_vm0, %v5390_v21, %v5391_v20  ;;  %v5394_v32 = vsel %vm3767_vm0, %v5391_v20, %v5393_v28  ;;  %v16018_v36 = vld [vmem:[%s15951_s16 + $0xe4] sm:$0xff]   ;;  %v14788_v40 = vld [vmem:[%s15959_s4 + $0x650] sm:$0xff]   ;;  %v14789_v42 = vld [vmem:[%s15959_s4 + $0x58] sm:$0xff]  }
  0xcd   : > { %13489 = vmatpush3.bf16.msra.mxu0 %v14767_v6  ;;  %12818 = vmatprep.subr.bf16.mxu1 %v14768_v7  ;;  %18467 = vst [vmem:[#allocation31_spill] sm:$0xff] %v16018_v36  ;;  %v5396_v38 = vsel %vm3767_vm0, %v5393_v28, %v5395_v35  ;;  %v5397_v39 = vrot.slane %v16018_v36, 2  ;;  %v16027_v43 = vld [vmem:[%s15951_s16 + $0xec] sm:$0xf]  ;;  %v4946_v44 = vld [vmem:[%s15951_s16 + $0xf0] sm:$0x3] }
  0xce   : > { %13490 = vmatprep.subr.bf16.mxu0 %v14769_v8  ;;  %13500 = vmatprep.mubr.bf16.mxu0 %v5392_v23  ;;  %v14790_v45 = vld [vmem:[%s15959_s4 + $0x658] sm:$0xff]   ;;  %v16033_v47 = vcombine.low %v16027_v43, %v4946_v44  ;;  %v14799_v48 = vld [vmem:[%s15951_s16 + $0x20] sm:$0xff]   ;;  %v14797_v53 = vld [vmem:[%s15959_s4 + $0x68] sm:$0xff]   ;;  %v5770_v28 = vshll.u32 %v15994_v18, 16 }
  0xcf   : > { %v5398_v46 = vsel %vm3767_vm0, %v5395_v35, %v5397_v39  ;;  %v14793_v50 = vld [vmem:[%s15959_s4 + $0x60] sm:$0xff]   ;;  %v14800_v54 = vld [vmem:[%s15951_s16 + $0x28] ss:$0 sps:$4 sm:$0xff]   ;;  %v16047_v57 = vld [vmem:[%s15951_s16 + $0x8c] sm:$0xff]  }
  0xd0   : > { %12819 = vmatpush3.bf16.msra.mxu1 %v14768_v7  ;;  %v5399_v49 = vrot.slane %v16033_v47, 2  ;;  %v14795_v52 = vld [vmem:[%s15959_s4 + $0x660] sm:$0xff]   ;;  %v16043_v55 = vld [vmem:[%s15951_s16 + $0x88] sm:$0xf]  ;;  %v18367_v61 = vshrl.u32 %v16047_v57, 16  ;;  %v18366_v62 = vshll.u32 %v16047_v57, 16 }
  0xd1   : > { %13491 = vmatpush3.bf16.msra.mxu0 %v14769_v8  ;;  %12820 = vmatprep.subr.bf16.mxu1 %v14770_v9  ;;  %v14798_v56 = vld [vmem:[%s15959_s4 + $0x668] sm:$0xff]   ;;  %v5192_v58 = vld [vmem:[%s15951_s16 + $0x84] sm:$0xc]  ;;  %v14801_v63 = vld [vmem:[%s15959_s4 + $0x70] sm:$0xff]  }
  0xd2   : > { %13492 = vmatprep.subr.bf16.mxu0 %v14771_v10  ;;  %v5400_v51 = vsel %vm3767_vm0, %v5397_v39, %v5399_v49  ;;  %v14806_v59 = vld [vmem:[%s15951_s16 + $0x40] sm:$0xff]   ;;  %v16052_v60 = vcombine.low %v5192_v58, %v16043_v55  ;;  %v16060_v2 = vld [vmem:[%s15951_s16 + $0x94] sm:$0xff]   ;;  %v5575_v4 = vrot.slane %v18367_v61, 2  ;;  %v5576_v5 = vrot.slane %v18366_v62, 3  ;;  %v6336_v62 = vld [vmem:[%s15951_s16 + $0x48] sm:$0x8] }
  0xd3   : > { %v14803_v3 = vld [vmem:[%s15959_s4 + $0x670] sm:$0xff]   ;;  %v18365_v8 = vshrl.u32 %v16060_v2, 16  ;;  %v14808_v20 = vld [vmem:[%s15959_s4 + $0x80] sm:$0xff]  }
  0xd4   : > { %12821 = vmatpush3.bf16.msra.mxu1 %v14770_v9  ;;  %18468 = vst [vmem:[#allocation32_spill] sm:$0xff] %v16052_v60  ;;  %v5568_v0 = vshrl.u32 %v16052_v60, 16  ;;  %v5571_v1 = vshll.u32 %v16052_v60, 16  ;;  %v18364_v9 = vshll.u32 %v16060_v2, 16  ;;  %v14811_v23 = vld [vmem:[%s15959_s4 + $0x680] sm:$0xff]  }
  0xd5   : > { %13493 = vmatpush3.bf16.msra.mxu0 %v14771_v10  ;;  %12822 = vmatprep.subr.bf16.mxu1 %v14772_v11  ;;  %v5577_v10 = vor.u32 %v5576_v5, %v5575_v4  ;;  %v5579_v14 = vrot.slane %v18365_v8, 2  ;;  %v14907_v61 = vld [vmem:[%s15959_s4 + $0x780] sm:$0xff]  }
  0xd6   : > { %13494 = vmatprep.subr.bf16.mxu0 %v14773_v13  ;;  %v5570_v6 = vrot.slane %v5568_v0, 2  ;;  %v5573_v7 = vrot.slane %v5571_v1, 3  ;;  %v5580_v16 = vrot.slane %v18364_v9, 3  ;;  %v18355_v1 = vshrl.u32 %v16002_v24, 16  ;;  %v14887_v9 = vld [vmem:[%s15959_s4 + $0x748] sm:$0xff]  }
  0xd8   : > { %12823 = vmatpush3.bf16.msra.mxu1 %v14772_v11  ;;  %v14804_v11 = vld [vmem:[%s15959_s4 + $0x78] sm:$0xff]   ;;  %v5574_v12 = vor.u32 %v5573_v7, %v5570_v6  ;;  %v5581_v21 = vor.u32 %v5580_v16, %v5579_v14  ;;  %v16128_v6 = vld [vmem:[%s15951_s16 + $0x8] sm:$0xff]   ;;  %v717_v7 = vld [vmem:[%s15951_s16] sm:$0xf] }
  0xd9   : > { %13495 = vmatpush3.bf16.msra.mxu0 %v14773_v13  ;;  %12824 = vmatprep.subr.bf16.mxu1 %v14774_v17  ;;  %v785_v16 = vshll.u32 %v16128_v6, 16 }
  0xda   : > { %13496 = vmatprep.subr.bf16.mxu0 %v14775_v19  ;;  %v5578_v13 = vsel %vm4122_vm1, %v5574_v12, %v5577_v10 }
  0xdc   : > { %12825 = vmatpush3.bf16.msra.mxu1 %v14774_v17  ;;  %v14805_v17 = vld [vmem:[%s15959_s4 + $0x678] sm:$0xff]  }
  0xdd   : > { %13497 = vmatpush3.bf16.msra.mxu0 %v14775_v19  ;;  %12826 = vmatprep.subr.bf16.mxu1 %v14776_v22  ;;  %v14807_v19 = vld [vmem:[%s15951_s16 + $0x48] sm:$0xff]  }
  0xde   : > { %13498 = vmatprep.subr.bf16.mxu0 %v14777_v25 }
  0xe0   : > { %12827 = vmatpush3.bf16.msra.mxu1 %v14776_v22  ;;  %v18358_v22 = vshrl.u32 %v15990_v15, 16 }
  0xe1   : > { %13499 = vmatpush3.bf16.msra.mxu0 %v14777_v25  ;;  %12840 = vmatprep.subr.bf16.mxu1 %v14779_v26  ;;  %v5767_v25 = vshrl.u32 %v15994_v18, 16 }
  0xe2   : > { %13512 = vmatprep.subr.bf16.mxu0 %v14782_v27 }
  0xe3   : > { %12829 = vmatmul.mubr.bf16.vlgmr.msra.gmra.mrb[0].mxu1 %v14783_v29  ;;  %v14814_v29 = vld [vmem:[%s15959_s4 + $0x688] sm:$0xff]   ;;  %v16095_v18 = vrot.slane %v5767_v25, 2 }
  0xe4   : > { %12841 = vmatpush3.bf16.msra.mxu1 %v14779_v26  ;;  %13501 = vmatmul.mubr.bf16.vlgmr.msra.gmra.mrb[0].mxu0 %v5394_v32  ;;  %v14813_v26 = vld [vmem:[%s15959_s4 + $0x88] sm:$0xff]   ;;  %v5582_v32 = vsel %vm4122_vm1, %v5577_v10, %v5581_v21  ;;  %v16132_v10 = vld [vmem:[%s15951_s16 + $0x4] sm:$0xf] }
  0xe5   : > { %13513 = vmatpush3.bf16.msra.mxu0 %v14782_v27  ;;  %12842 = vmatprep.subr.bf16.mxu1 %v14785_v30  ;;  %v16083_v27 = vld [vmem:[%s15951_s16 + $0x9c] sm:$0xff]   ;;  %v10801_v14 = vcombine.low %v717_v7, %v16132_v10  ;;  %v727_v7 = vld [vmem:[%s15951_s16 + $0x28] sm:$0xf] }
  0xe6   : > { %13514 = vmatprep.subr.bf16.mxu0 %v14786_v31  ;;  %12832 = vmatprep.mubr.bf16.mxu1 %v14791_v34  ;;  %v18363_v34 = vshrl.u32 %v16083_v27, 16  ;;  %v18362_v35 = vshll.u32 %v16083_v27, 16 }
  0xe7   : > { %13504 = vmatprep.mubr.bf16.mxu0 %v5396_v38  ;;  %v14817_v38 = vld [vmem:[%s15959_s4 + $0x90] sm:$0xff]   ;;  %v780_v25 = vshll.u32 %v10801_v14, 16 }
  0xe8   : > { %12843 = vmatpush3.bf16.msra.mxu1 %v14785_v30  ;;  %v14815_v30 = vld [vmem:[%s15951_s16 + $0x50] sm:$0xff]   ;;  %v5583_v39 = vrot.slane %v18363_v34, 2  ;;  %v5944_v34 = vld [vmem:[%s15951_s16 + $0x84] sm:$0x8] }
  0xe9   : > { %13515 = vmatpush3.bf16.msra.mxu0 %v14786_v31  ;;  %12844 = vmatprep.subr.bf16.mxu1 %v14787_v37  ;;  %v18356_v31 = vshll.u32 %v15990_v15, 16 }
  0xea   : > { %13516 = vmatprep.subr.bf16.mxu0 %v14788_v40 }
  0xeb   : > { %12833 = vmatmul.mubr.bf16.gmra.mrb[4].mxu1 %v14792_v41  ;;  %v16102_v41 = vrot.slane %v5770_v28, 3  ;;  %v14825_v28 = vld [vmem:[%s15959_s4 + $0x6a0] sm:$0xff]  }
  0xec   : > { %12845 = vmatpush3.bf16.msra.mxu1 %v14787_v37  ;;  %13505 = vmatmul.mubr.bf16.gmra.mrb[4].mxu0 %v5398_v46  ;;  %v16093_v37 = vld [vmem:[%s15951_s16 + $0xa4] sm:$0xff]   ;;  %v14818_v46 = vld [vmem:[%s15959_s4 + $0x690] sm:$0xff]  }
  0xed   : > { %13517 = vmatpush3.bf16.msra.mxu0 %v14788_v40  ;;  %12846 = vmatprep.subr.bf16.mxu1 %v14789_v42  ;;  %v5584_v40 = vrot.slane %v18362_v35, 3  ;;  %v18360_v44 = vshll.u32 %v16093_v37, 16 }
  0xee   : > { %13518 = vmatprep.subr.bf16.mxu0 %v14790_v45  ;;  %12836 = vmatprep.mubr.bf16.mxu1 %v14799_v48 }
  0xef   : > { %13508 = vmatprep.mubr.bf16.mxu0 %v5400_v51  ;;  %v5585_v48 = vor.u32 %v5584_v40, %v5583_v39  ;;  %v5773_v39 = vor.u32 %v16102_v41, %v16095_v18  ;;  %v14829_v18 = vld [vmem:[%s15959_s4 + $0xb0] sm:$0xff]  }
  0xf0   : > { %12847 = vmatpush3.bf16.msra.mxu1 %v14789_v42  ;;  %v18361_v42 = vshrl.u32 %v16093_v37, 16 }
  0xf1   : > { %13519 = vmatpush3.bf16.msra.mxu0 %v14790_v45  ;;  %12848 = vmatprep.subr.bf16.mxu1 %v14793_v50  ;;  %v14816_v45 = vld [vmem:[%s15951_s16 + $0x58] sm:$0xff]  }
  0xf2   : > { %13520 = vmatprep.subr.bf16.mxu0 %v14795_v52  ;;  %v5587_v51 = vrot.slane %v18361_v42, 2 }
  0xf3   : > { %12837 = vmatmul.mubr.bf16.gmra.mrb[8].mxu1 %v14800_v54  ;;  %v14819_v54 = vld [vmem:[%s15959_s4 + $0x98] sm:$0xff]  }
  0xf4   : > { %12849 = vmatpush3.bf16.msra.mxu1 %v14793_v50  ;;  %13509 = vmatmul.mubr.bf16.gmra.mrb[8].mxu0 %v5399_v49  ;;  %v4688_v49 = vld [vmem:[%s15951_s16 + $0xac] sm:$0xf]  ;;  %v5774_v50 = vrot.slane %v18358_v22, 2 }
  0xf5   : > { %13521 = vmatpush3.bf16.msra.mxu0 %v14795_v52  ;;  %12850 = vmatprep.subr.bf16.mxu1 %v14797_v53  ;;  %v5588_v52 = vrot.slane %v18360_v44, 3 }
  0xf6   : > { %13522 = vmatprep.subr.bf16.mxu0 %v14798_v56  ;;  %12856 = vmatprep.mubr.bf16.mxu1 %v14806_v59  ;;  %v5775_v59 = vrot.slane %v18356_v31, 3 }
  0xf7   : > { %13528 = vmatprep.mubr.bf16.mxu0 %v5578_v13  ;;  %v5589_v0 = vor.u32 %v5588_v52, %v5587_v51  ;;  %v16154_v51 = vld [vmem:[%s15951_s16 + $0x10] sm:$0xff]   ;;  %v5778_v52 = vrot.slane %v18355_v1, 2  ;;  %v16222_v1 = vld [vmem:[%s15951_s16 + $0x44] sm:$0xf] }
  0xf8   : > { %12851 = vmatpush3.bf16.msra.mxu1 %v14797_v53  ;;  %v5546_v53 = vld [vmem:[%s15951_s16 + $0xb0] sm:$0x7]  ;;  %v16148_v40 = vor.u32 %v5775_v59, %v5774_v50  ;;  %v18357_v59 = vshrl.u32 %v16018_v36, 16 }
  0xf9   : > { %13523 = vmatpush3.bf16.msra.mxu0 %v14798_v56  ;;  %12852 = vmatprep.subr.bf16.mxu1 %v14801_v63  ;;  %v5586_v56 = vsel %vm4122_vm1, %v5581_v21, %v5585_v48  ;;  %v16118_v58 = vcombine.low %v4688_v49, %v5546_v53 }
  0xfa   : > { %13524 = vmatprep.subr.bf16.mxu0 %v14803_v3  ;;  %v5777_v41 = vsel %vm4122_vm1, %v5773_v39, %v16148_v40 }
  0xfb   : > { %v5592_v4 = vshrl.u32 %v16118_v58, 16  ;;  %v5595_v5 = vshll.u32 %v16118_v58, 16 }
  0xfc   : > { %12853 = vmatpush3.bf16.msra.mxu1 %v14801_v63  ;;  %v14821_v63 = vld [vmem:[%s15951_s16 + $0x60] sm:$0xff]  }
  0xfd   : > { %13525 = vmatpush3.bf16.msra.mxu0 %v14803_v3  ;;  %12854 = vmatprep.subr.bf16.mxu1 %v14804_v11  ;;  %v14820_v3 = vld [vmem:[%s15959_s4 + $0x698] sm:$0xff]   ;;  %v5594_v12 = vrot.slane %v5592_v4, 2  ;;  %v5597_v13 = vrot.slane %v5595_v5, 3  ;;  %v793_v4 = vshll.u32 %v16154_v51, 16 }
  0xfe   : > { %13526 = vmatprep.subr.bf16.mxu0 %v14805_v17  ;;  %v14833_v5 = vld [vmem:[%s15959_s4 + $0x6b8] sm:$0xff]  }
  0xff   : > { %v5598_v21 = vor.u32 %v5597_v13, %v5594_v12  ;;  %v16179_v12 = vld [vmem:[%s15951_s16 + $0x20] sm:$0xff]   ;;  %v1243_v13 = vrot.slane %v16128_v6, 1 }
 0x100   : > { %12855 = vmatpush3.bf16.msra.mxu1 %v14804_v11  ;;  %v5590_v11 = vsel %vm4122_vm1, %v5585_v48, %v5589_v0  ;;  %v14828_v48 = vld [vmem:[%s15959_s4 + $0x6a8] sm:$0xff]  }
 0x101   : > { %13527 = vmatpush3.bf16.msra.mxu0 %v14805_v17  ;;  %12868 = vmatprep.subr.bf16.mxu1 %v14808_v20  ;;  %v18354_v17 = vshll.u32 %v16002_v24, 16 }
 0x102   : > { %13540 = vmatprep.subr.bf16.mxu0 %v14811_v23 }
 0x103   : > { %12857 = vmatmul.mubr.bf16.vlgmr.msra.gmra.mrb[0].mxu1 %v14807_v19  ;;  %v14822_v19 = vld [vmem:[%s15951_s16 + $0x68] ss:$0 sps:$4 sm:$0xff]   ;;  %v5779_v50 = vrot.slane %v18354_v17, 3  ;;  %v969_v17 = vld [vmem:[%s15951_s16 + $0x40] sm:$0xf] }
 0x104   : > { %12869 = vmatpush3.bf16.msra.mxu1 %v14808_v20  ;;  %13529 = vmatmul.mubr.bf16.vlgmr.msra.gmra.mrb[0].mxu0 %v5582_v32  ;;  %v14823_v20 = vld [vmem:[%s15959_s4 + $0xa0] sm:$0xff]   ;;  %v782_v32 = vrot.slane %v780_v25, 1  ;;  %v18359_v25 = vshll.u32 %v16018_v36, 16 }
 0x105   : > { %13541 = vmatpush3.bf16.msra.mxu0 %v14811_v23  ;;  %12870 = vmatprep.subr.bf16.mxu1 %v14813_v26  ;;  %v778_v23 = vshrl.u32 %v10801_v14, 16  ;;  %v5780_v39 = vor.u32 %v5779_v50, %v5778_v52  ;;  %v14839_v52 = vld [vmem:[%s15959_s4 + $0xc8] sm:$0xff]  }
 0x106   : > { %13542 = vmatprep.subr.bf16.mxu0 %v14814_v29  ;;  %12860 = vmatprep.mubr.bf16.mxu1 %v14815_v30  ;;  %v5599_v30 = vsel %vm4122_vm1, %v5589_v0, %v5598_v21  ;;  %v14832_v0 = vld [vmem:[%s15959_s4 + $0xb8] sm:$0xff]  }
 0x107   : > { %13532 = vmatprep.mubr.bf16.mxu0 %v5586_v56  ;;  %v14831_v56 = vld [vmem:[%s15959_s4 + $0x6b0] sm:$0xff]  }
 0x108   : > { %12871 = vmatpush3.bf16.msra.mxu1 %v14813_v26  ;;  %v18353_v26 = vshrl.u32 %v16013_v33, 16 }
 0x109   : > { %13543 = vmatpush3.bf16.msra.mxu0 %v14814_v29  ;;  %12872 = vmatprep.subr.bf16.mxu1 %v14817_v38  ;;  %v18352_v29 = vshll.u32 %v16013_v33, 16 }
 0x10a   : > { %13544 = vmatprep.subr.bf16.mxu0 %v14818_v46  ;;  %v5782_v53 = vrot.slane %v18353_v26, 2 }
 0x10b   : > { %12861 = vmatmul.mubr.bf16.gmra.mrb[4].mxu1 %v14816_v45  ;;  %v14827_v45 = vld [vmem:[%s15959_s4 + $0xa8] sm:$0xff]  }
 0x10c   : > { %12873 = vmatpush3.bf16.msra.mxu1 %v14817_v38  ;;  %12864 = vmatprep.mubr.bf16.mxu1 %v14821_v63  ;;  %v787_v38 = vrot.slane %v785_v16, 1  ;;  %v16170_v63 = vld [vmem:[%s15951_s16 + $0x18] sm:$0xff]  }
 0x10d   : > { %13545 = vmatpush3.bf16.msra.mxu0 %v14818_v46  ;;  %12874 = vmatprep.subr.bf16.mxu1 %v14819_v54  ;;  %v783_v46 = vor.u32 %v782_v32, %v778_v23  ;;  %v18370_v14 = vshll.u32 %v16170_v63, 16  ;;  %v797_v23 = vshrl.u32 %v16154_v51, 16 }
 0x10e   : > { %13546 = vmatprep.subr.bf16.mxu0 %v14820_v3  ;;  %13533 = vmatmul.mubr.bf16.gmra.mrb[4].mxu0 %v5590_v11  ;;  %v728_v11 = vld [vmem:[%s15951_s16 + $0x2c] sm:$0x1] }
 0x10f   : > { %13536 = vmatprep.mubr.bf16.mxu0 %v5599_v30  ;;  %v788_v49 = vsel %vm776_vm2, %v783_v46, %v787_v38  ;;  %v14838_v30 = vld [vmem:[%s15959_s4 + $0x6c0] sm:$0xff]   ;;  %v18368_v46 = vshll.u32 %v16179_v12, 16 }
 0x110   : > { %12875 = vmatpush3.bf16.msra.mxu1 %v14819_v54  ;;  %v5783_v54 = vrot.slane %v18352_v29, 3 }
 0x111   : > { %13547 = vmatpush3.bf16.msra.mxu0 %v14820_v3  ;;  %12876 = vmatprep.subr.bf16.mxu1 %v14823_v20  ;;  %v789_v3 = vshrl.u32 %v16128_v6, 16 }
 0x112   : > { %13548 = vmatprep.subr.bf16.mxu0 %v14825_v28 }
 0x113   : > { %12865 = vmatmul.mubr.bf16.gmra.mrb[12].mxu1 %v14822_v19  ;;  %v1245_v19 = vrot.slane %v16154_v51, 1  ;;  %v14860_v51 = vld [vmem:[%s15959_s4 + $0x100] sm:$0xff]  }
 0x114   : > { %12877 = vmatpush3.bf16.msra.mxu1 %v14823_v20  ;;  %12884 = vmatprep.mubr.bf16.mxu1 %v788_v49  ;;  %v795_v20 = vrot.slane %v793_v4, 1  ;;  %v5745_v49 = vld [vmem:[%s15951_s16 + $0xf0] sm:$0x7] }
 0x115   : > { %13549 = vmatpush3.bf16.msra.mxu0 %v14825_v28  ;;  %12878 = vmatprep.subr.bf16.mxu1 %v14827_v45  ;;  %v791_v28 = vor.u32 %v789_v3, %v787_v38  ;;  %v16195_v32 = vsel %vm1241_vm3, %v1243_v13, %v1245_v19  ;;  %v803_v38 = vrot.slane %v18370_v14, 1 }
 0x116   : > { %13550 = vmatprep.subr.bf16.mxu0 %v14828_v48  ;;  %13537 = vmatmul.mubr.bf16.gmra.mrb[12].mxu0 %v5598_v21  ;;  %v14837_v21 = vld [vmem:[%s15959_s4 + $0xc0] sm:$0xff]   ;;  %v799_v50 = vor.u32 %v797_v23, %v795_v20 }
 0x117   : > { %13556 = vmatprep.mubr.bf16.mxu0 %v5777_v41  ;;  %v11451_v41 = vcombine.low %v16027_v43, %v5745_v49  ;;  %v796_v29 = vsel %vm776_vm2, %v791_v28, %v795_v20  ;;  %v5781_v43 = vsel %vm4122_vm1, %v16148_v40, %v5780_v39  ;;  %v14840_v20 = vld [vmem:[%s15959_s4 + $0x6c8] sm:$0xff]   ;;  %v10831_v40 = vcombine.low %v969_v17, %v16222_v1 }
 0x118   : > { %12879 = vmatpush3.bf16.msra.mxu1 %v14827_v45  ;;  %v18371_v45 = vshrl.u32 %v16170_v63, 16  ;;  %v804_v28 = vsel %vm776_vm2, %v799_v50, %v803_v38 }
 0x119   : > { %13551 = vmatpush3.bf16.msra.mxu0 %v14828_v48  ;;  %12880 = vmatprep.subr.bf16.mxu1 %v14829_v18  ;;  %v16199_v48 = vcombine.low %v727_v7, %v728_v11  ;;  %v18369_v7 = vshrl.u32 %v16179_v12, 16  ;;  %v1249_v11 = vrot.slane %v16179_v12, 1  ;;  %v1031_v22 = vshll.u32 %v10831_v40, 16 }
 0x11a   : > { %13552 = vmatprep.subr.bf16.mxu0 %v14831_v56  ;;  %v807_v17 = vor.u32 %v18371_v45, %v803_v38 }
 0x11b   : > { %v817_v49 = vshll.u32 %v16199_v48, 16 }
 0x11c   : > { %12881 = vmatpush3.bf16.msra.mxu1 %v14829_v18  ;;  %v16204_v18 = vor.u32 %v5783_v54, %v5782_v53  ;;  %v5791_v53 = vshrl.u32 %v11451_v41, 16  ;;  %v5794_v54 = vshll.u32 %v11451_v41, 16  ;;  %v811_v41 = vrot.slane %v18368_v46, 1  ;;  %v14910_v46 = vld [vmem:[%s15959_s4 + $0x788] sm:$0xff]  }
 0x11d   : > { %13553 = vmatpush3.bf16.msra.mxu0 %v14831_v56  ;;  %12882 = vmatprep.subr.bf16.mxu1 %v14832_v0  ;;  %v1247_v56 = vrot.slane %v16170_v63, 1 }
 0x11e   : > { %13554 = vmatprep.subr.bf16.mxu0 %v14833_v5  ;;  %v5796_v50 = vrot.slane %v5794_v54, 3  ;;  %v815_v44 = vor.u32 %v18369_v7, %v811_v41  ;;  %v812_v54 = vsel %vm776_vm2, %v807_v17, %v811_v41  ;;  %v14849_v41 = vld [vmem:[%s15959_s4 + $0x6e0] sm:$0xff]  }
 0x11f   : > { %v16215_v26 = vsel %vm1241_vm3, %v1245_v19, %v1247_v56  ;;  %v16225_v31 = vsel %vm1241_vm3, %v1247_v56, %v1249_v11  ;;  %v5786_v19 = vrot.slane %v18357_v59, 2  ;;  %v5787_v56 = vrot.slane %v18359_v25, 3  ;;  %v16247_v59 = vld [vmem:[%s15951_s16 + $0x48] sm:$0xff]   ;;  %v14843_v25 = vld [vmem:[%s15959_s4 + $0xd0] sm:$0xff]  }
 0x120   : > { %12883 = vmatpush3.bf16.msra.mxu1 %v14832_v0  ;;  %v1251_v0 = vrot.slane %v16199_v48, 1  ;;  %v1036_v35 = vshll.u32 %v16247_v59, 16 }
 0x121   : > { %13555 = vmatpush3.bf16.msra.mxu0 %v14833_v5  ;;  %12896 = vmatprep.subr.bf16.mxu1 %v14837_v21  ;;  %v5785_v5 = vsel %vm4122_vm1, %v5780_v39, %v16204_v18  ;;  %v5788_v38 = vor.u32 %v5787_v56, %v5786_v19  ;;  %v16268_v56 = vld [vmem:[%s15951_s16 + $0x50] sm:$0xff]  }
 0x122   : > { %13568 = vmatprep.subr.bf16.mxu0 %v14838_v30  ;;  %v16242_v39 = vsel %vm1241_vm3, %v1249_v11, %v1251_v0  ;;  %v819_v11 = vrot.slane %v817_v49, 1 }
 0x123   : > { %12885 = vmatmul.mubr.bf16.vlgmr.msra.gmra.mrb[0].mxu1 %v796_v29  ;;  %v5793_v29 = vrot.slane %v5791_v53, 2  ;;  %v1029_v53 = vshrl.u32 %v10831_v40, 16  ;;  %v1038_v40 = vrot.slane %v1036_v35, 1  ;;  %v14851_v35 = vld [vmem:[%s15959_s4 + $0x6e8] sm:$0xff]  }
 0x124   : > { %12897 = vmatpush3.bf16.msra.mxu1 %v14837_v21  ;;  %13557 = vmatmul.mubr.bf16.vlgmr.msra.gmra.mrb[0].mxu0 %v5781_v43  ;;  %v14844_v21 = vld [vmem:[%s15959_s4 + $0x6d0] sm:$0xff]   ;;  %v14845_v43 = vld [vmem:[%s15959_s4 + $0xd8] sm:$0xff]   ;;  %v820_v49 = vsel %vm776_vm2, %v815_v44, %v819_v11  ;;  %v14848_v44 = vld [vmem:[%s15959_s4 + $0xe0] sm:$0xff]  }
 0x125   : > { %13569 = vmatpush3.bf16.msra.mxu0 %v14838_v30  ;;  %12898 = vmatprep.subr.bf16.mxu1 %v14839_v52  ;;  %v5797_v42 = vor.u32 %v5796_v50, %v5793_v29  ;;  %v1033_v30 = vrot.slane %v1031_v22, 1  ;;  %v1422_v50 = vrot.slane %v16268_v56, 1 }
 0x126   : > { %13570 = vmatprep.subr.bf16.mxu0 %v14840_v20  ;;  %12888 = vmatprep.mubr.bf16.mxu1 %v804_v28  ;;  %v14846_v28 = vld [vmem:[%s15959_s4 + $0x6d8] sm:$0xff]  }
 0x127   : > { %13560 = vmatprep.mubr.bf16.mxu0 %v5785_v5  ;;  %v821_v5 = vshrl.u32 %v16199_v48, 16  ;;  %v5798_v22 = vsel %vm4122_vm1, %v5788_v38, %v5797_v42  ;;  %v1034_v19 = vor.u32 %v1033_v30, %v1029_v53  ;;  %v14854_v30 = vld [vmem:[%s15959_s4 + $0x6f0] sm:$0xff]   ;;  %v16502_v48 = vld [vmem:[%s15951_s16 + $0x58] sm:$0xf] }
 0x128   : > { %12899 = vmatpush3.bf16.msra.mxu1 %v14839_v52  ;;  %v5789_v52 = vsel %vm4122_vm1, %v16204_v18, %v5788_v38  ;;  %v16281_v38 = vld [vmem:[%s15951_s16 + $0x60] sm:$0xff]  }
 0x129   : > { %13571 = vmatpush3.bf16.msra.mxu0 %v14840_v20  ;;  %12900 = vmatprep.subr.bf16.mxu1 %v14843_v25  ;;  %v11476_v20 = vcombine.low %v5944_v34, %v16043_v55  ;;  %v823_v18 = vor.u32 %v821_v5, %v819_v11  ;;  %v1420_v55 = vrot.slane %v16247_v59, 1  ;;  %v14850_v34 = vld [vmem:[%s15959_s4 + $0xe8] sm:$0xff]   ;;  %v1039_v29 = vsel %vm776_vm2, %v1034_v19, %v1038_v40  ;;  %v1220_v19 = vld [vmem:[%s15951_s16] sm:$0xe] }
 0x12a   : > { %13572 = vmatprep.subr.bf16.mxu0 %v14844_v21  ;;  %v1609_v11 = vrot.slane %v797_v23, 1  ;;  %v16293_v23 = vld [vmem:[%s15951_s16 + $0x68] sm:$0x1f]   ;;  %v1605_v5 = vrot.slane %v789_v3, 1  ;;  %v14855_v3 = vld [vmem:[%s15959_s4 + $0xf8] sm:$0xff]  }
 0x12b   : > { %12889 = vmatmul.mubr.bf16.gmra.mrb[4].mxu1 %v812_v54  ;;  %v5965_v17 = vrot.slane %v11476_v20, 3  ;;  %v16287_v53 = vsel %vm1241_vm3, %v1420_v55, %v1422_v50  ;;  %v18372_v20 = vrot.slane %v16293_v23, 1 }
 0x12c   : > { %12901 = vmatpush3.bf16.msra.mxu1 %v14843_v25  ;;  %12892 = vmatprep.mubr.bf16.mxu1 %v820_v49  ;;  %v5966_v25 = vrot.slane %v16047_v57, 3 }
 0x12d   : > { %13573 = vmatpush3.bf16.msra.mxu0 %v14844_v21  ;;  %12902 = vmatprep.subr.bf16.mxu1 %v14845_v43  ;;  %v16278_v21 = vld [vmem:[%s15951_s16 + $0x58] sm:$0xff]  }
 0x12e   : > { %13574 = vmatprep.subr.bf16.mxu0 %v14846_v28  ;;  %13561 = vmatmul.mubr.bf16.gmra.mrb[4].mxu0 %v5789_v52  ;;  %v5967_v54 = vsel %vm4521_vm4, %v5965_v17, %v5966_v25  ;;  %v1424_v49 = vrot.slane %v16278_v21, 1  ;;  %v1040_v52 = vshrl.u32 %v16247_v59, 16  ;;  %v1610_v17 = vrot.slane %v793_v4, 2 }
 0x12f   : > { %13564 = vmatprep.mubr.bf16.mxu0 %v5798_v22  ;;  %v5968_v4 = vrot.slane %v16060_v2, 3 }
 0x130   : > { %12903 = vmatpush3.bf16.msra.mxu1 %v14845_v43  ;;  %v14852_v43 = vld [vmem:[%s15959_s4 + $0xf0] sm:$0xff]   ;;  %v16302_v22 = vsel %vm1241_vm3, %v1422_v50, %v1424_v49 }
 0x131   : > { %13575 = vmatpush3.bf16.msra.mxu0 %v14846_v28  ;;  %12904 = vmatprep.subr.bf16.mxu1 %v14848_v44  ;;  %v1426_v28 = vrot.slane %v16281_v38, 1  ;;  %v5969_v6 = vsel %vm4521_vm4, %v5966_v25, %v5968_v4  ;;  %v14867_v25 = vld [vmem:[%s15959_s4 + $0x110] sm:$0xff]  }
 0x132   : > { %13576 = vmatprep.subr.bf16.mxu0 %v14849_v41 }
 0x133   : > { %12893 = vmatmul.mubr.bf16.gmra.mrb[16].mxu1 %v823_v18  ;;  %v16314_v18 = vcombine.low %v1220_v19, %v16132_v10 }
 0x134   : > { %12905 = vmatpush3.bf16.msra.mxu1 %v14848_v44  ;;  %12912 = vmatprep.mubr.bf16.mxu1 %v1039_v29  ;;  %v1044_v44 = vshll.u32 %v16268_v56, 16  ;;  %v14856_v29 = vld [vmem:[%s15959_s4 + $0x6f8] sm:$0xff]  }
 0x135   : > { %13577 = vmatpush3.bf16.msra.mxu0 %v14849_v41  ;;  %12906 = vmatprep.subr.bf16.mxu1 %v14850_v34  ;;  %v1606_v41 = vrot.slane %v785_v16, 2  ;;  %v1048_v16 = vshrl.u32 %v16268_v56, 16  ;;  %v1242_v10 = vrot.slane %v16314_v18, 1  ;;  %v14862_v56 = vld [vmem:[%s15959_s4 + $0x700] sm:$0xff]   ;;  %v1598_v59 = vshrl.u32 %v16314_v18, 16 }
 0x136   : > { %13578 = vmatprep.subr.bf16.mxu0 %v14851_v35  ;;  %13565 = vmatmul.mubr.bf16.gmra.mrb[16].mxu0 %v5797_v42  ;;  %v16308_v42 = vsel %vm1241_vm3, %v1424_v49, %v1426_v28  ;;  %v1042_v49 = vor.u32 %v1040_v52, %v1038_v40  ;;  %v1060_v40 = vshll.u32 %v16281_v38, 16  ;;  %v14863_v52 = vld [vmem:[%s15959_s4 + $0x108] sm:$0xff]  }
 0x137   : > { %13584 = vmatprep.mubr.bf16.mxu0 %v5967_v54  ;;  %v16324_v50 = vor.u32 %v1606_v41, %v1605_v5  ;;  %v16329_v54 = vor.u32 %v1610_v17, %v1609_v11  ;;  %v16336_v5 = vsel %vm1241_vm3, %v1242_v10, %v1243_v13  ;;  %v5970_v11 = vrot.slane %v16083_v27, 3  ;;  %v14864_v17 = vld [vmem:[%s15959_s4 + $0x708] sm:$0xff]   ;;  %v14868_v10 = vld [vmem:[%s15959_s4 + $0x710] sm:$0xff]  }
 0x138   : > { %12907 = vmatpush3.bf16.msra.mxu1 %v14850_v34  ;;  %v16319_v34 = vsel %vm1241_vm3, %v1426_v28, %v18372_v20  ;;  %v1046_v28 = vrot.slane %v1044_v44, 1  ;;  %v1056_v44 = vshrl.u32 %v16278_v21, 16  ;;  %v1064_v13 = vshrl.u32 %v16281_v38, 16  ;;  %v14912_v20 = vld [vmem:[%s15959_s4 + $0x790] sm:$0xff]  }
 0x139   : > { %13579 = vmatpush3.bf16.msra.mxu0 %v14851_v35  ;;  %12908 = vmatprep.subr.bf16.mxu1 %v14852_v43  ;;  %v1052_v35 = vshll.u32 %v16278_v21, 16  ;;  %v1068_v41 = vshll.u32 %v16293_v23, 16 }
 0x13a   : > { %13580 = vmatprep.subr.bf16.mxu0 %v14854_v30  ;;  %v1050_v19 = vor.u32 %v1048_v16, %v1046_v28  ;;  %v1062_v16 = vrot.slane %v1060_v40, 1  ;;  %v16364_v40 = vld [vmem:[%s15951_s16 + $0x10] sm:$0xf] }
 0x13c   : > { %12909 = vmatpush3.bf16.msra.mxu1 %v14852_v43  ;;  %v1054_v43 = vrot.slane %v1052_v35, 1  ;;  %v1066_v38 = vor.u32 %v1064_v13, %v1062_v16  ;;  %v1070_v35 = vrot.slane %v1068_v41, 1 }
 0x13d   : > { %13581 = vmatpush3.bf16.msra.mxu0 %v14854_v30  ;;  %12910 = vmatprep.subr.bf16.mxu1 %v14855_v3  ;;  %v1047_v30 = vsel %vm776_vm2, %v1042_v49, %v1046_v28  ;;  %v5972_v49 = vrot.slane %v16093_v37, 3  ;;  %v14869_v28 = vld [vmem:[%s15959_s4 + $0x118] sm:$0xff]  }
 0x13e   : > { %13582 = vmatprep.subr.bf16.mxu0 %v14856_v29  ;;  %v1058_v21 = vor.u32 %v1056_v44, %v1054_v43  ;;  %v14870_v44 = vld [vmem:[%s15959_s4 + $0x718] sm:$0xff]  }
 0x140   : > { %12911 = vmatpush3.bf16.msra.mxu1 %v14855_v3  ;;  %v1055_v3 = vsel %vm776_vm2, %v1050_v19, %v1054_v43  ;;  %v1071_v19 = vsel %vm776_vm2, %v1066_v38, %v1070_v35  ;;  %v16361_v43 = vld [vmem:[%s15951_s16 + $0xc] sm:$0xf] }
 0x141   : > { %13583 = vmatpush3.bf16.msra.mxu0 %v14856_v29  ;;  %12924 = vmatprep.subr.bf16.mxu1 %v14860_v51  ;;  %v5971_v29 = vsel %vm4521_vm4, %v5968_v4, %v5970_v11  ;;  %v1063_v4 = vsel %vm776_vm2, %v1058_v21, %v1062_v16 }
 0x142   : > { %13596 = vmatprep.subr.bf16.mxu0 %v14862_v56 }
 0x143   : > { %12913 = vmatmul.mubr.bf16.vlgmr.msra.gmra.mrb[0].mxu1 %v1047_v30  ;;  %v16367_v30 = vld [vmem:[%s15951_s16 + $0x14] sm:$0xf] }
 0x144   : > { %12925 = vmatpush3.bf16.msra.mxu1 %v14860_v51  ;;  %13585 = vmatmul.mubr.bf16.vlgmr.msra.gmra.mrb[0].mxu0 %v5969_v6  ;;  %v5974_v51 = vrot.slane %v16118_v58, 3  ;;  %v1072_v58 = vshrl.u32 %v16293_v23, 16  ;;  %v14872_v6 = vld [vmem:[%s15959_s4 + $0x120] sm:$0xff]  }
 0x145   : > { %13597 = vmatpush3.bf16.msra.mxu0 %v14862_v56  ;;  %12926 = vmatprep.subr.bf16.mxu1 %v14863_v52  ;;  %v6121_v56 = vld [vmem:[%s15951_s16 + $0x8] sm:$0x8] }
 0x146   : > { %13598 = vmatprep.subr.bf16.mxu0 %v14864_v17  ;;  %12916 = vmatprep.mubr.bf16.mxu1 %v1055_v3  ;;  %v5975_v13 = vsel %vm4521_vm4, %v5972_v49, %v5974_v51  ;;  %v16375_v41 = vcombine.low %v6121_v56, %v16361_v43  ;;  %v1398_v3 = vld [vmem:[%s15951_s16 + $0x40] sm:$0xe]  ;;  %v1074_v21 = vor.u32 %v1072_v58, %v1070_v35  ;;  %v14876_v35 = vld [vmem:[%s15959_s4 + $0x130] sm:$0xff]   ;;  %v16400_v56 = vld [vmem:[%s15951_s16 + $0x1c] sm:$0xf] }
 0x147   : > { %13588 = vmatprep.mubr.bf16.mxu0 %v5971_v29  ;;  %v10886_v16 = vcombine.low %v1398_v3, %v16222_v1  ;;  %v16411_v58 = vld [vmem:[%s15951_s16 + $0x20] sm:$0xf] }
 0x148   : > { %12927 = vmatpush3.bf16.msra.mxu1 %v14863_v52  ;;  %v5973_v52 = vsel %vm4521_vm4, %v5970_v11, %v5972_v49  ;;  %v14873_v11 = vld [vmem:[%s15959_s4 + $0x720] sm:$0xff]   ;;  %v6180_v29 = vrot.slane %v16375_v41, 3  ;;  %v14875_v49 = vld [vmem:[%s15959_s4 + $0x728] sm:$0xff]   ;;  %v6574_v45 = vshrl.u32 %v16375_v41, 16  ;;  %v6577_v7 = vshll.u32 %v16375_v41, 16  ;;  %v14914_v41 = vld [vmem:[%s15959_s4 + $0x798] sm:$0xff]  }
 0x149   : > { %13599 = vmatpush3.bf16.msra.mxu0 %v14864_v17  ;;  %12928 = vmatprep.subr.bf16.mxu1 %v14867_v25  ;;  %v16379_v17 = vcombine.low %v16364_v40, %v16367_v30  ;;  %v1419_v38 = vrot.slane %v10886_v16, 1 }
 0x14a   : > { %13600 = vmatprep.subr.bf16.mxu0 %v14868_v10 }
 0x14b   : > { %12917 = vmatmul.mubr.bf16.gmra.mrb[4].mxu1 %v1063_v4  ;;  %v16389_v4 = vld [vmem:[%s15951_s16 + $0x18] sm:$0xf]  ;;  %v16394_v1 = vsel %vm1241_vm3, %v1419_v38, %v1420_v55  ;;  %v1601_v55 = vshll.u32 %v16314_v18, 16  ;;  %v16431_v38 = vld [vmem:[%s15951_s16 + $0x30] sm:$0xf] }
 0x14c   : > { %12929 = vmatpush3.bf16.msra.mxu1 %v14867_v25  ;;  %12920 = vmatprep.mubr.bf16.mxu1 %v1071_v19  ;;  %v6181_v25 = vrot.slane %v16379_v17, 3  ;;  %v14877_v19 = vld [vmem:[%s15959_s4 + $0x730] sm:$0xff]   ;;  %v14879_v18 = vld [vmem:[%s15959_s4 + $0x738] sm:$0xff]  }
 0x14d   : > { %13601 = vmatpush3.bf16.msra.mxu0 %v14868_v10  ;;  %12930 = vmatprep.subr.bf16.mxu1 %v14869_v28  ;;  %v14874_v10 = vld [vmem:[%s15959_s4 + $0x128] sm:$0xff]  }
 0x14e   : > { %13602 = vmatprep.subr.bf16.mxu0 %v14870_v44  ;;  %13589 = vmatmul.mubr.bf16.gmra.mrb[4].mxu0 %v5973_v52  ;;  %v1600_v52 = vrot.slane %v1598_v59, 1  ;;  %v14886_v59 = vld [vmem:[%s15959_s4 + $0x148] sm:$0xff]  }
 0x14f   : > { %13592 = vmatprep.mubr.bf16.mxu0 %v5975_v13  ;;  %v14881_v13 = vld [vmem:[%s15959_s4 + $0x140] sm:$0xff]  }
 0x150   : > { %12931 = vmatpush3.bf16.msra.mxu1 %v14869_v28  ;;  %v6182_v28 = vsel %vm4521_vm4, %v6180_v29, %v6181_v25  ;;  %v16428_v29 = vld [vmem:[%s15951_s16 + $0x2c] sm:$0xf] }
 0x151   : > { %13603 = vmatpush3.bf16.msra.mxu0 %v14870_v44  ;;  %12932 = vmatprep.subr.bf16.mxu1 %v14872_v6  ;;  %v14878_v44 = vld [vmem:[%s15959_s4 + $0x138] sm:$0xff]  }
 0x152   : > { %13604 = vmatprep.subr.bf16.mxu0 %v14873_v11 }
 0x153   : > { %12921 = vmatmul.mubr.bf16.gmra.mrb[20].mxu1 %v1074_v21  ;;  %v16425_v21 = vld [vmem:[%s15951_s16 + $0x28] sm:$0xf] }
 0x154   : > { %12933 = vmatpush3.bf16.msra.mxu1 %v14872_v6  ;;  %12940 = vmatprep.mubr.bf16.mxu1 %v16336_v5  ;;  %v16407_v5 = vcombine.low %v16389_v4, %v16400_v56  ;;  %v1603_v6 = vrot.slane %v1601_v55, 2 }
 0x155   : > { %13605 = vmatpush3.bf16.msra.mxu0 %v14873_v11  ;;  %12934 = vmatprep.subr.bf16.mxu1 %v14874_v10  ;;  %v14884_v11 = vld [vmem:[%s15959_s4 + $0x740] sm:$0xff]  }
 0x156   : > { %13606 = vmatprep.subr.bf16.mxu0 %v14875_v49  ;;  %13593 = vmatmul.mubr.bf16.gmra.mrb[20].mxu0 %v5974_v51  ;;  %v16414_v51 = vld [vmem:[%s15951_s16 + $0x24] sm:$0xf]  ;;  %v6183_v3 = vrot.slane %v16407_v5, 3 }
 0x157   : > { %13612 = vmatprep.mubr.bf16.mxu0 %v6182_v28  ;;  %v16422_v16 = vcombine.low %v16411_v58, %v16414_v51 }
 0x158   : > { %12935 = vmatpush3.bf16.msra.mxu1 %v14874_v10  ;;  %v6132_v10 = vld [vmem:[%s15951_s16 + $0x34] sm:$0x7]  ;;  %v6184_v28 = vsel %vm4521_vm4, %v6181_v25, %v6183_v3  ;;  %v16450_v25 = vsel %vm1596_vm5, %v16324_v50, %v16329_v54 }
 0x159   : > { %13607 = vmatpush3.bf16.msra.mxu0 %v14875_v49  ;;  %12936 = vmatprep.subr.bf16.mxu1 %v14876_v35  ;;  %v1604_v49 = vor.u32 %v1603_v6, %v1600_v52  ;;  %v11506_v55 = vcombine.low %v16431_v38, %v6132_v10  ;;  %v14889_v10 = vld [vmem:[%s15959_s4 + $0x750] sm:$0xff]  }
 0x15a   : > { %13608 = vmatprep.subr.bf16.mxu0 %v14877_v19 }
 0x15b   : > { %v6189_v8 = vrot.slane %v11506_v55, 3 }
 0x15c   : > { %12937 = vmatpush3.bf16.msra.mxu1 %v14876_v35  ;;  %v6185_v35 = vrot.slane %v16422_v16, 3 }
 0x15d   : > { %13609 = vmatpush3.bf16.msra.mxu0 %v14877_v19  ;;  %12938 = vmatprep.subr.bf16.mxu1 %v14878_v44  ;;  %v16439_v19 = vcombine.low %v16425_v21, %v16428_v29 }
 0x15e   : > { %13610 = vmatprep.subr.bf16.mxu0 %v14879_v18  ;;  %v6186_v6 = vsel %vm4521_vm4, %v6183_v3, %v6185_v35  ;;  %v16468_v3 = vld [vmem:[%s15951_s16 + $0x50] sm:$0xf] }
 0x160   : > { %12939 = vmatpush3.bf16.msra.mxu1 %v14878_v44  ;;  %v16445_v44 = vsel %vm1596_vm5, %v1604_v49, %v16324_v50  ;;  %v14888_v50 = vld [vmem:[%s15959_s4 + $0x150] sm:$0xff]   ;;  %v6187_v49 = vrot.slane %v16439_v19, 3 }
 0x161   : > { %13611 = vmatpush3.bf16.msra.mxu0 %v14879_v18  ;;  %12952 = vmatprep.subr.bf16.mxu1 %v14881_v13  ;;  %v16537_v18 = vld [vmem:[%s15951_s16 + $0x70] sm:$0xf] }
 0x162   : > { %13624 = vmatprep.subr.bf16.mxu0 %v14884_v11 }
 0x163   : > { %12941 = vmatmul.mubr.bf16.vlgmr.msra.gmra.mrb[0].mxu1 %v16195_v32  ;;  %v14890_v32 = vld [vmem:[%s15959_s4 + $0x158] sm:$0xff]  }
 0x164   : > { %12953 = vmatpush3.bf16.msra.mxu1 %v14881_v13  ;;  %13613 = vmatmul.mubr.bf16.vlgmr.msra.gmra.mrb[0].mxu0 %v6184_v28  ;;  %v16465_v13 = vld [vmem:[%s15951_s16 + $0x4c] sm:$0xf]  ;;  %v14891_v28 = vld [vmem:[%s15959_s4 + $0x758] sm:$0xff]  }
 0x165   : > { %13625 = vmatpush3.bf16.msra.mxu0 %v14884_v11  ;;  %12954 = vmatprep.subr.bf16.mxu1 %v14886_v59  ;;  %v16471_v11 = vld [vmem:[%s15951_s16 + $0x54] sm:$0xf] }
 0x166   : > { %13626 = vmatprep.subr.bf16.mxu0 %v14887_v9  ;;  %12944 = vmatprep.mubr.bf16.mxu1 %v16215_v26  ;;  %v6188_v26 = vsel %vm4521_vm4, %v6185_v35, %v6187_v49  ;;  %v16483_v55 = vcombine.low %v16468_v3, %v16471_v11  ;;  %v14896_v35 = vld [vmem:[%s15959_s4 + $0x168] sm:$0xff]  }
 0x167   : > { %13616 = vmatprep.mubr.bf16.mxu0 %v6186_v6  ;;  %v14892_v6 = vld [vmem:[%s15959_s4 + $0x160] sm:$0xff]  }
 0x168   : > { %12955 = vmatpush3.bf16.msra.mxu1 %v14886_v59  ;;  %v6190_v59 = vsel %vm4521_vm4, %v6187_v49, %v6189_v8  ;;  %v16529_v49 = vld [vmem:[%s15951_s16 + $0x68] sm:$0xf] }
 0x169   : > { %13627 = vmatpush3.bf16.msra.mxu0 %v14887_v9  ;;  %12956 = vmatprep.subr.bf16.mxu1 %v14888_v50  ;;  %v16479_v9 = vcombine.low %v6336_v62, %v16465_v13  ;;  %v6396_v62 = vrot.slane %v16483_v55, 3 }
 0x16a   : > { %13628 = vmatprep.subr.bf16.mxu0 %v14889_v10 }
 0x16b   : > { %12945 = vmatmul.mubr.bf16.gmra.mrb[4].mxu1 %v16225_v31  ;;  %v14894_v31 = vld [vmem:[%s15959_s4 + $0x760] sm:$0xff]  }
 0x16c   : > { %12957 = vmatpush3.bf16.msra.mxu1 %v14888_v50  ;;  %12948 = vmatprep.mubr.bf16.mxu1 %v16242_v39  ;;  %v6395_v39 = vrot.slane %v16479_v9, 3  ;;  %v14897_v50 = vld [vmem:[%s15959_s4 + $0x768] sm:$0xff]  }
 0x16d   : > { %13629 = vmatpush3.bf16.msra.mxu0 %v14889_v10  ;;  %12958 = vmatprep.subr.bf16.mxu1 %v14890_v32  ;;  %v14909_v10 = vld [vmem:[%s15959_s4 + $0x188] sm:$0xff]  }
 0x16e   : > { %13630 = vmatprep.subr.bf16.mxu0 %v14891_v28  ;;  %13617 = vmatmul.mubr.bf16.gmra.mrb[4].mxu0 %v6188_v26  ;;  %v6397_v26 = vsel %vm4521_vm4, %v6395_v39, %v6396_v62  ;;  %v14902_v39 = vld [vmem:[%s15959_s4 + $0x778] sm:$0xff]  }
 0x16f   : > { %13620 = vmatprep.mubr.bf16.mxu0 %v6190_v59  ;;  %v16508_v59 = vld [vmem:[%s15951_s16 + $0x60] sm:$0xf] }
 0x170   : > { %12959 = vmatpush3.bf16.msra.mxu1 %v14890_v32  ;;  %v14898_v32 = vld [vmem:[%s15959_s4 + $0x170] sm:$0xff]  }
 0x171   : > { %13631 = vmatpush3.bf16.msra.mxu0 %v14891_v28  ;;  %12960 = vmatprep.subr.bf16.mxu1 %v14892_v6  ;;  %v14900_v28 = vld [vmem:[%s15959_s4 + $0x770] sm:$0xff]  }
 0x172   : > { %13632 = vmatprep.subr.bf16.mxu0 %v14894_v31 }
 0x173   : > { %12949 = vmatmul.mubr.bf16.gmra.mrb[24].mxu1 %v1251_v0  ;;  %v16505_v0 = vld [vmem:[%s15951_s16 + $0x5c] sm:$0xf] }
 0x174   : > { %12961 = vmatpush3.bf16.msra.mxu1 %v14892_v6  ;;  %12968 = vmatprep.mubr.bf16.mxu1 %v16394_v1  ;;  %v16511_v6 = vld [vmem:[%s15951_s16 + $0x64] sm:$0xf]  ;;  %v14901_v1 = vld [vmem:[%s15959_s4 + $0x178] sm:$0xff]  }
 0x175   : > { %13633 = vmatpush3.bf16.msra.mxu0 %v14894_v31  ;;  %12962 = vmatprep.subr.bf16.mxu1 %v14896_v35  ;;  %v16532_v31 = vld [vmem:[%s15951_s16 + $0x6c] sm:$0xf] }
 0x176   : > { %13634 = vmatprep.subr.bf16.mxu0 %v14897_v50  ;;  %13621 = vmatmul.mubr.bf16.gmra.mrb[24].mxu0 %v6189_v8  ;;  %v16516_v8 = vcombine.low %v16502_v48, %v16505_v0  ;;  %v16547_v14 = vcombine.low %v16529_v49, %v16532_v31 }
 0x177   : > { %13640 = vmatprep.mubr.bf16.mxu0 %v6397_v26 }
 0x178   : > { %12963 = vmatpush3.bf16.msra.mxu1 %v14896_v35  ;;  %v16523_v35 = vcombine.low %v16508_v59, %v16511_v6  ;;  %v6398_v26 = vrot.slane %v16516_v8, 3 }
 0x179   : > { %13635 = vmatpush3.bf16.msra.mxu0 %v14897_v50  ;;  %12964 = vmatprep.subr.bf16.mxu1 %v14898_v32  ;;  %v14904_v50 = vld [vmem:[%s15959_s4 + $0x180] sm:$0xff]  }
 0x17a   : > { %13636 = vmatprep.subr.bf16.mxu0 %v14900_v28  ;;  %v6400_v52 = vrot.slane %v16523_v35, 3 }
 0x17c   : > { %12965 = vmatpush3.bf16.msra.mxu1 %v14898_v32  ;;  %v6399_v32 = vsel %vm4521_vm4, %v6396_v62, %v6398_v26  ;;  %v6401_v62 = vsel %vm4521_vm4, %v6398_v26, %v6400_v52  ;;  %v6402_v26 = vrot.slane %v16547_v14, 3 }
 0x17d   : > { %13637 = vmatpush3.bf16.msra.mxu0 %v14900_v28  ;;  %12966 = vmatprep.subr.bf16.mxu1 %v14901_v1  ;;  %v6347_v28 = vld [vmem:[%s15951_s16 + $0x74] sm:$0x7] }
 0x17e   : > { %13638 = vmatprep.subr.bf16.mxu0 %v14902_v39 }
 0x180   : > { %12967 = vmatpush3.bf16.msra.mxu1 %v14901_v1  ;;  %v6576_v1 = vrot.slane %v6574_v45, 3  ;;  %v14919_v45 = vld [vmem:[%s15959_s4 + $0x1a8] sm:$0xff]  }
 0x181   : > { %13639 = vmatpush3.bf16.msra.mxu0 %v14902_v39  ;;  %12980 = vmatprep.subr.bf16.mxu1 %v14904_v50  ;;  %v11536_v39 = vcombine.low %v16537_v18, %v6347_v28 }
 0x182   : > { %13652 = vmatprep.subr.bf16.mxu0 %v14907_v61 }
 0x183   : > { %12969 = vmatmul.mubr.bf16.vlgmr.msra.gmra.mrb[0].mxu1 %v16287_v53  ;;  %v14911_v53 = vld [vmem:[%s15959_s4 + $0x190] sm:$0xff]   ;;  %v6404_v28 = vrot.slane %v11536_v39, 3  ;;  %v6591_v39 = vshrl.u32 %v16407_v5, 16 }
 0x184   : > { %12981 = vmatpush3.bf16.msra.mxu1 %v14904_v50  ;;  %13641 = vmatmul.mubr.bf16.vlgmr.msra.gmra.mrb[0].mxu0 %v6399_v32  ;;  %v6582_v50 = vshrl.u32 %v16379_v17, 16  ;;  %v6585_v32 = vshll.u32 %v16379_v17, 16  ;;  %v14915_v17 = vld [vmem:[%s15959_s4 + $0x1a0] sm:$0xff]  }
 0x185   : > { %13653 = vmatpush3.bf16.msra.mxu0 %v14907_v61  ;;  %12982 = vmatprep.subr.bf16.mxu1 %v14909_v10  ;;  %v14913_v61 = vld [vmem:[%s15959_s4 + $0x198] sm:$0xff]  }
 0x186   : > { %13654 = vmatprep.subr.bf16.mxu0 %v14910_v46  ;;  %12972 = vmatprep.mubr.bf16.mxu1 %v16302_v22  ;;  %v6403_v22 = vsel %vm4521_vm4, %v6400_v52, %v6402_v26  ;;  %v6584_v60 = vrot.slane %v6582_v50, 3  ;;  %v6587_v36 = vrot.slane %v6585_v32, 4  ;;  %v18469_v52 = vrot.slane %v16293_v23, 1  ;;  %v14923_v23 = vld [vmem:[%s15959_s4 + $0x7b0] sm:$0xff]   ;;  %v1575_v50 = vld [vmem:[%s15951_s16 + $0x2c] sm:$0x3] }
 0x187   : > { %13644 = vmatprep.mubr.bf16.mxu0 %v6401_v62  ;;  %v6579_v62 = vrot.slane %v6577_v7, 4  ;;  %v14924_v32 = vld [vmem:[%s15959_s4 + $0x1b8] sm:$0xff]  }
 0x188   : > { %12983 = vmatpush3.bf16.msra.mxu1 %v14909_v10  ;;  %v14917_v10 = vld [vmem:[%s15959_s4 + $0x7a0] sm:$0xff]   ;;  %v6588_v7 = vor.u32 %v6587_v36, %v6584_v60  ;;  %v14921_v36 = vld [vmem:[%s15959_s4 + $0x1b0] sm:$0xff]  }
 0x189   : > { %13655 = vmatpush3.bf16.msra.mxu0 %v14910_v46  ;;  %12984 = vmatprep.subr.bf16.mxu1 %v14911_v53  ;;  %v6405_v46 = vsel %vm4521_vm4, %v6402_v26, %v6404_v28  ;;  %v6593_v26 = vrot.slane %v6591_v39, 3 }
 0x18a   : > { %13656 = vmatprep.subr.bf16.mxu0 %v14912_v20 }
 0x18b   : > { %12973 = vmatmul.mubr.bf16.gmra.mrb[4].mxu1 %v16308_v42  ;;  %v6580_v42 = vor.u32 %v6579_v62, %v6576_v1  ;;  %v16589_v62 = vld [vmem:[%s15951_s16 + $0x34] sm:$0xf] }
 0x18c   : > { %12985 = vmatpush3.bf16.msra.mxu1 %v14911_v53  ;;  %12976 = vmatprep.mubr.bf16.mxu1 %v16319_v34  ;;  %v14920_v34 = vld [vmem:[%s15959_s4 + $0x7a8] sm:$0xff]   ;;  %v6594_v53 = vshll.u32 %v16407_v5, 16  ;;  %v6603_v5 = vshll.u32 %v16422_v16, 16 }
 0x18d   : > { %13657 = vmatpush3.bf16.msra.mxu0 %v14912_v20  ;;  %12986 = vmatprep.subr.bf16.mxu1 %v14913_v61  ;;  %v6589_v60 = vsel %vm6572_vm6, %v6580_v42, %v6588_v7  ;;  %v18471_v42 = vshll.u32 %v16170_v63, 16 }
 0x18e   : > { %13658 = vmatprep.subr.bf16.mxu0 %v14914_v41  ;;  %13645 = vmatmul.mubr.bf16.gmra.mrb[4].mxu0 %v6403_v22  ;;  %v6605_v39 = vrot.slane %v6603_v5, 4  ;;  %v6612_v5 = vshll.u32 %v16439_v19, 16 }
 0x18f   : > { %13648 = vmatprep.mubr.bf16.mxu0 %v6405_v46  ;;  %v14925_v46 = vld [vmem:[%s15959_s4 + $0x7b8] sm:$0xff]  }
 0x190   : > { %12987 = vmatpush3.bf16.msra.mxu1 %v14913_v61  ;;  %v6600_v61 = vshrl.u32 %v16422_v16, 16  ;;  %v14927_v16 = vld [vmem:[%s15959_s4 + $0x7c0] sm:$0xff]  }
 0x191   : > { %13659 = vmatpush3.bf16.msra.mxu0 %v14914_v41  ;;  %12988 = vmatprep.subr.bf16.mxu1 %v14915_v17  ;;  %v15323_v41 = vld [vmem:[%s15951_s16 + $0x28] sm:$0xf] }
 0x192   : > { %13660 = vmatprep.subr.bf16.mxu0 %v14917_v10  ;;  %v10911_v22 = vcombine.low %v15323_v41, %v1575_v50 }
 0x193   : > { %12977 = vmatmul.mubr.bf16.gmra.mrb[28].mxu1 %v18469_v52  ;;  %v1614_v52 = vrot.slane %v18471_v42, 2 }
 0x194   : > { %12989 = vmatpush3.bf16.msra.mxu1 %v14915_v17  ;;  %12996 = vmatprep.mubr.bf16.mxu1 %v16445_v44  ;;  %v6596_v44 = vrot.slane %v6594_v53, 4  ;;  %v18470_v17 = vshrl.u32 %v16170_v63, 16  ;;  %v1622_v50 = vshrl.u32 %v10911_v22, 16  ;;  %v1625_v41 = vshll.u32 %v10911_v22, 16  ;;  %v14928_v22 = vld [vmem:[%s15959_s4 + $0x1c8] sm:$0xff]  }
 0x195   : > { %13661 = vmatpush3.bf16.msra.mxu0 %v14917_v10  ;;  %12990 = vmatprep.subr.bf16.mxu1 %v14919_v45  ;;  %v18473_v63 = vshll.u32 %v16179_v12, 16 }
 0x196   : > { %13662 = vmatprep.subr.bf16.mxu0 %v14920_v34  ;;  %13649 = vmatmul.mubr.bf16.gmra.mrb[28].mxu0 %v6404_v28  ;;  %v1613_v10 = vrot.slane %v18470_v17, 1  ;;  %v6597_v53 = vor.u32 %v6596_v44, %v6593_v26  ;;  %v18472_v17 = vshrl.u32 %v16179_v12, 16  ;;  %v1624_v20 = vrot.slane %v1622_v50, 1  ;;  %v14929_v12 = vld [vmem:[%s15959_s4 + $0x7c8] sm:$0xff]  }
 0x197   : > { %13668 = vmatprep.mubr.bf16.mxu0 %v6589_v60  ;;  %v11561_v60 = vcombine.low %v16431_v38, %v16589_v62  ;;  %v6796_v50 = vshll.u32 %v16479_v9, 16 }
 0x198   : > { %12991 = vmatpush3.bf16.msra.mxu1 %v14919_v45  ;;  %v14926_v45 = vld [vmem:[%s15959_s4 + $0x1c0] sm:$0xff]   ;;  %v1617_v28 = vrot.slane %v18472_v17, 1  ;;  %v1615_v42 = vor.u32 %v1614_v52, %v1613_v10  ;;  %v6598_v44 = vsel %vm6572_vm6, %v6588_v7, %v6597_v53  ;;  %v1627_v17 = vrot.slane %v1625_v41, 2 }
 0x199   : > { %13663 = vmatpush3.bf16.msra.mxu0 %v14920_v34  ;;  %12992 = vmatprep.subr.bf16.mxu1 %v14921_v36  ;;  %v6602_v34 = vrot.slane %v6600_v61, 3  ;;  %v6609_v61 = vshrl.u32 %v16439_v19, 16  ;;  %v6618_v1 = vshrl.u32 %v11561_v60, 16  ;;  %v6621_v26 = vshll.u32 %v11561_v60, 16 }
 0x19a   : > { %13664 = vmatprep.subr.bf16.mxu0 %v14923_v23  ;;  %v1616_v19 = vsel %vm1596_vm5, %v16329_v54, %v1615_v42  ;;  %v6614_v10 = vrot.slane %v6612_v5, 4  ;;  %v1628_v60 = vor.u32 %v1627_v17, %v1624_v20  ;;  %v6793_v54 = vshrl.u32 %v16479_v9, 16  ;;  %v14932_v20 = vld [vmem:[%s15959_s4 + $0x1d8] sm:$0xff]  }
 0x19b   : > { %v6620_v7 = vrot.slane %v6618_v1, 3  ;;  %v6804_v1 = vshll.u32 %v16483_v55, 16 }
 0x19c   : > { %12993 = vmatpush3.bf16.msra.mxu1 %v14921_v36  ;;  %v1618_v36 = vrot.slane %v18473_v63, 2  ;;  %v14933_v63 = vld [vmem:[%s15959_s4 + $0x7d8] sm:$0xff]  }
 0x19d   : > { %13665 = vmatpush3.bf16.msra.mxu0 %v14923_v23  ;;  %12994 = vmatprep.subr.bf16.mxu1 %v14924_v32  ;;  %v6606_v23 = vor.u32 %v6605_v39, %v6602_v34  ;;  %v6623_v34 = vrot.slane %v6621_v26, 4  ;;  %v14930_v39 = vld [vmem:[%s15959_s4 + $0x1d0] sm:$0xff]   ;;  %v6806_v5 = vrot.slane %v6804_v1, 4  ;;  %v14935_v26 = vld [vmem:[%s15959_s4 + $0x1e0] sm:$0xff]  }
 0x19e   : > { %13666 = vmatprep.subr.bf16.mxu0 %v14925_v46 }
 0x19f   : > { %v6607_v52 = vsel %vm6572_vm6, %v6597_v53, %v6606_v23  ;;  %v6624_v53 = vor.u32 %v6623_v34, %v6620_v7  ;;  %v14941_v7 = vld [vmem:[%s15959_s4 + $0x7f0] sm:$0xff]   ;;  %v14942_v34 = vld [vmem:[%s15959_s4 + $0x1f8] sm:$0xff]  }
 0x1a0   : > { %12995 = vmatpush3.bf16.msra.mxu1 %v14924_v32  ;;  %v6611_v32 = vrot.slane %v6609_v61, 3  ;;  %v6798_v61 = vrot.slane %v6796_v50, 4  ;;  %v14943_v50 = vld [vmem:[%s15959_s4 + $0x7f8] sm:$0xff]  }
 0x1a1   : > { %13667 = vmatpush3.bf16.msra.mxu0 %v14925_v46  ;;  %13008 = vmatprep.subr.bf16.mxu1 %v14926_v45  ;;  %v1619_v46 = vor.u32 %v1618_v36, %v1617_v28  ;;  %v6801_v28 = vshrl.u32 %v16483_v55, 16  ;;  %v6795_v36 = vrot.slane %v6793_v54, 3  ;;  %v16641_v54 = vld [vmem:[%s15951_s16 + $0x74] sm:$0xf] }
 0x1a2   : > { %13680 = vmatprep.subr.bf16.mxu0 %v14927_v16  ;;  %v11586_v1 = vcombine.low %v16537_v18, %v16641_v54 }
 0x1a3   : > { %12997 = vmatmul.mubr.bf16.vlgmr.msra.gmra.mrb[0].mxu1 %v16450_v25  ;;  %v14931_v25 = vld [vmem:[%s15959_s4 + $0x7d0] sm:$0xff]   ;;  %v1629_v41 = vsel %vm1596_vm5, %v1619_v46, %v1628_v60 }
 0x1a4   : > { %13009 = vmatpush3.bf16.msra.mxu1 %v14926_v45  ;;  %13669 = vmatmul.mubr.bf16.vlgmr.msra.gmra.mrb[0].mxu0 %v6598_v44  ;;  %v6615_v45 = vor.u32 %v6614_v10, %v6611_v32  ;;  %v14936_v44 = vld [vmem:[%s15959_s4 + $0x7e0] sm:$0xff]   ;;  %v6810_v32 = vshrl.u32 %v16516_v8, 16  ;;  %v6813_v10 = vshll.u32 %v16516_v8, 16  ;;  %v6819_v8 = vshrl.u32 %v16523_v35, 16 }
 0x1a5   : > { %13681 = vmatpush3.bf16.msra.mxu0 %v14927_v16  ;;  %13010 = vmatprep.subr.bf16.mxu1 %v14928_v22  ;;  %v1620_v16 = vsel %vm1596_vm5, %v1615_v42, %v1619_v46  ;;  %v6803_v42 = vrot.slane %v6801_v28, 3 }
 0x1a6   : > { %13682 = vmatprep.subr.bf16.mxu0 %v14929_v12  ;;  %13000 = vmatprep.mubr.bf16.mxu1 %v1616_v19  ;;  %v6616_v9 = vsel %vm6572_vm6, %v6606_v23, %v6615_v45  ;;  %v6625_v55 = vsel %vm6572_vm6, %v6615_v45, %v6624_v53  ;;  %v6799_v23 = vor.u32 %v6798_v61, %v6795_v36  ;;  %v14938_v19 = vld [vmem:[%s15959_s4 + $0x7e8] sm:$0xff]   ;;  %v6821_v45 = vrot.slane %v6819_v8, 3 }
 0x1a7   : > { %13672 = vmatprep.mubr.bf16.mxu0 %v6607_v52  ;;  %v6807_v17 = vor.u32 %v6806_v5, %v6803_v42  ;;  %v14939_v52 = vld [vmem:[%s15959_s4 + $0x1f0] sm:$0xff]   ;;  %v6837_v61 = vshrl.u32 %v11586_v1, 16  ;;  %v14949_v5 = vld [vmem:[%s15959_s4 + $0x808] sm:$0xff]  }
 0x1a8   : > { %13011 = vmatpush3.bf16.msra.mxu1 %v14928_v22  ;;  %v14944_v22 = vld [vmem:[%s15951_s16 + $0x80] sm:$0xff]  }
 0x1a9   : > { %13683 = vmatpush3.bf16.msra.mxu0 %v14929_v12  ;;  %13012 = vmatprep.subr.bf16.mxu1 %v14930_v39  ;;  %v14937_v12 = vld [vmem:[%s15959_s4 + $0x1e8] sm:$0xff]   ;;  %v6808_v46 = vsel %vm6572_vm6, %v6799_v23, %v6807_v17  ;;  %v6839_v23 = vrot.slane %v6837_v61, 3 }
 0x1aa   : > { %13684 = vmatprep.subr.bf16.mxu0 %v14931_v25  ;;  %v14960_v61 = vld [vmem:[%s15959_s4 + $0x228] sm:$0xff]  }
 0x1ab   : > { %13001 = vmatmul.mubr.bf16.gmra.mrb[4].mxu1 %v1620_v16  ;;  %v14946_v16 = vld [vmem:[%s15959_s4 + $0x200] sm:$0xff]  }
 0x1ac   : > { %13013 = vmatpush3.bf16.msra.mxu1 %v14930_v39  ;;  %13004 = vmatprep.mubr.bf16.mxu1 %v1629_v41  ;;  %v6812_v39 = vrot.slane %v6810_v32, 3  ;;  %v6831_v41 = vshll.u32 %v16547_v14, 16  ;;  %v14953_v32 = vld [vmem:[%s15959_s4 + $0x810] sm:$0xff]  }
 0x1ad   : > { %13685 = vmatpush3.bf16.msra.mxu0 %v14931_v25  ;;  %13014 = vmatprep.subr.bf16.mxu1 %v14932_v20  ;;  %v6815_v25 = vrot.slane %v6813_v10, 4 }
 0x1ae   : > { %13686 = vmatprep.subr.bf16.mxu0 %v14933_v63  ;;  %13673 = vmatmul.mubr.bf16.gmra.mrb[4].mxu0 %v6616_v9  ;;  %v14948_v9 = vld [vmem:[%s15959_s4 + $0x208] sm:$0xff]  }
 0x1af   : > { %13676 = vmatprep.mubr.bf16.mxu0 %v6625_v55  ;;  %v6840_v55 = vshll.u32 %v11586_v1, 16 }
 0x1b0   : > { %13015 = vmatpush3.bf16.msra.mxu1 %v14932_v20  ;;  %v6828_v20 = vshrl.u32 %v16547_v14, 16 }
 0x1b1   : > { %13687 = vmatpush3.bf16.msra.mxu0 %v14933_v63  ;;  %13016 = vmatprep.subr.bf16.mxu1 %v14935_v26  ;;  %v14945_v63 = vld [vmem:[%s15951_s16 + $0x88] sm:$0xff]  }
 0x1b2   : > { %13688 = vmatprep.subr.bf16.mxu0 %v14936_v44 }
 0x1b3   : > { %13005 = vmatmul.mubr.bf16.gmra.mrb[32].mxu1 %v1628_v60  ;;  %v6822_v60 = vshll.u32 %v16523_v35, 16  ;;  %v14947_v35 = vld [vmem:[%s15959_s4 + $0x800] sm:$0xff]  }
 0x1b4   : > { %13017 = vmatpush3.bf16.msra.mxu1 %v14935_v26  ;;  %13024 = vmatprep.mubr.bf16.mxu1 %v14944_v22  ;;  %v14950_v26 = vld [vmem:[%s15951_s16 + $0x90] sm:$0xff]   ;;  %v6833_v22 = vrot.slane %v6831_v41, 4  ;;  %v14959_v41 = vld [vmem:[%s15959_s4 + $0x820] sm:$0xff]  }
 0x1b5   : > { %13689 = vmatpush3.bf16.msra.mxu0 %v14936_v44  ;;  %13018 = vmatprep.subr.bf16.mxu1 %v14937_v12  ;;  %v6824_v28 = vrot.slane %v6822_v60, 4  ;;  %v6830_v44 = vrot.slane %v6828_v20, 3 }
 0x1b6   : > { %13690 = vmatprep.subr.bf16.mxu0 %v14938_v19  ;;  %13677 = vmatmul.mubr.bf16.gmra.mrb[32].mxu0 %v6624_v53  ;;  %v6816_v53 = vor.u32 %v6815_v25, %v6812_v39  ;;  %v14954_v39 = vld [vmem:[%s15959_s4 + $0x218] sm:$0xff]   ;;  %v14956_v25 = vld [vmem:[%s15951_s16 + $0xa0] sm:$0xff]  }
 0x1b7   : > { %13696 = vmatprep.mubr.bf16.mxu0 %v6808_v46  ;;  %v6825_v36 = vor.u32 %v6824_v28, %v6821_v45  ;;  %v14955_v28 = vld [vmem:[%s15959_s4 + $0x818] sm:$0xff]  }
 0x1b8   : > { %13019 = vmatpush3.bf16.msra.mxu1 %v14937_v12  ;;  %v6817_v42 = vsel %vm6572_vm6, %v6807_v17, %v6816_v53  ;;  %v6842_v12 = vrot.slane %v6840_v55, 4  ;;  %v14951_v17 = vld [vmem:[%s15951_s16 + $0x98] sm:$0xff]   ;;  %v14967_v55 = vld [vmem:[%s15951_s16 + $0xc0] sm:$0xff]  }
 0x1b9   : > { %13691 = vmatpush3.bf16.msra.mxu0 %v14938_v19  ;;  %13020 = vmatprep.subr.bf16.mxu1 %v14939_v52  ;;  %v6826_v14 = vsel %vm6572_vm6, %v6816_v53, %v6825_v36  ;;  %v14952_v19 = vld [vmem:[%s15959_s4 + $0x210] sm:$0xff]   ;;  %v16677_v53 = vld [vmem:[%s15951_s16 + $0x88] sm:$0xff]  }
 0x1ba   : > { %13692 = vmatprep.subr.bf16.mxu0 %v14941_v7  ;;  %v6843_v8 = vor.u32 %v6842_v12, %v6839_v23  ;;  %v16699_v23 = vld [vmem:[%s15951_s16 + $0xa0] sm:$0xff]  }
 0x1bc   : > { %13021 = vmatpush3.bf16.msra.mxu1 %v14939_v52  ;;  %v6834_v52 = vor.u32 %v6833_v22, %v6830_v44  ;;  %v2187_v22 = vld [vmem:[%s15951_s16 + $0xa8] sm:$0xf] }
 0x1bd   : > { %13693 = vmatpush3.bf16.msra.mxu0 %v14941_v7  ;;  %13022 = vmatprep.subr.bf16.mxu1 %v14942_v34 }
 0x1be   : > { %13694 = vmatprep.subr.bf16.mxu0 %v14943_v50  ;;  %v6844_v20 = vsel %vm6572_vm6, %v6834_v52, %v6843_v8 }
 0x1c0   : > { %13023 = vmatpush3.bf16.msra.mxu1 %v14942_v34 }
 0x1c1   : > { %13695 = vmatpush3.bf16.msra.mxu0 %v14943_v50  ;;  %13036 = vmatprep.subr.bf16.mxu1 %v14946_v16 }
 0x1c2   : > { %13708 = vmatprep.subr.bf16.mxu0 %v14947_v35 }
 0x1c3   : > { %13025 = vmatmul.mubr.bf16.vlgmr.msra.gmra.mrb[0].mxu1 %v14945_v63  ;;  %v16682_v63 = vld [vmem:[%s15951_s16 + $0x90] sm:$0xff]  }
 0x1c4   : > { %13037 = vmatpush3.bf16.msra.mxu1 %v14946_v16  ;;  %13697 = vmatmul.mubr.bf16.vlgmr.msra.gmra.mrb[0].mxu0 %v6817_v42  ;;  %v14958_v16 = vld [vmem:[%s15959_s4 + $0x220] sm:$0xff]   ;;  %v2703_v42 = vrot.slane %v16682_v63, 1 }
 0x1c5   : > { %13709 = vmatpush3.bf16.msra.mxu0 %v14947_v35  ;;  %13038 = vmatprep.subr.bf16.mxu1 %v14948_v9  ;;  %v6835_v35 = vsel %vm6572_vm6, %v6825_v36, %v6834_v52  ;;  %v14957_v36 = vld [vmem:[%s15951_s16 + $0xa8] ss:$0 sps:$4 sm:$0xff]  }
 0x1c6   : > { %13710 = vmatprep.subr.bf16.mxu0 %v14949_v5  ;;  %13028 = vmatprep.mubr.bf16.mxu1 %v14950_v26  ;;  %v16659_v10 = vpop.f32.mrb[8].mxu1  ;;  %v16691_v26 = vld [vmem:[%s15951_s16 + $0x98] sm:$0xff]  }
 0x1c7   : > { %v16661_v46 = vpop.f32.mrb[9].mxu1  ;;  %13700 = vmatprep.mubr.bf16.mxu0 %v6826_v14  ;;  %v16663_v7 = vpop.f32.mrb[8].mxu0  ;;  %v2188_v14 = vld [vmem:[%s15951_s16 + $0xac] sm:$0x1]  ;;  %v2705_v12 = vrot.slane %v16691_v26, 1 }
 0x1c8   : > { %18474 = vst [vmem:[#allocation33_spill] sm:$0xff] %v16663_v7  ;;  %13039 = vmatpush3.bf16.msra.mxu1 %v14948_v9  ;;  %v12839_v34 = vpop.f32.mrb[10].mxu1  ;;  %v16667_v60 = vpop.f32.mrb[9].mxu0  ;;  %v2701_v9 = vrot.slane %v16677_v53, 1 }
 0x1c9   : > { %18475 = vst [vmem:[#allocation34_spill] sm:$0xff] %v16667_v60  ;;  %13711 = vmatpush3.bf16.msra.mxu0 %v14949_v5  ;;  %13040 = vmatprep.subr.bf16.mxu1 %v14952_v19  ;;  %v16669_v50 = vpop.f32.mrb[11].mxu1  ;;  %v13511_v45 = vpop.f32.mrb[10].mxu0  ;;  %v14961_v5 = vld [vmem:[%s15959_s4 + $0x828] sm:$0xff]   ;;  %v16707_v52 = vsel %vm1241_vm3, %v2703_v42, %v2705_v12  ;;  %v2707_v34 = vrot.slane %v16699_v23, 1  ;;  %v14976_v60 = vld [vmem:[%s15951_s16 + $0xd8] sm:$0xff]  }
 0x1ca   : > { %13712 = vmatprep.subr.bf16.mxu0 %v14953_v32  ;;  %v16672_v1 = vpop.f32.mrb[11].mxu0  ;;  %v16694_v44 = vsel %vm1241_vm3, %v2701_v9, %v2703_v42  ;;  %v2679_v45 = vld [vmem:[%s15951_s16 + $0x80] sm:$0xe]  ;;  %v14968_v42 = vld [vmem:[%s15951_s16 + $0xc8] sm:$0xff]  }
 0x1cb   : > { %18476 = vst [vmem:[#allocation35_spill] sm:$0xff] %v16672_v1  ;;  %13029 = vmatmul.mubr.bf16.gmra.mrb[4].mxu1 %v14951_v17  ;;  %v14964_v17 = vld [vmem:[%s15959_s4 + $0x830] sm:$0xff]  }
 0x1cc   : > { %13041 = vmatpush3.bf16.msra.mxu1 %v14952_v19  ;;  %13032 = vmatprep.mubr.bf16.mxu1 %v14956_v25  ;;  %v14962_v19 = vld [vmem:[%s15959_s4 + $0x230] sm:$0xff]   ;;  %v2178_v25 = vld [vmem:[%s15951_s16 + $0x84] sm:$0xf] }
 0x1cd   : > { %13713 = vmatpush3.bf16.msra.mxu0 %v14953_v32  ;;  %13042 = vmatprep.subr.bf16.mxu1 %v14954_v39  ;;  %v16704_v32 = vcombine.low %v2187_v22, %v2188_v14  ;;  %v16740_v22 = vld [vmem:[%s15951_s16 + $0xd0] sm:$0xff]   ;;  %v315_v14 = vld [vmem:[#allocation2 + $0x50] sm:$0xff] }
 0x1ce   : > { %13714 = vmatprep.subr.bf16.mxu0 %v14955_v28  ;;  %13701 = vmatmul.mubr.bf16.gmra.mrb[4].mxu0 %v6835_v35  ;;  %v14965_v35 = vld [vmem:[%s15959_s4 + $0x238] sm:$0xff]  }
 0x1cf   : > { %13704 = vmatprep.mubr.bf16.mxu0 %v6844_v20 }
 0x1d0   : > { %13043 = vmatpush3.bf16.msra.mxu1 %v14954_v39  ;;  %v18477_v39 = vcombine.low %v16361_v43, %v16364_v40  ;;  %v14966_v43 = vld [vmem:[%s15959_s4 + $0x838] sm:$0xff]  }
 0x1d1   : > { %13715 = vmatpush3.bf16.msra.mxu0 %v14955_v28  ;;  %13044 = vmatprep.subr.bf16.mxu1 %v14958_v16  ;;  %v16715_v28 = vcombine.low %v2679_v45, %v2178_v25  ;;  %v313_v45 = vld [vmem:[#allocation2 + $0x40] sm:$0xff] }
 0x1d2   : > { %13716 = vmatprep.subr.bf16.mxu0 %v14959_v41 }
 0x1d3   : > { %13033 = vmatmul.mubr.bf16.gmra.mrb[36].mxu1 %v14957_v36  ;;  %v2700_v40 = vrot.slane %v16715_v28, 1  ;;  %v14971_v36 = vld [vmem:[%s15959_s4 + $0x840] sm:$0xff]  }
 0x1d4   : > { %13045 = vmatpush3.bf16.msra.mxu1 %v14958_v16  ;;  %13052 = vmatprep.mubr.bf16.mxu1 %v14967_v55  ;;  %v18376_v16 = vrot.slane %v16704_v32, 1 }
 0x1d5   : > { %13717 = vmatpush3.bf16.msra.mxu0 %v14959_v41  ;;  %13046 = vmatprep.subr.bf16.mxu1 %v14960_v61  ;;  %v14969_v41 = vld [vmem:[%s15959_s4 + $0x240] sm:$0xff]   ;;  %v16733_v55 = vsel %vm1241_vm3, %v2700_v40, %v2701_v9  ;;  %v515_v40 = vadd.f32 %v16659_v10, %v315_v14 }
 0x1d6   : > { %13718 = vmatprep.subr.bf16.mxu0 %v14961_v5  ;;  %13705 = vmatmul.mubr.bf16.gmra.mrb[36].mxu0 %v6843_v8  ;;  %v16718_v8 = vsel %vm1241_vm3, %v2705_v12, %v2707_v34  ;;  %v16727_v20 = vsel %vm1241_vm3, %v2707_v34, %v18376_v16  ;;  %v18378_v34 = vrot.slane %v16740_v22, 1  ;;  %v513_v16 = vadd.f32 %v16661_v46, %v313_v45  ;;  %v14979_v46 = vld [vmem:[%s15959_s4 + $0x258] sm:$0xff]   ;;  %v14981_v14 = vld [vmem:[%s15951_s16 + $0xe0] sm:$0xff]  }
 0x1d7   : > { %13724 = vmatprep.mubr.bf16.mxu0 %v18477_v39  ;;  %v14975_v39 = vld [vmem:[%s15951_s16 + $0xd0] sm:$0xff]  }
 0x1d8   : > { %13047 = vmatpush3.bf16.msra.mxu1 %v14960_v61  ;;  %v2177_v61 = vld [vmem:[%s15951_s16 + $0x80] sm:$0xf] }
 0x1d9   : > { %13719 = vmatpush3.bf16.msra.mxu0 %v14961_v5  ;;  %13048 = vmatprep.subr.bf16.mxu1 %v14962_v19  ;;  %v16737_v5 = vld [vmem:[%s15951_s16 + $0xc8] sm:$0xff]   ;;  %v10996_v9 = vcombine.low %v2177_v61, %v2178_v25  ;;  %v18478_v25 = vcombine.low %v16367_v30, %v16389_v4  ;;  %v14977_v61 = vld [vmem:[%s15959_s4 + $0x250] sm:$0xff]   ;;  %v18479_v30 = vcombine.low %v16400_v56, %v16411_v58  ;;  %v18381_v56 = vshll.u32 %v16677_v53, 16 }
 0x1da   : > { %13720 = vmatprep.subr.bf16.mxu0 %v14964_v17  ;;  %v18377_v12 = vrot.slane %v16737_v5, 1 }
 0x1dc   : > { %13049 = vmatpush3.bf16.msra.mxu1 %v14962_v19  ;;  %v14973_v19 = vld [vmem:[%s15959_s4 + $0x248] sm:$0xff]  }
 0x1dd   : > { %13721 = vmatpush3.bf16.msra.mxu0 %v14964_v17  ;;  %13050 = vmatprep.subr.bf16.mxu1 %v14965_v35  ;;  %v14974_v17 = vld [vmem:[%s15959_s4 + $0x848] sm:$0xff]  }
 0x1de   : > { %13722 = vmatprep.subr.bf16.mxu0 %v14966_v43 }
 0x1e0   : > { %13051 = vmatpush3.bf16.msra.mxu1 %v14965_v35  ;;  %v16752_v35 = vsel %vm1241_vm3, %v18377_v12, %v18378_v34  ;;  %v14978_v12 = vld [vmem:[%s15959_s4 + $0x850] sm:$0xff]  }
 0x1e1   : > { %13723 = vmatpush3.bf16.msra.mxu0 %v14966_v43  ;;  %13064 = vmatprep.subr.bf16.mxu1 %v14969_v41  ;;  %v314_v43 = vld [vmem:[#allocation2 + $0x48] sm:$0xff] }
 0x1e2   : > { %13736 = vmatprep.subr.bf16.mxu0 %v14971_v36  ;;  %v514_v4 = vadd.f32 %v16669_v50, %v314_v43 }
 0x1e3   : > { %13053 = vmatmul.mubr.bf16.vlgmr.msra.gmra.mrb[0].mxu1 %v14968_v42  ;;  %v2239_v42 = vshll.u32 %v10996_v9, 16 }
 0x1e4   : > { %13065 = vmatpush3.bf16.msra.mxu1 %v14969_v41  ;;  %13725 = vmatmul.mubr.bf16.vlgmr.msra.gmra.mrb[0].mxu0 %v18478_v25  ;;  %v14983_v25 = vld [vmem:[%s15959_s4 + $0x260] sm:$0xff]  }
 0x1e5   : > { %13737 = vmatpush3.bf16.msra.mxu0 %v14971_v36  ;;  %13066 = vmatprep.subr.bf16.mxu1 %v14973_v19  ;;  %v2241_v45 = vrot.slane %v2239_v42, 1  ;;  %v2856_v42 = vld [vmem:[%s15951_s16 + $0xc0] sm:$0xe] }
 0x1e6   : > { %v12866_v1 = vpop.f32.mrb[12].mxu1  ;;  %13738 = vmatprep.subr.bf16.mxu0 %v14974_v17  ;;  %13056 = vmatprep.mubr.bf16.mxu1 %v14975_v39  ;;  %v2237_v39 = vshrl.u32 %v10996_v9, 16 }
 0x1e7   : > { %v16761_v34 = vadd.f32 %v12866_v1, %v515_v40  ;;  %v692_v41 = vpop.f32.mrb[13].mxu1  ;;  %13728 = vmatprep.mubr.bf16.mxu0 %v18479_v30  ;;  %v2246_v30 = vrot.slane %v18381_v56, 1  ;;  %v2276_v56 = vshll.u32 %v16704_v32, 16 }
 0x1e8   : > { %v16768_v10 = vadd.f32 %v692_v41, %v513_v16  ;;  %v12867_v36 = vpop.f32.mrb[14].mxu1  ;;  %13067 = vmatpush3.bf16.msra.mxu1 %v14973_v19  ;;  %v14980_v16 = vld [vmem:[%s15959_s4 + $0x858] sm:$0xff]   ;;  %v16781_v19 = vld [vmem:[%s15951_s16 + $0xc4] sm:$0xf]  ;;  %v2242_v41 = vor.u32 %v2241_v45, %v2237_v39 }
 0x1e9   : > { %13739 = vmatpush3.bf16.msra.mxu0 %v14974_v17  ;;  %v695_v1 = vpop.f32.mrb[15].mxu1  ;;  %13068 = vmatprep.subr.bf16.mxu1 %v14977_v61  ;;  %v16773_v58 = vpop.f32.mrb[12].mxu0  ;;  %v16784_v17 = vld [vmem:[%s15951_s16 + $0xd8] sm:$0xff]   ;;  %v18483_v36 = vcombine.low %v16414_v51, %v16425_v21  ;;  %v16811_v21 = vld [vmem:[%s15951_s16 + $0xe0] sm:$0xff]  }
 0x1ea   : > { %18480 = vst [vmem:[#allocation36_spill] sm:$0xff] %v16773_v58  ;;  %v16775_v50 = vadd.f32 %v695_v1, %v514_v4  ;;  %13740 = vmatprep.subr.bf16.mxu0 %v14978_v12  ;;  %v16778_v43 = vpop.f32.mrb[13].mxu0  ;;  %v2882_v4 = vrot.slane %v16784_v17, 1  ;;  %v18485_v1 = vrot.slane %v16740_v22, 1  ;;  %v2247_v51 = vsel %vm776_vm2, %v2242_v41, %v2246_v30 }
 0x1eb   : > { %18481 = vst [vmem:[#allocation37_spill] sm:$0xff] %v16778_v43  ;;  %13057 = vmatmul.mubr.bf16.gmra.mrb[4].mxu1 %v14976_v60  ;;  %v13539_v9 = vpop.f32.mrb[14].mxu0  ;;  %v11081_v60 = vcombine.low %v2856_v42, %v16781_v19  ;;  %v14988_v42 = vld [vmem:[%s15959_s4 + $0x868] sm:$0xff]  }
 0x1ec   : > { %13069 = vmatpush3.bf16.msra.mxu1 %v14977_v61  ;;  %13060 = vmatprep.mubr.bf16.mxu1 %v14981_v14  ;;  %v16787_v40 = vpop.f32.mrb[15].mxu0  ;;  %v14985_v61 = vld [vmem:[%s15959_s4 + $0x860] sm:$0xff]   ;;  %v14982_v14 = vld [vmem:[%s15951_s16 + $0xe8] ss:$0 sps:$4 sm:$0xff]   ;;  %v16805_v45 = vsel %vm1241_vm3, %v18485_v1, %v2882_v4  ;;  %v14994_v1 = vld [vmem:[%s15959_s4 + $0x878] sm:$0xff]  }
 0x1ed   : > { %18482 = vst [vmem:[#allocation38_spill] sm:$0xff] %v16787_v40  ;;  %13741 = vmatpush3.bf16.msra.mxu0 %v14978_v12  ;;  %13070 = vmatprep.subr.bf16.mxu1 %v14979_v46  ;;  %v18484_v12 = vcombine.low %v16428_v29, %v16431_v38  ;;  %v2877_v39 = vrot.slane %v11081_v60, 1  ;;  %v14987_v9 = vld [vmem:[%s15959_s4 + $0x268] sm:$0xff]   ;;  %v18486_v29 = vrot.slane %v16737_v5, 1  ;;  %v11616_v60 = vcombine.low %v16589_v62, %v16589_v62 }
 0x1ee   : > { %13742 = vmatprep.subr.bf16.mxu0 %v14980_v16  ;;  %13729 = vmatmul.mubr.bf16.gmra.mrb[4].mxu0 %v18483_v36  ;;  %v14989_v36 = vld [vmem:[%s15959_s4 + $0x270] sm:$0xff]  }
 0x1ef   : > { %13732 = vmatprep.mubr.bf16.mxu0 %v18484_v12  ;;  %v16816_v38 = vsel %vm1241_vm3, %v2877_v39, %v18486_v29  ;;  %v14991_v39 = vld [vmem:[%s15959_s4 + $0x870] sm:$0xff]   ;;  %v18383_v29 = vshll.u32 %v16691_v26, 16 }
 0x1f0   : > { %13071 = vmatpush3.bf16.msra.mxu1 %v14979_v46  ;;  %v16821_v46 = vld [vmem:[%s15951_s16 + $0xe8] sm:$0x1f]  }
 0x1f1   : > { %13743 = vmatpush3.bf16.msra.mxu0 %v14980_v16  ;;  %13072 = vmatprep.subr.bf16.mxu1 %v14983_v25  ;;  %v2884_v16 = vrot.slane %v16811_v21, 1  ;;  %v18379_v41 = vrot.slane %v16821_v46, 1 }
 0x1f2   : > { %13744 = vmatprep.subr.bf16.mxu0 %v14985_v61 }
 0x1f3   : > { %13061 = vmatmul.mubr.bf16.gmra.mrb[40].mxu1 %v14982_v14  ;;  %v16827_v12 = vsel %vm1241_vm3, %v2882_v4, %v2884_v16  ;;  %v16833_v62 = vsel %vm1241_vm3, %v2884_v16, %v18379_v41  ;;  %v18380_v4 = vshll.u32 %v16682_v63, 16  ;;  %v14993_v14 = vld [vmem:[%s15959_s4 + $0x278] sm:$0xff]   ;;  %v15002_v41 = vld [vmem:[%s15959_s4 + $0x288] sm:$0xff]  }
 0x1f4   : > { %13073 = vmatpush3.bf16.msra.mxu1 %v14983_v25  ;;  %13080 = vmatprep.mubr.bf16.mxu1 %v2247_v51  ;;  %v18487_v25 = vcombine.low %v16465_v13, %v16468_v3  ;;  %v18384_v51 = vshrl.u32 %v16682_v63, 16 }
 0x1f5   : > { %13745 = vmatpush3.bf16.msra.mxu0 %v14985_v61  ;;  %13074 = vmatprep.subr.bf16.mxu1 %v14987_v9  ;;  %v18382_v61 = vshrl.u32 %v16677_v53, 16  ;;  %v2254_v3 = vrot.slane %v18380_v4, 1  ;;  %v18387_v4 = vshrl.u32 %v16699_v23, 16 }
 0x1f6   : > { %13746 = vmatprep.subr.bf16.mxu0 %v14988_v42  ;;  %13733 = vmatmul.mubr.bf16.gmra.mrb[40].mxu0 %v11616_v60  ;;  %v2428_v60 = vld [vmem:[%s15951_s16 + $0xc0] sm:$0xf] }
 0x1f7   : > { %13752 = vmatprep.mubr.bf16.mxu0 %v18487_v25  ;;  %v2250_v13 = vor.u32 %v18382_v61, %v2246_v30  ;;  %v2258_v16 = vor.u32 %v18384_v51, %v2254_v3  ;;  %v18385_v25 = vshll.u32 %v16699_v23, 16  ;;  %v11026_v61 = vcombine.low %v2428_v60, %v16781_v19  ;;  %v15027_v51 = vld [vmem:[%s15951_s16 + $0xc] sm:$0xff]  }
 0x1f8   : > { %13075 = vmatpush3.bf16.msra.mxu1 %v14987_v9  ;;  %v14998_v9 = vld [vmem:[%s15959_s4 + $0x280] sm:$0xff]   ;;  %v15006_v19 = vld [vmem:[%s15959_s4 + $0x290] sm:$0xff]  }
 0x1f9   : > { %13747 = vmatpush3.bf16.msra.mxu0 %v14988_v42  ;;  %13076 = vmatprep.subr.bf16.mxu1 %v14989_v36  ;;  %v15000_v42 = vld [vmem:[%s15959_s4 + $0x880] sm:$0xff]   ;;  %v2255_v30 = vsel %vm776_vm2, %v2250_v13, %v2254_v3  ;;  %v2270_v13 = vrot.slane %v18385_v25, 1  ;;  %v18489_v25 = vcombine.low %v16505_v0, %v16508_v59  ;;  %v2495_v0 = vshll.u32 %v16737_v5, 16 }
 0x1fa   : > { %13748 = vmatprep.subr.bf16.mxu0 %v14991_v39 }
 0x1fb   : > { %v2274_v60 = vor.u32 %v18387_v4, %v2270_v13  ;;  %v16885_v4 = vld [vmem:[%s15951_s16 + $0x14] sm:$0xff]  }
 0x1fc   : > { %13077 = vmatpush3.bf16.msra.mxu1 %v14989_v36  ;;  %v2262_v36 = vrot.slane %v18383_v29, 1  ;;  %v15003_v29 = vld [vmem:[%s15959_s4 + $0x888] sm:$0xff]  }
 0x1fd   : > { %13749 = vmatpush3.bf16.msra.mxu0 %v14991_v39  ;;  %13078 = vmatprep.subr.bf16.mxu1 %v14993_v14  ;;  %v18386_v39 = vshrl.u32 %v16691_v26, 16 }
 0x1fe   : > { %13750 = vmatprep.subr.bf16.mxu0 %v14994_v1 }
 0x1ff   : > { %v2266_v3 = vor.u32 %v18386_v39, %v2262_v36  ;;  %v2488_v39 = vshrl.u32 %v11026_v61, 16 }
 0x200   : > { %13079 = vmatpush3.bf16.msra.mxu1 %v14993_v14  ;;  %v2263_v14 = vsel %vm776_vm2, %v2258_v16, %v2262_v36  ;;  %v2278_v16 = vrot.slane %v2276_v56, 1  ;;  %v15008_v36 = vld [vmem:[%s15959_s4 + $0x298] sm:$0xff]  }
 0x201   : > { %13751 = vmatpush3.bf16.msra.mxu0 %v14994_v1  ;;  %13092 = vmatprep.subr.bf16.mxu1 %v14998_v9  ;;  %v18488_v1 = vcombine.low %v16471_v11, %v16502_v48  ;;  %v15007_v11 = vld [vmem:[%s15959_s4 + $0x890] sm:$0xff]  }
 0x202   : > { %13764 = vmatprep.subr.bf16.mxu0 %v15000_v42  ;;  %v2279_v58 = vsel %vm776_vm2, %v2274_v60, %v2278_v16  ;;  %v2497_v60 = vrot.slane %v2495_v0, 1  ;;  %v15022_v0 = vld [vmem:[%s15959_s4 + $0x8b8] sm:$0xff]  }
 0x203   : > { %13081 = vmatmul.mubr.bf16.vlgmr.msra.gmra.mrb[0].mxu1 %v2255_v30  ;;  %v2490_v30 = vshll.u32 %v11026_v61, 16  ;;  %v7393_v61 = vshll.u32 %v16885_v4, 16 }
 0x204   : > { %13093 = vmatpush3.bf16.msra.mxu1 %v14998_v9  ;;  %13753 = vmatmul.mubr.bf16.vlgmr.msra.gmra.mrb[0].mxu0 %v18488_v1 }
 0x205   : > { %13765 = vmatpush3.bf16.msra.mxu0 %v15000_v42  ;;  %13094 = vmatprep.subr.bf16.mxu1 %v15002_v41  ;;  %v2280_v42 = vshrl.u32 %v16704_v32, 16  ;;  %v2492_v7 = vrot.slane %v2490_v30, 1 }
 0x206   : > { %v12894_v9 = vpop.f32.mrb[16].mxu1  ;;  %13766 = vmatprep.subr.bf16.mxu0 %v15003_v29  ;;  %13084 = vmatprep.mubr.bf16.mxu1 %v2263_v14  ;;  %v2271_v14 = vsel %vm776_vm2, %v2266_v3, %v2270_v13  ;;  %v15011_v3 = vld [vmem:[%s15959_s4 + $0x2a0] sm:$0xff]  }
 0x207   : > { %v16877_v48 = vadd.f32 %v12894_v9, %v16761_v34  ;;  %v944_v1 = vpop.f32.mrb[17].mxu1  ;;  %13756 = vmatprep.mubr.bf16.mxu0 %v18489_v25  ;;  %v15009_v34 = vld [vmem:[%s15959_s4 + $0x898] sm:$0xff]   ;;  %v7388_v9 = vshll.u32 %v15027_v51, 16  ;;  %v2282_v30 = vor.u32 %v2280_v42, %v2278_v16  ;;  %v15019_v16 = vld [vmem:[%s15959_s4 + $0x8b0] sm:$0xff]   ;;  %v16924_v42 = vld [vmem:[%s15951_s16 + $0x24] sm:$0xff]  }
 0x208   : > { %v16888_v56 = vadd.f32 %v944_v1, %v16768_v10  ;;  %v12895_v40 = vpop.f32.mrb[18].mxu1  ;;  %13095 = vmatpush3.bf16.msra.mxu1 %v15002_v41  ;;  %v15016_v1 = vld [vmem:[%s15959_s4 + $0x8a8] sm:$0xff]  }
 0x209   : > { %13767 = vmatpush3.bf16.msra.mxu0 %v15003_v29  ;;  %v947_v43 = vpop.f32.mrb[19].mxu1  ;;  %13096 = vmatprep.subr.bf16.mxu1 %v15006_v19  ;;  %v16894_v59 = vpop.f32.mrb[16].mxu0  ;;  %v7386_v40 = vshrl.u32 %v15027_v51, 16  ;;  %v7390_v25 = vrot.slane %v7388_v9, 1  ;;  %v18490_v51 = vcombine.low %v16511_v6, %v16529_v49  ;;  %v11646_v49 = vcombine.low %v16641_v54, %v16641_v54  ;;  %v15017_v6 = vld [vmem:[%s15959_s4 + $0x2b0] sm:$0xff]  }
 0x20a   : > { %v16897_v10 = vadd.f32 %v947_v43, %v16775_v50  ;;  %13768 = vmatprep.subr.bf16.mxu0 %v15007_v11  ;;  %v16899_v41 = vpop.f32.mrb[17].mxu0  ;;  %v15013_v50 = vld [vmem:[%s15959_s4 + $0x8a0] sm:$0xff]   ;;  %v2493_v43 = vor.u32 %v2492_v7, %v2488_v39  ;;  %v15015_v7 = vld [vmem:[%s15959_s4 + $0x2a8] sm:$0xff]   ;;  %v2499_v54 = vshrl.u32 %v16737_v5, 16 }
 0x20b   : > { %13085 = vmatmul.mubr.bf16.gmra.mrb[4].mxu1 %v2271_v14  ;;  %v13567_v29 = vpop.f32.mrb[18].mxu0  ;;  %v15021_v14 = vld [vmem:[%s15959_s4 + $0x2b8] sm:$0xff]  }
 0x20c   : > { %13097 = vmatpush3.bf16.msra.mxu1 %v15006_v19  ;;  %13088 = vmatprep.mubr.bf16.mxu1 %v2279_v58  ;;  %v16902_v13 = vpop.f32.mrb[19].mxu0  ;;  %v18491_v58 = vcombine.low %v16532_v31, %v16537_v18  ;;  %v7391_v19 = vor.u32 %v7390_v25, %v7386_v40  ;;  %v2498_v39 = vsel %vm776_vm2, %v2493_v43, %v2497_v60  ;;  %v15030_v31 = vld [vmem:[%s15951_s16 + $0x1c] sm:$0xff]   ;;  %v2511_v29 = vshll.u32 %v16784_v17, 16 }
 0x20d   : > { %13769 = vmatpush3.bf16.msra.mxu0 %v15007_v11  ;;  %13098 = vmatprep.subr.bf16.mxu1 %v15008_v36  ;;  %v7395_v11 = vrot.slane %v7393_v61, 1  ;;  %v7401_v9 = vshll.u32 %v15030_v31, 16  ;;  %v2507_v61 = vshrl.u32 %v16740_v22, 16  ;;  %v2501_v5 = vor.u32 %v2499_v54, %v2497_v60 }
 0x20e   : > { %13770 = vmatprep.subr.bf16.mxu0 %v15009_v34  ;;  %13757 = vmatmul.mubr.bf16.gmra.mrb[4].mxu0 %v18490_v51  ;;  %v7405_v25 = vshrl.u32 %v15030_v31, 16  ;;  %v15029_v51 = vld [vmem:[%s15959_s4 + $0x8c0] sm:$0xff]   ;;  %v2527_v31 = vshll.u32 %v16821_v46, 16 }
 0x20f   : > { %13760 = vmatprep.mubr.bf16.mxu0 %v18491_v58  ;;  %v7396_v18 = vsel %vm776_vm2, %v7391_v19, %v7395_v11  ;;  %v7403_v43 = vrot.slane %v7401_v9, 1  ;;  %v15031_v58 = vld [vmem:[%s15959_s4 + $0x2c8] sm:$0xff]  }
 0x210   : > { %13099 = vmatpush3.bf16.msra.mxu1 %v15008_v36  ;;  %v2503_v36 = vshll.u32 %v16740_v22, 16  ;;  %v2513_v22 = vrot.slane %v2511_v29, 1  ;;  %v2529_v29 = vrot.slane %v2527_v31, 1 }
 0x211   : > { %13771 = vmatpush3.bf16.msra.mxu0 %v15009_v34  ;;  %13100 = vmatprep.subr.bf16.mxu1 %v15011_v3  ;;  %v7397_v34 = vshrl.u32 %v16885_v4, 16  ;;  %v15026_v4 = vld [vmem:[%s15959_s4 + $0x2c0] sm:$0xff]  }
 0x212   : > { %13772 = vmatprep.subr.bf16.mxu0 %v15013_v50  ;;  %v2505_v40 = vrot.slane %v2503_v36, 1 }
 0x213   : > { %13089 = vmatmul.mubr.bf16.gmra.mrb[44].mxu1 %v2282_v30  ;;  %v15043_v30 = vld [vmem:[%s15951_s16 + $0x2c] sm:$0xff]  }
 0x214   : > { %13101 = vmatpush3.bf16.msra.mxu1 %v15011_v3  ;;  %13108 = vmatprep.mubr.bf16.mxu1 %v2498_v39  ;;  %v7409_v3 = vshll.u32 %v16924_v42, 16  ;;  %v2509_v19 = vor.u32 %v2507_v61, %v2505_v40  ;;  %v2506_v60 = vsel %vm776_vm2, %v2501_v5, %v2505_v40  ;;  %v2515_v39 = vshrl.u32 %v16784_v17, 16  ;;  %v15035_v40 = vld [vmem:[%s15959_s4 + $0x2d0] sm:$0xff]  }
 0x215   : > { %13773 = vmatpush3.bf16.msra.mxu0 %v15013_v50  ;;  %13102 = vmatprep.subr.bf16.mxu1 %v15015_v7  ;;  %v7399_v50 = vor.u32 %v7397_v34, %v7395_v11  ;;  %v7417_v36 = vshll.u32 %v15043_v30, 16 }
 0x216   : > { %13774 = vmatprep.subr.bf16.mxu0 %v15016_v1  ;;  %13761 = vmatmul.mubr.bf16.gmra.mrb[44].mxu0 %v11646_v49  ;;  %v7411_v49 = vrot.slane %v7409_v3, 1  ;;  %v2514_v54 = vsel %vm776_vm2, %v2509_v19, %v2513_v22  ;;  %v2517_v34 = vor.u32 %v2515_v39, %v2513_v22  ;;  %v7579_v19 = vld [vmem:[%s15951_s16 + $0x90] sm:$0xf] }
 0x217   : > { %13780 = vmatprep.mubr.bf16.mxu0 %v7396_v18  ;;  %v16940_v18 = vld [vmem:[%s15951_s16 + $0x34] sm:$0x1f]   ;;  %v7404_v11 = vsel %vm776_vm2, %v7399_v50, %v7403_v43 }
 0x218   : > { %13103 = vmatpush3.bf16.msra.mxu1 %v15015_v7  ;;  %v2519_v7 = vshll.u32 %v16811_v21, 16  ;;  %v15037_v50 = vld [vmem:[%s15959_s4 + $0x2d8] sm:$0xff]  }
 0x219   : > { %13775 = vmatpush3.bf16.msra.mxu0 %v15016_v1  ;;  %13104 = vmatprep.subr.bf16.mxu1 %v15017_v6  ;;  %v7407_v1 = vor.u32 %v7405_v25, %v7403_v43  ;;  %v7419_v25 = vrot.slane %v7417_v36, 1  ;;  %v2531_v36 = vshrl.u32 %v16821_v46, 16 }
 0x21a   : > { %13776 = vmatprep.subr.bf16.mxu0 %v15019_v16  ;;  %v2521_v17 = vrot.slane %v2519_v7, 1 }
 0x21b   : > { %v7412_v9 = vsel %vm776_vm2, %v7407_v1, %v7411_v49 }
 0x21c   : > { %13105 = vmatpush3.bf16.msra.mxu1 %v15017_v6  ;;  %v2523_v6 = vshrl.u32 %v16811_v21, 16  ;;  %v7421_v21 = vshrl.u32 %v15043_v30, 16  ;;  %v7578_v30 = vld [vmem:[%s15951_s16 + $0x8c] sm:$0xf] }
 0x21d   : > { %13777 = vmatpush3.bf16.msra.mxu0 %v15019_v16  ;;  %13106 = vmatprep.subr.bf16.mxu1 %v15021_v14  ;;  %v15032_v16 = vld [vmem:[%s15959_s4 + $0x8c8] sm:$0xff]  }
 0x21e   : > { %13778 = vmatprep.subr.bf16.mxu0 %v15022_v0  ;;  %v2525_v61 = vor.u32 %v2523_v6, %v2521_v17  ;;  %v7423_v39 = vor.u32 %v7421_v21, %v7419_v25  ;;  %v7580_v6 = vld [vmem:[%s15951_s16 + $0x94] sm:$0xf]  ;;  %v15042_v21 = vld [vmem:[%s15959_s4 + $0x8e0] sm:$0xff]  }
 0x220   : > { %13107 = vmatpush3.bf16.msra.mxu1 %v15021_v14  ;;  %v7413_v14 = vshrl.u32 %v16924_v42, 16  ;;  %v15036_v42 = vld [vmem:[%s15959_s4 + $0x8d0] sm:$0xff]  }
 0x221   : > { %13779 = vmatpush3.bf16.msra.mxu0 %v15022_v0  ;;  %13120 = vmatprep.subr.bf16.mxu1 %v15026_v4  ;;  %v7425_v0 = vshll.u32 %v16940_v18, 16 }
 0x222   : > { %13792 = vmatprep.subr.bf16.mxu0 %v15029_v51  ;;  %v7415_v43 = vor.u32 %v7413_v14, %v7411_v49 }
 0x223   : > { %13109 = vmatmul.mubr.bf16.vlgmr.msra.gmra.mrb[0].mxu1 %v2506_v60  ;;  %v2522_v60 = vsel %vm776_vm2, %v2517_v34, %v2521_v17  ;;  %v7427_v1 = vrot.slane %v7425_v0, 1  ;;  %v7429_v0 = vshrl.u32 %v16940_v18, 16  ;;  %v15048_v18 = vld [vmem:[%s15959_s4 + $0x8f0] sm:$0xff]  }
 0x224   : > { %13121 = vmatpush3.bf16.msra.mxu1 %v15026_v4  ;;  %13781 = vmatmul.mubr.bf16.vlgmr.msra.gmra.mrb[0].mxu0 %v7404_v11  ;;  %v2530_v11 = vsel %vm776_vm2, %v2525_v61, %v2529_v29  ;;  %v15044_v61 = vld [vmem:[%s15959_s4 + $0x2e8] sm:$0xff]  }
 0x225   : > { %13793 = vmatpush3.bf16.msra.mxu0 %v15029_v51  ;;  %13122 = vmatprep.subr.bf16.mxu1 %v15031_v58  ;;  %v7577_v51 = vld [vmem:[%s15951_s16 + $0x88] sm:$0x8]  ;;  %v7428_v17 = vsel %vm776_vm2, %v7423_v39, %v7427_v1 }
 0x226   : > { %v12922_v5 = vpop.f32.mrb[20].mxu1  ;;  %13794 = vmatprep.subr.bf16.mxu0 %v15032_v16  ;;  %13112 = vmatprep.mubr.bf16.mxu1 %v2514_v54  ;;  %v16976_v14 = vcombine.low %v7577_v51, %v7578_v30  ;;  %v7582_v51 = vld [vmem:[%s15951_s16 + $0x9c] sm:$0xf]  ;;  %v7583_v30 = vld [vmem:[%s15951_s16 + $0xa0] sm:$0xf] }
 0x227   : > { %v16953_v3 = vadd.f32 %v12922_v5, %v16877_v48  ;;  %v1195_v4 = vpop.f32.mrb[21].mxu1  ;;  %13784 = vmatprep.mubr.bf16.mxu0 %v7412_v9  ;;  %v15040_v9 = vld [vmem:[%s15959_s4 + $0x2e0] sm:$0xff]  }
 0x228   : > { %v16960_v22 = vadd.f32 %v1195_v4, %v16888_v56  ;;  %v12923_v7 = vpop.f32.mrb[22].mxu1  ;;  %13123 = vmatpush3.bf16.msra.mxu1 %v15031_v58  ;;  %v15038_v56 = vld [vmem:[%s15959_s4 + $0x8d8] sm:$0xff]   ;;  %v7636_v5 = vrot.slane %v16976_v14, 3  ;;  %v7431_v4 = vor.u32 %v7429_v0, %v7427_v1  ;;  %v15052_v1 = vld [vmem:[%s15959_s4 + $0x300] sm:$0xff]  }
 0x229   : > { %13795 = vmatpush3.bf16.msra.mxu0 %v15032_v16  ;;  %v1198_v48 = vpop.f32.mrb[23].mxu1  ;;  %13124 = vmatprep.subr.bf16.mxu1 %v15035_v40  ;;  %v16965_v49 = vpop.f32.mrb[20].mxu0  ;;  %v7420_v16 = vsel %vm776_vm2, %v7415_v43, %v7419_v25  ;;  %v15045_v25 = vld [vmem:[%s15959_s4 + $0x8e8] sm:$0xff]   ;;  %v15046_v43 = vld [vmem:[%s15959_s4 + $0x2f0] sm:$0xff]  }
 0x22a   : > { %v16968_v31 = vadd.f32 %v1198_v48, %v16897_v10  ;;  %13796 = vmatprep.subr.bf16.mxu0 %v15036_v42  ;;  %v16971_v58 = vpop.f32.mrb[21].mxu0  ;;  %v16978_v10 = vcombine.low %v7579_v19, %v7580_v6  ;;  %v7584_v19 = vld [vmem:[%s15951_s16 + $0xa4] sm:$0xf] }
 0x22b   : > { %13113 = vmatmul.mubr.bf16.gmra.mrb[4].mxu1 %v2522_v60  ;;  %v13595_v54 = vpop.f32.mrb[22].mxu0  ;;  %v15050_v60 = vld [vmem:[%s15959_s4 + $0x8f8] sm:$0xff]   ;;  %v17001_v39 = vcombine.low %v7583_v30, %v7584_v19 }
 0x22c   : > { %13125 = vmatpush3.bf16.msra.mxu1 %v15035_v40  ;;  %13116 = vmatprep.mubr.bf16.mxu1 %v2530_v11  ;;  %v16980_v34 = vpop.f32.mrb[23].mxu0  ;;  %v2533_v40 = vor.u32 %v2531_v36, %v2529_v29  ;;  %v15055_v11 = vld [vmem:[%s15959_s4 + $0x900] sm:$0xff]   ;;  %v7586_v36 = vld [vmem:[%s15951_s16 + $0xac] sm:$0xf]  ;;  %v17011_v54 = vld [vmem:[%s15951_s16 + $0xb0] sm:$0xf] }
 0x22d   : > { %13797 = vmatpush3.bf16.msra.mxu0 %v15036_v42  ;;  %13126 = vmatprep.subr.bf16.mxu1 %v15037_v50  ;;  %v7637_v42 = vrot.slane %v16978_v10, 3  ;;  %v7641_v6 = vrot.slane %v17001_v39, 3 }
 0x22e   : > { %13798 = vmatprep.subr.bf16.mxu0 %v15038_v56  ;;  %13785 = vmatmul.mubr.bf16.gmra.mrb[4].mxu0 %v7420_v16  ;;  %v15057_v16 = vld [vmem:[%s15959_s4 + $0x308] sm:$0xff]  }
 0x22f   : > { %13788 = vmatprep.mubr.bf16.mxu0 %v7428_v17  ;;  %v7638_v29 = vsel %vm4521_vm4, %v7636_v5, %v7637_v42  ;;  %v7588_v17 = vld [vmem:[%s15951_s16 + $0xb4] sm:$0x7] }
 0x230   : > { %13127 = vmatpush3.bf16.msra.mxu1 %v15037_v50  ;;  %v7581_v50 = vld [vmem:[%s15951_s16 + $0x98] sm:$0xf]  ;;  %v11706_v5 = vcombine.low %v17011_v54, %v7588_v17 }
 0x231   : > { %13799 = vmatpush3.bf16.msra.mxu0 %v15038_v56  ;;  %13128 = vmatprep.subr.bf16.mxu1 %v15040_v9  ;;  %v16998_v7 = vcombine.low %v7581_v50, %v7582_v51  ;;  %v7585_v56 = vld [vmem:[%s15951_s16 + $0xa8] sm:$0xf]  ;;  %v7795_v51 = vld [vmem:[%s15951_s16 + $0xd4] sm:$0xf] }
 0x232   : > { %13800 = vmatprep.subr.bf16.mxu0 %v15042_v21  ;;  %v17017_v0 = vcombine.low %v7585_v56, %v7586_v36 }
 0x233   : > { %13117 = vmatmul.mubr.bf16.gmra.mrb[48].mxu1 %v2533_v40  ;;  %v7639_v48 = vrot.slane %v16998_v7, 3  ;;  %v15059_v40 = vld [vmem:[%s15959_s4 + $0x310] sm:$0xff]  }
 0x234   : > { %13129 = vmatpush3.bf16.msra.mxu1 %v15040_v9  ;;  %13136 = vmatprep.mubr.bf16.mxu1 %v16733_v55  ;;  %v15049_v55 = vld [vmem:[%s15959_s4 + $0x2f8] sm:$0xff]   ;;  %v7643_v50 = vrot.slane %v17017_v0, 3 }
 0x235   : > { %13801 = vmatpush3.bf16.msra.mxu0 %v15042_v21  ;;  %13130 = vmatprep.subr.bf16.mxu1 %v15044_v61  ;;  %v7640_v9 = vsel %vm4521_vm4, %v7637_v42, %v7639_v48  ;;  %v15058_v21 = vld [vmem:[%s15959_s4 + $0x908] sm:$0xff]  }
 0x236   : > { %13802 = vmatprep.subr.bf16.mxu0 %v15045_v25  ;;  %13789 = vmatmul.mubr.bf16.gmra.mrb[48].mxu0 %v7431_v4  ;;  %v7792_v42 = vld [vmem:[%s15951_s16 + $0xc8] sm:$0x8]  ;;  %v15060_v4 = vld [vmem:[%s15959_s4 + $0x910] sm:$0xff]   ;;  %v7644_v36 = vsel %vm4521_vm4, %v7641_v6, %v7643_v50 }
 0x237   : > { %13808 = vmatprep.mubr.bf16.mxu0 %v7638_v29 }
 0x238   : > { %13131 = vmatpush3.bf16.msra.mxu1 %v15044_v61  ;;  %v7642_v61 = vsel %vm4521_vm4, %v7639_v48, %v7641_v6  ;;  %v15062_v48 = vld [vmem:[%s15959_s4 + $0x918] sm:$0xff]  }
 0x239   : > { %13803 = vmatpush3.bf16.msra.mxu0 %v15045_v25  ;;  %13132 = vmatprep.subr.bf16.mxu1 %v15046_v43 }
 0x23a   : > { %13804 = vmatprep.subr.bf16.mxu0 %v15048_v18 }
 0x23c   : > { %13133 = vmatpush3.bf16.msra.mxu1 %v15046_v43  ;;  %v7794_v43 = vld [vmem:[%s15951_s16 + $0xd0] sm:$0xf] }
 0x23d   : > { %13805 = vmatpush3.bf16.msra.mxu0 %v15048_v18  ;;  %13134 = vmatprep.subr.bf16.mxu1 %v15049_v55 }
 0x23e   : > { %13806 = vmatprep.subr.bf16.mxu0 %v15050_v60 }
 0x240   : > { %13135 = vmatpush3.bf16.msra.mxu1 %v15049_v55  ;;  %v7645_v55 = vrot.slane %v11706_v5, 3  ;;  %v15069_v5 = vld [vmem:[%s15959_s4 + $0x330] sm:$0xff]  }
 0x241   : > { %13807 = vmatpush3.bf16.msra.mxu0 %v15050_v60  ;;  %13148 = vmatprep.subr.bf16.mxu1 %v15052_v1  ;;  %v15061_v60 = vld [vmem:[%s15959_s4 + $0x318] sm:$0xff]  }
 0x242   : > { %13820 = vmatprep.subr.bf16.mxu0 %v15055_v11 }
 0x243   : > { %13137 = vmatmul.mubr.bf16.vlgmr.msra.gmra.mrb[0].mxu1 %v16694_v44  ;;  %v7793_v44 = vld [vmem:[%s15951_s16 + $0xcc] sm:$0xf] }
 0x244   : > { %13149 = vmatpush3.bf16.msra.mxu1 %v15052_v1  ;;  %13809 = vmatmul.mubr.bf16.vlgmr.msra.gmra.mrb[0].mxu0 %v7640_v9  ;;  %v15063_v9 = vld [vmem:[%s15959_s4 + $0x320] sm:$0xff]  }
 0x245   : > { %13821 = vmatpush3.bf16.msra.mxu0 %v15055_v11  ;;  %13150 = vmatprep.subr.bf16.mxu1 %v15057_v16  ;;  %v17042_v11 = vcombine.low %v7792_v42, %v7793_v44  ;;  %v15071_v42 = vld [vmem:[%s15959_s4 + $0x930] sm:$0xff]   ;;  %v7797_v44 = vld [vmem:[%s15951_s16 + $0xdc] sm:$0xf] }
 0x246   : > { %v12950_v25 = vpop.f32.mrb[24].mxu1  ;;  %13822 = vmatprep.subr.bf16.mxu0 %v15058_v21  ;;  %13140 = vmatprep.mubr.bf16.mxu1 %v16707_v52 }
 0x247   : > { %v17028_v18 = vadd.f32 %v12950_v25, %v16953_v3  ;;  %v1373_v29 = vpop.f32.mrb[25].mxu1  ;;  %13812 = vmatprep.mubr.bf16.mxu0 %v7642_v61  ;;  %v18493_v61 = vrot.slane %v16704_v32, 1  ;;  %v15072_v32 = vld [vmem:[%s15959_s4 + $0x338] sm:$0xff]  }
 0x248   : > { %v17033_v30 = vadd.f32 %v1373_v29, %v16960_v22  ;;  %v12951_v19 = vpop.f32.mrb[26].mxu1  ;;  %13151 = vmatpush3.bf16.msra.mxu1 %v15057_v16  ;;  %v17044_v22 = vcombine.low %v7794_v43, %v7795_v51  ;;  %v7798_v43 = vld [vmem:[%s15951_s16 + $0xe0] sm:$0xf]  ;;  %v7799_v29 = vld [vmem:[%s15951_s16 + $0xe4] sm:$0xf] }
 0x249   : > { %13823 = vmatpush3.bf16.msra.mxu0 %v15058_v21  ;;  %v1376_v52 = vpop.f32.mrb[27].mxu1  ;;  %13152 = vmatprep.subr.bf16.mxu1 %v15059_v40  ;;  %v17036_v1 = vpop.f32.mrb[24].mxu0  ;;  %v15065_v21 = vld [vmem:[%s15959_s4 + $0x920] sm:$0xff]   ;;  %v7800_v51 = vld [vmem:[%s15951_s16 + $0xe8] sm:$0xf] }
 0x24a   : > { %v17039_v3 = vadd.f32 %v1376_v52, %v16968_v31  ;;  %13824 = vmatprep.subr.bf16.mxu0 %v15060_v4  ;;  %v17046_v56 = vpop.f32.mrb[25].mxu0  ;;  %v7646_v31 = vsel %vm4521_vm4, %v7643_v50, %v7645_v55  ;;  %v7852_v6 = vrot.slane %v17044_v22, 3  ;;  %v15073_v50 = vld [vmem:[%s15959_s4 + $0x938] sm:$0xff]   ;;  %v17077_v52 = vld [vmem:[%s15951_s16 + $0xf0] sm:$0xf] }
 0x24b   : > { %13141 = vmatmul.mubr.bf16.gmra.mrb[4].mxu1 %v16718_v8  ;;  %v13623_v16 = vpop.f32.mrb[26].mxu0  ;;  %v7851_v8 = vrot.slane %v17042_v11, 3 }
 0x24c   : > { %13153 = vmatpush3.bf16.msra.mxu1 %v15059_v40  ;;  %13144 = vmatprep.mubr.bf16.mxu1 %v16727_v20  ;;  %v17052_v17 = vpop.f32.mrb[27].mxu0  ;;  %v15067_v40 = vld [vmem:[%s15959_s4 + $0x328] sm:$0xff]   ;;  %v15075_v16 = vld [vmem:[%s15959_s4 + $0x340] sm:$0xff]  }
 0x24d   : > { %18492 = vst [vmem:[#allocation39_spill] sm:$0xff] %v17052_v17  ;;  %13825 = vmatpush3.bf16.msra.mxu0 %v15060_v4  ;;  %13154 = vmatprep.subr.bf16.mxu1 %v15061_v60  ;;  %v15068_v20 = vld [vmem:[%s15959_s4 + $0x928] sm:$0xff]   ;;  %v7853_v25 = vsel %vm4521_vm4, %v7851_v8, %v7852_v6  ;;  %v7796_v4 = vld [vmem:[%s15951_s16 + $0xd8] sm:$0xf]  ;;  %v3055_v8 = vshrl.u32 %v16715_v28, 16 }
 0x24e   : > { %13826 = vmatprep.subr.bf16.mxu0 %v15062_v48  ;;  %13813 = vmatmul.mubr.bf16.gmra.mrb[4].mxu0 %v7644_v36  ;;  %v17074_v19 = vcombine.low %v7796_v4, %v7797_v44 }
 0x24f   : > { %13816 = vmatprep.mubr.bf16.mxu0 %v7646_v31  ;;  %v15078_v31 = vld [vmem:[%s15959_s4 + $0x940] sm:$0xff]   ;;  %v17098_v4 = vrot.slane %v3055_v8, 1  ;;  %v8032_v8 = vshll.u32 %v16976_v14, 16 }
 0x250   : > { %13155 = vmatpush3.bf16.msra.mxu1 %v15061_v60  ;;  %v7803_v60 = vld [vmem:[%s15951_s16 + $0xf4] sm:$0x7] }
 0x251   : > { %13827 = vmatpush3.bf16.msra.mxu0 %v15062_v48  ;;  %13156 = vmatprep.subr.bf16.mxu1 %v15063_v9  ;;  %v18494_v48 = vshrl.u32 %v16682_v63, 16 }
 0x252   : > { %13828 = vmatprep.subr.bf16.mxu0 %v15065_v21 }
 0x253   : > { %13145 = vmatmul.mubr.bf16.gmra.mrb[52].mxu1 %v18493_v61  ;;  %v17084_v36 = vrot.slane %v18494_v48, 1  ;;  %v15081_v61 = vld [vmem:[%s15959_s4 + $0x948] sm:$0xff]  }
 0x254   : > { %13157 = vmatpush3.bf16.msra.mxu1 %v15063_v9  ;;  %13164 = vmatprep.mubr.bf16.mxu1 %v16816_v38  ;;  %v7801_v38 = vld [vmem:[%s15951_s16 + $0xec] sm:$0xf]  ;;  %v7854_v9 = vrot.slane %v17074_v19, 3 }
 0x255   : > { %13829 = vmatpush3.bf16.msra.mxu0 %v15065_v21  ;;  %13158 = vmatprep.subr.bf16.mxu1 %v15067_v40  ;;  %v17089_v21 = vcombine.low %v7800_v51, %v7801_v38  ;;  %v18496_v51 = vshll.u32 %v16677_v53, 16 }
 0x256   : > { %13830 = vmatprep.subr.bf16.mxu0 %v15068_v20  ;;  %13817 = vmatmul.mubr.bf16.gmra.mrb[52].mxu0 %v7645_v55  ;;  %v17080_v55 = vcombine.low %v7798_v43, %v7799_v29  ;;  %v3058_v43 = vshll.u32 %v16715_v28, 16  ;;  %v18495_v29 = vshrl.u32 %v16677_v53, 16  ;;  %v8029_v53 = vshrl.u32 %v16976_v14, 16 }
 0x257   : > { %13836 = vmatprep.mubr.bf16.mxu0 %v7853_v25  ;;  %v7858_v25 = vrot.slane %v17089_v21, 3  ;;  %v3063_v38 = vrot.slane %v18496_v51, 2  ;;  %v8046_v14 = vshrl.u32 %v16998_v7, 16 }
 0x258   : > { %13159 = vmatpush3.bf16.msra.mxu1 %v15067_v40  ;;  %v11736_v40 = vcombine.low %v17077_v52, %v7803_v60  ;;  %v3060_v28 = vrot.slane %v3058_v43, 2  ;;  %v8040_v43 = vshll.u32 %v16978_v10, 16 }
 0x259   : > { %13831 = vmatpush3.bf16.msra.mxu0 %v15068_v20  ;;  %13160 = vmatprep.subr.bf16.mxu1 %v15069_v5  ;;  %v15080_v20 = vld [vmem:[%s15959_s4 + $0x348] sm:$0xff]  }
 0x25a   : > { %13832 = vmatprep.subr.bf16.mxu0 %v15071_v42  ;;  %v17100_v44 = vrot.slane %v11736_v40, 3  ;;  %v15084_v40 = vld [vmem:[%s15959_s4 + $0x358] sm:$0xff]  }
 0x25c   : > { %13161 = vmatpush3.bf16.msra.mxu1 %v15069_v5  ;;  %v7856_v5 = vrot.slane %v17080_v55, 3 }
 0x25d   : > { %13833 = vmatpush3.bf16.msra.mxu0 %v15071_v42  ;;  %13162 = vmatprep.subr.bf16.mxu1 %v15072_v32  ;;  %v7855_v42 = vsel %vm4521_vm4, %v7852_v6, %v7854_v9  ;;  %v15083_v6 = vld [vmem:[%s15959_s4 + $0x950] sm:$0xff]  }
 0x25e   : > { %13834 = vmatprep.subr.bf16.mxu0 %v15073_v50  ;;  %v7857_v60 = vsel %vm4521_vm4, %v7854_v9, %v7856_v5  ;;  %v8037_v9 = vshrl.u32 %v16978_v10, 16  ;;  %v8034_v10 = vrot.slane %v8032_v8, 4 }
 0x260   : > { %13163 = vmatpush3.bf16.msra.mxu1 %v15072_v32  ;;  %v3062_v32 = vrot.slane %v18495_v29, 1 }
 0x261   : > { %13835 = vmatpush3.bf16.msra.mxu0 %v15073_v50  ;;  %13176 = vmatprep.subr.bf16.mxu1 %v15075_v16  ;;  %v15082_v50 = vld [vmem:[%s15959_s4 + $0x350] sm:$0xff]  }
 0x262   : > { %13848 = vmatprep.subr.bf16.mxu0 %v15078_v31 }
 0x263   : > { %13165 = vmatmul.mubr.bf16.vlgmr.msra.gmra.mrb[0].mxu1 %v16752_v35 }
 0x264   : > { %13177 = vmatpush3.bf16.msra.mxu1 %v15075_v16  ;;  %13837 = vmatmul.mubr.bf16.vlgmr.msra.gmra.mrb[0].mxu0 %v7855_v42 }
 0x265   : > { %13849 = vmatpush3.bf16.msra.mxu0 %v15078_v31  ;;  %13178 = vmatprep.subr.bf16.mxu1 %v15080_v20 }
 0x266   : > { %v12978_v48 = vpop.f32.mrb[28].mxu1  ;;  %13850 = vmatprep.subr.bf16.mxu0 %v15081_v61  ;;  %13168 = vmatprep.mubr.bf16.mxu1 %v16805_v45  ;;  %v15085_v45 = vld [vmem:[%s15959_s4 + $0x958] sm:$0xff]  }
 0x267   : > { %v17115_v35 = vadd.f32 %v12978_v48, %v17028_v18  ;;  %v1550_v16 = vpop.f32.mrb[29].mxu1  ;;  %13840 = vmatprep.mubr.bf16.mxu0 %v7857_v60  ;;  %v8049_v18 = vshll.u32 %v16998_v7, 16  ;;  %v8031_v48 = vrot.slane %v8029_v53, 3  ;;  %v7859_v7 = vsel %vm4521_vm4, %v7856_v5, %v7858_v25 }
 0x268   : > { %v17120_v31 = vadd.f32 %v1550_v16, %v17033_v30  ;;  %v12979_v42 = vpop.f32.mrb[30].mxu1  ;;  %13179 = vmatpush3.bf16.msra.mxu1 %v15080_v20  ;;  %v18497_v30 = vshll.u32 %v16682_v63, 16  ;;  %v15086_v16 = vld [vmem:[%s15959_s4 + $0x360] sm:$0xff]   ;;  %v7861_v63 = vsel %vm4521_vm4, %v7858_v25, %v17100_v44  ;;  %v8042_v53 = vrot.slane %v8040_v43, 4  ;;  %v15091_v25 = vld [vmem:[%s15959_s4 + $0x968] sm:$0xff]  }
 0x269   : > { %13851 = vmatpush3.bf16.msra.mxu0 %v15081_v61  ;;  %v1553_v29 = vpop.f32.mrb[31].mxu1  ;;  %13180 = vmatprep.subr.bf16.mxu1 %v15082_v50  ;;  %v17126_v51 = vpop.f32.mrb[28].mxu0  ;;  %v8039_v42 = vrot.slane %v8037_v9, 3  ;;  %v3061_v5 = vor.u32 %v3060_v28, %v17098_v4  ;;  %v8048_v9 = vrot.slane %v8046_v14, 3  ;;  %v8058_v4 = vshll.u32 %v17001_v39, 16 }
 0x26a   : > { %v17129_v60 = vadd.f32 %v1553_v29, %v17039_v3  ;;  %13852 = vmatprep.subr.bf16.mxu0 %v15083_v6  ;;  %v17133_v20 = vrot.slane %v18497_v30, 2  ;;  %v17135_v61 = vpop.f32.mrb[29].mxu0  ;;  %v17143_v3 = vor.u32 %v3063_v38, %v3062_v32  ;;  %v8035_v32 = vor.u32 %v8034_v10, %v8031_v48  ;;  %v3033_v14 = vld [vmem:[%s15951_s16 + $0xac] sm:$0x3]  ;;  %v15092_v48 = vld [vmem:[%s15959_s4 + $0x370] sm:$0xff]  }
 0x26b   : > { %13169 = vmatmul.mubr.bf16.gmra.mrb[4].mxu1 %v16827_v12  ;;  %v13651_v17 = vpop.f32.mrb[30].mxu0  ;;  %v15088_v12 = vld [vmem:[%s15959_s4 + $0x960] sm:$0xff]   ;;  %v17152_v38 = vor.u32 %v8042_v53, %v8039_v42  ;;  %v18500_v29 = vshll.u32 %v16691_v26, 16  ;;  %v18501_v30 = vrot.slane %v16821_v46, 1  ;;  %v8064_v10 = vshrl.u32 %v17017_v0, 16  ;;  %v15095_v46 = vld [vmem:[%s15959_s4 + $0x378] sm:$0xff]  }
 0x26c   : > { %13181 = vmatpush3.bf16.msra.mxu1 %v15082_v50  ;;  %13172 = vmatprep.mubr.bf16.mxu1 %v16833_v62  ;;  %v17145_v8 = vpop.f32.mrb[31].mxu0  ;;  %v8051_v17 = vrot.slane %v8049_v18, 4  ;;  %v8055_v50 = vshrl.u32 %v17001_v39, 16  ;;  %v15090_v62 = vld [vmem:[%s15959_s4 + $0x368] sm:$0xff]   ;;  %v3065_v28 = vsel %vm1596_vm5, %v3061_v5, %v17143_v3  ;;  %v15094_v39 = vld [vmem:[%s15959_s4 + $0x970] sm:$0xff]   ;;  %v8067_v5 = vshll.u32 %v17017_v0, 16 }
 0x26d   : > { %18498 = vst [vmem:[#allocation40_spill] sm:$0xff] %v17145_v8  ;;  %13853 = vmatpush3.bf16.msra.mxu0 %v15083_v6  ;;  %13182 = vmatprep.subr.bf16.mxu1 %v15084_v40  ;;  %v18499_v6 = vshrl.u32 %v16691_v26, 16  ;;  %v8060_v26 = vrot.slane %v8058_v4, 4  ;;  %v15098_v0 = vld [vmem:[%s15959_s4 + $0x980] sm:$0xff]  }
 0x26e   : > { %13854 = vmatprep.subr.bf16.mxu0 %v15085_v45  ;;  %13841 = vmatmul.mubr.bf16.gmra.mrb[4].mxu0 %v7859_v7  ;;  %v8057_v18 = vrot.slane %v8055_v50, 3  ;;  %v8007_v7 = vld [vmem:[%s15951_s16 + $0xb4] sm:$0xf]  ;;  %v17178_v50 = vld [vmem:[%s15951_s16 + $0x8] sm:$0xf] }
 0x26f   : > { %13844 = vmatprep.mubr.bf16.mxu0 %v7861_v63  ;;  %v3070_v43 = vrot.slane %v18499_v6, 1  ;;  %v15096_v63 = vld [vmem:[%s15959_s4 + $0x978] sm:$0xff]   ;;  %v11761_v53 = vcombine.low %v17011_v54, %v8007_v7  ;;  %v15099_v7 = vld [vmem:[%s15959_s4 + $0x388] sm:$0xff]  }
 0x270   : > { %13183 = vmatpush3.bf16.msra.mxu1 %v15084_v40  ;;  %v3071_v40 = vrot.slane %v18500_v29, 2  ;;  %v18502_v29 = vshrl.u32 %v16699_v23, 16 }
 0x271   : > { %13855 = vmatpush3.bf16.msra.mxu0 %v15085_v45  ;;  %13184 = vmatprep.subr.bf16.mxu1 %v15086_v16  ;;  %v8044_v45 = vsel %vm6572_vm6, %v8035_v32, %v17152_v38  ;;  %v17181_v32 = vld [vmem:[%s15951_s16 + $0xc] sm:$0xff]   ;;  %v8073_v54 = vshrl.u32 %v11761_v53, 16  ;;  %v8076_v4 = vshll.u32 %v11761_v53, 16 }
 0x272   : > { %13856 = vmatprep.subr.bf16.mxu0 %v15088_v12  ;;  %v15100_v53 = vld [vmem:[%s15959_s4 + $0x988] sm:$0xff]  }
 0x273   : > { %13173 = vmatmul.mubr.bf16.gmra.mrb[56].mxu1 %v18501_v30  ;;  %v18503_v30 = vshll.u32 %v16699_v23, 16 }
 0x274   : > { %13185 = vmatpush3.bf16.msra.mxu1 %v15086_v16  ;;  %13192 = vmatprep.mubr.bf16.mxu1 %v3065_v28  ;;  %v15324_v16 = vld [vmem:[%s15951_s16 + $0xa8] sm:$0xf]  ;;  %v8052_v28 = vor.u32 %v8051_v17, %v8048_v9  ;;  %v8066_v9 = vrot.slane %v8064_v10, 3  ;;  %v8069_v17 = vrot.slane %v8067_v5, 4  ;;  %v15101_v5 = vld [vmem:[%s15959_s4 + $0x390] sm:$0xff]  }
 0x275   : > { %13857 = vmatpush3.bf16.msra.mxu0 %v15088_v12  ;;  %13186 = vmatprep.subr.bf16.mxu1 %v15090_v62  ;;  %v11106_v42 = vcombine.low %v15324_v16, %v3033_v14  ;;  %v3232_v12 = vld [vmem:[%s15951_s16 + $0x4] sm:$0xe]  ;;  %v3074_v14 = vrot.slane %v18502_v29, 1  ;;  %v3072_v16 = vor.u32 %v3071_v40, %v3070_v43  ;;  %v18388_v43 = vshll.u32 %v17181_v32, 16 }
 0x276   : > { %13858 = vmatprep.subr.bf16.mxu0 %v15091_v25  ;;  %13845 = vmatmul.mubr.bf16.gmra.mrb[56].mxu0 %v17100_v44  ;;  %v3068_v44 = vor.u32 %v17133_v20, %v17084_v36  ;;  %v11131_v36 = vcombine.low %v3232_v12, %v17178_v50  ;;  %v8075_v12 = vrot.slane %v8073_v54, 3  ;;  %v15102_v54 = vld [vmem:[%s15959_s4 + $0x990] sm:$0xff]  }
 0x277   : > { %13864 = vmatprep.mubr.bf16.mxu0 %v8044_v45  ;;  %v3079_v6 = vshrl.u32 %v11106_v42, 16  ;;  %v3075_v45 = vrot.slane %v18503_v30, 2  ;;  %v8078_v30 = vrot.slane %v8076_v4, 4 }
 0x278   : > { %13187 = vmatpush3.bf16.msra.mxu1 %v15090_v62  ;;  %v3082_v62 = vshll.u32 %v11106_v42, 16  ;;  %v3069_v20 = vsel %vm1596_vm5, %v17143_v3, %v3068_v44  ;;  %v17199_v42 = vor.u32 %v8060_v26, %v8057_v18  ;;  %v8053_v3 = vsel %vm6572_vm6, %v17152_v38, %v8052_v28 }
 0x279   : > { %13859 = vmatpush3.bf16.msra.mxu0 %v15091_v25  ;;  %13188 = vmatprep.subr.bf16.mxu1 %v15092_v48  ;;  %v15097_v25 = vld [vmem:[%s15959_s4 + $0x380] sm:$0xff]   ;;  %v3081_v23 = vrot.slane %v3079_v6, 1  ;;  %v3295_v40 = vshll.u32 %v11131_v36, 16  ;;  %v18504_v18 = vshrl.u32 %v17181_v32, 16  ;;  %v8248_v6 = vshrl.u32 %v17042_v11, 16 }
 0x27a   : > { %13860 = vmatprep.subr.bf16.mxu0 %v15094_v39  ;;  %v3084_v29 = vrot.slane %v3082_v62, 2  ;;  %v8251_v38 = vshll.u32 %v17042_v11, 16  ;;  %v3076_v62 = vor.u32 %v3075_v45, %v3074_v14  ;;  %v8062_v4 = vsel %vm6572_vm6, %v8052_v28, %v17199_v42  ;;  %v15103_v28 = vld [vmem:[%s15959_s4 + $0x398] sm:$0xff]  }
 0x27b   : > { %v3302_v26 = vrot.slane %v18504_v18, 1  ;;  %v3305_v11 = vrot.slane %v18388_v43, 2  ;;  %v15104_v18 = vld [vmem:[%s15959_s4 + $0x998] sm:$0xff]   ;;  %v8259_v43 = vshll.u32 %v17044_v22, 16 }
 0x27c   : > { %13189 = vmatpush3.bf16.msra.mxu1 %v15092_v48  ;;  %v3292_v48 = vshrl.u32 %v11131_v36, 16  ;;  %v17216_v36 = vor.u32 %v3084_v29, %v3081_v23  ;;  %v3297_v23 = vrot.slane %v3295_v40, 2  ;;  %v8253_v40 = vrot.slane %v8251_v38, 4 }
 0x27d   : > { %13861 = vmatpush3.bf16.msra.mxu0 %v15094_v39  ;;  %13190 = vmatprep.subr.bf16.mxu1 %v15095_v46  ;;  %v17196_v39 = vld [vmem:[%s15951_s16 + $0x14] sm:$0xff]  }
 0x27e   : > { %13862 = vmatprep.subr.bf16.mxu0 %v15096_v63  ;;  %v18392_v10 = vshrl.u32 %v17196_v39, 16 }
 0x280   : > { %13191 = vmatpush3.bf16.msra.mxu1 %v15095_v46  ;;  %v18391_v46 = vshll.u32 %v17196_v39, 16 }
 0x281   : > { %13863 = vmatpush3.bf16.msra.mxu0 %v15096_v63  ;;  %13204 = vmatprep.subr.bf16.mxu1 %v15097_v25  ;;  %v3073_v63 = vsel %vm1596_vm5, %v3068_v44, %v3072_v16  ;;  %v17218_v44 = vrot.slane %v3292_v48, 1  ;;  %v3077_v48 = vsel %vm1596_vm5, %v3072_v16, %v3076_v62 }
 0x282   : > { %13876 = vmatprep.subr.bf16.mxu0 %v15098_v0 }
 0x283   : > { %13193 = vmatmul.mubr.bf16.vlgmr.msra.gmra.mrb[0].mxu1 %v3069_v20 }
 0x284   : > { %13205 = vmatpush3.bf16.msra.mxu1 %v15097_v25  ;;  %13865 = vmatmul.mubr.bf16.vlgmr.msra.gmra.mrb[0].mxu0 %v8053_v3  ;;  %v8256_v25 = vshrl.u32 %v17044_v22, 16  ;;  %v8268_v22 = vshll.u32 %v17074_v19, 16 }
 0x285   : > { %13877 = vmatpush3.bf16.msra.mxu0 %v15098_v0  ;;  %13206 = vmatprep.subr.bf16.mxu1 %v15099_v7  ;;  %v8070_v0 = vor.u32 %v8069_v17, %v8066_v9  ;;  %v3086_v9 = vsel %vm1596_vm5, %v3076_v62, %v17216_v36  ;;  %v8250_v17 = vrot.slane %v8248_v6, 3  ;;  %v17249_v6 = vld [vmem:[%s15951_s16 + $0x1c] sm:$0xff]   ;;  %v8261_v62 = vrot.slane %v8259_v43, 4 }
 0x286   : > { %v13006_v20 = vpop.f32.mrb[32].mxu1  ;;  %13878 = vmatprep.subr.bf16.mxu0 %v15100_v53  ;;  %13196 = vmatprep.mubr.bf16.mxu1 %v3073_v63  ;;  %v17232_v63 = vor.u32 %v8078_v30, %v8075_v12  ;;  %v8258_v16 = vrot.slane %v8256_v25, 3  ;;  %v8265_v12 = vshrl.u32 %v17074_v19, 16  ;;  %v15106_v19 = vld [vmem:[%s15959_s4 + $0x3a0] sm:$0xff]   ;;  %v17257_v25 = vor.u32 %v3305_v11, %v3302_v26 }
 0x287   : > { %v17224_v14 = vadd.f32 %v13006_v20, %v17115_v35  ;;  %v1750_v45 = vpop.f32.mrb[33].mxu1  ;;  %13868 = vmatprep.mubr.bf16.mxu0 %v8062_v4  ;;  %v8071_v30 = vsel %vm6572_vm6, %v17199_v42, %v8070_v0  ;;  %v3298_v20 = vor.u32 %v3297_v23, %v17218_v44  ;;  %v15107_v42 = vld [vmem:[%s15959_s4 + $0x9a0] sm:$0xff]   ;;  %v3314_v43 = vrot.slane %v18391_v46, 2  ;;  %v15109_v44 = vld [vmem:[%s15959_s4 + $0x9a8] sm:$0xff]  }
 0x288   : > { %v17228_v29 = vadd.f32 %v1750_v45, %v17120_v31  ;;  %v13007_v3 = vpop.f32.mrb[34].mxu1  ;;  %13207 = vmatpush3.bf16.msra.mxu1 %v15099_v7  ;;  %v15108_v45 = vld [vmem:[%s15959_s4 + $0x3a8] sm:$0xff]   ;;  %v17266_v26 = vor.u32 %v8261_v62, %v8258_v16  ;;  %v8270_v11 = vrot.slane %v8268_v22, 4  ;;  %v18390_v23 = vshrl.u32 %v17249_v6, 16 }
 0x289   : > { %13879 = vmatpush3.bf16.msra.mxu0 %v15100_v53  ;;  %v1753_v35 = vpop.f32.mrb[35].mxu1  ;;  %13208 = vmatprep.subr.bf16.mxu1 %v15101_v5  ;;  %v17237_v31 = vpop.f32.mrb[32].mxu0  ;;  %v18389_v3 = vshll.u32 %v17249_v6, 16  ;;  %v8274_v22 = vshrl.u32 %v17080_v55, 16 }
 0x28a   : > { %v17240_v7 = vadd.f32 %v1753_v35, %v17129_v60  ;;  %13880 = vmatprep.subr.bf16.mxu0 %v15102_v54  ;;  %v17244_v53 = vpop.f32.mrb[33].mxu0  ;;  %v8080_v60 = vsel %vm6572_vm6, %v8070_v0, %v17232_v63  ;;  %v8267_v0 = vrot.slane %v8265_v12, 3  ;;  %v3307_v35 = vsel %vm1596_vm5, %v3298_v20, %v17257_v25 }
 0x28b   : > { %13197 = vmatmul.mubr.bf16.gmra.mrb[4].mxu1 %v3077_v48  ;;  %v13679_v38 = vpop.f32.mrb[34].mxu0  ;;  %v17271_v48 = vld [vmem:[%s15951_s16 + $0x24] sm:$0xff]   ;;  %v3323_v62 = vrot.slane %v18389_v3, 2  ;;  %v8283_v3 = vshrl.u32 %v17089_v21, 16 }
 0x28c   : > { %13209 = vmatpush3.bf16.msra.mxu1 %v15101_v5  ;;  %13200 = vmatprep.mubr.bf16.mxu1 %v3086_v9  ;;  %v17253_v4 = vpop.f32.mrb[35].mxu0  ;;  %v3311_v5 = vrot.slane %v18392_v10, 1  ;;  %v3242_v9 = vld [vmem:[%s15951_s16 + $0x2c] sm:$0xf]  ;;  %v18393_v16 = vshrl.u32 %v17271_v48, 16 }
 0x28d   : > { %18505 = vst [vmem:[#allocation41_spill] sm:$0xff] %v17253_v4  ;;  %13881 = vmatpush3.bf16.msra.mxu0 %v15102_v54  ;;  %13210 = vmatprep.subr.bf16.mxu1 %v15103_v28  ;;  %v8254_v54 = vor.u32 %v8253_v40, %v8250_v17  ;;  %v15110_v40 = vld [vmem:[%s15959_s4 + $0x3b0] sm:$0xff]  }
 0x28e   : > { %13882 = vmatprep.subr.bf16.mxu0 %v15104_v18  ;;  %13869 = vmatmul.mubr.bf16.gmra.mrb[4].mxu0 %v8071_v30  ;;  %v8277_v30 = vshll.u32 %v17080_v55, 16  ;;  %v17290_v38 = vld [vmem:[%s15951_s16 + $0xf4] sm:$0xf]  ;;  %v18394_v55 = vshll.u32 %v17271_v48, 16 }
 0x28f   : > { %13872 = vmatprep.mubr.bf16.mxu0 %v8080_v60  ;;  %v8263_v17 = vsel %vm6572_vm6, %v8254_v54, %v17266_v26  ;;  %v3320_v60 = vrot.slane %v18390_v23, 1  ;;  %v11786_v54 = vcombine.low %v17077_v52, %v17290_v38  ;;  %v17311_v52 = vld [vmem:[%s15951_s16 + $0x4c] sm:$0xff]  }
 0x290   : > { %13211 = vmatpush3.bf16.msra.mxu1 %v15103_v28  ;;  %v3243_v28 = vld [vmem:[%s15951_s16 + $0x30] sm:$0x3] }
 0x291   : > { %13883 = vmatpush3.bf16.msra.mxu0 %v15104_v18  ;;  %13212 = vmatprep.subr.bf16.mxu1 %v15106_v19  ;;  %v15112_v18 = vld [vmem:[%s15959_s4 + $0x9b0] sm:$0xff]   ;;  %v17283_v12 = vcombine.low %v3242_v9, %v3243_v28  ;;  %v17304_v9 = vld [vmem:[%s15951_s16 + $0x48] sm:$0xf]  ;;  %v15118_v28 = vld [vmem:[%s15959_s4 + $0x3c0] sm:$0xff]   ;;  %v8292_v23 = vshrl.u32 %v11786_v54, 16  ;;  %v8295_v46 = vshll.u32 %v11786_v54, 16 }
 0x292   : > { %13884 = vmatprep.subr.bf16.mxu0 %v15107_v42 }
 0x293   : > { %13201 = vmatmul.mubr.bf16.gmra.mrb[60].mxu1 %v17216_v36  ;;  %v15113_v36 = vld [vmem:[%s15959_s4 + $0x3b8] sm:$0xff]   ;;  %v3339_v20 = vshll.u32 %v17283_v12, 16  ;;  %v8297_v8 = vrot.slane %v8295_v46, 4 }
 0x294   : > { %13213 = vmatpush3.bf16.msra.mxu1 %v15106_v19  ;;  %13220 = vmatprep.mubr.bf16.mxu1 %v3307_v35  ;;  %v15114_v19 = vld [vmem:[%s15959_s4 + $0x9b8] sm:$0xff]   ;;  %v3489_v35 = vld [vmem:[%s15951_s16 + $0x44] sm:$0xe] }
 0x295   : > { %13885 = vmatpush3.bf16.msra.mxu0 %v15107_v42  ;;  %13214 = vmatprep.subr.bf16.mxu1 %v15108_v45  ;;  %v8276_v42 = vrot.slane %v8274_v22, 3  ;;  %v8286_v22 = vshll.u32 %v17089_v21, 16  ;;  %v3341_v54 = vrot.slane %v3339_v20, 2 }
 0x296   : > { %13886 = vmatprep.subr.bf16.mxu0 %v15109_v44  ;;  %13873 = vmatmul.mubr.bf16.gmra.mrb[60].mxu0 %v17232_v63  ;;  %v3336_v63 = vshrl.u32 %v17283_v12, 16 }
 0x297   : > { %13892 = vmatprep.mubr.bf16.mxu0 %v8263_v17  ;;  %v8271_v17 = vor.u32 %v8270_v11, %v8267_v0  ;;  %v11161_v0 = vcombine.low %v3489_v35, %v17304_v9  ;;  %v15121_v11 = vld [vmem:[%s15959_s4 + $0x9c8] sm:$0xff]   ;;  %v18401_v35 = vshll.u32 %v17311_v52, 16 }
 0x298   : > { %13215 = vmatpush3.bf16.msra.mxu1 %v15108_v45  ;;  %v8279_v45 = vrot.slane %v8277_v30, 4  ;;  %v15119_v30 = vld [vmem:[%s15959_s4 + $0x9c0] sm:$0xff]   ;;  %v3338_v10 = vrot.slane %v3336_v63, 1  ;;  %v15124_v63 = vld [vmem:[%s15959_s4 + $0x3d0] sm:$0xff]  }
 0x299   : > { %13887 = vmatpush3.bf16.msra.mxu0 %v15109_v44  ;;  %13216 = vmatprep.subr.bf16.mxu1 %v15110_v40  ;;  %v3315_v44 = vor.u32 %v3314_v43, %v3311_v5  ;;  %v3324_v5 = vor.u32 %v3323_v62, %v3320_v60  ;;  %v3329_v43 = vrot.slane %v18393_v16, 1  ;;  %v8272_v60 = vsel %vm6572_vm6, %v17266_v26, %v8271_v17 }
 0x29a   : > { %13888 = vmatprep.subr.bf16.mxu0 %v15112_v18  ;;  %v8280_v4 = vor.u32 %v8279_v45, %v8276_v42  ;;  %v8285_v62 = vrot.slane %v8283_v3, 3  ;;  %v8288_v16 = vrot.slane %v8286_v22, 4  ;;  %v3552_v20 = vshll.u32 %v11161_v0, 16  ;;  %v15125_v42 = vld [vmem:[%s15959_s4 + $0x9d0] sm:$0xff]   ;;  %v15126_v22 = vld [vmem:[%s15959_s4 + $0x3d8] sm:$0xff]  }
 0x29b   : > { %v3316_v21 = vsel %vm1596_vm5, %v17257_v25, %v3315_v44  ;;  %v3325_v25 = vsel %vm1596_vm5, %v3315_v44, %v3324_v5  ;;  %v3342_v46 = vor.u32 %v3341_v54, %v3338_v10 }
 0x29c   : > { %13217 = vmatpush3.bf16.msra.mxu1 %v15110_v40  ;;  %v15120_v40 = vld [vmem:[%s15959_s4 + $0x3c8] sm:$0xff]   ;;  %v8281_v3 = vsel %vm6572_vm6, %v8271_v17, %v8280_v4  ;;  %v3554_v54 = vrot.slane %v3552_v20, 2 }
 0x29d   : > { %13889 = vmatpush3.bf16.msra.mxu0 %v15112_v18  ;;  %13218 = vmatprep.subr.bf16.mxu1 %v15113_v36  ;;  %v3332_v18 = vrot.slane %v18394_v55, 2  ;;  %v8294_v55 = vrot.slane %v8292_v23, 3 }
 0x29e   : > { %13890 = vmatprep.subr.bf16.mxu0 %v15114_v19 }
 0x29f   : > { %v3333_v26 = vor.u32 %v3332_v18, %v3329_v43  ;;  %v8298_v43 = vor.u32 %v8297_v8, %v8294_v55 }
 0x2a0   : > { %13219 = vmatpush3.bf16.msra.mxu1 %v15113_v36  ;;  %v18402_v36 = vshrl.u32 %v17311_v52, 16 }
 0x2a1   : > { %13891 = vmatpush3.bf16.msra.mxu0 %v15114_v19  ;;  %13232 = vmatprep.subr.bf16.mxu1 %v15118_v28  ;;  %v3549_v19 = vshrl.u32 %v11161_v0, 16  ;;  %v3334_v10 = vsel %vm1596_vm5, %v3324_v5, %v3333_v26 }
 0x2a2   : > { %13904 = vmatprep.subr.bf16.mxu0 %v15119_v30 }
 0x2a3   : > { %13221 = vmatmul.mubr.bf16.vlgmr.msra.gmra.mrb[0].mxu1 %v3316_v21  ;;  %v8289_v21 = vor.u32 %v8288_v16, %v8285_v62  ;;  %v3343_v16 = vsel %vm1596_vm5, %v3333_v26, %v3342_v46  ;;  %v3551_v0 = vrot.slane %v3549_v19, 1  ;;  %v17354_v62 = vld [vmem:[%s15951_s16 + $0x54] sm:$0xff]  }
 0x2a4   : > { %13233 = vmatpush3.bf16.msra.mxu1 %v15118_v28  ;;  %13893 = vmatmul.mubr.bf16.vlgmr.msra.gmra.mrb[0].mxu0 %v8272_v60  ;;  %v3559_v28 = vrot.slane %v18402_v36, 1  ;;  %v18400_v26 = vshrl.u32 %v17354_v62, 16 }
 0x2a5   : > { %13905 = vmatpush3.bf16.msra.mxu0 %v15119_v30  ;;  %13234 = vmatprep.subr.bf16.mxu1 %v15120_v40  ;;  %v8290_v55 = vsel %vm6572_vm6, %v8280_v4, %v8289_v21  ;;  %v3555_v19 = vor.u32 %v3554_v54, %v3551_v0  ;;  %v15130_v4 = vld [vmem:[%s15959_s4 + $0x9e0] sm:$0xff]   ;;  %v3500_v0 = vld [vmem:[%s15951_s16 + $0x70] sm:$0x3] }
 0x2a6   : > { %v13034_v23 = vpop.f32.mrb[36].mxu1  ;;  %13906 = vmatprep.subr.bf16.mxu0 %v15121_v11  ;;  %13224 = vmatprep.mubr.bf16.mxu1 %v3325_v25 }
 0x2a7   : > { %v17331_v45 = vadd.f32 %v13034_v23, %v17224_v14  ;;  %v1951_v44 = vpop.f32.mrb[37].mxu1  ;;  %13896 = vmatprep.mubr.bf16.mxu0 %v8281_v3  ;;  %v3562_v14 = vrot.slane %v18401_v35, 2  ;;  %v17363_v3 = vld [vmem:[%s15951_s16 + $0x5c] sm:$0xff]  }
 0x2a8   : > { %v17337_v17 = vadd.f32 %v1951_v44, %v17228_v29  ;;  %v13035_v30 = vpop.f32.mrb[38].mxu1  ;;  %13235 = vmatpush3.bf16.msra.mxu1 %v15120_v40  ;;  %v15127_v40 = vld [vmem:[%s15959_s4 + $0x9d8] sm:$0xff]   ;;  %v15133_v44 = vld [vmem:[%s15959_s4 + $0x3f0] sm:$0xff]  }
 0x2a9   : > { %13907 = vmatpush3.bf16.msra.mxu0 %v15121_v11  ;;  %v1954_v18 = vpop.f32.mrb[39].mxu1  ;;  %13236 = vmatprep.subr.bf16.mxu1 %v15124_v63  ;;  %v17343_v60 = vpop.f32.mrb[36].mxu0  ;;  %v8299_v11 = vsel %vm6572_vm6, %v8289_v21, %v8298_v43  ;;  %v3563_v20 = vor.u32 %v3562_v14, %v3559_v28  ;;  %v18397_v21 = vshll.u32 %v17354_v62, 16  ;;  %v15325_v28 = vld [vmem:[%s15951_s16 + $0x8c] sm:$0xf]  ;;  %v3568_v14 = vrot.slane %v18400_v26, 1 }
 0x2aa   : > { %18506 = vst [vmem:[#allocation42_spill] sm:$0xff] %v17343_v60  ;;  %v17346_v29 = vadd.f32 %v1954_v18, %v17240_v7  ;;  %13908 = vmatprep.subr.bf16.mxu0 %v15125_v42  ;;  %v17349_v8 = vpop.f32.mrb[37].mxu0  ;;  %v15129_v7 = vld [vmem:[%s15959_s4 + $0x3e0] sm:$0xff]   ;;  %v18396_v18 = vshrl.u32 %v17363_v3, 16  ;;  %v15344_v26 = vld [vmem:[%s15951_s16 + $0xec] sm:$0xf] }
 0x2ab   : > { %18507 = vst [vmem:[#allocation43_spill] sm:$0xff] %v17349_v8  ;;  %13225 = vmatmul.mubr.bf16.gmra.mrb[4].mxu1 %v3334_v10  ;;  %v13707_v5 = vpop.f32.mrb[38].mxu0  ;;  %v3564_v23 = vsel %vm1596_vm5, %v3555_v19, %v3563_v20  ;;  %v15135_v10 = vld [vmem:[%s15959_s4 + $0x9f0] sm:$0xff]   ;;  %v3571_v54 = vrot.slane %v18397_v21, 2 }
 0x2ac   : > { %13237 = vmatpush3.bf16.msra.mxu1 %v15124_v63  ;;  %13228 = vmatprep.mubr.bf16.mxu1 %v3343_v16  ;;  %v17356_v25 = vpop.f32.mrb[39].mxu0  ;;  %v15131_v63 = vld [vmem:[%s15959_s4 + $0x3e8] sm:$0xff]   ;;  %v18395_v16 = vshll.u32 %v17363_v3, 16 }
 0x2ad   : > { %18508 = vst [vmem:[#allocation44_spill] sm:$0xff] %v17356_v25  ;;  %13909 = vmatpush3.bf16.msra.mxu0 %v15125_v42  ;;  %13238 = vmatprep.subr.bf16.mxu1 %v15126_v22  ;;  %v15132_v42 = vld [vmem:[%s15959_s4 + $0x9e8] sm:$0xff]   ;;  %v3572_v19 = vor.u32 %v3571_v54, %v3568_v14  ;;  %v15327_v14 = vld [vmem:[%s15951_s16 + $0x94] sm:$0xf] }
 0x2ae   : > { %13910 = vmatprep.subr.bf16.mxu0 %v15127_v40  ;;  %13897 = vmatmul.mubr.bf16.gmra.mrb[4].mxu0 %v8290_v55  ;;  %v15136_v55 = vld [vmem:[%s15959_s4 + $0x3f8] sm:$0xff]  }
 0x2af   : > { %13900 = vmatprep.mubr.bf16.mxu0 %v8299_v11  ;;  %v15137_v11 = vld [vmem:[%s15959_s4 + $0x9f8] sm:$0xff]  }
 0x2b0   : > { %13239 = vmatpush3.bf16.msra.mxu1 %v15126_v22  ;;  %v15326_v22 = vld [vmem:[%s15951_s16 + $0x90] sm:$0xf] }
 0x2b1   : > { %13911 = vmatpush3.bf16.msra.mxu0 %v15127_v40  ;;  %13240 = vmatprep.subr.bf16.mxu1 %v15129_v7  ;;  %v11811_v30 = vcombine.low %v15325_v28, %v15326_v22  ;;  %v17381_v40 = vld [vmem:[%s15951_s16 + $0x64] sm:$0xff]  }
 0x2b2   : > { %13912 = vmatprep.subr.bf16.mxu0 %v15130_v4  ;;  %v15143_v22 = vld [vmem:[%s15959_s4 + $0xa00] sm:$0xff]  }
 0x2b3   : > { %13229 = vmatmul.mubr.bf16.gmra.mrb[64].mxu1 %v3342_v46  ;;  %v3499_v46 = vld [vmem:[%s15951_s16 + $0x6c] sm:$0xf] }
 0x2b4   : > { %13241 = vmatpush3.bf16.msra.mxu1 %v15129_v7  ;;  %13248 = vmatprep.mubr.bf16.mxu1 %v3564_v23  ;;  %v17384_v5 = vcombine.low %v3499_v46, %v3500_v0  ;;  %v3580_v7 = vrot.slane %v18395_v16, 2  ;;  %v15141_v23 = vld [vmem:[%s15959_s4 + $0x400] sm:$0xff]   ;;  %v15328_v0 = vld [vmem:[%s15951_s16 + $0x98] sm:$0xf] }
 0x2b5   : > { %13913 = vmatpush3.bf16.msra.mxu0 %v15130_v4  ;;  %13242 = vmatprep.subr.bf16.mxu1 %v15131_v63  ;;  %v18398_v4 = vshrl.u32 %v17381_v40, 16 }
 0x2b6   : > { %13914 = vmatprep.subr.bf16.mxu0 %v15132_v42  ;;  %13901 = vmatmul.mubr.bf16.gmra.mrb[64].mxu0 %v8298_v43  ;;  %v3577_v43 = vrot.slane %v18396_v18, 1  ;;  %v3596_v28 = vshll.u32 %v17384_v5, 16 }
 0x2b7   : > { %13920 = vmatprep.mubr.bf16.mxu0 %v11811_v30  ;;  %v15145_v30 = vld [vmem:[%s15959_s4 + $0x408] sm:$0xff]   ;;  %v3586_v54 = vrot.slane %v18398_v4, 1 }
 0x2b8   : > { %13243 = vmatpush3.bf16.msra.mxu1 %v15131_v63  ;;  %v18399_v63 = vshll.u32 %v17381_v40, 16  ;;  %v3581_v46 = vor.u32 %v3580_v7, %v3577_v43  ;;  %v3598_v21 = vrot.slane %v3596_v28, 2  ;;  %v15146_v43 = vld [vmem:[%s15959_s4 + $0xa08] sm:$0xff]   ;;  %v15329_v7 = vld [vmem:[%s15951_s16 + $0x9c] sm:$0xf]  ;;  %v15150_v28 = vld [vmem:[%s15959_s4 + $0xa10] sm:$0xff]  }
 0x2b9   : > { %13915 = vmatpush3.bf16.msra.mxu0 %v15132_v42  ;;  %13244 = vmatprep.subr.bf16.mxu1 %v15133_v44  ;;  %v3593_v42 = vshrl.u32 %v17384_v5, 16 }
 0x2ba   : > { %13916 = vmatprep.subr.bf16.mxu0 %v15135_v10  ;;  %v3589_v16 = vrot.slane %v18399_v63, 2  ;;  %v3746_v63 = vld [vmem:[%s15951_s16 + $0x4] sm:$0xc] }
 0x2bb   : > { %v3595_v18 = vrot.slane %v3593_v42, 1 }
 0x2bc   : > { %13245 = vmatpush3.bf16.msra.mxu1 %v15133_v44  ;;  %v3573_v44 = vsel %vm1596_vm5, %v3563_v20, %v3572_v19  ;;  %v3582_v20 = vsel %vm1596_vm5, %v3572_v19, %v3581_v46  ;;  %v3590_v4 = vor.u32 %v3589_v16, %v3586_v54 }
 0x2bd   : > { %13917 = vmatpush3.bf16.msra.mxu0 %v15135_v10  ;;  %13246 = vmatprep.subr.bf16.mxu1 %v15136_v55  ;;  %v11812_v10 = vcombine.low %v15327_v14, %v15328_v0  ;;  %v15330_v14 = vld [vmem:[%s15951_s16 + $0xa0] sm:$0xf] }
 0x2be   : > { %13918 = vmatprep.subr.bf16.mxu0 %v15137_v11  ;;  %v11813_v0 = vcombine.low %v15329_v7, %v15330_v14  ;;  %v15333_v14 = vld [vmem:[%s15951_s16 + $0xac] sm:$0xf] }
 0x2c0   : > { %13247 = vmatpush3.bf16.msra.mxu1 %v15136_v55  ;;  %v15149_v55 = vld [vmem:[%s15959_s4 + $0x410] sm:$0xff]  }
 0x2c1   : > { %13919 = vmatpush3.bf16.msra.mxu0 %v15137_v11  ;;  %13260 = vmatprep.subr.bf16.mxu1 %v15141_v23  ;;  %v3599_v11 = vor.u32 %v3598_v21, %v3595_v18  ;;  %v3591_v21 = vsel %vm1596_vm5, %v3581_v46, %v3590_v4  ;;  %v15331_v46 = vld [vmem:[%s15951_s16 + $0xa4] sm:$0xf] }
 0x2c2   : > { %13932 = vmatprep.subr.bf16.mxu0 %v15143_v22 }
 0x2c3   : > { %13249 = vmatmul.mubr.bf16.vlgmr.msra.gmra.mrb[0].mxu1 %v3573_v44 }
 0x2c4   : > { %13261 = vmatpush3.bf16.msra.mxu1 %v15141_v23  ;;  %13921 = vmatmul.mubr.bf16.vlgmr.msra.gmra.mrb[0].mxu0 %v11812_v10  ;;  %v17422_v10 = vcombine.low %v3746_v63, %v17178_v50 }
 0x2c5   : > { %13933 = vmatpush3.bf16.msra.mxu0 %v15143_v22  ;;  %13262 = vmatprep.subr.bf16.mxu1 %v15145_v30  ;;  %v15151_v22 = vld [vmem:[%s15959_s4 + $0x418] sm:$0xff]  }
 0x2c6   : > { %v13062_v42 = vpop.f32.mrb[40].mxu1  ;;  %13934 = vmatprep.subr.bf16.mxu0 %v15146_v43  ;;  %13252 = vmatprep.mubr.bf16.mxu1 %v3582_v20  ;;  %v15332_v20 = vld [vmem:[%s15951_s16 + $0xa8] sm:$0xf] }
 0x2c7   : > { %v17413_v44 = vadd.f32 %v13062_v42, %v17331_v45  ;;  %v2152_v19 = vpop.f32.mrb[41].mxu1  ;;  %13924 = vmatprep.mubr.bf16.mxu0 %v11813_v0  ;;  %v3600_v45 = vsel %vm1596_vm5, %v3590_v4, %v3599_v11  ;;  %v15334_v4 = vld [vmem:[%s15951_s16 + $0xb0] sm:$0xf]  ;;  %v3768_v42 = vrot.slane %v17422_v10, 2 }
 0x2c8   : > { %v17416_v23 = vadd.f32 %v2152_v19, %v17337_v17  ;;  %v13063_v16 = vpop.f32.mrb[42].mxu1  ;;  %13263 = vmatpush3.bf16.msra.mxu1 %v15145_v30  ;;  %v15152_v30 = vld [vmem:[%s15959_s4 + $0xa18] sm:$0xff]   ;;  %v11815_v50 = vcombine.low %v15333_v14, %v15334_v4  ;;  %v3769_v19 = vrot.slane %v17181_v32, 2  ;;  %v3771_v4 = vrot.slane %v17196_v39, 2 }
 0x2c9   : > { %13935 = vmatpush3.bf16.msra.mxu0 %v15146_v43  ;;  %v2155_v18 = vpop.f32.mrb[43].mxu1  ;;  %13264 = vmatprep.subr.bf16.mxu1 %v15149_v55  ;;  %v17424_v54 = vpop.f32.mrb[40].mxu0  ;;  %v11814_v43 = vcombine.low %v15331_v46, %v15332_v20  ;;  %v15156_v16 = vld [vmem:[%s15959_s4 + $0xa20] sm:$0xff]   ;;  %v15336_v46 = vld [vmem:[%s15951_s16 + $0xcc] sm:$0xf] }
 0x2ca   : > { %18509 = vst [vmem:[#allocation45_spill] sm:$0xff] %v17424_v54  ;;  %v17427_v17 = vadd.f32 %v2155_v18, %v17346_v29  ;;  %13936 = vmatprep.subr.bf16.mxu0 %v15150_v28  ;;  %v17432_v7 = vpop.f32.mrb[41].mxu0  ;;  %v15154_v29 = vld [vmem:[%s15959_s4 + $0x420] sm:$0xff]   ;;  %v15335_v18 = vld [vmem:[%s15951_s16 + $0xb4] sm:$0xf] }
 0x2cb   : > { %18510 = vst [vmem:[#allocation46_spill] sm:$0xff] %v17432_v7  ;;  %13253 = vmatmul.mubr.bf16.gmra.mrb[4].mxu1 %v3591_v21  ;;  %v13735_v63 = vpop.f32.mrb[42].mxu0  ;;  %v15159_v21 = vld [vmem:[%s15959_s4 + $0xa28] sm:$0xff]   ;;  %v15337_v20 = vld [vmem:[%s15951_s16 + $0xd0] sm:$0xf] }
 0x2cc   : > { %13265 = vmatpush3.bf16.msra.mxu1 %v15149_v55  ;;  %13256 = vmatprep.mubr.bf16.mxu1 %v3600_v45  ;;  %v17436_v0 = vpop.f32.mrb[43].mxu0  ;;  %v15158_v55 = vld [vmem:[%s15959_s4 + $0x428] sm:$0xff]   ;;  %v11816_v45 = vcombine.low %v15335_v18, %v15335_v18  ;;  %v11841_v14 = vcombine.low %v15336_v46, %v15337_v20  ;;  %v15169_v63 = vld [vmem:[%s15959_s4 + $0xa40] sm:$0xff]   ;;  %v15340_v46 = vld [vmem:[%s15951_s16 + $0xdc] sm:$0xf] }
 0x2cd   : > { %18511 = vst [vmem:[#allocation47_spill] sm:$0xff] %v17436_v0  ;;  %13937 = vmatpush3.bf16.msra.mxu0 %v15150_v28  ;;  %13266 = vmatprep.subr.bf16.mxu1 %v15151_v22  ;;  %v3770_v28 = vsel %vm3767_vm0, %v3768_v42, %v3769_v19  ;;  %v3772_v42 = vsel %vm3767_vm0, %v3769_v19, %v3771_v4  ;;  %v15172_v18 = vld [vmem:[%s15959_s4 + $0xa48] sm:$0xff]   ;;  %v15341_v20 = vld [vmem:[%s15951_s16 + $0xe0] sm:$0xf]  ;;  %v3775_v19 = vrot.slane %v17271_v48, 2 }
 0x2ce   : > { %13938 = vmatprep.subr.bf16.mxu0 %v15152_v30  ;;  %13925 = vmatmul.mubr.bf16.gmra.mrb[4].mxu0 %v11814_v43  ;;  %v15165_v43 = vld [vmem:[%s15959_s4 + $0xa38] sm:$0xff]  }
 0x2cf   : > { %13928 = vmatprep.mubr.bf16.mxu0 %v11815_v50  ;;  %v15167_v50 = vld [vmem:[%s15959_s4 + $0x440] sm:$0xff]  }
 0x2d0   : > { %13267 = vmatpush3.bf16.msra.mxu1 %v15151_v22  ;;  %v15160_v22 = vld [vmem:[%s15959_s4 + $0x430] sm:$0xff]  }
 0x2d1   : > { %13939 = vmatpush3.bf16.msra.mxu0 %v15152_v30  ;;  %13268 = vmatprep.subr.bf16.mxu1 %v15154_v29  ;;  %v15162_v30 = vld [vmem:[%s15959_s4 + $0xa30] sm:$0xff]  }
 0x2d2   : > { %13940 = vmatprep.subr.bf16.mxu0 %v15156_v16 }
 0x2d3   : > { %13257 = vmatmul.mubr.bf16.gmra.mrb[68].mxu1 %v3599_v11  ;;  %v15164_v11 = vld [vmem:[%s15959_s4 + $0x438] sm:$0xff]  }
 0x2d4   : > { %13269 = vmatpush3.bf16.msra.mxu1 %v15154_v29  ;;  %13276 = vmatprep.mubr.bf16.mxu1 %v3770_v28  ;;  %v3773_v29 = vrot.slane %v17249_v6, 2 }
 0x2d5   : > { %13941 = vmatpush3.bf16.msra.mxu0 %v15156_v16  ;;  %13270 = vmatprep.subr.bf16.mxu1 %v15158_v55  ;;  %v15338_v16 = vld [vmem:[%s15951_s16 + $0xd4] sm:$0xf] }
 0x2d6   : > { %13942 = vmatprep.subr.bf16.mxu0 %v15159_v21  ;;  %13929 = vmatmul.mubr.bf16.gmra.mrb[68].mxu0 %v11816_v45  ;;  %v3774_v45 = vsel %vm3767_vm0, %v3771_v4, %v3773_v29  ;;  %v15174_v4 = vld [vmem:[%s15959_s4 + $0xa50] sm:$0xff]  }
 0x2d7   : > { %13948 = vmatprep.mubr.bf16.mxu0 %v11841_v14  ;;  %v11843_v14 = vcombine.low %v15340_v46, %v15341_v20  ;;  %v15175_v46 = vld [vmem:[%s15959_s4 + $0x458] sm:$0xff]  }
 0x2d8   : > { %13271 = vmatpush3.bf16.msra.mxu1 %v15158_v55  ;;  %v15339_v55 = vld [vmem:[%s15951_s16 + $0xd8] sm:$0xf] }
 0x2d9   : > { %13943 = vmatpush3.bf16.msra.mxu0 %v15159_v21  ;;  %13272 = vmatprep.subr.bf16.mxu1 %v15160_v22  ;;  %v11842_v28 = vcombine.low %v15338_v16, %v15339_v55  ;;  %v15171_v21 = vld [vmem:[%s15959_s4 + $0x448] sm:$0xff]  }
 0x2da   : > { %13944 = vmatprep.subr.bf16.mxu0 %v15162_v30 }
 0x2dc   : > { %13273 = vmatpush3.bf16.msra.mxu1 %v15160_v22  ;;  %v15191_v22 = vld [vmem:[%s15951_s16 + $0x8c] sm:$0xff]  }
 0x2dd   : > { %13945 = vmatpush3.bf16.msra.mxu0 %v15162_v30  ;;  %13274 = vmatprep.subr.bf16.mxu1 %v15164_v11  ;;  %v15173_v30 = vld [vmem:[%s15959_s4 + $0x450] sm:$0xff]  }
 0x2de   : > { %13946 = vmatprep.subr.bf16.mxu0 %v15165_v43 }
 0x2e0   : > { %13275 = vmatpush3.bf16.msra.mxu1 %v15164_v11  ;;  %v3777_v11 = vrot.slane %v17283_v12, 2  ;;  %v3776_v12 = vsel %vm3767_vm0, %v3773_v29, %v3775_v19  ;;  %v15176_v29 = vld [vmem:[%s15959_s4 + $0xa58] sm:$0xff]  }
 0x2e1   : > { %13947 = vmatpush3.bf16.msra.mxu0 %v15165_v43  ;;  %13288 = vmatprep.subr.bf16.mxu1 %v15167_v50 }
 0x2e2   : > { %13960 = vmatprep.subr.bf16.mxu0 %v15169_v63  ;;  %v3778_v20 = vsel %vm3767_vm0, %v3775_v19, %v3777_v11  ;;  %v15345_v19 = vld [vmem:[%s15951_s16 + $0xf0] sm:$0xf] }
 0x2e3   : > { %13277 = vmatmul.mubr.bf16.vlgmr.msra.gmra.mrb[0].mxu1 %v3772_v42  ;;  %v3924_v42 = vld [vmem:[%s15951_s16 + $0x44] sm:$0xc]  ;;  %v11845_v35 = vcombine.low %v15344_v26, %v15345_v19  ;;  %v11846_v19 = vcombine.low %v17290_v38, %v17290_v38  ;;  %v15187_v38 = vld [vmem:[%s15959_s4 + $0x478] sm:$0xff]  }
 0x2e4   : > { %13289 = vmatpush3.bf16.msra.mxu1 %v15167_v50  ;;  %13949 = vmatmul.mubr.bf16.vlgmr.msra.gmra.mrb[0].mxu0 %v11842_v28  ;;  %v17478_v28 = vld [vmem:[%s15951_s16 + $0x94] sm:$0xff]   ;;  %v15179_v26 = vld [vmem:[%s15959_s4 + $0xa60] sm:$0xff]  }
 0x2e5   : > { %13961 = vmatpush3.bf16.msra.mxu0 %v15169_v63  ;;  %13290 = vmatprep.subr.bf16.mxu1 %v15171_v21 }
 0x2e6   : > { %v13090_v43 = vpop.f32.mrb[44].mxu1  ;;  %13962 = vmatprep.subr.bf16.mxu0 %v15172_v18  ;;  %13280 = vmatprep.mubr.bf16.mxu1 %v3774_v45  ;;  %v8843_v45 = vshll.u32 %v15191_v22, 16 }
 0x2e7   : > { %v17471_v16 = vadd.f32 %v13090_v43, %v17413_v44  ;;  %v2403_v50 = vpop.f32.mrb[45].mxu1  ;;  %13952 = vmatprep.mubr.bf16.mxu0 %v11843_v14  ;;  %v15342_v43 = vld [vmem:[%s15951_s16 + $0xe4] sm:$0xf] }
 0x2e8   : > { %v17474_v55 = vadd.f32 %v2403_v50, %v17416_v23  ;;  %v13091_v63 = vpop.f32.mrb[46].mxu1  ;;  %13291 = vmatpush3.bf16.msra.mxu1 %v15171_v21  ;;  %v17483_v23 = vcombine.low %v3924_v42, %v17304_v9  ;;  %v15343_v50 = vld [vmem:[%s15951_s16 + $0xe8] sm:$0xf]  ;;  %v8841_v42 = vshrl.u32 %v15191_v22, 16  ;;  %v8845_v36 = vrot.slane %v8843_v45, 1 }
 0x2e9   : > { %13963 = vmatpush3.bf16.msra.mxu0 %v15172_v18  ;;  %v2406_v44 = vpop.f32.mrb[47].mxu1  ;;  %13292 = vmatprep.subr.bf16.mxu1 %v15173_v30  ;;  %v17485_v14 = vpop.f32.mrb[44].mxu0  ;;  %v11844_v18 = vcombine.low %v15342_v43, %v15343_v50  ;;  %v15177_v43 = vld [vmem:[%s15959_s4 + $0x460] sm:$0xff]   ;;  %v3946_v50 = vrot.slane %v17311_v52, 2 }
 0x2ea   : > { %18512 = vst [vmem:[#allocation48_spill] sm:$0xff] %v17485_v14  ;;  %v17488_v21 = vadd.f32 %v2406_v44, %v17427_v17  ;;  %13964 = vmatprep.subr.bf16.mxu0 %v15174_v4  ;;  %v17493_v63 = vpop.f32.mrb[45].mxu0  ;;  %v8848_v17 = vshll.u32 %v17478_v28, 16  ;;  %v8846_v22 = vor.u32 %v8845_v36, %v8841_v42  ;;  %v15188_v42 = vld [vmem:[%s15959_s4 + $0xa78] sm:$0xff]   ;;  %v4127_v14 = vshll.u32 %v17422_v10, 16 }
 0x2eb   : > { %18513 = vst [vmem:[#allocation49_spill] sm:$0xff] %v17493_v63  ;;  %13281 = vmatmul.mubr.bf16.gmra.mrb[4].mxu1 %v3776_v12  ;;  %v13763_v9 = vpop.f32.mrb[46].mxu0  ;;  %v3945_v12 = vrot.slane %v17483_v23, 2 }
 0x2ec   : > { %13293 = vmatpush3.bf16.msra.mxu1 %v15173_v30  ;;  %13284 = vmatprep.mubr.bf16.mxu1 %v3778_v20  ;;  %v17498_v44 = vpop.f32.mrb[47].mxu0  ;;  %v8850_v30 = vrot.slane %v8848_v17, 1  ;;  %v15182_v20 = vld [vmem:[%s15959_s4 + $0xa68] sm:$0xff]   ;;  %v3948_v17 = vrot.slane %v17354_v62, 2  ;;  %v4129_v60 = vrot.slane %v4127_v14, 3 }
 0x2ed   : > { %18514 = vst [vmem:[#allocation50_spill] sm:$0xff] %v17498_v44  ;;  %13965 = vmatpush3.bf16.msra.mxu0 %v15174_v4  ;;  %13294 = vmatprep.subr.bf16.mxu1 %v15175_v46  ;;  %v15181_v4 = vld [vmem:[%s15959_s4 + $0x468] sm:$0xff]   ;;  %v3947_v45 = vsel %vm3767_vm0, %v3945_v12, %v3946_v50 }
 0x2ee   : > { %13966 = vmatprep.subr.bf16.mxu0 %v15176_v29  ;;  %13953 = vmatmul.mubr.bf16.gmra.mrb[4].mxu0 %v11844_v18  ;;  %v8851_v36 = vsel %vm776_vm2, %v8846_v22, %v8850_v30  ;;  %v15202_v18 = vld [vmem:[%s15951_s16 + $0xa4] sm:$0xff]  }
 0x2ef   : > { %13956 = vmatprep.mubr.bf16.mxu0 %v11845_v35  ;;  %v15183_v35 = vld [vmem:[%s15959_s4 + $0x470] sm:$0xff]   ;;  %v8864_v12 = vshll.u32 %v15202_v18, 16  ;;  %v15196_v44 = vld [vmem:[%s15959_s4 + $0xa88] sm:$0xff]  }
 0x2f0   : > { %13295 = vmatpush3.bf16.msra.mxu1 %v15175_v46  ;;  %v15194_v46 = vld [vmem:[%s15951_s16 + $0x9c] sm:$0xff]  }
 0x2f1   : > { %13967 = vmatpush3.bf16.msra.mxu0 %v15176_v29  ;;  %13296 = vmatprep.subr.bf16.mxu1 %v15177_v43  ;;  %v15185_v29 = vld [vmem:[%s15959_s4 + $0xa70] sm:$0xff]   ;;  %v8856_v9 = vshll.u32 %v15194_v46, 16 }
 0x2f2   : > { %13968 = vmatprep.subr.bf16.mxu0 %v15179_v26 }
 0x2f3   : > { %13285 = vmatmul.mubr.bf16.gmra.mrb[72].mxu1 %v3777_v11  ;;  %v8852_v11 = vshrl.u32 %v17478_v28, 16  ;;  %v15193_v28 = vld [vmem:[%s15959_s4 + $0xa80] sm:$0xff]  }
 0x2f4   : > { %13297 = vmatpush3.bf16.msra.mxu1 %v15177_v43  ;;  %13304 = vmatprep.mubr.bf16.mxu1 %v3947_v45  ;;  %v8860_v43 = vshrl.u32 %v15194_v46, 16  ;;  %v15204_v45 = vld [vmem:[%s15951_s16 + $0xac] sm:$0xff]   ;;  %v17524_v46 = vld [vmem:[%s15951_s16 + $0xb4] sm:$0x1f]  }
 0x2f5   : > { %13969 = vmatpush3.bf16.msra.mxu0 %v15179_v26  ;;  %13298 = vmatprep.subr.bf16.mxu1 %v15181_v4  ;;  %v15190_v26 = vld [vmem:[%s15959_s4 + $0x480] sm:$0xff]   ;;  %v8854_v22 = vor.u32 %v8852_v11, %v8850_v30  ;;  %v15195_v30 = vld [vmem:[%s15959_s4 + $0x488] sm:$0xff]   ;;  %v9032_v11 = vld [vmem:[%s15951_s16 + $0x10] sm:$0xf]  ;;  %v8872_v0 = vshll.u32 %v15204_v45, 16 }
 0x2f6   : > { %13970 = vmatprep.subr.bf16.mxu0 %v15182_v20  ;;  %13957 = vmatmul.mubr.bf16.gmra.mrb[72].mxu0 %v11846_v19  ;;  %v3949_v19 = vsel %vm3767_vm0, %v3946_v50, %v3948_v17  ;;  %v3952_v50 = vrot.slane %v17381_v40, 2 }
 0x2f7   : > { %13976 = vmatprep.mubr.bf16.mxu0 %v8851_v36 }
 0x2f8   : > { %13299 = vmatpush3.bf16.msra.mxu1 %v15181_v4  ;;  %v8858_v4 = vrot.slane %v8856_v9, 1  ;;  %v17530_v9 = vld [vmem:[%s15951_s16 + $0x14] sm:$0xf] }
 0x2f9   : > { %13971 = vmatpush3.bf16.msra.mxu0 %v15182_v20  ;;  %13300 = vmatprep.subr.bf16.mxu1 %v15183_v35  ;;  %v3950_v20 = vrot.slane %v17363_v3, 2  ;;  %v11901_v63 = vcombine.low %v9032_v11, %v17530_v9 }
 0x2fa   : > { %13972 = vmatprep.subr.bf16.mxu0 %v15185_v29  ;;  %v8862_v36 = vor.u32 %v8860_v43, %v8858_v4 }
 0x2fc   : > { %13301 = vmatpush3.bf16.msra.mxu1 %v15183_v35  ;;  %v8866_v35 = vrot.slane %v8864_v12, 1 }
 0x2fd   : > { %13973 = vmatpush3.bf16.msra.mxu0 %v15185_v29  ;;  %13302 = vmatprep.subr.bf16.mxu1 %v15187_v38  ;;  %v8859_v29 = vsel %vm776_vm2, %v8854_v22, %v8858_v4  ;;  %v8876_v22 = vshrl.u32 %v15204_v45, 16  ;;  %v8880_v4 = vshll.u32 %v17524_v46, 16 }
 0x2fe   : > { %13974 = vmatprep.subr.bf16.mxu0 %v15188_v42  ;;  %v8867_v12 = vsel %vm776_vm2, %v8862_v36, %v8866_v35 }
 0x2ff   : > { %v8882_v54 = vrot.slane %v8880_v4, 1  ;;  %v9092_v4 = vshrl.u32 %v11901_v63, 16 }
 0x300   : > { %13303 = vmatpush3.bf16.msra.mxu1 %v15187_v38  ;;  %v3951_v38 = vsel %vm3767_vm0, %v3948_v17, %v3950_v20  ;;  %v4124_v17 = vshrl.u32 %v17422_v10, 16 }
 0x301   : > { %13975 = vmatpush3.bf16.msra.mxu0 %v15188_v42  ;;  %13316 = vmatprep.subr.bf16.mxu1 %v15190_v26  ;;  %v8868_v42 = vshrl.u32 %v15202_v18, 16  ;;  %v15198_v18 = vld [vmem:[%s15959_s4 + $0xa90] sm:$0xff]  }
 0x302   : > { %13988 = vmatprep.subr.bf16.mxu0 %v15193_v28  ;;  %v4126_v8 = vrot.slane %v4124_v17, 2 }
 0x303   : > { %13305 = vmatmul.mubr.bf16.vlgmr.msra.gmra.mrb[0].mxu1 %v3949_v19  ;;  %v15197_v19 = vld [vmem:[%s15959_s4 + $0x490] sm:$0xff]   ;;  %v8870_v25 = vor.u32 %v8868_v42, %v8866_v35 }
 0x304   : > { %13317 = vmatpush3.bf16.msra.mxu1 %v15190_v26  ;;  %13977 = vmatmul.mubr.bf16.vlgmr.msra.gmra.mrb[0].mxu0 %v8859_v29  ;;  %v8874_v26 = vrot.slane %v8872_v0, 1  ;;  %v3953_v29 = vsel %vm3767_vm0, %v3950_v20, %v3952_v50 }
 0x305   : > { %13989 = vmatpush3.bf16.msra.mxu0 %v15193_v28  ;;  %13318 = vmatprep.subr.bf16.mxu1 %v15195_v30  ;;  %v18515_v28 = vrot.slane %v17384_v5, 2 }
 0x306   : > { %v13118_v43 = vpop.f32.mrb[48].mxu1  ;;  %13990 = vmatprep.subr.bf16.mxu0 %v15196_v44  ;;  %13308 = vmatprep.mubr.bf16.mxu1 %v3951_v38  ;;  %v15199_v38 = vld [vmem:[%s15959_s4 + $0x498] sm:$0xff]   ;;  %v8878_v0 = vor.u32 %v8876_v22, %v8874_v26  ;;  %v8875_v14 = vsel %vm776_vm2, %v8870_v25, %v8874_v26  ;;  %v15203_v25 = vld [vmem:[%s15959_s4 + $0xaa0] sm:$0xff]  }
 0x307   : > { %v17544_v45 = vadd.f32 %v13118_v43, %v17471_v16  ;;  %v2654_v36 = vpop.f32.mrb[49].mxu1  ;;  %v3955_v11 = vsel %vm3767_vm0, %v3952_v50, %v18515_v28  ;;  %13980 = vmatprep.mubr.bf16.mxu0 %v8867_v12  ;;  %v17555_v16 = vld [vmem:[%s15951_s16 + $0x18] sm:$0xff]   ;;  %v9094_v43 = vshll.u32 %v11901_v63, 16  ;;  %v18516_v50 = vshrl.u32 %v17181_v32, 16  ;;  %v15201_v28 = vld [vmem:[%s15959_s4 + $0x4a0] sm:$0xff]  }
 0x308   : > { %v17551_v10 = vadd.f32 %v2654_v36, %v17474_v55  ;;  %v13119_v7 = vpop.f32.mrb[50].mxu1  ;;  %13319 = vmatpush3.bf16.msra.mxu1 %v15195_v30  ;;  %v18517_v55 = vshll.u32 %v17181_v32, 16  ;;  %v15200_v12 = vld [vmem:[%s15959_s4 + $0xa98] sm:$0xff]   ;;  %v8883_v32 = vsel %vm776_vm2, %v8878_v0, %v8882_v54  ;;  %v18404_v36 = vshll.u32 %v17555_v16, 16  ;;  %v4101_v0 = vld [vmem:[%s15951_s16 + $0x30] sm:$0x7] }
 0x309   : > { %13991 = vmatpush3.bf16.msra.mxu0 %v15196_v44  ;;  %v2657_v20 = vpop.f32.mrb[51].mxu1  ;;  %13320 = vmatprep.subr.bf16.mxu1 %v15197_v19  ;;  %v4131_v35 = vrot.slane %v18516_v50, 2  ;;  %v17561_v7 = vpop.f32.mrb[48].mxu0  ;;  %v9096_v17 = vrot.slane %v9094_v43, 1  ;;  %v15207_v43 = vld [vmem:[%s15959_s4 + $0x4b0] sm:$0xff]   ;;  %v17591_v50 = vld [vmem:[%s15951_s16 + $0x20] sm:$0xff]  }
 0x30a   : > { %v4132_v42 = vrot.slane %v18517_v55, 3  ;;  %v17564_v30 = vadd.f32 %v2657_v20, %v17488_v21  ;;  %13992 = vmatprep.subr.bf16.mxu0 %v15198_v18  ;;  %v17567_v22 = vpop.f32.mrb[49].mxu0  ;;  %v9101_v26 = vrot.slane %v18404_v36, 1  ;;  %v18521_v55 = vshrl.u32 %v17196_v39, 16 }
 0x30b   : > { %18518 = vst [vmem:[#allocation51_spill] sm:$0xff] %v17567_v22  ;;  %13309 = vmatmul.mubr.bf16.gmra.mrb[4].mxu1 %v3953_v29  ;;  %v13791_v44 = vpop.f32.mrb[50].mxu0  ;;  %v4130_v29 = vor.u32 %v4129_v60, %v4126_v8  ;;  %v9097_v63 = vor.u32 %v9096_v17, %v9092_v4  ;;  %v15205_v60 = vld [vmem:[%s15959_s4 + $0x4a8] sm:$0xff]   ;;  %v18405_v4 = vshrl.u32 %v17555_v16, 16  ;;  %v18403_v17 = vshll.u32 %v17591_v50, 16 }
 0x30c   : > { %13321 = vmatpush3.bf16.msra.mxu1 %v15197_v19  ;;  %13312 = vmatprep.mubr.bf16.mxu1 %v3955_v11  ;;  %v17572_v21 = vpop.f32.mrb[51].mxu0  ;;  %v17575_v20 = vor.u32 %v4132_v42, %v4131_v35  ;;  %v8884_v19 = vshrl.u32 %v17524_v46, 16  ;;  %v18520_v11 = vrot.slane %v17384_v5, 2  ;;  %v15209_v35 = vld [vmem:[%s15959_s4 + $0xab0] sm:$0xff]   ;;  %v4135_v42 = vrot.slane %v18521_v55, 2  ;;  %v17602_v44 = vld [vmem:[%s15951_s16 + $0x28] sm:$0xff]  }
 0x30d   : > { %18519 = vst [vmem:[#allocation52_spill] sm:$0xff] %v17572_v21  ;;  %13993 = vmatpush3.bf16.msra.mxu0 %v15198_v18  ;;  %13322 = vmatprep.subr.bf16.mxu1 %v15199_v38  ;;  %v15206_v18 = vld [vmem:[%s15959_s4 + $0xaa8] sm:$0xff]   ;;  %v18525_v55 = vshrl.u32 %v17271_v48, 16  ;;  %v17679_v21 = vld [vmem:[%s15951_s16 + $0x58] sm:$0xff]  }
 0x30e   : > { %13994 = vmatprep.subr.bf16.mxu0 %v15200_v12  ;;  %13981 = vmatmul.mubr.bf16.gmra.mrb[4].mxu0 %v8875_v14  ;;  %v4134_v8 = vsel %vm4122_vm1, %v4130_v29, %v17575_v20  ;;  %v8886_v46 = vor.u32 %v8884_v19, %v8882_v54  ;;  %v15346_v54 = vld [vmem:[%s15951_s16 + $0x2c] sm:$0xf]  ;;  %v18523_v29 = vshrl.u32 %v17249_v6, 16 }
 0x30f   : > { %13984 = vmatprep.mubr.bf16.mxu0 %v8883_v32  ;;  %v17595_v5 = vcombine.low %v15346_v54, %v4101_v0  ;;  %v15210_v32 = vld [vmem:[%s15959_s4 + $0x4b8] sm:$0xff]  }
 0x310   : > { %13323 = vmatpush3.bf16.msra.mxu1 %v15199_v38  ;;  %v9102_v38 = vsel %vm776_vm2, %v9097_v63, %v9101_v26  ;;  %v17622_v0 = vld [vmem:[%s15951_s16 + $0x38] sm:$0xf]  ;;  %v9043_v54 = vld [vmem:[%s15951_s16 + $0x3c] sm:$0x1] }
 0x311   : > { %13995 = vmatpush3.bf16.msra.mxu0 %v15200_v12  ;;  %13324 = vmatprep.subr.bf16.mxu1 %v15201_v28  ;;  %v18522_v12 = vshll.u32 %v17196_v39, 16  ;;  %v18524_v39 = vshll.u32 %v17249_v6, 16  ;;  %v4148_v63 = vshrl.u32 %v17595_v5, 16  ;;  %v9109_v6 = vrot.slane %v18403_v17, 1 }
 0x312   : > { %13996 = vmatprep.subr.bf16.mxu0 %v15203_v25 }
 0x313   : > { %13313 = vmatmul.mubr.bf16.gmra.mrb[76].mxu1 %v18520_v11  ;;  %v4136_v14 = vrot.slane %v18522_v12, 3  ;;  %v4140_v19 = vrot.slane %v18524_v39, 3  ;;  %v15212_v11 = vld [vmem:[%s15959_s4 + $0x4c0] sm:$0xff]  }
 0x314   : > { %13325 = vmatpush3.bf16.msra.mxu1 %v15201_v28  ;;  %13332 = vmatprep.mubr.bf16.mxu1 %v4134_v8  ;;  %v15211_v28 = vld [vmem:[%s15959_s4 + $0xab8] sm:$0xff]  }
 0x315   : > { %13997 = vmatpush3.bf16.msra.mxu0 %v15203_v25  ;;  %13326 = vmatprep.subr.bf16.mxu1 %v15205_v60  ;;  %v4139_v25 = vrot.slane %v18523_v29, 2  ;;  %v4137_v8 = vor.u32 %v4136_v14, %v4135_v42  ;;  %v4143_v42 = vrot.slane %v18525_v55, 2  ;;  %v18526_v14 = vshll.u32 %v17271_v48, 16 }
 0x316   : > { %13998 = vmatprep.subr.bf16.mxu0 %v15206_v18  ;;  %13985 = vmatmul.mubr.bf16.gmra.mrb[76].mxu0 %v8886_v46  ;;  %v18406_v46 = vshll.u32 %v17602_v44, 16  ;;  %v4150_v29 = vrot.slane %v4148_v63, 2  ;;  %v17646_v63 = vld [vmem:[%s15951_s16 + $0x54] sm:$0xf] }
 0x317   : > { %14004 = vmatprep.mubr.bf16.mxu0 %v9102_v38  ;;  %v9105_v38 = vor.u32 %v18405_v4, %v9101_v26  ;;  %v4141_v12 = vor.u32 %v4140_v19, %v4139_v25  ;;  %v4144_v26 = vrot.slane %v18526_v14, 3  ;;  %v4138_v17 = vsel %vm4122_vm1, %v17575_v20, %v4137_v8  ;;  %v15217_v25 = vld [vmem:[%s15959_s4 + $0x4c8] sm:$0xff]   ;;  %v9283_v19 = vld [vmem:[%s15951_s16 + $0x50] sm:$0xf] }
 0x318   : > { %13327 = vmatpush3.bf16.msra.mxu1 %v15205_v60  ;;  %v4151_v60 = vshll.u32 %v17595_v5, 16  ;;  %v9117_v55 = vrot.slane %v18406_v46, 1  ;;  %v17640_v4 = vcombine.low %v17622_v0, %v9043_v54  ;;  %v15218_v20 = vld [vmem:[%s15959_s4 + $0xac8] sm:$0xff]  }
 0x319   : > { %13999 = vmatpush3.bf16.msra.mxu0 %v15206_v18  ;;  %13328 = vmatprep.subr.bf16.mxu1 %v15207_v43  ;;  %v18407_v18 = vshrl.u32 %v17591_v50, 16  ;;  %v9110_v48 = vsel %vm776_vm2, %v9105_v38, %v9109_v6  ;;  %v4145_v14 = vor.u32 %v4144_v26, %v4143_v42  ;;  %v4326_v42 = vshll.u32 %v17483_v23, 16 }
 0x31a   : > { %14000 = vmatprep.subr.bf16.mxu0 %v15209_v35  ;;  %v4153_v39 = vrot.slane %v4151_v60, 3  ;;  %v4142_v60 = vsel %vm4122_vm1, %v4137_v8, %v4141_v12  ;;  %v9131_v54 = vshll.u32 %v17640_v4, 16  ;;  %v4323_v8 = vshrl.u32 %v17483_v23, 16 }
 0x31b   : > { %v9113_v36 = vor.u32 %v18407_v18, %v9109_v6  ;;  %v11931_v18 = vcombine.low %v9283_v19, %v17646_v63  ;;  %v4328_v22 = vrot.slane %v4326_v42, 3 }
 0x31c   : > { %13329 = vmatpush3.bf16.msra.mxu1 %v15207_v43  ;;  %v15215_v43 = vld [vmem:[%s15959_s4 + $0xac0] sm:$0xff]   ;;  %v17651_v46 = vor.u32 %v4153_v39, %v4150_v29 }
 0x31d   : > { %14001 = vmatpush3.bf16.msra.mxu0 %v15209_v35  ;;  %13330 = vmatprep.subr.bf16.mxu1 %v15210_v32  ;;  %v17629_v35 = vld [vmem:[%s15951_s16 + $0x30] sm:$0xff]   ;;  %v9118_v38 = vsel %vm776_vm2, %v9113_v36, %v9117_v55  ;;  %v9343_v42 = vshrl.u32 %v11931_v18, 16 }
 0x31e   : > { %14002 = vmatprep.subr.bf16.mxu0 %v15211_v28  ;;  %v18410_v6 = vshrl.u32 %v17629_v35, 16 }
 0x320   : > { %13331 = vmatpush3.bf16.msra.mxu1 %v15210_v32  ;;  %v18408_v32 = vshll.u32 %v17629_v35, 16 }
 0x321   : > { %14003 = vmatpush3.bf16.msra.mxu0 %v15211_v28  ;;  %13344 = vmatprep.subr.bf16.mxu1 %v15212_v11  ;;  %v18409_v28 = vshrl.u32 %v17602_v44, 16 }
 0x322   : > { %14016 = vmatprep.subr.bf16.mxu0 %v15215_v43  ;;  %v9125_v36 = vrot.slane %v18408_v32, 1  ;;  %v15221_v32 = vld [vmem:[%s15959_s4 + $0x4d8] sm:$0xff]  }
 0x323   : > { %13333 = vmatmul.mubr.bf16.vlgmr.msra.gmra.mrb[0].mxu1 %v4138_v17  ;;  %v15219_v17 = vld [vmem:[%s15959_s4 + $0x4d0] sm:$0xff]   ;;  %v9121_v23 = vor.u32 %v18409_v28, %v9117_v55  ;;  %v18527_v55 = vshrl.u32 %v17311_v52, 16 }
 0x324   : > { %13345 = vmatpush3.bf16.msra.mxu1 %v15212_v11  ;;  %14005 = vmatmul.mubr.bf16.vlgmr.msra.gmra.mrb[0].mxu0 %v9110_v48  ;;  %v15220_v11 = vld [vmem:[%s15959_s4 + $0xad0] sm:$0xff]   ;;  %v4155_v48 = vsel %vm4122_vm1, %v4145_v14, %v17651_v46 }
 0x325   : > { %14017 = vmatpush3.bf16.msra.mxu0 %v15215_v43  ;;  %13346 = vmatprep.subr.bf16.mxu1 %v15217_v25  ;;  %v4146_v43 = vsel %vm4122_vm1, %v4141_v12, %v4145_v14  ;;  %v9345_v12 = vshll.u32 %v11931_v18, 16 }
 0x326   : > { %v13146_v26 = vpop.f32.mrb[52].mxu1  ;;  %14018 = vmatprep.subr.bf16.mxu0 %v15218_v20  ;;  %13336 = vmatprep.mubr.bf16.mxu1 %v4142_v60 }
 0x327   : > { %v17665_v29 = vadd.f32 %v13146_v26, %v17544_v45  ;;  %v2831_v39 = vpop.f32.mrb[53].mxu1  ;;  %14008 = vmatprep.mubr.bf16.mxu0 %v9118_v38  ;;  %v9129_v45 = vor.u32 %v18410_v6, %v9125_v36  ;;  %v9133_v26 = vrot.slane %v9131_v54, 1  ;;  %v4325_v38 = vrot.slane %v4323_v8, 2  ;;  %v15222_v54 = vld [vmem:[%s15959_s4 + $0xad8] sm:$0xff]  }
 0x328   : > { %v17673_v19 = vadd.f32 %v2831_v39, %v17551_v10  ;;  %v13147_v60 = vpop.f32.mrb[54].mxu1  ;;  %13347 = vmatpush3.bf16.msra.mxu1 %v15217_v25  ;;  %v4330_v10 = vrot.slane %v18527_v55, 2  ;;  %v18528_v39 = vshll.u32 %v17311_v52, 16  ;;  %v9347_v55 = vrot.slane %v9345_v12, 1  ;;  %v17709_v12 = vld [vmem:[%s15951_s16 + $0x60] sm:$0xff]  }
 0x329   : > { %14019 = vmatpush3.bf16.msra.mxu0 %v15218_v20  ;;  %v2834_v14 = vpop.f32.mrb[55].mxu1  ;;  %13348 = vmatprep.subr.bf16.mxu1 %v15219_v17  ;;  %v17685_v60 = vpop.f32.mrb[52].mxu0  ;;  %v9126_v20 = vsel %vm776_vm2, %v9121_v23, %v9125_v36  ;;  %v9134_v52 = vsel %vm776_vm2, %v9129_v45, %v9133_v26  ;;  %v15226_v36 = vld [vmem:[%s15959_s4 + $0xae0] sm:$0xff]   ;;  %v15229_v23 = vld [vmem:[%s15959_s4 + $0xae8] sm:$0xff]  }
 0x32a   : > { %v4331_v25 = vrot.slane %v18528_v39, 3  ;;  %v17688_v28 = vadd.f32 %v2834_v14, %v17564_v30  ;;  %14020 = vmatprep.subr.bf16.mxu0 %v15220_v11  ;;  %v17691_v6 = vpop.f32.mrb[53].mxu0  ;;  %v18412_v39 = vshll.u32 %v17679_v21, 16  ;;  %v15224_v14 = vld [vmem:[%s15959_s4 + $0x4e0] sm:$0xff]   ;;  %v9348_v18 = vor.u32 %v9347_v55, %v9343_v42  ;;  %v15233_v42 = vld [vmem:[%s15959_s4 + $0x4f8] sm:$0xff]  }
 0x32b   : > { %18529 = vst [vmem:[#allocation53_spill] sm:$0xff] %v17691_v6  ;;  %13337 = vmatmul.mubr.bf16.gmra.mrb[4].mxu1 %v4146_v43  ;;  %v13819_v8 = vpop.f32.mrb[54].mxu0  ;;  %v4329_v43 = vor.u32 %v4328_v22, %v4325_v38  ;;  %v15230_v38 = vld [vmem:[%s15959_s4 + $0x4f0] sm:$0xff]   ;;  %v18413_v55 = vshrl.u32 %v17679_v21, 16 }
 0x32c   : > { %13349 = vmatpush3.bf16.msra.mxu1 %v15219_v17  ;;  %13340 = vmatprep.mubr.bf16.mxu1 %v4155_v48  ;;  %v17696_v30 = vpop.f32.mrb[55].mxu0  ;;  %v4332_v6 = vor.u32 %v4331_v25, %v4330_v10  ;;  %v9135_v17 = vshrl.u32 %v17640_v4, 16  ;;  %v9352_v48 = vrot.slane %v18412_v39, 1  ;;  %v15232_v10 = vld [vmem:[%s15959_s4 + $0xaf0] sm:$0xff]   ;;  %v18411_v8 = vshll.u32 %v17709_v12, 16 }
 0x32d   : > { %18530 = vst [vmem:[#allocation54_spill] sm:$0xff] %v17696_v30  ;;  %14021 = vmatpush3.bf16.msra.mxu0 %v15220_v11  ;;  %13350 = vmatprep.subr.bf16.mxu1 %v15221_v32  ;;  %v15228_v11 = vld [vmem:[%s15959_s4 + $0x4e8] sm:$0xff]   ;;  %v4301_v25 = vld [vmem:[%s15951_s16 + $0x70] sm:$0x7] }
 0x32e   : > { %14022 = vmatprep.subr.bf16.mxu0 %v15222_v54  ;;  %14009 = vmatmul.mubr.bf16.gmra.mrb[4].mxu0 %v9126_v20  ;;  %v4333_v22 = vsel %vm4122_vm1, %v4329_v43, %v4332_v6  ;;  %v9137_v45 = vor.u32 %v9135_v17, %v9133_v26  ;;  %v18531_v26 = vshrl.u32 %v17354_v62, 16  ;;  %v18533_v17 = vshrl.u32 %v17363_v3, 16 }
 0x32f   : > { %14012 = vmatprep.mubr.bf16.mxu0 %v9134_v52  ;;  %v17720_v52 = vld [vmem:[%s15951_s16 + $0x68] sm:$0xff]  }
 0x330   : > { %13351 = vmatpush3.bf16.msra.mxu1 %v15221_v32  ;;  %v9353_v32 = vsel %vm776_vm2, %v9348_v18, %v9352_v48  ;;  %v4338_v18 = vrot.slane %v18533_v17, 2 }
 0x331   : > { %14023 = vmatpush3.bf16.msra.mxu0 %v15222_v54  ;;  %13352 = vmatprep.subr.bf16.mxu1 %v15224_v14  ;;  %v18532_v54 = vshll.u32 %v17354_v62, 16 }
 0x332   : > { %14024 = vmatprep.subr.bf16.mxu0 %v15226_v36 }
 0x333   : > { %13341 = vmatmul.mubr.bf16.gmra.mrb[80].mxu1 %v17651_v46  ;;  %v4334_v46 = vrot.slane %v18531_v26, 2  ;;  %v4335_v20 = vrot.slane %v18532_v54, 3  ;;  %v9356_v26 = vor.u32 %v18413_v55, %v9352_v48  ;;  %v18536_v48 = vshll.u32 %v17381_v40, 16 }
 0x334   : > { %13353 = vmatpush3.bf16.msra.mxu1 %v15224_v14  ;;  %13360 = vmatprep.mubr.bf16.mxu1 %v4333_v22  ;;  %v15347_v14 = vld [vmem:[%s15951_s16 + $0x6c] sm:$0xf] }
 0x335   : > { %14025 = vmatpush3.bf16.msra.mxu0 %v15226_v36  ;;  %13354 = vmatprep.subr.bf16.mxu1 %v15228_v11  ;;  %v11266_v43 = vcombine.low %v15347_v14, %v4301_v25  ;;  %v15234_v36 = vld [vmem:[%s15959_s4 + $0xaf8] sm:$0xff]   ;;  %v4336_v62 = vor.u32 %v4335_v20, %v4334_v46  ;;  %v18414_v25 = vshll.u32 %v17720_v52, 16  ;;  %v17743_v14 = vld [vmem:[%s15951_s16 + $0x70] sm:$0xff]   ;;  %v4343_v39 = vrot.slane %v18536_v48, 3 }
 0x336   : > { %14026 = vmatprep.subr.bf16.mxu0 %v15229_v23  ;;  %14013 = vmatmul.mubr.bf16.gmra.mrb[80].mxu0 %v9137_v45  ;;  %v9360_v45 = vrot.slane %v18411_v8, 1  ;;  %v17738_v20 = vld [vmem:[%s15951_s16 + $0x78] sm:$0xf] }
 0x337   : > { %14032 = vmatprep.mubr.bf16.mxu0 %v9353_v32  ;;  %v18416_v32 = vshrl.u32 %v17709_v12, 16  ;;  %v4347_v46 = vshrl.u32 %v11266_v43, 16  ;;  %v4350_v54 = vshll.u32 %v11266_v43, 16  ;;  %v4337_v17 = vsel %vm4122_vm1, %v4332_v6, %v4336_v62 }
 0x338   : > { %13355 = vmatpush3.bf16.msra.mxu1 %v15228_v11  ;;  %v18534_v11 = vshll.u32 %v17363_v3, 16  ;;  %v9294_v3 = vld [vmem:[%s15951_s16 + $0x7c] sm:$0x1]  ;;  %v9368_v55 = vrot.slane %v18414_v25, 1  ;;  %v9361_v6 = vsel %vm776_vm2, %v9356_v26, %v9360_v45  ;;  %v18417_v25 = vshrl.u32 %v17720_v52, 16 }
 0x339   : > { %14027 = vmatpush3.bf16.msra.mxu0 %v15229_v23  ;;  %13356 = vmatprep.subr.bf16.mxu1 %v15230_v38  ;;  %v15235_v23 = vld [vmem:[%s15959_s4 + $0x500] sm:$0xff]   ;;  %v9364_v43 = vor.u32 %v18416_v32, %v9360_v45  ;;  %v17755_v30 = vcombine.low %v17738_v20, %v9294_v3  ;;  %v18418_v26 = vshrl.u32 %v17743_v14, 16  ;;  %v15348_v32 = vld [vmem:[%s15951_s16 + $0x8] sm:$0xf] }
 0x33a   : > { %14028 = vmatprep.subr.bf16.mxu0 %v15232_v10  ;;  %v4339_v22 = vrot.slane %v18534_v11, 3 }
 0x33b   : > { %v9369_v45 = vsel %vm776_vm2, %v9364_v43, %v9368_v55 }
 0x33c   : > { %13357 = vmatpush3.bf16.msra.mxu1 %v15230_v38  ;;  %v15238_v38 = vld [vmem:[%s15959_s4 + $0xb00] sm:$0xff]   ;;  %v4340_v11 = vor.u32 %v4339_v22, %v4338_v18  ;;  %v15240_v18 = vld [vmem:[%s15959_s4 + $0x508] sm:$0xff]   ;;  %v4349_v22 = vrot.slane %v4347_v46, 2  ;;  %v9382_v46 = vshll.u32 %v17755_v30, 16 }
 0x33d   : > { %14029 = vmatpush3.bf16.msra.mxu0 %v15232_v10  ;;  %13358 = vmatprep.subr.bf16.mxu1 %v15233_v42  ;;  %v18535_v10 = vshrl.u32 %v17381_v40, 16  ;;  %v15241_v40 = vld [vmem:[%s15959_s4 + $0xb08] sm:$0xff]  }
 0x33e   : > { %14030 = vmatprep.subr.bf16.mxu0 %v15234_v36  ;;  %v4341_v48 = vsel %vm4122_vm1, %v4336_v62, %v4340_v11  ;;  %v15243_v62 = vld [vmem:[%s15959_s4 + $0xb10] sm:$0xff]  }
 0x33f   : > { %v4342_v8 = vrot.slane %v18535_v10, 2  ;;  %v18415_v10 = vshll.u32 %v17743_v14, 16 }
 0x340   : > { %13359 = vmatpush3.bf16.msra.mxu1 %v15233_v42  ;;  %v4352_v42 = vrot.slane %v4350_v54, 3  ;;  %v15242_v54 = vld [vmem:[%s15959_s4 + $0x510] sm:$0xff]  }
 0x341   : > { %14031 = vmatpush3.bf16.msra.mxu0 %v15234_v36  ;;  %13372 = vmatprep.subr.bf16.mxu1 %v15235_v23  ;;  %v4344_v36 = vor.u32 %v4343_v39, %v4342_v8 }
 0x342   : > { %14044 = vmatprep.subr.bf16.mxu0 %v15238_v38  ;;  %v4353_v3 = vor.u32 %v4352_v42, %v4349_v22 }
 0x343   : > { %13361 = vmatmul.mubr.bf16.vlgmr.msra.gmra.mrb[0].mxu1 %v4337_v17  ;;  %v4345_v42 = vsel %vm4122_vm1, %v4340_v11, %v4344_v36  ;;  %v15245_v11 = vld [vmem:[%s15959_s4 + $0xb18] sm:$0xff]  }
 0x344   : > { %13373 = vmatpush3.bf16.msra.mxu1 %v15235_v23  ;;  %14033 = vmatmul.mubr.bf16.vlgmr.msra.gmra.mrb[0].mxu0 %v9361_v6  ;;  %v9376_v23 = vrot.slane %v18415_v10, 1  ;;  %v4500_v6 = vld [vmem:[%s15951_s16 + $0x4] sm:$0x8]  ;;  %v9384_v10 = vrot.slane %v9382_v46, 1 }
 0x345   : > { %14045 = vmatpush3.bf16.msra.mxu0 %v15238_v38  ;;  %13374 = vmatprep.subr.bf16.mxu1 %v15240_v18  ;;  %v9372_v38 = vor.u32 %v18417_v25, %v9368_v55  ;;  %v11291_v55 = vcombine.low %v4500_v6, %v15348_v32  ;;  %v9534_v25 = vld [vmem:[%s15951_s16 + $0x10] sm:$0xe] }
 0x346   : > { %v13174_v17 = vpop.f32.mrb[56].mxu1  ;;  %14046 = vmatprep.subr.bf16.mxu0 %v15241_v40  ;;  %13364 = vmatprep.mubr.bf16.mxu1 %v4341_v48  ;;  %v9380_v48 = vor.u32 %v18418_v26, %v9376_v23 }
 0x347   : > { %v17772_v39 = vadd.f32 %v13174_v17, %v17665_v29  ;;  %v3008_v8 = vpop.f32.mrb[57].mxu1  ;;  %14036 = vmatprep.mubr.bf16.mxu0 %v9369_v45  ;;  %v15244_v17 = vld [vmem:[%s15959_s4 + $0x518] sm:$0xff]   ;;  %v4354_v45 = vsel %vm4122_vm1, %v4344_v36, %v4353_v3  ;;  %v17797_v36 = vcombine.low %v9534_v25, %v17530_v9  ;;  %v9556_v25 = vrot.slane %v17555_v16, 1 }
 0x348   : > { %v17777_v43 = vadd.f32 %v3008_v8, %v17673_v19  ;;  %v13175_v22 = vpop.f32.mrb[58].mxu1  ;;  %13375 = vmatpush3.bf16.msra.mxu1 %v15240_v18  ;;  %v9385_v32 = vsel %vm776_vm2, %v9380_v48, %v9384_v10  ;;  %v15252_v48 = vld [vmem:[%s15959_s4 + $0xb28] sm:$0xff]  }
 0x349   : > { %14047 = vmatpush3.bf16.msra.mxu0 %v15241_v40  ;;  %v3011_v29 = vpop.f32.mrb[59].mxu1  ;;  %13376 = vmatprep.subr.bf16.mxu1 %v15242_v54  ;;  %v17786_v19 = vpop.f32.mrb[56].mxu0  ;;  %v9377_v40 = vsel %vm776_vm2, %v9372_v38, %v9376_v23  ;;  %v4522_v22 = vrot.slane %v11291_v55, 3  ;;  %v15249_v23 = vld [vmem:[%s15959_s4 + $0xb20] sm:$0xff]   ;;  %v9555_v9 = vrot.slane %v17797_v36, 1  ;;  %v15253_v55 = vld [vmem:[%s15959_s4 + $0x530] sm:$0xff]  }
 0x34a   : > { %v17789_v18 = vadd.f32 %v3011_v29, %v17688_v28  ;;  %14048 = vmatprep.subr.bf16.mxu0 %v15243_v62  ;;  %v17792_v8 = vpop.f32.mrb[57].mxu0  ;;  %v15247_v28 = vld [vmem:[%s15959_s4 + $0x520] sm:$0xff]   ;;  %v15349_v29 = vld [vmem:[%s15951_s16 + $0xc] sm:$0xff]  }
 0x34b   : > { %13365 = vmatmul.mubr.bf16.gmra.mrb[4].mxu1 %v4345_v42  ;;  %v13847_v46 = vpop.f32.mrb[58].mxu0  ;;  %v4523_v42 = vrot.slane %v15349_v29, 3  ;;  %v15261_v29 = vld [vmem:[%s15959_s4 + $0xb40] sm:$0xff]  }
 0x34c   : > { %13377 = vmatpush3.bf16.msra.mxu1 %v15242_v54  ;;  %13368 = vmatprep.mubr.bf16.mxu1 %v4354_v45  ;;  %v17799_v6 = vpop.f32.mrb[59].mxu0  ;;  %v9386_v54 = vshrl.u32 %v17755_v30, 16 }
 0x34d   : > { %18537 = vst [vmem:[#allocation55_spill] sm:$0xff] %v17799_v6  ;;  %14049 = vmatpush3.bf16.msra.mxu0 %v15243_v62  ;;  %13378 = vmatprep.subr.bf16.mxu1 %v15244_v17  ;;  %v15251_v62 = vld [vmem:[%s15959_s4 + $0x528] sm:$0xff]   ;;  %v4524_v38 = vsel %vm4521_vm4, %v4522_v22, %v4523_v42  ;;  %v4678_v22 = vld [vmem:[%s15951_s16 + $0x84] sm:$0xe]  ;;  %v18539_v6 = vshll.u32 %v16047_v57, 16 }
 0x34e   : > { %14050 = vmatprep.subr.bf16.mxu0 %v15245_v11  ;;  %14037 = vmatmul.mubr.bf16.gmra.mrb[4].mxu0 %v9377_v40  ;;  %v9388_v45 = vor.u32 %v9386_v54, %v9384_v10  ;;  %v15256_v10 = vld [vmem:[%s15959_s4 + $0x538] sm:$0xff]  }
 0x34f   : > { %14040 = vmatprep.mubr.bf16.mxu0 %v9385_v32  ;;  %v15350_v40 = vld [vmem:[%s15951_s16 + $0x14] sm:$0xff]   ;;  %v15259_v32 = vld [vmem:[%s15959_s4 + $0x540] sm:$0xff]  }
 0x350   : > { %13379 = vmatpush3.bf16.msra.mxu1 %v15244_v17  ;;  %v9557_v17 = vsel %vm1241_vm3, %v9555_v9, %v9556_v25  ;;  %v4525_v46 = vrot.slane %v15350_v40, 3  ;;  %v15353_v40 = vld [vmem:[%s15951_s16 + $0x24] sm:$0xff]  }
 0x351   : > { %14051 = vmatpush3.bf16.msra.mxu0 %v15245_v11  ;;  %13380 = vmatprep.subr.bf16.mxu1 %v15247_v28  ;;  %v15255_v11 = vld [vmem:[%s15959_s4 + $0xb30] sm:$0xff]  }
 0x352   : > { %14052 = vmatprep.subr.bf16.mxu0 %v15249_v23  ;;  %v4526_v9 = vsel %vm4521_vm4, %v4523_v42, %v4525_v46 }
 0x353   : > { %13369 = vmatmul.mubr.bf16.gmra.mrb[84].mxu1 %v4353_v3  ;;  %v15257_v3 = vld [vmem:[%s15959_s4 + $0xb38] sm:$0xff]  }
 0x354   : > { %13381 = vmatpush3.bf16.msra.mxu1 %v15247_v28  ;;  %13388 = vmatprep.mubr.bf16.mxu1 %v4524_v38  ;;  %v9558_v28 = vrot.slane %v17591_v50, 1  ;;  %v15352_v38 = vld [vmem:[%s15951_s16 + $0x88] sm:$0xf] }
 0x355   : > { %14053 = vmatpush3.bf16.msra.mxu0 %v15249_v23  ;;  %13382 = vmatprep.subr.bf16.mxu1 %v15251_v62  ;;  %v15351_v23 = vld [vmem:[%s15951_s16 + $0x1c] sm:$0xff]  }
 0x356   : > { %14054 = vmatprep.subr.bf16.mxu0 %v15252_v48  ;;  %14041 = vmatmul.mubr.bf16.gmra.mrb[84].mxu0 %v9388_v45  ;;  %v4527_v54 = vrot.slane %v15351_v23, 3  ;;  %v9559_v45 = vsel %vm1241_vm3, %v9556_v25, %v9558_v28  ;;  %v4531_v25 = vrot.slane %v17595_v5, 3  ;;  %v15266_v5 = vld [vmem:[%s15959_s4 + $0x558] sm:$0xff]  }
 0x357   : > { %14060 = vmatprep.mubr.bf16.mxu0 %v9557_v17  ;;  %v15262_v17 = vld [vmem:[%s15959_s4 + $0x548] sm:$0xff]  }
 0x358   : > { %13383 = vmatpush3.bf16.msra.mxu1 %v15251_v62  ;;  %v9560_v62 = vrot.slane %v17602_v44, 1 }
 0x359   : > { %14055 = vmatpush3.bf16.msra.mxu0 %v15252_v48  ;;  %13384 = vmatprep.subr.bf16.mxu1 %v15253_v55  ;;  %v11316_v48 = vcombine.low %v4678_v22, %v15352_v38 }
 0x35a   : > { %14056 = vmatprep.subr.bf16.mxu0 %v15255_v11  ;;  %v9561_v42 = vsel %vm1241_vm3, %v9558_v28, %v9560_v62  ;;  %v9562_v28 = vrot.slane %v17629_v35, 1 }
 0x35b   : > { %v4738_v23 = vshrl.u32 %v11316_v48, 16  ;;  %v4741_v22 = vshll.u32 %v11316_v48, 16 }
 0x35c   : > { %13385 = vmatpush3.bf16.msra.mxu1 %v15253_v55  ;;  %v15263_v55 = vld [vmem:[%s15959_s4 + $0xb48] sm:$0xff]  }
 0x35d   : > { %14057 = vmatpush3.bf16.msra.mxu0 %v15255_v11  ;;  %13386 = vmatprep.subr.bf16.mxu1 %v15256_v10  ;;  %v4528_v11 = vsel %vm4521_vm4, %v4525_v46, %v4527_v54  ;;  %v4743_v26 = vrot.slane %v4741_v22, 2 }
 0x35e   : > { %14058 = vmatprep.subr.bf16.mxu0 %v15257_v3 }
 0x360   : > { %13387 = vmatpush3.bf16.msra.mxu1 %v15256_v10  ;;  %v4529_v10 = vrot.slane %v15353_v40, 3 }
 0x361   : > { %14059 = vmatpush3.bf16.msra.mxu0 %v15257_v3  ;;  %13400 = vmatprep.subr.bf16.mxu1 %v15259_v32  ;;  %v15264_v3 = vld [vmem:[%s15959_s4 + $0x550] sm:$0xff]  }
 0x362   : > { %14072 = vmatprep.subr.bf16.mxu0 %v15261_v29 }
 0x363   : > { %13389 = vmatmul.mubr.bf16.vlgmr.msra.gmra.mrb[0].mxu1 %v4526_v9  ;;  %v15265_v9 = vld [vmem:[%s15959_s4 + $0xb50] sm:$0xff]  }
 0x364   : > { %13401 = vmatpush3.bf16.msra.mxu1 %v15259_v32  ;;  %14061 = vmatmul.mubr.bf16.vlgmr.msra.gmra.mrb[0].mxu0 %v9559_v45  ;;  %v4530_v32 = vsel %vm4521_vm4, %v4527_v54, %v4529_v10  ;;  %v9564_v45 = vrot.slane %v17640_v4, 1  ;;  %v4532_v54 = vsel %vm4521_vm4, %v4529_v10, %v4531_v25  ;;  %v15267_v4 = vld [vmem:[%s15959_s4 + $0xb58] sm:$0xff]   ;;  %v9563_v10 = vsel %vm1241_vm3, %v9560_v62, %v9562_v28 }
 0x365   : > { %14073 = vmatpush3.bf16.msra.mxu0 %v15261_v29  ;;  %13402 = vmatprep.subr.bf16.mxu1 %v15262_v17 }
 0x366   : > { %v13202_v38 = vpop.f32.mrb[60].mxu1  ;;  %14074 = vmatprep.subr.bf16.mxu0 %v15263_v55  ;;  %13392 = vmatprep.mubr.bf16.mxu1 %v4528_v11  ;;  %v4740_v11 = vrot.slane %v4738_v23, 1 }
 0x367   : > { %v17834_v46 = vadd.f32 %v13202_v38, %v17772_v39  ;;  %v3207_v40 = vpop.f32.mrb[61].mxu1  ;;  %14064 = vmatprep.mubr.bf16.mxu0 %v9561_v42  ;;  %v18538_v42 = vshrl.u32 %v16047_v57, 16  ;;  %v9565_v57 = vsel %vm1241_vm3, %v9562_v28, %v9564_v45 }
 0x368   : > { %v17839_v29 = vadd.f32 %v3207_v40, %v17777_v43  ;;  %v13203_v48 = vpop.f32.mrb[62].mxu1  ;;  %13403 = vmatpush3.bf16.msra.mxu1 %v15262_v17  ;;  %v4751_v43 = vrot.slane %v18539_v6, 2  ;;  %v9711_v40 = vld [vmem:[%s15951_s16 + $0x50] sm:$0xe] }
 0x369   : > { %14075 = vmatpush3.bf16.msra.mxu0 %v15263_v55  ;;  %v3210_v39 = vpop.f32.mrb[63].mxu1  ;;  %13404 = vmatprep.subr.bf16.mxu1 %v15264_v3  ;;  %v4748_v38 = vrot.slane %v18538_v42, 1  ;;  %v17849_v48 = vpop.f32.mrb[60].mxu0  ;;  %v17860_v6 = vcombine.low %v9711_v40, %v17646_v63  ;;  %v9733_v63 = vrot.slane %v17679_v21, 1 }
 0x36a   : > { %v17852_v17 = vadd.f32 %v3210_v39, %v17789_v18  ;;  %14076 = vmatprep.subr.bf16.mxu0 %v15265_v9  ;;  %v17855_v55 = vpop.f32.mrb[61].mxu0  ;;  %v15268_v18 = vld [vmem:[%s15959_s4 + $0x560] sm:$0xff]   ;;  %v4744_v39 = vor.u32 %v4743_v26, %v4740_v11  ;;  %v15271_v26 = vld [vmem:[%s15959_s4 + $0xb68] sm:$0xff]   ;;  %v4689_v11 = vld [vmem:[%s15951_s16 + $0xb0] sm:$0x3] }
 0x36b   : > { %13393 = vmatmul.mubr.bf16.gmra.mrb[4].mxu1 %v4530_v32  ;;  %v13875_v23 = vpop.f32.mrb[62].mxu0  ;;  %v4752_v42 = vor.u32 %v4751_v43, %v4748_v38  ;;  %v15269_v32 = vld [vmem:[%s15959_s4 + $0xb60] sm:$0xff]   ;;  %v9732_v62 = vrot.slane %v17860_v6, 1  ;;  %v18541_v38 = vshrl.u32 %v16060_v2, 16 }
 0x36c   : > { %13405 = vmatpush3.bf16.msra.mxu1 %v15264_v3  ;;  %13396 = vmatprep.mubr.bf16.mxu1 %v4532_v54  ;;  %v17862_v22 = vpop.f32.mrb[63].mxu0  ;;  %v15270_v3 = vld [vmem:[%s15959_s4 + $0x568] sm:$0xff]   ;;  %v15273_v54 = vld [vmem:[%s15959_s4 + $0xb70] sm:$0xff]   ;;  %v15274_v23 = vld [vmem:[%s15959_s4 + $0x578] sm:$0xff]  }
 0x36d   : > { %18540 = vst [vmem:[#allocation56_spill] sm:$0xff] %v17862_v22  ;;  %14077 = vmatpush3.bf16.msra.mxu0 %v15265_v9  ;;  %13406 = vmatprep.subr.bf16.mxu1 %v15266_v5  ;;  %v4753_v9 = vsel %vm1596_vm5, %v4744_v39, %v4752_v42  ;;  %v9734_v28 = vsel %vm1241_vm3, %v9732_v62, %v9733_v63  ;;  %v4757_v43 = vrot.slane %v18541_v38, 1  ;;  %v18544_v39 = vshll.u32 %v16083_v27, 16  ;;  %v15280_v22 = vld [vmem:[%s15959_s4 + $0x588] sm:$0xff]  }
 0x36e   : > { %14078 = vmatprep.subr.bf16.mxu0 %v15267_v4  ;;  %14065 = vmatmul.mubr.bf16.gmra.mrb[4].mxu0 %v9563_v10 }
 0x36f   : > { %14068 = vmatprep.mubr.bf16.mxu0 %v9565_v57  ;;  %v15275_v57 = vld [vmem:[%s15959_s4 + $0xb78] sm:$0xff]  }
 0x370   : > { %13407 = vmatpush3.bf16.msra.mxu1 %v15266_v5  ;;  %v15272_v5 = vld [vmem:[%s15959_s4 + $0x570] sm:$0xff]  }
 0x371   : > { %14079 = vmatpush3.bf16.msra.mxu0 %v15267_v4  ;;  %13408 = vmatprep.subr.bf16.mxu1 %v15268_v18  ;;  %v15354_v4 = vld [vmem:[%s15951_s16 + $0xac] sm:$0xf] }
 0x372   : > { %14080 = vmatprep.subr.bf16.mxu0 %v15269_v32  ;;  %v17880_v10 = vcombine.low %v15354_v4, %v4689_v11  ;;  %v4935_v11 = vld [vmem:[%s15951_s16 + $0xc4] sm:$0xe] }
 0x373   : > { %13397 = vmatmul.mubr.bf16.gmra.mrb[88].mxu1 %v4531_v25  ;;  %v18542_v25 = vshll.u32 %v16060_v2, 16 }
 0x374   : > { %13409 = vmatpush3.bf16.msra.mxu1 %v15268_v18  ;;  %13416 = vmatprep.mubr.bf16.mxu1 %v4753_v9  ;;  %v4782_v62 = vshrl.u32 %v17880_v10, 16  ;;  %v15277_v9 = vld [vmem:[%s15959_s4 + $0x580] sm:$0xff]  }
 0x375   : > { %14081 = vmatpush3.bf16.msra.mxu0 %v15269_v32  ;;  %13410 = vmatprep.subr.bf16.mxu1 %v15270_v3  ;;  %v4760_v40 = vrot.slane %v18542_v25, 2  ;;  %v4769_v32 = vrot.slane %v18544_v39, 2 }
 0x376   : > { %14082 = vmatprep.subr.bf16.mxu0 %v15271_v26  ;;  %14069 = vmatmul.mubr.bf16.gmra.mrb[88].mxu0 %v9564_v45  ;;  %v18543_v45 = vshrl.u32 %v16083_v27, 16  ;;  %v18545_v27 = vshrl.u32 %v16093_v37, 16 }
 0x377   : > { %14088 = vmatprep.mubr.bf16.mxu0 %v9734_v28  ;;  %v4761_v2 = vor.u32 %v4760_v40, %v4757_v43  ;;  %v15279_v28 = vld [vmem:[%s15959_s4 + $0xb80] sm:$0xff]   ;;  %v18546_v43 = vshll.u32 %v16093_v37, 16  ;;  %v4784_v40 = vrot.slane %v4782_v62, 1  ;;  %v15282_v62 = vld [vmem:[%s15959_s4 + $0x590] sm:$0xff]  }
 0x378   : > { %13411 = vmatpush3.bf16.msra.mxu1 %v15270_v3  ;;  %v4766_v18 = vrot.slane %v18543_v45, 1  ;;  %v4785_v3 = vshll.u32 %v17880_v10, 16  ;;  %v9737_v45 = vrot.slane %v17720_v52, 1 }
 0x379   : > { %14083 = vmatpush3.bf16.msra.mxu0 %v15271_v26  ;;  %13412 = vmatprep.subr.bf16.mxu1 %v15272_v5  ;;  %v9735_v26 = vrot.slane %v17709_v12, 1  ;;  %v4778_v25 = vrot.slane %v18546_v43, 2  ;;  %v15283_v43 = vld [vmem:[%s15959_s4 + $0xb90] sm:$0xff]  }
 0x37a   : > { %14084 = vmatprep.subr.bf16.mxu0 %v15273_v54  ;;  %v4770_v38 = vor.u32 %v4769_v32, %v4766_v18  ;;  %v4787_v4 = vrot.slane %v4785_v3, 2  ;;  %v15355_v18 = vld [vmem:[%s15951_s16 + $0xc8] sm:$0xf] }
 0x37b   : > { %v9736_v39 = vsel %vm1241_vm3, %v9733_v63, %v9735_v26  ;;  %v11346_v32 = vcombine.low %v4935_v11, %v15355_v18 }
 0x37c   : > { %13413 = vmatpush3.bf16.msra.mxu1 %v15272_v5  ;;  %v4775_v5 = vrot.slane %v18545_v27, 1  ;;  %v15281_v27 = vld [vmem:[%s15959_s4 + $0xb88] sm:$0xff]   ;;  %v4771_v37 = vsel %vm1596_vm5, %v4761_v2, %v4770_v38 }
 0x37d   : > { %14085 = vmatpush3.bf16.msra.mxu0 %v15273_v54  ;;  %13414 = vmatprep.subr.bf16.mxu1 %v15274_v23  ;;  %v4762_v54 = vsel %vm1596_vm5, %v4752_v42, %v4761_v2  ;;  %v17905_v42 = vor.u32 %v4787_v4, %v4784_v40  ;;  %v4995_v63 = vshrl.u32 %v11346_v32, 16  ;;  %v4998_v3 = vshll.u32 %v11346_v32, 16  ;;  %v15284_v40 = vld [vmem:[%s15959_s4 + $0x598] sm:$0xff]  }
 0x37e   : > { %14086 = vmatprep.subr.bf16.mxu0 %v15275_v57 }
 0x37f   : > { %v4997_v18 = vrot.slane %v4995_v63, 1  ;;  %v5000_v32 = vrot.slane %v4998_v3, 2 }
 0x380   : > { %13415 = vmatpush3.bf16.msra.mxu1 %v15274_v23  ;;  %v4779_v23 = vor.u32 %v4778_v25, %v4775_v5  ;;  %v9739_v5 = vrot.slane %v17743_v14, 1 }
 0x381   : > { %14087 = vmatpush3.bf16.msra.mxu0 %v15275_v57  ;;  %13428 = vmatprep.subr.bf16.mxu1 %v15277_v9  ;;  %v9738_v57 = vsel %vm1241_vm3, %v9735_v26, %v9737_v45  ;;  %v9741_v26 = vrot.slane %v17755_v30, 1  ;;  %v18547_v30 = vshrl.u32 %v15990_v15, 16 }
 0x382   : > { %14100 = vmatprep.subr.bf16.mxu0 %v15279_v28  ;;  %v4789_v4 = vsel %vm1596_vm5, %v4779_v23, %v17905_v42 }
 0x383   : > { %13417 = vmatmul.mubr.bf16.vlgmr.msra.gmra.mrb[0].mxu1 %v4762_v54  ;;  %v9742_v63 = vsel %vm1241_vm3, %v9739_v5, %v9741_v26 }
 0x384   : > { %13429 = vmatpush3.bf16.msra.mxu1 %v15277_v9  ;;  %14089 = vmatmul.mubr.bf16.vlgmr.msra.gmra.mrb[0].mxu0 %v9736_v39  ;;  %v4780_v9 = vsel %vm1596_vm5, %v4770_v38, %v4779_v23  ;;  %v9913_v39 = vshll.u32 %v17797_v36, 16  ;;  %v15285_v23 = vld [vmem:[%s15959_s4 + $0xb98] sm:$0xff]  }
 0x385   : > { %14101 = vmatpush3.bf16.msra.mxu0 %v15279_v28  ;;  %13430 = vmatprep.subr.bf16.mxu1 %v15280_v22 }
 0x386   : > { %v13230_v11 = vpop.f32.mrb[64].mxu1  ;;  %14102 = vmatprep.subr.bf16.mxu0 %v15281_v27  ;;  %13420 = vmatprep.mubr.bf16.mxu1 %v4771_v37  ;;  %v18548_v37 = vshll.u32 %v15990_v15, 16 }
 0x387   : > { %v17911_v54 = vadd.f32 %v13230_v11, %v17834_v46  ;;  %v3464_v2 = vpop.f32.mrb[65].mxu1  ;;  %14092 = vmatprep.mubr.bf16.mxu0 %v9738_v57  ;;  %v9910_v46 = vshrl.u32 %v17797_v36, 16 }
 0x388   : > { %v17917_v28 = vadd.f32 %v3464_v2, %v17839_v29  ;;  %v13231_v25 = vpop.f32.mrb[66].mxu1  ;;  %13431 = vmatpush3.bf16.msra.mxu1 %v15280_v22  ;;  %v5005_v29 = vrot.slane %v18547_v30, 1  ;;  %v5008_v57 = vrot.slane %v18548_v37, 2  ;;  %v9915_v2 = vrot.slane %v9913_v39, 2 }
 0x389   : > { %14103 = vmatpush3.bf16.msra.mxu0 %v15281_v27  ;;  %v3467_v38 = vpop.f32.mrb[67].mxu1  ;;  %13432 = vmatprep.subr.bf16.mxu1 %v15282_v62  ;;  %v17928_v22 = vpop.f32.mrb[64].mxu0  ;;  %v9740_v27 = vsel %vm1241_vm3, %v9737_v45, %v9739_v5  ;;  %v9912_v15 = vrot.slane %v9910_v46, 1  ;;  %v18549_v25 = vshrl.u32 %v17555_v16, 16  ;;  %v15287_v45 = vld [vmem:[%s15959_s4 + $0x5a0] sm:$0xff]  }
 0x38a   : > { %v17931_v11 = vadd.f32 %v3467_v38, %v17852_v17  ;;  %14104 = vmatprep.subr.bf16.mxu0 %v15283_v43  ;;  %v17934_v36 = vpop.f32.mrb[65].mxu0  ;;  %v18550_v38 = vshll.u32 %v17555_v16, 16  ;;  %v5009_v5 = vor.u32 %v5008_v57, %v5005_v29  ;;  %v15289_v16 = vld [vmem:[%s15959_s4 + $0x5a8] sm:$0xff]   ;;  %v18551_v29 = vshrl.u32 %v16002_v24, 16 }
 0x38b   : > { %13421 = vmatmul.mubr.bf16.gmra.mrb[4].mxu1 %v4780_v9  ;;  %v13903_v3 = vpop.f32.mrb[66].mxu0  ;;  %v9917_v17 = vrot.slane %v18549_v25, 1  ;;  %v5001_v9 = vor.u32 %v5000_v32, %v4997_v18  ;;  %v15292_v32 = vld [vmem:[%s15959_s4 + $0xbb0] sm:$0xff]  }
 0x38c   : > { %13433 = vmatpush3.bf16.msra.mxu1 %v15282_v62  ;;  %13424 = vmatprep.mubr.bf16.mxu1 %v4789_v4  ;;  %v9918_v30 = vrot.slane %v18550_v38, 2  ;;  %v17942_v37 = vpop.f32.mrb[67].mxu0  ;;  %v15288_v62 = vld [vmem:[%s15959_s4 + $0xba0] sm:$0xff]   ;;  %v9916_v4 = vor.u32 %v9915_v2, %v9912_v15  ;;  %v5014_v57 = vrot.slane %v18551_v29, 1  ;;  %v15293_v15 = vld [vmem:[%s15959_s4 + $0x5b8] sm:$0xff]   ;;  %v18554_v2 = vshll.u32 %v17591_v50, 16 }
 0x38d   : > { %14105 = vmatpush3.bf16.msra.mxu0 %v15283_v43  ;;  %13434 = vmatprep.subr.bf16.mxu1 %v15284_v40  ;;  %v5010_v39 = vsel %vm1596_vm5, %v5001_v9, %v5009_v5  ;;  %v15290_v43 = vld [vmem:[%s15959_s4 + $0xba8] sm:$0xff]  }
 0x38e   : > { %14106 = vmatprep.subr.bf16.mxu0 %v15285_v23  ;;  %14093 = vmatmul.mubr.bf16.gmra.mrb[4].mxu0 %v9740_v27  ;;  %v9919_v46 = vor.u32 %v9918_v30, %v9917_v17  ;;  %v9888_v27 = vld [vmem:[%s15951_s16 + $0x3c] sm:$0x3]  ;;  %v9922_v25 = vrot.slane %v18554_v2, 2  ;;  %v18555_v17 = vshrl.u32 %v16013_v33, 16  ;;  %v15298_v2 = vld [vmem:[%s15959_s4 + $0x5c8] sm:$0xff]  }
 0x38f   : > { %14096 = vmatprep.mubr.bf16.mxu0 %v9742_v63  ;;  %v18553_v63 = vshrl.u32 %v17591_v50, 16  ;;  %v18558_v50 = vshll.u32 %v17602_v44, 16 }
 0x390   : > { %13435 = vmatpush3.bf16.msra.mxu1 %v15284_v40  ;;  %v9920_v18 = vsel %vm1596_vm5, %v9916_v4, %v9919_v46  ;;  %v15291_v40 = vld [vmem:[%s15959_s4 + $0x5b0] sm:$0xff]   ;;  %v5023_v38 = vrot.slane %v18555_v17, 1 }
 0x391   : > { %14107 = vmatpush3.bf16.msra.mxu0 %v15285_v23  ;;  %13436 = vmatprep.subr.bf16.mxu1 %v15287_v45  ;;  %v18552_v23 = vshll.u32 %v16002_v24, 16  ;;  %v9921_v3 = vrot.slane %v18553_v63, 1  ;;  %v18556_v24 = vshll.u32 %v16013_v33, 16  ;;  %v5042_v33 = vshll.u32 %v16033_v47, 16 }
 0x392   : > { %14108 = vmatprep.subr.bf16.mxu0 %v15288_v62 }
 0x393   : > { %13425 = vmatmul.mubr.bf16.gmra.mrb[92].mxu1 %v17905_v42  ;;  %v5017_v42 = vrot.slane %v18552_v23, 2  ;;  %v5026_v30 = vrot.slane %v18556_v24, 2  ;;  %v5044_v17 = vrot.slane %v5042_v33, 2  ;;  %v15301_v33 = vld [vmem:[%s15959_s4 + $0xbd0] sm:$0xff]  }
 0x394   : > { %13437 = vmatpush3.bf16.msra.mxu1 %v15287_v45  ;;  %13444 = vmatprep.mubr.bf16.mxu1 %v5010_v39  ;;  %v17969_v45 = vcombine.low %v17622_v0, %v9888_v27  ;;  %v15296_v39 = vld [vmem:[%s15959_s4 + $0x5c0] sm:$0xff]  }
 0x395   : > { %14109 = vmatpush3.bf16.msra.mxu0 %v15288_v62  ;;  %13438 = vmatprep.subr.bf16.mxu1 %v15289_v16  ;;  %v5018_v9 = vor.u32 %v5017_v42, %v5014_v57  ;;  %v18557_v62 = vshrl.u32 %v17602_v44, 16  ;;  %v15297_v0 = vld [vmem:[%s15959_s4 + $0xbc0] sm:$0xff]  }
 0x396   : > { %14110 = vmatprep.subr.bf16.mxu0 %v15290_v43  ;;  %14097 = vmatmul.mubr.bf16.gmra.mrb[92].mxu0 %v9741_v26  ;;  %v15294_v26 = vld [vmem:[%s15959_s4 + $0xbb8] sm:$0xff]   ;;  %v9934_v29 = vshrl.u32 %v17969_v45, 16  ;;  %v9937_v57 = vshll.u32 %v17969_v45, 16 }
 0x397   : > { %14116 = vmatprep.mubr.bf16.mxu0 %v9920_v18  ;;  %v9925_v4 = vrot.slane %v18557_v62, 1  ;;  %v5039_v18 = vshrl.u32 %v16033_v47, 16  ;;  %v5019_v44 = vsel %vm1596_vm5, %v5009_v5, %v5018_v9  ;;  %v18562_v5 = vshrl.u32 %v17629_v35, 16 }
 0x398   : > { %13439 = vmatpush3.bf16.msra.mxu1 %v15289_v16  ;;  %v9926_v16 = vrot.slane %v18558_v50, 2 }
 0x399   : > { %14111 = vmatpush3.bf16.msra.mxu0 %v15290_v43  ;;  %13440 = vmatprep.subr.bf16.mxu1 %v15291_v40  ;;  %v9923_v43 = vor.u32 %v9922_v25, %v9921_v3  ;;  %v5041_v25 = vrot.slane %v5039_v18, 1  ;;  %v9929_v24 = vrot.slane %v18562_v5, 1  ;;  %v18565_v5 = vshll.u32 %v17679_v21, 16 }
 0x39a   : > { %14112 = vmatprep.subr.bf16.mxu0 %v15292_v32  ;;  %v9927_v3 = vor.u32 %v9926_v16, %v9925_v4  ;;  %v9939_v4 = vrot.slane %v9937_v57, 2  ;;  %v15300_v16 = vld [vmem:[%s15959_s4 + $0x5d0] sm:$0xff]  }
 0x39b   : > { %v9924_v47 = vsel %vm1596_vm5, %v9919_v46, %v9923_v43  ;;  %v5045_v18 = vor.u32 %v5044_v17, %v5041_v25 }
 0x39c   : > { %13441 = vmatpush3.bf16.msra.mxu1 %v15291_v40  ;;  %v5027_v40 = vor.u32 %v5026_v30, %v5023_v38  ;;  %v15299_v38 = vld [vmem:[%s15959_s4 + $0xbc8] sm:$0xff]   ;;  %v18563_v30 = vshll.u32 %v17629_v35, 16  ;;  %v9928_v50 = vsel %vm1596_vm5, %v9923_v43, %v9927_v3 }
 0x39d   : > { %14113 = vmatpush3.bf16.msra.mxu0 %v15292_v32  ;;  %13442 = vmatprep.subr.bf16.mxu1 %v15293_v15  ;;  %v18559_v32 = vld [vmem:[#allocation31_spill] sm:$0xff] }
 0x39e   : > { %14114 = vmatprep.subr.bf16.mxu0 %v15294_v26  ;;  %v18560_v23 = vshrl.u32 %v18559_v32, 16  ;;  %v18561_v27 = vshll.u32 %v18559_v32, 16  ;;  %v9930_v62 = vrot.slane %v18563_v30, 2  ;;  %v10109_v32 = vshrl.u32 %v17860_v6, 16 }
 0x3a0   : > { %13443 = vmatpush3.bf16.msra.mxu1 %v15293_v15  ;;  %v5032_v42 = vrot.slane %v18560_v23, 1  ;;  %v5035_v63 = vrot.slane %v18561_v27, 2  ;;  %v5028_v15 = vsel %vm1596_vm5, %v5018_v9, %v5027_v40  ;;  %v10112_v23 = vshll.u32 %v17860_v6, 16 }
 0x3a1   : > { %14115 = vmatpush3.bf16.msra.mxu0 %v15294_v26  ;;  %13456 = vmatprep.subr.bf16.mxu1 %v15296_v39  ;;  %v9936_v26 = vrot.slane %v9934_v29, 1  ;;  %v9931_v29 = vor.u32 %v9930_v62, %v9929_v24  ;;  %v10111_v17 = vrot.slane %v10109_v32, 1  ;;  %v10117_v24 = vrot.slane %v18565_v5, 2  ;;  %v18566_v62 = vld [vmem:[#allocation32_spill] sm:$0xff] }
 0x3a2   : > { %14128 = vmatprep.subr.bf16.mxu0 %v15297_v0  ;;  %v5036_v46 = vor.u32 %v5035_v63, %v5032_v42  ;;  %v18567_v32 = vshrl.u32 %v17709_v12, 16  ;;  %v15358_v5 = vld [vmem:[%s15951_s16 + $0x9c] sm:$0xff]  }
 0x3a3   : > { %13445 = vmatmul.mubr.bf16.vlgmr.msra.gmra.mrb[0].mxu1 %v5019_v44  ;;  %v9932_v6 = vsel %vm1596_vm5, %v9927_v3, %v9931_v29  ;;  %v15304_v3 = vld [vmem:[%s15959_s4 + $0x5e0] sm:$0xff]  }
 0x3a4   : > { %13457 = vmatpush3.bf16.msra.mxu1 %v15296_v39  ;;  %14117 = vmatmul.mubr.bf16.vlgmr.msra.gmra.mrb[0].mxu0 %v9924_v47  ;;  %v9940_v39 = vor.u32 %v9939_v4, %v9936_v26  ;;  %v5046_v27 = vsel %vm1596_vm5, %v5036_v46, %v5045_v18  ;;  %v5213_v26 = vrot.slane %v18566_v62, 2  ;;  %v15356_v4 = vld [vmem:[%s15951_s16 + $0x8c] sm:$0xff]  }
 0x3a5   : > { %14129 = vmatpush3.bf16.msra.mxu0 %v15297_v0  ;;  %13458 = vmatprep.subr.bf16.mxu1 %v15298_v2  ;;  %v5037_v0 = vsel %vm1596_vm5, %v5027_v40, %v5036_v46  ;;  %v5214_v46 = vrot.slane %v15356_v4, 2 }
 0x3a6   : > { %v13258_v9 = vpop.f32.mrb[68].mxu1  ;;  %14130 = vmatprep.subr.bf16.mxu0 %v15299_v38  ;;  %13448 = vmatprep.mubr.bf16.mxu1 %v5028_v15  ;;  %v9941_v40 = vsel %vm1596_vm5, %v9931_v29, %v9940_v39 }
 0x3a7   : > { %v17998_v44 = vadd.f32 %v13258_v9, %v17911_v54  ;;  %v3721_v35 = vpop.f32.mrb[69].mxu1  ;;  %14120 = vmatprep.mubr.bf16.mxu0 %v9928_v50  ;;  %v15302_v54 = vld [vmem:[%s15959_s4 + $0x5d8] sm:$0xff]   ;;  %v15305_v50 = vld [vmem:[%s15959_s4 + $0xbe0] sm:$0xff]   ;;  %v15306_v9 = vld [vmem:[%s15959_s4 + $0x5e8] sm:$0xff]  }
 0x3a8   : > { %v18001_v57 = vadd.f32 %v3721_v35, %v17917_v28  ;;  %v13259_v43 = vpop.f32.mrb[70].mxu1  ;;  %13459 = vmatpush3.bf16.msra.mxu1 %v15298_v2  ;;  %v15303_v28 = vld [vmem:[%s15959_s4 + $0xbd8] sm:$0xff]   ;;  %v15307_v35 = vld [vmem:[%s15959_s4 + $0xbe8] sm:$0xff]  }
 0x3a9   : > { %14131 = vmatpush3.bf16.msra.mxu0 %v15299_v38  ;;  %v3724_v42 = vpop.f32.mrb[71].mxu1  ;;  %13460 = vmatprep.subr.bf16.mxu1 %v15300_v16  ;;  %v18008_v63 = vpop.f32.mrb[68].mxu0  ;;  %v10114_v38 = vrot.slane %v10112_v23, 2  ;;  %v15309_v43 = vld [vmem:[%s15959_s4 + $0x5f0] sm:$0xff]   ;;  %v10120_v23 = vrot.slane %v18567_v32, 1 }
 0x3aa   : > { %v18011_v47 = vadd.f32 %v3724_v42, %v17931_v11  ;;  %14132 = vmatprep.subr.bf16.mxu0 %v15301_v33  ;;  %v18014_v2 = vpop.f32.mrb[69].mxu0  ;;  %v18564_v11 = vshrl.u32 %v17679_v21, 16  ;;  %v18568_v42 = vshll.u32 %v17709_v12, 16 }
 0x3ab   : > { %13449 = vmatmul.mubr.bf16.gmra.mrb[4].mxu1 %v5037_v0  ;;  %v13931_v25 = vpop.f32.mrb[70].mxu0  ;;  %v15310_v0 = vld [vmem:[%s15959_s4 + $0xbf0] sm:$0xff]  }
 0x3ac   : > { %13461 = vmatpush3.bf16.msra.mxu1 %v15300_v16  ;;  %13452 = vmatprep.mubr.bf16.mxu1 %v5046_v27  ;;  %v10116_v15 = vrot.slane %v18564_v11, 1  ;;  %v18022_v30 = vpop.f32.mrb[71].mxu0  ;;  %v10115_v16 = vor.u32 %v10114_v38, %v10111_v17  ;;  %v10087_v27 = vld [vmem:[%s15951_s16 + $0x7c] sm:$0x3]  ;;  %v18570_v17 = vshll.u32 %v17720_v52, 16 }
 0x3ad   : > { %14133 = vmatpush3.bf16.msra.mxu0 %v15301_v33  ;;  %13462 = vmatprep.subr.bf16.mxu1 %v15302_v54  ;;  %v5215_v33 = vsel %vm3767_vm0, %v5213_v26, %v5214_v46  ;;  %v12036_v11 = vcombine.low %v17738_v20, %v10087_v27  ;;  %v15314_v20 = vld [vmem:[%s15959_s4 + $0xc08] sm:$0xff]  }
 0x3ae   : > { %14134 = vmatprep.subr.bf16.mxu0 %v15303_v28  ;;  %14121 = vmatmul.mubr.bf16.gmra.mrb[4].mxu0 %v9932_v6  ;;  %v10118_v21 = vor.u32 %v10117_v24, %v10116_v15  ;;  %v15357_v6 = vld [vmem:[%s15951_s16 + $0x94] sm:$0xff]   ;;  %v10125_v38 = vrot.slane %v18570_v17, 2  ;;  %v15313_v15 = vld [vmem:[%s15959_s4 + $0xc00] sm:$0xff]   ;;  %v5218_v24 = vrot.slane %v15358_v5, 2 }
 0x3af   : > { %14124 = vmatprep.mubr.bf16.mxu0 %v9941_v40  ;;  %v18569_v40 = vshrl.u32 %v17720_v52, 16  ;;  %v10133_v26 = vshrl.u32 %v12036_v11, 16  ;;  %v10136_v4 = vshll.u32 %v12036_v11, 16 }
 0x3b0   : > { %13463 = vmatpush3.bf16.msra.mxu1 %v15302_v54  ;;  %v10119_v29 = vsel %vm1596_vm5, %v10115_v16, %v10118_v21  ;;  %v10121_v54 = vrot.slane %v18568_v42, 2 }
 0x3b1   : > { %14135 = vmatpush3.bf16.msra.mxu0 %v15303_v28  ;;  %13464 = vmatprep.subr.bf16.mxu1 %v15304_v3  ;;  %v15312_v28 = vld [vmem:[%s15959_s4 + $0xbf8] sm:$0xff]   ;;  %v10124_v25 = vrot.slane %v18569_v40, 1  ;;  %v10286_v40 = vld [vmem:[%s15951_s16 + $0x10] sm:$0xc] }
 0x3b2   : > { %14136 = vmatprep.subr.bf16.mxu0 %v15305_v50  ;;  %v10122_v12 = vor.u32 %v10121_v54, %v10120_v23  ;;  %v15315_v23 = vld [vmem:[%s15959_s4 + $0xc10] sm:$0xff]   ;;  %v5222_v54 = vrot.slane %v17880_v10, 2 }
 0x3b3   : > { %13453 = vmatmul.mubr.bf16.gmra.mrb[96].mxu1 %v5045_v18  ;;  %v15311_v18 = vld [vmem:[%s15959_s4 + $0x5f8] sm:$0xff]   ;;  %v10126_v62 = vor.u32 %v10125_v38, %v10124_v25 }
 0x3b4   : > { %13465 = vmatpush3.bf16.msra.mxu1 %v15304_v3  ;;  %13472 = vmatprep.mubr.bf16.mxu1 %v5215_v33  ;;  %v10123_v52 = vsel %vm1596_vm5, %v10118_v21, %v10122_v12  ;;  %v10135_v21 = vrot.slane %v10133_v26, 1  ;;  %v15361_v26 = vld [vmem:[%s15951_s16 + $0x18] sm:$0xff]  }
 0x3b5   : > { %14137 = vmatpush3.bf16.msra.mxu0 %v15305_v50  ;;  %13466 = vmatprep.subr.bf16.mxu1 %v15306_v9  ;;  %v18571_v50 = vshrl.u32 %v17743_v14, 16 }
 0x3b6   : > { %14138 = vmatprep.subr.bf16.mxu0 %v15307_v35  ;;  %14125 = vmatmul.mubr.bf16.gmra.mrb[96].mxu0 %v9940_v39  ;;  %v5216_v39 = vrot.slane %v15357_v6, 2 }
 0x3b7   : > { %14144 = vmatprep.mubr.bf16.mxu0 %v10119_v29  ;;  %v10128_v16 = vrot.slane %v18571_v50, 1  ;;  %v15359_v29 = vld [vmem:[%s15951_s16 + $0xa4] sm:$0xff]  }
 0x3b8   : > { %13467 = vmatpush3.bf16.msra.mxu1 %v15306_v9  ;;  %v5217_v3 = vsel %vm3767_vm0, %v5214_v46, %v5216_v39  ;;  %v18572_v9 = vshll.u32 %v17743_v14, 16  ;;  %v5219_v46 = vsel %vm3767_vm0, %v5216_v39, %v5218_v24  ;;  %v15363_v50 = vld [vmem:[%s15951_s16 + $0x28] sm:$0xff]  }
 0x3b9   : > { %14139 = vmatpush3.bf16.msra.mxu0 %v15307_v35  ;;  %13468 = vmatprep.subr.bf16.mxu1 %v15309_v43  ;;  %v10127_v35 = vsel %vm1596_vm5, %v10122_v12, %v10126_v62  ;;  %v15360_v12 = vld [vmem:[%s15951_s16 + $0x14] sm:$0xf] }
 0x3ba   : > { %14140 = vmatprep.subr.bf16.mxu0 %v15310_v0  ;;  %v10129_v33 = vrot.slane %v18572_v9, 2  ;;  %v15318_v9 = vld [vmem:[%s15959_s4 + $0xc28] sm:$0xff]  }
 0x3bc   : > { %13469 = vmatpush3.bf16.msra.mxu1 %v15309_v43  ;;  %v5220_v43 = vrot.slane %v15359_v29, 2  ;;  %v10130_v32 = vor.u32 %v10129_v33, %v10128_v16  ;;  %v10312_v16 = vrot.slane %v15363_v50, 2  ;;  %v15321_v29 = vld [vmem:[%s15959_s4 + $0xc38] sm:$0xff]  }
 0x3bd   : > { %14141 = vmatpush3.bf16.msra.mxu0 %v15310_v0  ;;  %13470 = vmatprep.subr.bf16.mxu1 %v15311_v18  ;;  %v10138_v0 = vrot.slane %v10136_v4, 2  ;;  %v10308_v4 = vrot.slane %v15361_v26, 2 }
 0x3be   : > { %14142 = vmatprep.subr.bf16.mxu0 %v15312_v28  ;;  %v5221_v6 = vsel %vm3767_vm0, %v5218_v24, %v5220_v43  ;;  %v10131_v17 = vsel %vm1596_vm5, %v10126_v62, %v10130_v32  ;;  %v5223_v11 = vsel %vm3767_vm0, %v5220_v43, %v5222_v54  ;;  %v15364_v43 = vld [vmem:[%s15951_s16 + $0x30] sm:$0xff]  }
 0x3bf   : > { %v10139_v39 = vor.u32 %v10138_v0, %v10135_v21  ;;  %v10314_v21 = vrot.slane %v15364_v43, 2  ;;  %v10316_v0 = vrot.slane %v17969_v45, 2 }
 0x3c0   : > { %13471 = vmatpush3.bf16.msra.mxu1 %v15311_v18 }
 0x3c1   : > { %14143 = vmatpush3.bf16.msra.mxu0 %v15312_v28  ;;  %14184 = vmatprep.subr.bf16.mxu1 %v15313_v15  ;;  %v10140_v24 = vsel %vm1596_vm5, %v10130_v32, %v10139_v39  ;;  %v10315_v32 = vsel %vm3767_vm0, %v10312_v16, %v10314_v21 }
 0x3c2   : > { %14156 = vmatprep.subr.bf16.mxu0 %v15313_v15 }
 0x3c3   : > { %13473 = vmatmul.mubr.bf16.vlgmr.msra.gmra.mrb[0].mxu1 %v5217_v3 }
 0x3c4   : > { %14145 = vmatmul.mubr.bf16.vlgmr.msra.gmra.mrb[0].mxu0 %v10123_v52  ;;  %14192 = vmatpush3.bf16.msra.mxu1 %v15313_v15  ;;  %v15362_v52 = vld [vmem:[%s15951_s16 + $0x20] sm:$0xff]  }
 0x3c5   : > { %14157 = vmatpush3.bf16.msra.mxu0 %v15313_v15  ;;  %14185 = vmatprep.subr.bf16.mxu1 %v15314_v20  ;;  %v12061_v15 = vcombine.low %v10286_v40, %v15360_v12 }
 0x3c6   : > { %v13286_v18 = vpop.f32.mrb[72].mxu1  ;;  %14158 = vmatprep.subr.bf16.mxu0 %v15314_v20  ;;  %13476 = vmatprep.mubr.bf16.mxu1 %v5219_v46 }
 0x3c7   : > { %v18061_v14 = vadd.f32 %v13286_v18, %v17998_v44  ;;  %v3899_v42 = vpop.f32.mrb[73].mxu1  ;;  %14148 = vmatprep.mubr.bf16.mxu0 %v10127_v35  ;;  %v15316_v44 = vld [vmem:[%s15959_s4 + $0xc18] sm:$0xff]   ;;  %v10307_v62 = vrot.slane %v12061_v15, 2  ;;  %v15320_v35 = vld [vmem:[%s15959_s4 + $0xc30] sm:$0xff]   ;;  %v10317_v18 = vsel %vm3767_vm0, %v10314_v21, %v10316_v0 }
 0x3c8   : > { %v18065_v27 = vadd.f32 %v3899_v42, %v18001_v57  ;;  %v13287_v28 = vpop.f32.mrb[74].mxu1  ;;  %14193 = vmatpush3.bf16.msra.mxu1 %v15314_v20 }
 0x3c9   : > { %14159 = vmatpush3.bf16.msra.mxu0 %v15314_v20  ;;  %v3902_v25 = vpop.f32.mrb[75].mxu1  ;;  %14186 = vmatprep.subr.bf16.mxu1 %v15315_v23  ;;  %v18071_v38 = vpop.f32.mrb[72].mxu0  ;;  %v10310_v20 = vrot.slane %v15362_v52, 2  ;;  %v10309_v33 = vsel %vm3767_vm0, %v10307_v62, %v10308_v4 }
 0x3ca   : > { %v18074_v10 = vadd.f32 %v3902_v25, %v18011_v47  ;;  %14160 = vmatprep.subr.bf16.mxu0 %v15315_v23  ;;  %v18076_v57 = vpop.f32.mrb[73].mxu0  ;;  %v15317_v47 = vld [vmem:[%s15959_s4 + $0xc20] sm:$0xff]  }
 0x3cb   : > { %13477 = vmatmul.mubr.bf16.gmra.mrb[4].mxu1 %v5221_v6  ;;  %v13959_v5 = vpop.f32.mrb[74].mxu0  ;;  %v10313_v46 = vsel %vm3767_vm0, %v10310_v20, %v10312_v16 }
 0x3cc   : > { %14149 = vmatmul.mubr.bf16.gmra.mrb[4].mxu0 %v10131_v17  ;;  %14194 = vmatpush3.bf16.msra.mxu1 %v15315_v23  ;;  %v18081_v3 = vpop.f32.mrb[75].mxu0 }
 0x3cd   : > { %14161 = vmatpush3.bf16.msra.mxu0 %v15315_v23  ;;  %14187 = vmatprep.subr.bf16.mxu1 %v15316_v44  ;;  %v10311_v23 = vsel %vm3767_vm0, %v10308_v4, %v10310_v20 }
 0x3ce   : > { %14162 = vmatprep.subr.bf16.mxu0 %v15316_v44  ;;  %13480 = vmatprep.mubr.bf16.mxu1 %v5223_v11 }
 0x3cf   : > { %14152 = vmatprep.mubr.bf16.mxu0 %v10140_v24 }
 0x3d0   : > { %14195 = vmatpush3.bf16.msra.mxu1 %v15316_v44 }
 0x3d1   : > { %14163 = vmatpush3.bf16.msra.mxu0 %v15316_v44  ;;  %14188 = vmatprep.subr.bf16.mxu1 %v15317_v47 }
 0x3d2   : > { %14164 = vmatprep.subr.bf16.mxu0 %v15317_v47 }
 0x3d3   : > { %13481 = vmatmul.mubr.bf16.gmra.mrb[100].mxu1 %v5222_v54 }
 0x3d4   : > { %14196 = vmatpush3.bf16.msra.mxu1 %v15317_v47  ;;  %14153 = vmatmul.mubr.bf16.gmra.mrb[100].mxu0 %v10139_v39 }
 0x3d5   : > { %14165 = vmatpush3.bf16.msra.mxu0 %v15317_v47  ;;  %14189 = vmatprep.subr.bf16.mxu1 %v15318_v9 }
 0x3d6   : > { %14166 = vmatprep.subr.bf16.mxu0 %v15318_v9  ;;  %14172 = vmatprep.mubr.bf16.mxu0 %v10309_v33 }
 0x3d7   : > { %14176 = vmatprep.mubr.bf16.mxu1 %v10313_v46 }
 0x3d8   : > { %14197 = vmatpush3.bf16.msra.mxu1 %v15318_v9 }
 0x3d9   : > { %14167 = vmatpush3.bf16.msra.mxu0 %v15318_v9  ;;  %14190 = vmatprep.subr.bf16.mxu1 %v15320_v35 }
 0x3da   : > { %14168 = vmatprep.subr.bf16.mxu0 %v15320_v35 }
 0x3dc   : > { %14198 = vmatpush3.bf16.msra.mxu1 %v15320_v35 }
 0x3dd   : > { %14169 = vmatpush3.bf16.msra.mxu0 %v15320_v35  ;;  %14191 = vmatprep.subr.bf16.mxu1 %v15321_v29 }
 0x3de   : > { %14170 = vmatprep.subr.bf16.mxu0 %v15321_v29 }
 0x3e0   : > { %14199 = vmatpush3.bf16.msra.mxu1 %v15321_v29 }
 0x3e1   : > { %14171 = vmatpush3.bf16.msra.mxu0 %v15321_v29 }
 0x3e3   : > { %14177 = vmatmul.mubr.bf16.vlgmr.msra.gmra.mrb[104].mxu1 %v10315_v32 }
 0x3e4   : > { %14173 = vmatmul.mubr.bf16.vlgmr.msra.gmra.mrb[0].mxu0 %v10311_v23  ;;  %14180 = vmatprep.mubr.bf16.mxu1 %v10317_v18 }
 0x3e6   : > { %v13314_v42 = vpop.f32.mrb[76].mxu1 }
 0x3e7   : > { %v4100_v54 = vadd.f32 %v13314_v42, %v18061_v14  ;;  %v4076_v28 = vpop.f32.mrb[77].mxu1 }
 0x3e8   : > { %v4098_v6 = vadd.f32 %v4076_v28, %v18065_v27  ;;  %v13315_v39 = vpop.f32.mrb[78].mxu1 }
 0x3e9   : > { %v4079_v45 = vpop.f32.mrb[79].mxu1  ;;  %v18099_v40 = vpop.f32.mrb[76].mxu0 }
 0x3ea   : > { %v4099_v25 = vadd.f32 %v4079_v45, %v18074_v10  ;;  %v18102_v17 = vpop.f32.mrb[77].mxu0 }
 0x3eb   : > { %14181 = vmatmul.mubr.bf16.gmra.mrb[108].mxu1 %v10316_v0  ;;  %v13987_v44 = vpop.f32.mrb[78].mxu0 }
 0x3ec   : > { %v18104_v11 = vpop.f32.mrb[79].mxu0 }
 0x406   : > { %v13342_v12 = vpop.f32.mrb[80].mxu1 }
 0x407   : > { %v4300_v15 = vadd.f32 %v13342_v12, %v4100_v54  ;;  %v4276_v5 = vpop.f32.mrb[81].mxu1 }
 0x408   : > { %v4298_v24 = vadd.f32 %v4276_v5, %v4098_v6  ;;  %v13343_v14 = vpop.f32.mrb[82].mxu1 }
 0x409   : > { %v4279_v47 = vpop.f32.mrb[83].mxu1  ;;  %v18106_v62 = vpop.f32.mrb[80].mxu0 }
 0x40a   : > { %v4299_v27 = vadd.f32 %v4279_v47, %v4099_v25  ;;  %v18108_v26 = vpop.f32.mrb[81].mxu0 }
 0x40b   : > { %v14015_v4 = vpop.f32.mrb[82].mxu0 }
 0x40c   : > { %v18110_v52 = vpop.f32.mrb[83].mxu0 }
 0x40d   : > { %18573 = vst [vmem:[#allocation31_spill] sm:$0xff] %v18110_v52 }
 0x426   : > { %v13370_v10 = vpop.f32.mrb[84].mxu1 }
 0x427   : > { %v4499_v20 = vadd.f32 %v13370_v10, %v4300_v15  ;;  %v4475_v50 = vpop.f32.mrb[85].mxu1 }
 0x428   : > { %v4497_v16 = vadd.f32 %v4475_v50, %v4298_v24  ;;  %v13371_v9 = vpop.f32.mrb[86].mxu1 }
 0x429   : > { %v4478_v33 = vpop.f32.mrb[87].mxu1  ;;  %v18112_v46 = vpop.f32.mrb[84].mxu0 }
 0x42a   : > { %v4498_v35 = vadd.f32 %v4478_v33, %v4299_v27  ;;  %v18114_v29 = vpop.f32.mrb[85].mxu0 }
 0x42b   : > { %18574 = vst [vmem:[#allocation32_spill] sm:$0xff] %v18114_v29  ;;  %v14043_v43 = vpop.f32.mrb[86].mxu0 }
 0x42c   : > { %v18116_v21 = vpop.f32.mrb[87].mxu0 }
 0x42d   : > { %18575 = vst [vmem:[#allocation57_spill] sm:$0xff] %v18116_v21 }
 0x446   : > { %v13398_v0 = vpop.f32.mrb[88].mxu1 }
 0x447   : > { %v4677_v32 = vadd.f32 %v13398_v0, %v4499_v20  ;;  %v4653_v23 = vpop.f32.mrb[89].mxu1 }
 0x448   : > { %v4675_v18 = vadd.f32 %v4653_v23, %v4497_v16  ;;  %v13399_v42 = vpop.f32.mrb[90].mxu1 }
 0x449   : > { %v4656_v54 = vpop.f32.mrb[91].mxu1  ;;  %v18118_v28 = vpop.f32.mrb[88].mxu0 }
 0x44a   : > { %18576 = vst [vmem:[#allocation58_spill] sm:$0xff] %v18118_v28  ;;  %v4676_v6 = vadd.f32 %v4656_v54, %v4498_v35  ;;  %v18120_v39 = vpop.f32.mrb[89].mxu0 }
 0x44b   : > { %18577 = vst [vmem:[#allocation59_spill] sm:$0xff] %v18120_v39  ;;  %v14071_v45 = vpop.f32.mrb[90].mxu0 }
 0x44c   : > { %v18122_v25 = vpop.f32.mrb[91].mxu0 }
 0x44d   : > { %18578 = vst [vmem:[#allocation60_spill] sm:$0xff] %v18122_v25 }
 0x466   : > { %v13426_v44 = vpop.f32.mrb[92].mxu1 }
 0x467   : > { %v4934_v12 = vadd.f32 %v13426_v44, %v4677_v32  ;;  %v4910_v15 = vpop.f32.mrb[93].mxu1 }
 0x468   : > { %v4932_v5 = vadd.f32 %v4910_v15, %v4675_v18  ;;  %v13427_v24 = vpop.f32.mrb[94].mxu1  ;;  %v311_v15 = vld [vmem:[#allocation2 + $0x30] sm:$0xff] }
 0x469   : > { %v4913_v14 = vpop.f32.mrb[95].mxu1  ;;  %v18124_v47 = vpop.f32.mrb[92].mxu0  ;;  %v309_v24 = vld [vmem:[#allocation2 + $0x20] sm:$0xff] }
 0x46a   : > { %18579 = vst [vmem:[#allocation61_spill] sm:$0xff] %v18124_v47  ;;  %v4933_v27 = vadd.f32 %v4913_v14, %v4676_v6  ;;  %v18126_v4 = vpop.f32.mrb[93].mxu0  ;;  %v312_v14 = vld [vmem:[#allocation2 + $0x38] sm:$0xff] }
 0x46b   : > { %18580 = vst [vmem:[#allocation62_spill] sm:$0xff] %v18126_v4  ;;  %v14099_v10 = vpop.f32.mrb[94].mxu0 }
 0x46c   : > { %v18128_v20 = vpop.f32.mrb[95].mxu0 }
 0x46d   : > { %18581 = vst [vmem:[#allocation63_spill] sm:$0xff] %v18128_v20 }
 0x486   : > { %v13454_v50 = vpop.f32.mrb[96].mxu1 }
 0x487   : > { %v5191_v16 = vadd.f32 %v13454_v50, %v4934_v12  ;;  %v5167_v9 = vpop.f32.mrb[97].mxu1 }
 0x488   : > { %v5189_v33 = vadd.f32 %v5167_v9, %v4932_v5  ;;  %v13455_v35 = vpop.f32.mrb[98].mxu1  ;;  %v310_v9 = vld [vmem:[#allocation2 + $0x28] sm:$0xff] }
 0x489   : > { %v5170_v43 = vpop.f32.mrb[99].mxu1  ;;  %v18130_v0 = vpop.f32.mrb[96].mxu0 }
 0x48a   : > { %18582 = vst [vmem:[#allocation64_spill] sm:$0xff] %v18130_v0  ;;  %v5190_v32 = vadd.f32 %v5170_v43, %v4933_v27  ;;  %v18132_v23 = vpop.f32.mrb[97].mxu0 }
 0x48b   : > { %18583 = vst [vmem:[#allocation65_spill] sm:$0xff] %v18132_v23  ;;  %v14127_v18 = vpop.f32.mrb[98].mxu0 }
 0x48c   : > { %v18134_v42 = vpop.f32.mrb[99].mxu0 }
 0x48d   : > { %18584 = vst [vmem:[#allocation66_spill] sm:$0xff] %v18134_v42 }
 0x496   : > { %v13474_v54 = vpop.f32.mrb[0].mxu1 }
 0x497   : > { %v5312_v6 = vpop.f32.mrb[1].mxu1 }
 0x498   : > { %v13475_v45 = vpop.f32.mrb[2].mxu1 }
 0x499   : > { %v18136_v44 = vpop.f32.mrb[3].mxu1 }
 0x49e   : > { %v13478_v12 = vpop.f32.mrb[4].mxu1 }
 0x49f   : > { %v14208_v5 = vadd.f32 %v13478_v12, %v311_v15  ;;  %v14150_v10 = vpop.f32.mrb[4].mxu0  ;;  %v5328_v50 = vpop.f32.mrb[5].mxu1 }
 0x4a0   : > { %v14211_v35 = vadd.f32 %v5328_v50, %v309_v24  ;;  %v10245_v27 = vpop.f32.mrb[5].mxu0  ;;  %v13479_v43 = vpop.f32.mrb[6].mxu1  ;;  %v18585_v50 = vld [vmem:[#allocation33_spill] sm:$0xff] }
 0x4a1   : > { %v14209_v20 = vadd.f32 %v14208_v5, %v14150_v10  ;;  %v14214_v18 = vadd.f32 %v13479_v43, %v312_v14  ;;  %v14151_v23 = vpop.f32.mrb[6].mxu0  ;;  %v5331_v42 = vpop.f32.mrb[7].mxu1  ;;  %v18586_v43 = vld [vmem:[#allocation34_spill] sm:$0xff] }
 0x4a2   : > { %v14212_v0 = vadd.f32 %v14211_v35, %v10245_v27  ;;  %v14217_v25 = vadd.f32 %v5331_v42, %v310_v9  ;;  %v10248_v4 = vpop.f32.mrb[7].mxu0 }
 0x4a3   : > { %v14215_v47 = vadd.f32 %v14214_v18, %v14151_v23  ;;  %v18588_v23 = vld [vmem:[#allocation37_spill] sm:$0xff] }
 0x4a4   : > { %v18138_v21 = vadd.f32 %v14217_v25, %v10248_v4  ;;  %v18587_v25 = vld [vmem:[#allocation36_spill] sm:$0xff] }
 0x4a6   : > { %v13482_v39 = vpop.f32.mrb[100].mxu1 }
 0x4a7   : > { %v5368_v28 = vadd.f32 %v13482_v39, %v5191_v16  ;;  %v5344_v52 = vpop.f32.mrb[101].mxu1  ;;  %v18140_v15 = vpop.f32.mrb[100].mxu0  ;;  %v18589_v16 = vld [vmem:[#allocation35_spill] sm:$0xff] }
 0x4a8   : > { %v5366_v12 = vadd.f32 %v5344_v52, %v5189_v33  ;;  %v13483_v29 = vpop.f32.mrb[102].mxu1  ;;  %v18142_v24 = vpop.f32.mrb[101].mxu0  ;;  %v18590_v33 = vld [vmem:[#allocation38_spill] sm:$0xff] }
 0x4a9   : > { %v5545_v5 = vadd.f32 %v18585_v50, %v5368_v28  ;;  %v5347_v14 = vpop.f32.mrb[103].mxu1  ;;  %v14155_v10 = vpop.f32.mrb[102].mxu0 }
 0x4aa   : > { %v5543_v35 = vadd.f32 %v18586_v43, %v5366_v12  ;;  %v5367_v42 = vadd.f32 %v5347_v14, %v5190_v32  ;;  %v18146_v9 = vpop.f32.mrb[103].mxu0  ;;  %v307_v10 = vld [vmem:[#allocation2 + $0x10] sm:$0xff] }
 0x4ab   : > { %v5744_v4 = vadd.f32 %v18587_v25, %v5545_v5 }
 0x4ac   : > { %v5742_v39 = vadd.f32 %v18588_v23, %v5543_v35  ;;  %v5544_v27 = vadd.f32 %v18589_v16, %v5367_v42  ;;  %v308_v35 = vld [vmem:[#allocation2 + $0x18] sm:$0xff]  ;;  %v18593_v16 = vld [vmem:[#allocation42_spill] sm:$0xff] }
 0x4ad   : > { %v5943_v52 = vadd.f32 %v16894_v59, %v5744_v4  ;;  %v305_v59 = vld [vmem:[#allocation2] sm:$0xff]  ;;  %v18591_v42 = vld [vmem:[#allocation39_spill] sm:$0xff]  ;;  %v306_v4 = vld [vmem:[#allocation2 + $0x8] sm:$0xff] }
 0x4ae   : > { %v5941_v29 = vadd.f32 %v16899_v41, %v5742_v39  ;;  %v5743_v18 = vadd.f32 %v18590_v33, %v5544_v27  ;;  %v14202_v39 = vadd.f32 %v5312_v6, %v305_v59  ;;  %v18594_v33 = vld [vmem:[#allocation43_spill] sm:$0xff]  ;;  %v18598_v59 = vld [vmem:[#allocation44_spill] sm:$0xff] }
 0x4af   : > { %v6120_v28 = vadd.f32 %v16965_v49, %v5943_v52 }
 0x4b0   : > { %v6118_v50 = vadd.f32 %v16971_v58, %v5941_v29  ;;  %v5942_v32 = vadd.f32 %v16902_v13, %v5743_v18  ;;  %v14200_v58 = vadd.f32 %v13474_v54, %v307_v10  ;;  %v18595_v18 = vld [vmem:[#allocation41_spill] sm:$0xff] }
 0x4b1   : > { %v6335_v12 = vadd.f32 %v17036_v1, %v6120_v28  ;;  %v18592_v1 = vld [vmem:[#allocation40_spill] sm:$0xff] }
 0x4b2   : > { %v6333_v5 = vadd.f32 %v17046_v56, %v6118_v50  ;;  %v6119_v14 = vadd.f32 %v16980_v34, %v5942_v32  ;;  %v14204_v34 = vadd.f32 %v13475_v45, %v308_v35 }
 0x4b3   : > { %v6550_v43 = vadd.f32 %v17126_v51, %v6335_v12  ;;  %v18596_v12 = vld [vmem:[#allocation45_spill] sm:$0xff] }
 0x4b4   : > { %v6548_v41 = vadd.f32 %v17135_v61, %v6333_v5  ;;  %v6334_v25 = vadd.f32 %v18591_v42, %v6119_v14 }
 0x4b5   : > { %v6770_v49 = vadd.f32 %v17237_v31, %v6550_v43  ;;  %v18597_v43 = vld [vmem:[#allocation46_spill] sm:$0xff] }
 0x4b6   : > { %v6768_v13 = vadd.f32 %v17244_v53, %v6548_v41  ;;  %v6549_v23 = vadd.f32 %v18592_v1, %v6334_v25  ;;  %v14178_v56 = vpop.f32.mrb[104].mxu1  ;;  %v14206_v53 = vadd.f32 %v18136_v44, %v306_v4  ;;  %v18599_v25 = vld [vmem:[#allocation48_spill] sm:$0xff] }
 0x4b7   : > { %v6989_v27 = vadd.f32 %v18593_v16, %v6770_v49  ;;  %v14174_v51 = vpop.f32.mrb[0].mxu0  ;;  %v14210_v52 = vadd.f32 %v14209_v20, %v14178_v56  ;;  %v10422_v29 = vpop.f32.mrb[105].mxu1 }
 0x4b8   : > { %v6987_v61 = vadd.f32 %v18594_v33, %v6768_v13  ;;  %v6769_v28 = vadd.f32 %v18595_v18, %v6549_v23  ;;  %v14201_v50 = vadd.f32 %v14200_v58, %v14174_v51  ;;  %v10406_v31 = vpop.f32.mrb[1].mxu0  ;;  %v14213_v54 = vadd.f32 %v14212_v0, %v10422_v29  ;;  %v14179_v32 = vpop.f32.mrb[106].mxu1  ;;  %v18600_v58 = vld [vmem:[#allocation49_spill] sm:$0xff]  ;;  %v18601_v13 = vld [vmem:[#allocation47_spill] sm:$0xff]  ;;  %v18604_v51 = vld [vmem:[#allocation52_spill] sm:$0xff] }
 0x4b9   : > { %v7157_v5 = vadd.f32 %v18596_v12, %v6989_v27  ;;  %10469 = vst [vmem:[#allocation2 + $0x30] sm:$0xff] %v14210_v52  ;;  %v14203_v6 = vadd.f32 %v14202_v39, %v10406_v31  ;;  %v14175_v45 = vpop.f32.mrb[2].mxu0  ;;  %v14216_v14 = vadd.f32 %v14215_v47, %v14179_v32  ;;  %v10425_v10 = vpop.f32.mrb[107].mxu1  ;;  %v18602_v23 = vld [vmem:[#allocation51_spill] sm:$0xff]  ;;  %v18603_v39 = vld [vmem:[#allocation50_spill] sm:$0xff]  ;;  %v18605_v29 = vld [vmem:[#allocation53_spill] sm:$0xff] }
 0x4ba   : > { %v7155_v20 = vadd.f32 %v18597_v43, %v6987_v61  ;;  %v6988_v35 = vadd.f32 %v18598_v59, %v6769_v28  ;;  %10465 = vst [vmem:[#allocation2 + $0x10] sm:$0xff] %v14201_v50  ;;  %10467 = vst [vmem:[#allocation2 + $0x20] sm:$0xff] %v14213_v54  ;;  %v14205_v41 = vadd.f32 %v14204_v34, %v14175_v45  ;;  %v10409_v42 = vpop.f32.mrb[3].mxu0  ;;  %v18609_v59 = vld [vmem:[#allocation32_spill] sm:$0xff] }
 0x4bb   : > { %v14219_v0 = vadd.f32 %v18138_v21, %v10425_v10  ;;  %v7325_v49 = vadd.f32 %v18599_v25, %v7157_v5  ;;  %10463 = vst [vmem:[#allocation2] sm:$0xff] %v14203_v6  ;;  %10470 = vst [vmem:[#allocation2 + $0x38] sm:$0xff] %v14216_v14  ;;  %v14207_v44 = vadd.f32 %v14206_v53, %v10409_v42  ;;  %v18607_v53 = vld [vmem:[#allocation55_spill] sm:$0xff]  ;;  %v18608_v6 = vld [vmem:[#allocation56_spill] sm:$0xff] }
 0x4bc   : > { %v7323_v4 = vadd.f32 %v18600_v58, %v7155_v20  ;;  %v7156_v47 = vadd.f32 %v18601_v13, %v6988_v35  ;;  %10466 = vst [vmem:[#allocation2 + $0x18] sm:$0xff] %v14205_v41  ;;  %v18610_v35 = vld [vmem:[#allocation31_spill] sm:$0xff]  ;;  %v18611_v41 = vld [vmem:[#allocation58_spill] sm:$0xff]  ;;  %v18614_v25 = vld [vmem:[#allocation61_spill] sm:$0xff] }
 0x4bd   : > { %10468 = vst [vmem:[#allocation2 + $0x28] sm:$0xff] %v14219_v0  ;;  %v7576_v1 = vadd.f32 %v17561_v7, %v7325_v49  ;;  %10464 = vst [vmem:[#allocation2 + $0x8] sm:$0xff] %v14207_v44  ;;  %v18606_v7 = vld [vmem:[#allocation54_spill] sm:$0xff]  ;;  %v18612_v42 = vld [vmem:[#allocation59_spill] sm:$0xff] }
 0x4be   : > { %v7574_v56 = vadd.f32 %v18602_v23, %v7323_v4  ;;  %v7324_v34 = vadd.f32 %v18603_v39, %v7156_v47  ;;  %v14182_v16 = vpop.f32.mrb[108].mxu1  ;;  %v18613_v0 = vld [vmem:[#allocation57_spill] sm:$0xff]  ;;  %v18615_v49 = vld [vmem:[#allocation62_spill] sm:$0xff]  ;;  %v18616_v44 = vld [vmem:[#allocation60_spill] sm:$0xff] }
 0x4bf   : > { %v7791_v21 = vadd.f32 %v17685_v60, %v7576_v1  ;;  %v10438_v27 = vpop.f32.mrb[109].mxu1  ;;  %v18617_v58 = vld [vmem:[#allocation64_spill] sm:$0xff]  ;;  %v18618_v4 = vld [vmem:[#allocation65_spill] sm:$0xff]  ;;  %v18619_v13 = vld [vmem:[#allocation63_spill] sm:$0xff] }
 0x4c0   : > { %v7575_v52 = vadd.f32 %v18604_v51, %v7324_v34  ;;  %v7789_v33 = vadd.f32 %v18605_v29, %v7574_v56  ;;  %v14183_v61 = vpop.f32.mrb[110].mxu1  ;;  %v18620_v56 = vld [vmem:[#allocation66_spill] sm:$0xff] }
 0x4c1   : > { %v8006_v18 = vadd.f32 %v17786_v19, %v7791_v21  ;;  %v10441_v28 = vpop.f32.mrb[111].mxu1  ;;  %v12071_v61 = vld [vmem:[#allocation8] ss:$0 sm:$0xff] (!%p12070_p13) }
 0x4c2   : > { %v8004_v50 = vadd.f32 %v17792_v8, %v7789_v33  ;;  %v7790_v31 = vadd.f32 %v18606_v7, %v7575_v52  ;;  %v10478_v29 = vld [vmem:[#allocation2] sm:$0xff] (!%p12070_p13) }
 0x4c3   : > { %v8225_v54 = vadd.f32 %v17849_v48, %v8006_v18  ;;  %v10496_v18 = vadd.f32 (!%p12070_p13), %v12071_v61, %v10478_v29  ;;  %v10482_v7 = vld [vmem:[#allocation2 + $0x20] sm:$0xff] (!%p12070_p13) }
 0x4c4   : > { %v8223_v32 = vadd.f32 %v17855_v55, %v8004_v50  ;;  %v8005_v12 = vadd.f32 %v18607_v53, %v7790_v31  ;;  %v10479_v33 = vld [vmem:[#allocation2 + $0x8] sm:$0xff] (!%p12070_p13)  ;;  %v10480_v50 = vld [vmem:[#allocation2 + $0x10] sm:$0xff] (!%p12070_p13) }
 0x4c5   : > { %v8444_v60 = vadd.f32 %v17928_v22, %v8225_v54  ;;  %v10498_v31 = vadd.f32 (!%p12070_p13), %v12071_v61, %v10480_v50  ;;  %v10483_v54 = vld [vmem:[#allocation2 + $0x28] sm:$0xff] (!%p12070_p13)  ;;  %v10507_v53 = vmax.f32 (!%p12070_p13), %v10496_v18, 0.0 }
 0x4c6   : > { %v8442_v5 = vadd.f32 %v17934_v36, %v8223_v32  ;;  %v8224_v45 = vadd.f32 %v18608_v6, %v8005_v12  ;;  %v10485_v32 = vld [vmem:[#allocation2 + $0x38] sm:$0xff] (!%p12070_p13)  ;;  %v10501_v12 = vadd.f32 (!%p12070_p13), %v12071_v61, %v10483_v54 }
 0x4c7   : > { %v8612_v14 = vadd.f32 %v18008_v63, %v8444_v60 }
 0x4c8   : > { %v8610_v19 = vadd.f32 %v18014_v2, %v8442_v5  ;;  %v8443_v8 = vadd.f32 %v17942_v37, %v8224_v45 }
 0x4c9   : > { %v8780_v10 = vadd.f32 %v18071_v38, %v8612_v14  ;;  %v10509_v14 = vmax.f32 (!%p12070_p13), %v10498_v31, 0.0 }
 0x4ca   : > { %v8778_v48 = vadd.f32 %v18076_v57, %v8610_v19  ;;  %v8611_v55 = vadd.f32 %v18022_v30, %v8443_v8 }
 0x4cb   : > { %v9031_v43 = vadd.f32 %v18099_v40, %v8780_v10  ;;  %v10503_v10 = vadd.f32 (!%p12070_p13), %v12071_v61, %v10485_v32 }
 0x4cc   : > { %v9029_v22 = vadd.f32 %v18102_v17, %v8778_v48  ;;  %v8779_v36 = vadd.f32 %v18081_v3, %v8611_v55  ;;  %v10512_v55 = vmax.f32 (!%p12070_p13), %v10501_v12, 0.0 }
 0x4cd   : > { %v9282_v20 = vadd.f32 %v18106_v62, %v9031_v43 }
 0x4ce   : > { %v9280_v63 = vadd.f32 %v18108_v26, %v9029_v22  ;;  %v9030_v2 = vadd.f32 %v18104_v11, %v8779_v36 }
 0x4cf   : > { %v9533_v37 = vadd.f32 %v18112_v46, %v9282_v20  ;;  %v10514_v20 = vmax.f32 (!%p12070_p13), %v10503_v10, 0.0 }
 0x4d0   : > { %v9531_v38 = vadd.f32 %v18609_v59, %v9280_v63  ;;  %v9281_v57 = vadd.f32 %v18610_v35, %v9030_v2 }
 0x4d1   : > { %v9710_v30 = vadd.f32 %v18611_v41, %v9533_v37 }
 0x4d2   : > { %v9708_v40 = vadd.f32 %v18612_v42, %v9531_v38  ;;  %v9532_v17 = vadd.f32 %v18613_v0, %v9281_v57 }
 0x4d3   : > { %v9887_v3 = vadd.f32 %v18614_v25, %v9710_v30 }
 0x4d4   : > { %v9885_v62 = vadd.f32 %v18615_v49, %v9708_v40  ;;  %v9709_v26 = vadd.f32 %v18616_v44, %v9532_v17 }
 0x4d5   : > { %v10086_v11 = vadd.f32 %v18617_v58, %v9887_v3 }
 0x4d6   : > { %v10084_v46 = vadd.f32 %v18618_v4, %v9885_v62  ;;  %v9886_v47 = vadd.f32 %v18619_v13, %v9709_v26 }
 0x4d7   : > { %v10285_v1 = vadd.f32 %v18140_v15, %v10086_v11  ;;  %v10497_v15 = vadd.f32 (!%p12070_p13), %v12071_v61, %v10479_v33 }
 0x4d8   : > { %v10283_v23 = vadd.f32 %v18142_v24, %v10084_v46  ;;  %v10085_v39 = vadd.f32 %v18620_v56, %v9886_v47  ;;  %10477 = sbr.rel (%p12070_p13) target bundleno = 1261 (0x4ed), region = 52  ;;  %v10481_v24 = vld [vmem:[#allocation2 + $0x18] sm:$0xff] (!%p12070_p13) }
 0x4d9   : > { %v10462_v34 = vadd.f32 %v14182_v16, %v10285_v1  ;;  %v10499_v16 = vadd.f32 (!%p12070_p13), %v12071_v61, %v10481_v24 }
 0x4da   : > { %v10284_v21 = vadd.f32 %v18146_v9, %v10085_v39  ;;  %v10460_v51 = vadd.f32 %v10438_v27, %v10283_v23  ;;  %v10500_v9 = vadd.f32 (!%p12070_p13), %v12071_v61, %v10482_v7  ;;  %v10484_v27 = vld [vmem:[#allocation2 + $0x30] sm:$0xff] (!%p12070_p13) }
 0x4db   : > { %10473 = vst [vmem:[#allocation2 + $0x50] sm:$0xff] %v10462_v34  ;;  %v10502_v60 = vadd.f32 (!%p12070_p13), %v12071_v61, %v10484_v27  ;;  %v10510_v19 = vmax.f32 (!%p12070_p13), %v10499_v16, 0.0 }
 0x4dc   : > { %10471 = vst [vmem:[#allocation2 + $0x40] sm:$0xff] %v10460_v51  ;;  %v10461_v52 = vadd.f32 %v10441_v28, %v10284_v21  ;;  %v10508_v28 = vmax.f32 (!%p12070_p13), %v10497_v15, 0.0  ;;  %v10511_v8 = vmax.f32 (!%p12070_p13), %v10500_v9, 0.0 }
 0x4dd   : > { %v10513_v43 = vmax.f32 (!%p12070_p13), %v10502_v60, 0.0  ;;  %v12105_v36 = vpack.c.bf16 (!%p12070_p13), %v10510_v19, %v10509_v14 }
 0x4de   : > { %10472 = vst [vmem:[#allocation2 + $0x48] sm:$0xff] %v10461_v52  ;;  %v12100_v48 = vpack.c.bf16 (!%p12070_p13), %v10508_v28, %v10507_v53  ;;  %v12110_v37 = vpack.c.bf16 (!%p12070_p13), %v10512_v55, %v10511_v8 }
 0x4df   : > { %12122 = vst [vmem:[%s15972_s5 + $0x8] sm:$0xff] %v12105_v36   ;;  %v12115_v38 = vpack.c.bf16 %v10514_v20, %v10513_v43 }
 0x4e0   : > { %12101 = vst [vmem:[%s15972_s5] sm:$0xff] %v12100_v48   ;;  %12123 = vst [vmem:[%s15972_s5 + $0x10] sm:$0xff] %v12110_v37  }
 0x4e1   : > { %12124 = vst [vmem:[%s15972_s5 + $0x18] sm:$0xff] %v12115_v38  }
 0x4e2   : > { %v10488_v45 = vld [vmem:[#allocation2 + $0x50] sm:$0xff] }
 0x4e3   : > { %v10486_v5 = vld [vmem:[#allocation2 + $0x40] sm:$0xff]  ;;  %v10506_v2 = vadd.f32 %v12071_v61, %v10488_v45 }
 0x4e4   : > { %v10504_v22 = vadd.f32 %v12071_v61, %v10486_v5 }
 0x4e5   : > { %v10487_v6 = vld [vmem:[#allocation2 + $0x48] sm:$0xff]  ;;  %v10517_v57 = vmax.f32 %v10506_v2, 0.0 }
 0x4e6   : > { %v10505_v63 = vadd.f32 %v12071_v61, %v10487_v6  ;;  %v10515_v59 = vmax.f32 %v10504_v22, 0.0 }
 0x4e7   : > { %v12096_v30 = vpack.c.bf16 %v10517_v57, %v10517_v57 }
 0x4e8   : > { %v10516_v35 = vmax.f32 %v10505_v63, 0.0 }
 0x4e9   : > { %10573 = vst [vmem:[%s15972_s5 + $0x28] sm:$0xf] %v12096_v30 }
 0x4ea   : > { %v12120_v41 = vpack.c.bf16 %v10516_v35, %v10515_v59 }
 0x4ec   : > { %12125 = vst [vmem:[%s15972_s5 + $0x20] sm:$0xff] %v12120_v41  }
 0x4ed PF: > { %s18622_s19 = sld [smem:[#allocation19_spill]]  ;;  %s18623_s22 = sld [smem:[#allocation20_spill]] }
 0x4ee   : > { %s18625_s23 = sld [smem:[#allocation25_spill]]  ;;  %s10591_s29 = sshll.u32 %s15972_s5, 4  ;;  %s18230_s29 = int_to_ptr.vmem [resolvable:$true] %s10591_s29 }
 0x4ef   : > { %s18626_s6 = sld [smem:[#allocation68_spill]]  ;;  %s18239_s4 = scalar_lea.sflag [#allocation5], %s285_s18 }
 0x4f0   : > { %s15453_s13 = scalar_lea.vmem %s18230_s29, 704  ;;  %s15631_s30 = smov [#allocation9]  }
 0x4f1   : > { %p15454_p6 = scmp.ne.s32.totalorder %s18230_s29, %s15453_s13  ;;  %s15457_s5 = sshll.u32 %s15631_s30, 4  ;;  %s15458_s5 = int_to_ptr.vmem [resolvable:$false] %s15457_s5 }
 0x4f2   : > { %s15459_s2 = scalar_lea.vmem %s15458_s5, 1408  ;;  %p15460_p12 = scmp.lt.s32.totalorder %s18230_s29, %s15458_s5 }
 0x4f3   : > { %s14597_s15 = smul.u32 11, %s18622_s19  ;;  %p15461_p4 = scmp.lt.s32.totalorder %s15459_s2, %s15453_s13 }
 0x4f4   : > { %s14598_s16 = smul.u32 44, %s18623_s22  ;;  %p18627_p5 = scmp.ne.s32.totalorder %s18625_s23, 0 }
 0x4f5   : > { %p15462_p8 = por %p15461_p4, %p15460_p12 }
 0x4f6   : > { %s10588_s7 = sadd.s32 %s14598_s16, %s14597_s15  ;;  %p15455_p7 = pnand %p15454_p6, %p18627_p5 }
 0x4f7   : > { %s12083_s10 = sshll.u32 %s10588_s7, 6 }
 0x4f8   : > { %s18235_s25 = scalar_lea.hbm %s18626_s6, %s12083_s10  ;;  %p15456_p0 = pneg %p15455_p7 }
 0x4fa   : > { %p15463_p2 = pnand %p15462_p8, %p15456_p0 }
 0x4fc   : > { %15466 = shalt.err (!%p15463_p2)
}
 0x4fd   : > { %s15467_s18 = scalar_lea.hbm %s18235_s25, 704  ;;  %s15471_s22 = scalar_lea.hbm %s18626_s6, 5632 }
 0x4fe   : > { %p15468_p1 = scmp.ne.s32.totalorder %s18235_s25, %s15467_s18  ;;  %p15472_p10 = scmp.lt.u32.totalorder %s18235_s25, %s18626_s6 }
 0x4ff   : > { %p15473_p11 = scmp.lt.u32.totalorder %s15471_s22, %s15467_s18  ;;  %p15475_p6 = scmp.lt.u32.totalorder %s15467_s18, %s18235_s25 }
 0x500   : > { %p15469_p3 = pnand %p15468_p1, %p18627_p5 }
 0x501   : > { %p15474_p13 = por %p15473_p11, %p15472_p10 }
 0x502   : > { %p15470_p9 = pneg %p15469_p3 }
 0x503   : > { %p15476_p7 = por %p15475_p6, %p15474_p13 }
 0x505   : > { %p15477_p0 = pnand %p15476_p7, %p15470_p9 }
 0x507   : > { %15480 = shalt.err (!%p15477_p0)
}
 0x508   : > { %s15632_s16 = smov 64   ;;  %s15633_s7 = smov 4  }
 0x509   : > { %14607 = dma.vmem_to_hbm [thread:$0]  (%p18627_p5), %s18230_s29, 704, %s18235_s25, %s18239_s4, %s15632_s16, %s15632_s16, %s15633_s7  }
 0x50a PF: > { %s18628_s10 = sld [smem:[#allocation14_spill]]  ;;  %p14627_p12 = scmp.ge.s32.totalorder %s15623_s27, 2 }
 0x50b   : > { %s18629_s8 = sld [smem:[#allocation26_spill]] }
 0x510   : > { %s10606_s11 = sand.u32 1, %s18628_s10  }
 0x511   : > { %p18630_p4 = scmp.ne.s32.totalorder %s18629_s8, 0  ;;  %s10607_s13 = scalar_lea.sflag [#allocation5], %s10606_s11 }
 0x513   : > { %p14621_p8 = pnand %p14627_p12, %p18630_p4 }
 0x515   : > { %15558 = dma.done.wait (!%p14621_p8), %s10607_s13, 704  }
 0x516   : > { %15560 = vsyncadd (!%p14621_p8), %s10607_s13, 4294966592  ;;  %s22_s27 = sadd.s32 1, %s15623_s27   ;;  %s18632_s5 = sld [smem:[#allocation15_spill]] }
 0x517   : > { %p18268_p2 = scmp.ge.s32.totalorder %s22_s27, 58   ;;  %s18633_s23 = smov %s15859_s12 }
 0x518   : > { %s18634_s15 = sld [smem:[#allocation16_spill]]  ;;  %s18635_s29 = sld [smem:[#allocation30_spill]] }
 0x519   : > { %s18636_s18 = sld [smem:[#allocation17_spill]]  ;;  %s18637_s22 = sld [smem:[#allocation21_spill]] }
 0x51a   : > { %s18638_s25 = sld [smem:[#allocation28_spill]]  ;;  %s18639_s4 = sld [smem:[#allocation29_spill]] }
 0x51b   : > { %s18641_s13 = smov %s15571_s14  ;;  %s18642_s14 = smov %s18633_s23 }
 0x51c   : > { %s18640_s12 = smov %s18632_s5  ;;  %s18643_s16 = smov %s15583_s17 }
 0x51d   : > { %s18645_s19 = smov %s15595_s20  ;;  %s18646_s20 = smov %s15854_s3 }
 0x51e   : > { %s18644_s17 = smov %s18635_s29  ;;  %s18647_s21 = smov %s15611_s24 }
 0x51f   : > { %s18648_s23 = smov %s15619_s26  ;;  %s18651_s26 = smov %s18661_s9 }
 0x520   : > { %s18649_s24 = smov %s18638_s25  ;;  %s18650_s25 = smov %s18639_s4 }
 0x521   :  { %21 = sbr.rel (!%p18268_p2) target bundleno = 16 (0x10), region = 151 }
 0x528   :  { %10612 = vsyncpa [#allocation4], 1 }
 0x529   :  { %10614 = vsyncpa [#allocation4 + $0x1], 1 }
 0x52a   :  { %10615 = vsyncpa [#allocation7], 1 }
 0x52b   :  { %10617 = vsyncpa [#allocation7 + $0x1], 1 }
 0x52c   :  { %10618 = vsyncpa [#allocation5], 1 }
 0x52d   :  { %10620 = vsyncpa [#allocation5 + $0x1], 1 }

</bundles_post_ra>
